<compile_context>
chip_gen: v5e
topology: v5e:2x2
jax: 0.10.0
libtpu: 0.0.40
codegen_flags: <defaults>
</compile_context>

<pallas_src>
import functools
import math

import jax
import jax.numpy as jnp
from jax.experimental import pallas as pl
from jax.experimental.pallas import tpu as pltpu


# ----------------------------- Pallas kernels ------------------------------

def _linear_kernel(x_ref, w_ref, b_ref, o_ref):
    o_ref[...] = (jnp.dot(x_ref[...], w_ref[...],
                          preferred_element_type=jnp.float32) + b_ref[...])


def linear(x, w, b):
    """y = x @ w + b.  x:[M,K], w:[K,N], b:[1,N] -> [M,N].  Whole arrays in VMEM."""
    M, _ = x.shape
    N = w.shape[1]
    return pl.pallas_call(
        _linear_kernel,
        out_shape=jax.ShapeDtypeStruct((M, N), jnp.float32),
    )(x, w, b)


def _bilstm_kernel(gxf_ref, gxb_ref, whhf_ref, whhb_ref, hsf_ref, hsb_ref,
                   hf, cf, hb, cb):
    """One grid step = one timestep for BOTH directions (fwd at t, bwd at T-1-t)."""
    t = pl.program_id(0)

    @pl.when(t == 0)
    def _():
        hf[...] = jnp.zeros_like(hf)
        cf[...] = jnp.zeros_like(cf)
        hb[...] = jnp.zeros_like(hb)
        cb[...] = jnp.zeros_like(cb)

    H = hf.shape[-1]

    def cell(gates, c_prev):
        # PyTorch LSTM gate order: i, f, g, o  (slices are 128-lane aligned)
        i = jax.nn.sigmoid(gates[:, 0 * H:1 * H])
        f = jax.nn.sigmoid(gates[:, 1 * H:2 * H])
        g = jnp.tanh(gates[:, 2 * H:3 * H])
        o = jax.nn.sigmoid(gates[:, 3 * H:4 * H])
        c_new = f * c_prev + i * g
        return o * jnp.tanh(c_new), c_new

    gf = gxf_ref[0] + jnp.dot(hf[...], whhf_ref[...],
                              preferred_element_type=jnp.float32)
    hfn, cfn = cell(gf, cf[...])
    hf[...] = hfn
    cf[...] = cfn
    hsf_ref[0] = hfn

    gb = gxb_ref[0] + jnp.dot(hb[...], whhb_ref[...],
                              preferred_element_type=jnp.float32)
    hbn, cbn = cell(gb, cb[...])
    hb[...] = hbn
    cb[...] = cbn
    hsb_ref[0] = hbn


def bilstm_layer(x_tm, lp):
    """Fused bidirectional LSTM layer.  x_tm:[T,B,In] -> [T,B,2H]."""
    T, B, In = x_tm.shape
    H = lp["whh_f"].shape[0]
    # Single lane-dense gx projection for both directions: [T*B, 8H].
    gx = linear(x_tm.reshape(T * B, In), lp["w_ih_cat"], lp["b_cat"])
    gx = gx.reshape(T, B, 8 * H)

    hs_f, hs_b = pl.pallas_call(
        _bilstm_kernel,
        grid=(T,),
        in_specs=[
            # forward gx: time block t, first 4H columns (block col 0)
            pl.BlockSpec((1, B, 4 * H), lambda t: (t, 0, 0)),
            # backward gx: time block T-1-t, second 4H columns (block col 1)
            pl.BlockSpec((1, B, 4 * H), lambda t: (T - 1 - t, 0, 1)),
            # recurrent weights stay resident across all grid steps
            pl.BlockSpec((H, 4 * H), lambda t: (0, 0)),
            pl.BlockSpec((H, 4 * H), lambda t: (0, 0)),
        ],
        out_specs=[
            pl.BlockSpec((1, B, H), lambda t: (t, 0, 0)),
            pl.BlockSpec((1, B, H), lambda t: (T - 1 - t, 0, 0)),
        ],
        out_shape=(jax.ShapeDtypeStruct((T, B, H), jnp.float32),
                   jax.ShapeDtypeStruct((T, B, H), jnp.float32)),
        scratch_shapes=[pltpu.VMEM((B, H), jnp.float32)] * 4,  # hf, cf, hb, cb
        compiler_params=pltpu.CompilerParams(
            dimension_semantics=("arbitrary",)),
    )(gx, gx, lp["whh_f"], lp["whh_b"])

    return jnp.concatenate([hs_f, hs_b], axis=-1)  # [T, B, 2H]


def _attn_block_kernel(xq_ref, xkv_ref, wq_ref, wk_ref, wv_ref,
                       bq_ref, bk_ref, bv_ref, wo_ref, bo_ref,
                       g_ref, b_ref, o_ref, *, B, Tq, Tk, eps):
    """Fused MHA block: QKV proj + SDPA + out-proj + residual + LayerNorm."""
    nhead, D, hd = wq_ref.shape
    scale = 1.0 / math.sqrt(hd)
    xq = xq_ref[...]                              # [B*Tq, D]
    xkv = xkv_ref[...]                            # [B*Tk, D]

    acc = jnp.zeros((B * Tq, D), jnp.float32)
    for h in range(nhead):                        # static unroll over 4 heads
        qh = (jnp.dot(xq, wq_ref[h], preferred_element_type=jnp.float32)
              + bq_ref[h]).reshape(B, Tq, hd)
        kh = (jnp.dot(xkv, wk_ref[h], preferred_element_type=jnp.float32)
              + bk_ref[h]).reshape(B, Tk, hd)
        vh = (jnp.dot(xkv, wv_ref[h], preferred_element_type=jnp.float32)
              + bv_ref[h]).reshape(B, Tk, hd)
        s = jnp.einsum("bqd,bkd->bqk", qh, kh,
                       preferred_element_type=jnp.float32) * scale
        m = jnp.max(s, axis=-1, keepdims=True)
        p = jnp.exp(s - m)
        p = p * pl.reciprocal(jnp.sum(p, axis=-1, keepdims=True), approx=True)
        oh = jnp.einsum("bqk,bkd->bqd", p, vh,
                        preferred_element_type=jnp.float32)
        acc = acc + jnp.dot(oh.reshape(B * Tq, hd), wo_ref[h],
                            preferred_element_type=jnp.float32)

    y = xq + acc + bo_ref[...]                    # residual (dropout = identity)
    mu = jnp.mean(y, axis=-1, keepdims=True)
    var = jnp.mean((y - mu) ** 2, axis=-1, keepdims=True)
    o_ref[...] = (y - mu) * jax.lax.rsqrt(var + eps) * g_ref[...] + b_ref[...]


def attn_block(xq, xkv, ap, ln, B, Tq, Tk):
    D = xq.shape[-1]
    return pl.pallas_call(
        functools.partial(_attn_block_kernel, B=B, Tq=Tq, Tk=Tk, eps=1e-5),
        out_shape=jax.ShapeDtypeStruct((B * Tq, D), jnp.float32),
    )(xq, xkv, ap["wq"], ap["wk"], ap["wv"], ap["bq"], ap["bk"], ap["bv"],
      ap["wo"], ap["bo"], ln["g"], ln["b"])


def _ffn_block_kernel(x_ref, w1_ref, b1_ref, w2_ref, b2_ref, g_ref, b_ref,
                      o_ref, *, eps):
    """Fused FFN block: linear1 + relu + linear2 + residual + LayerNorm."""
    x = x_ref[...]
    h = jnp.maximum(jnp.dot(x, w1_ref[...],
                            preferred_element_type=jnp.float32) + b1_ref[...], 0.0)
    y = x + jnp.dot(h, w2_ref[...],
                    preferred_element_type=jnp.float32) + b2_ref[...]
    mu = jnp.mean(y, axis=-1, keepdims=True)
    var = jnp.mean((y - mu) ** 2, axis=-1, keepdims=True)
    o_ref[...] = (y - mu) * jax.lax.rsqrt(var + eps) * g_ref[...] + b_ref[...]


def ffn_block(x, lp, ln):
    return pl.pallas_call(
        functools.partial(_ffn_block_kernel, eps=1e-5),
        out_shape=jax.ShapeDtypeStruct(x.shape, jnp.float32),
    )(x, lp["w1"], lp["b1"], lp["w2"], lp["b2"], ln["g"], ln["b"])


def _head_kernel(x_ref, g_ref, b_ref, aw1_ref, ab1_ref, aw2_ref, ab2_ref,
                 fw1_ref, fb1_ref, fw2_ref, fb2_ref, o_ref, *, B, T, eps):
    """Final LayerNorm + attention pooling over time + fc head.

    Output is a lane-dense [B, 128] slab whose every column holds the scalar
    result; the wrapper slices column 0."""
    D = x_ref.shape[-1]
    x = x_ref[...]                                           # [B*T, D]
    mu = jnp.mean(x, axis=-1, keepdims=True)
    var = jnp.mean((x - mu) ** 2, axis=-1, keepdims=True)
    xn = (x - mu) * jax.lax.rsqrt(var + eps) * g_ref[...] + b_ref[...]

    # attention-pool scores: tanh(xn @ W1 + b1) @ w2 + b2  (w2 given as [1, D] row)
    hh = jnp.tanh(jnp.dot(xn, aw1_ref[...],
                          preferred_element_type=jnp.float32) + ab1_ref[...])
    sc = jnp.sum(hh * aw2_ref[...], axis=-1, keepdims=True) + ab2_ref[...]   # [B*T, 1]
    sc3 = sc.reshape(B, T, 1)
    m = jnp.max(sc3, axis=1, keepdims=True)
    p = jnp.exp(sc3 - m)
    p = p * pl.reciprocal(jnp.sum(p, axis=1, keepdims=True), approx=True)
    x3 = xn.reshape(B, T, D)
    pooled = jnp.sum(x3 * p, axis=1)                          # [B, D]

    z = jnp.maximum(jnp.dot(pooled, fw1_ref[...],
                            preferred_element_type=jnp.float32) + fb1_ref[...], 0.0)
    res = jnp.sum(z * fw2_ref[...], axis=-1, keepdims=True) + fb2_ref[...]   # [B, 1]
    o_ref[...] = jnp.broadcast_to(res, o_ref.shape)


# ----------------------------- model pieces --------------------------------

def positional_encoding(seq_len, d_model):
    pos = jnp.arange(seq_len, dtype=jnp.float32)[:, None]
    div = jnp.exp(-(jnp.arange(0, d_model, 2, dtype=jnp.float32)
                    * math.log(10000.0) / d_model))
    pe = jnp.zeros((seq_len, d_model), jnp.float32)
    pe = pe.at[:, 0::2].set(jnp.sin(pos * div))
    pe = pe.at[:, 1::2].set(jnp.cos(pos * div))
    return pe


def emodel_forward(params, x):
    B, T, F = x.shape
    H = params["lstm"][0]["whh_f"].shape[0]
    D = 2 * H

    # Fold feature-importance scaling into the layer-0 input weights (exact).
    fi = params["feature_importance"]
    l0 = dict(params["lstm"][0])
    l0["w_ih_cat"] = l0["w_ih_cat"] * fi[:, None]
    lstm_layers = [l0, params["lstm"][1]]

    # 2-layer bidirectional LSTM, time-major.
    h_tm = jnp.transpose(x, (1, 0, 2))             # [T, B, F]
    for lp in lstm_layers:
        h_tm = bilstm_layer(h_tm, lp)              # [T, B, 2H]
    lstm_out = jnp.transpose(h_tm, (1, 0, 2))      # [B, T, D]

    # Transformer (src == tgt == lstm_out; encoder & decoder PE are identical).
    pe = positional_encoding(T, D)
    enc_in = (lstm_out + pe[None]).reshape(B * T, D)

    mem = enc_in
    for lp in params["enc"]:
        mem = attn_block(mem, mem, lp["self_attn"], lp["ln1"], B, T, T)
        mem = ffn_block(mem, lp, lp["ln2"])

    out = enc_in
    for lp in params["dec"]:
        out = attn_block(out, out, lp["self_attn"], lp["ln1"], B, T, T)
        out = attn_block(out, mem, lp["cross_attn"], lp["ln2"], B, T, T)
        out = ffn_block(out, lp, lp["ln3"])

    # Final LayerNorm + attention pooling + fc head, fused; lane-dense output.
    res = pl.pallas_call(
        functools.partial(_head_kernel, B=B, T=T, eps=1e-5),
        out_shape=jax.ShapeDtypeStruct((B, 128), jnp.float32),
    )(out, params["final_ln"]["g"], params["final_ln"]["b"],
      params["attn_w1"], params["attn_b1"], params["attn_w2"], params["attn_b2"],
      params["fc_w1"], params["fc_b1"], params["fc_w2"], params["fc_b2"])
    return res[:, 0]                               # [B]


# ----------------------------- parameter init ------------------------------

def init_params(key, feature_dim, hidden=128, d_model=256, nhead=4, ffn=1024):
    keys = iter(jax.random.split(key, 128))

    def w(shape, scale=0.05):
        return scale * jax.random.normal(next(keys), shape, jnp.float32)

    hd = d_model // nhead
    params = {"feature_importance": jnp.ones((feature_dim,), jnp.float32)}

    lstm = []
    in_sizes = [feature_dim, 2 * hidden]
    for layer in range(2):
        w_f = w((in_sizes[layer], 4 * hidden))
        w_b = w((in_sizes[layer], 4 * hidden))
        b_f = w((1, 4 * hidden))                   # = b_ih + b_hh (forward)
        b_b = w((1, 4 * hidden))                   # = b_ih + b_hh (backward)
        lstm.append(dict(
            w_ih_cat=jnp.concatenate([w_f, w_b], axis=1),   # [In, 8H]
            b_cat=jnp.concatenate([b_f, b_b], axis=1),      # [1, 8H]
            whh_f=w((hidden, 4 * hidden)),
            whh_b=w((hidden, 4 * hidden)),
        ))
    params["lstm"] = lstm

    def mha_params():
        return dict(wq=w((nhead, d_model, hd)), wk=w((nhead, d_model, hd)),
                    wv=w((nhead, d_model, hd)),
                    bq=w((nhead, 1, hd)), bk=w((nhead, 1, hd)), bv=w((nhead, 1, hd)),
                    wo=w((nhead, hd, d_model)), bo=w((1, d_model)))

    def ln_params():
        return dict(g=jnp.ones((1, d_model), jnp.float32),
                    b=jnp.zeros((1, d_model), jnp.float32))

    params["enc"] = [dict(self_attn=mha_params(),
                          w1=w((d_model, ffn)), b1=w((1, ffn)),
                          w2=w((ffn, d_model)), b2=w((1, d_model)),
                          ln1=ln_params(), ln2=ln_params())
                     for _ in range(2)]
    params["dec"] = [dict(self_attn=mha_params(), cross_attn=mha_params(),
                          w1=w((d_model, ffn)), b1=w((1, ffn)),
                          w2=w((ffn, d_model)), b2=w((1, d_model)),
                          ln1=ln_params(), ln2=ln_params(), ln3=ln_params())
                     for _ in range(2)]
    params["final_ln"] = ln_params()

    params["attn_w1"] = w((d_model, d_model))
    params["attn_b1"] = w((1, d_model))
    params["attn_w2"] = w((1, d_model))            # stored as a row ([D,1].T)
    params["attn_b2"] = w((1, 1))
    params["fc_w1"] = w((d_model, hidden))
    params["fc_b1"] = w((1, hidden))
    params["fc_w2"] = w((1, hidden))               # stored as a row ([H,1].T)
    params["fc_b2"] = w((1, 1))
    return params


# --------------------------------- main -------------------------------------

if __name__ == "__main__":
    B, T, F = 2, 8, 16
    key = jax.random.PRNGKey(0)
    pkey, xkey = jax.random.split(key)
    params = init_params(pkey, F)
    x = jax.random.normal(xkey, (B, T, F), jnp.float32)

    out = jax.jit(emodel_forward)(params, x)
    jax.block_until_ready(out)
    assert out.shape == (B,) and out.dtype == jnp.float32
    print("KERNEL_OK")
</pallas_src>

<mosaic_0001>
module attributes {stable_mosaic.version = 11 : i64} {
  func.func @_linear_kernel(%arg0: memref<16x16xf32, #tpu.memory_space<vmem>>, %arg1: memref<16x1024xf32, #tpu.memory_space<vmem>>, %arg2: memref<1x1024xf32, #tpu.memory_space<vmem>>, %arg3: memref<16x1024xf32, #tpu.memory_space<vmem>>) attributes {dimension_semantics = [], scalar_prefetch = 0 : i64, scratch_operands = 0 : i64, tpu.core_type = #tpu.core_type<tc>} {
    %c0 = arith.constant 0 : index
    %c0_0 = arith.constant 0 : index
    %0 = vector.load %arg0[%c0, %c0_0] : memref<16x16xf32, #tpu.memory_space<vmem>>, vector<16x16xf32>
    %c0_1 = arith.constant 0 : index
    %c0_2 = arith.constant 0 : index
    %1 = vector.load %arg1[%c0_1, %c0_2] : memref<16x1024xf32, #tpu.memory_space<vmem>>, vector<16x1024xf32>
    %cst = arith.constant dense<0.000000e+00> : vector<16x1024xf32>
    %2 = tpu.matmul %0, %1, %cst {dimension_numbers = #tpu.dot_dimension_numbers<[1], [0], [0], [1], [0, 0, 1, 1], [], []>} : vector<16x16xf32>, vector<16x1024xf32>, vector<16x1024xf32> -> vector<16x1024xf32>
    %c0_3 = arith.constant 0 : index
    %c0_4 = arith.constant 0 : index
    %3 = vector.load %arg2[%c0_3, %c0_4] : memref<1x1024xf32, #tpu.memory_space<vmem>>, vector<1x1024xf32>
    %4 = vector.broadcast %3 : vector<1x1024xf32> to vector<16x1024xf32>
    %5 = arith.addf %2, %4 : vector<16x1024xf32>
    %c0_5 = arith.constant 0 : index
    %c0_6 = arith.constant 0 : index
    %6 = vector.load %arg3[%c0_5, %c0_6] : memref<16x1024xf32, #tpu.memory_space<vmem>>, vector<16x1024xf32>
    tpu.vector_store %arg3[%c0_5, %c0_6], %5 {strides = array<i32>} : memref<16x1024xf32, #tpu.memory_space<vmem>>, vector<16x1024xf32>,
    return
  }
}

module attributes {stable_mosaic.version = 11 : i64} {
  func.func @_bilstm_kernel(%arg0: i32, %arg1: memref<1x2x512xf32, #tpu.memory_space<vmem>>, %arg2: memref<1x2x512xf32, #tpu.memory_space<vmem>>, %arg3: memref<128x512xf32, #tpu.memory_space<vmem>>, %arg4: memref<128x512xf32, #tpu.memory_space<vmem>>, %arg5: memref<1x2x128xf32, #tpu.memory_space<vmem>>, %arg6: memref<1x2x128xf32, #tpu.memory_space<vmem>>, %arg7: memref<2x128xf32, #tpu.memory_space<vmem>>, %arg8: memref<2x128xf32, #tpu.memory_space<vmem>>, %arg9: memref<2x128xf32, #tpu.memory_space<vmem>>, %arg10: memref<2x128xf32, #tpu.memory_space<vmem>>) attributes {dimension_semantics = [#tpu.dimension_semantics<arbitrary>], iteration_bounds = array<i64: 8>, scalar_prefetch = 0 : i64, scratch_operands = 4 : i64, tpu.core_type = #tpu.core_type<tc>, window_params = [{transform_indices = @transform_0, window_bounds = array<i64: 1, 2, 512>}, {transform_indices = @transform_1, window_bounds = array<i64: 1, 2, 512>}, {pipeline_mode = #tpu.pipeline_mode<synchronous>, transform_indices = @transform_2, window_bounds = array<i64: 128, 512>}, {pipeline_mode = #tpu.pipeline_mode<synchronous>, transform_indices = @transform_3, window_bounds = array<i64: 128, 512>}, {transform_indices = @transform_4, window_bounds = array<i64: 1, 2, 128>}, {transform_indices = @transform_5, window_bounds = array<i64: 1, 2, 128>}]} {
    %c0_i32 = arith.constant 0 : i32
    %0 = arith.cmpi eq, %arg0, %c0_i32 : i32
    %1 = arith.extui %0 : i1 to i32
    %c0_i32_0 = arith.constant 0 : i32
    %2 = arith.cmpi ne, %1, %c0_i32_0 : i32
    scf.if %2 {
      %cst_39 = arith.constant 0.000000e+00 : f32
      %77 = vector.broadcast %cst_39 : f32 to vector<2x128xf32>
      %c0_40 = arith.constant 0 : index
      %c0_41 = arith.constant 0 : index
      %78 = vector.load %arg7[%c0_40, %c0_41] : memref<2x128xf32, #tpu.memory_space<vmem>>, vector<2x128xf32>
      tpu.vector_store %arg7[%c0_40, %c0_41], %77 {strides = array<i32>} : memref<2x128xf32, #tpu.memory_space<vmem>>, vector<2x128xf32>,
      %cst_42 = arith.constant 0.000000e+00 : f32
      %79 = vector.broadcast %cst_42 : f32 to vector<2x128xf32>
      %c0_43 = arith.constant 0 : index
      %c0_44 = arith.constant 0 : index
      %80 = vector.load %arg8[%c0_43, %c0_44] : memref<2x128xf32, #tpu.memory_space<vmem>>, vector<2x128xf32>
      tpu.vector_store %arg8[%c0_43, %c0_44], %79 {strides = array<i32>} : memref<2x128xf32, #tpu.memory_space<vmem>>, vector<2x128xf32>,
      %cst_45 = arith.constant 0.000000e+00 : f32
      %81 = vector.broadcast %cst_45 : f32 to vector<2x128xf32>
      %c0_46 = arith.constant 0 : index
      %c0_47 = arith.constant 0 : index
      %82 = vector.load %arg9[%c0_46, %c0_47] : memref<2x128xf32, #tpu.memory_space<vmem>>, vector<2x128xf32>
      tpu.vector_store %arg9[%c0_46, %c0_47], %81 {strides = array<i32>} : memref<2x128xf32, #tpu.memory_space<vmem>>, vector<2x128xf32>,
      %cst_48 = arith.constant 0.000000e+00 : f32
      %83 = vector.broadcast %cst_48 : f32 to vector<2x128xf32>
      %c0_49 = arith.constant 0 : index
      %c0_50 = arith.constant 0 : index
      %84 = vector.load %arg10[%c0_49, %c0_50] : memref<2x128xf32, #tpu.memory_space<vmem>>, vector<2x128xf32>
      tpu.vector_store %arg10[%c0_49, %c0_50], %83 {strides = array<i32>} : memref<2x128xf32, #tpu.memory_space<vmem>>, vector<2x128xf32>,
    } else {
    }
    %c0 = arith.constant 0 : index
    %c0_1 = arith.constant 0 : index
    %c0_2 = arith.constant 0 : index
    %3 = vector.load %arg1[%c0, %c0_1, %c0_2] : memref<1x2x512xf32, #tpu.memory_space<vmem>>, vector<1x2x512xf32>
    %4 = vector.shape_cast %3 : vector<1x2x512xf32> to vector<2x512xf32>
    %c0_3 = arith.constant 0 : index
    %c0_4 = arith.constant 0 : index
    %5 = vector.load %arg7[%c0_3, %c0_4] : memref<2x128xf32, #tpu.memory_space<vmem>>, vector<2x128xf32>
    %c0_5 = arith.constant 0 : index
    %c0_6 = arith.constant 0 : index
    %6 = vector.load %arg3[%c0_5, %c0_6] : memref<128x512xf32, #tpu.memory_space<vmem>>, vector<128x512xf32>
    %cst = arith.constant dense<0.000000e+00> : vector<2x512xf32>
    %7 = tpu.matmul %5, %6, %cst {dimension_numbers = #tpu.dot_dimension_numbers<[1], [0], [0], [1], [0, 0, 1, 1], [], []>} : vector<2x128xf32>, vector<128x512xf32>, vector<2x512xf32> -> vector<2x512xf32>
    %8 = arith.addf %4, %7 : vector<2x512xf32>
    %c0_7 = arith.constant 0 : index
    %c0_8 = arith.constant 0 : index
    %9 = vector.load %arg8[%c0_7, %c0_8] : memref<2x128xf32, #tpu.memory_space<vmem>>, vector<2x128xf32>
    %10 = vector.extract_strided_slice %8 {offsets = [0, 0], sizes = [2, 128], strides = [1, 1]} : vector<2x512xf32> to vector<2x128xf32>
    %11 = arith.negf %10 : vector<2x128xf32>
    %12 = math.exp %11 : vector<2x128xf32>
    %cst_9 = arith.constant 1.000000e+00 : f32
    %13 = vector.broadcast %cst_9 : f32 to vector<2x128xf32>
    %14 = arith.addf %13, %12 : vector<2x128xf32>
    %15 = arith.divf %13, %14 : vector<2x128xf32>
    %16 = vector.extract_strided_slice %8 {offsets = [0, 128], sizes = [2, 128], strides = [1, 1]} : vector<2x512xf32> to vector<2x128xf32>
    %17 = arith.negf %16 : vector<2x128xf32>
    %18 = math.exp %17 : vector<2x128xf32>
    %cst_10 = arith.constant 1.000000e+00 : f32
    %19 = vector.broadcast %cst_10 : f32 to vector<2x128xf32>
    %20 = arith.addf %19, %18 : vector<2x128xf32>
    %21 = arith.divf %19, %20 : vector<2x128xf32>
    %22 = vector.extract_strided_slice %8 {offsets = [0, 256], sizes = [2, 128], strides = [1, 1]} : vector<2x512xf32> to vector<2x128xf32>
    %23 = math.tanh %22 : vector<2x128xf32>
    %24 = vector.extract_strided_slice %8 {offsets = [0, 384], sizes = [2, 128], strides = [1, 1]} : vector<2x512xf32> to vector<2x128xf32>
    %25 = arith.negf %24 : vector<2x128xf32>
    %26 = math.exp %25 : vector<2x128xf32>
    %cst_11 = arith.constant 1.000000e+00 : f32
    %27 = vector.broadcast %cst_11 : f32 to vector<2x128xf32>
    %28 = arith.addf %27, %26 : vector<2x128xf32>
    %29 = arith.divf %27, %28 : vector<2x128xf32>
    %30 = arith.mulf %21, %9 : vector<2x128xf32>
    %31 = arith.mulf %15, %23 : vector<2x128xf32>
    %32 = arith.addf %30, %31 : vector<2x128xf32>
    %33 = math.tanh %32 : vector<2x128xf32>
    %34 = arith.mulf %29, %33 : vector<2x128xf32>
    %c0_12 = arith.constant 0 : index
    %c0_13 = arith.constant 0 : index
    %35 = vector.load %arg7[%c0_12, %c0_13] : memref<2x128xf32, #tpu.memory_space<vmem>>, vector<2x128xf32>
    tpu.vector_store %arg7[%c0_12, %c0_13], %34 {strides = array<i32>} : memref<2x128xf32, #tpu.memory_space<vmem>>, vector<2x128xf32>,
    %c0_14 = arith.constant 0 : index
    %c0_15 = arith.constant 0 : index
    %36 = vector.load %arg8[%c0_14, %c0_15] : memref<2x128xf32, #tpu.memory_space<vmem>>, vector<2x128xf32>
    tpu.vector_store %arg8[%c0_14, %c0_15], %32 {strides = array<i32>} : memref<2x128xf32, #tpu.memory_space<vmem>>, vector<2x128xf32>,
    %c0_16 = arith.constant 0 : index
    %c0_17 = arith.constant 0 : index
    %c0_18 = arith.constant 0 : index
    %37 = vector.load %arg5[%c0_16, %c0_17, %c0_18] : memref<1x2x128xf32, #tpu.memory_space<vmem>>, vector<1x2x128xf32>
    %38 = vector.shape_cast %37 : vector<1x2x128xf32> to vector<2x128xf32>
    %39 = vector.shape_cast %34 : vector<2x128xf32> to vector<1x2x128xf32>
    tpu.vector_store %arg5[%c0_16, %c0_17, %c0_18], %39 {strides = array<i32>} : memref<1x2x128xf32, #tpu.memory_space<vmem>>, vector<1x2x128xf32>,
    %c0_19 = arith.constant 0 : index
    %c0_20 = arith.constant 0 : index
    %c0_21 = arith.constant 0 : index
    %40 = vector.load %arg2[%c0_19, %c0_20, %c0_21] : memref<1x2x512xf32, #tpu.memory_space<vmem>>, vector<1x2x512xf32>
    %41 = vector.shape_cast %40 : vector<1x2x512xf32> to vector<2x512xf32>
    %c0_22 = arith.constant 0 : index
    %c0_23 = arith.constant 0 : index
    %42 = vector.load %arg9[%c0_22, %c0_23] : memref<2x128xf32, #tpu.memory_space<vmem>>, vector<2x128xf32>
    %c0_24 = arith.constant 0 : index
    %c0_25 = arith.constant 0 : index
    %43 = vector.load %arg4[%c0_24, %c0_25] : memref<128x512xf32, #tpu.memory_space<vmem>>, vector<128x512xf32>
    %cst_26 = arith.constant dense<0.000000e+00> : vector<2x512xf32>
    %44 = tpu.matmul %42, %43, %cst_26 {dimension_numbers = #tpu.dot_dimension_numbers<[1], [0], [0], [1], [0, 0, 1, 1], [], []>} : vector<2x128xf32>, vector<128x512xf32>, vector<2x512xf32> -> vector<2x512xf32>
    %45 = arith.addf %41, %44 : vector<2x512xf32>
    %c0_27 = arith.constant 0 : index
    %c0_28 = arith.constant 0 : index
    %46 = vector.load %arg10[%c0_27, %c0_28] : memref<2x128xf32, #tpu.memory_space<vmem>>, vector<2x128xf32>
    %47 = vector.extract_strided_slice %45 {offsets = [0, 0], sizes = [2, 128], strides = [1, 1]} : vector<2x512xf32> to vector<2x128xf32>
    %48 = arith.negf %47 : vector<2x128xf32>
    %49 = math.exp %48 : vector<2x128xf32>
    %cst_29 = arith.constant 1.000000e+00 : f32
    %50 = vector.broadcast %cst_29 : f32 to vector<2x128xf32>
    %51 = arith.addf %50, %49 : vector<2x128xf32>
    %52 = arith.divf %50, %51 : vector<2x128xf32>
    %53 = vector.extract_strided_slice %45 {offsets = [0, 128], sizes = [2, 128], strides = [1, 1]} : vector<2x512xf32> to vector<2x128xf32>
    %54 = arith.negf %53 : vector<2x128xf32>
    %55 = math.exp %54 : vector<2x128xf32>
    %cst_30 = arith.constant 1.000000e+00 : f32
    %56 = vector.broadcast %cst_30 : f32 to vector<2x128xf32>
    %57 = arith.addf %56, %55 : vector<2x128xf32>
    %58 = arith.divf %56, %57 : vector<2x128xf32>
    %59 = vector.extract_strided_slice %45 {offsets = [0, 256], sizes = [2, 128], strides = [1, 1]} : vector<2x512xf32> to vector<2x128xf32>
    %60 = math.tanh %59 : vector<2x128xf32>
    %61 = vector.extract_strided_slice %45 {offsets = [0, 384], sizes = [2, 128], strides = [1, 1]} : vector<2x512xf32> to vector<2x128xf32>
    %62 = arith.negf %61 : vector<2x128xf32>
    %63 = math.exp %62 : vector<2x128xf32>
    %cst_31 = arith.constant 1.000000e+00 : f32
    %64 = vector.broadcast %cst_31 : f32 to vector<2x128xf32>
    %65 = arith.addf %64, %63 : vector<2x128xf32>
    %66 = arith.divf %64, %65 : vector<2x128xf32>
    %67 = arith.mulf %58, %46 : vector<2x128xf32>
    %68 = arith.mulf %52, %60 : vector<2x128xf32>
    %69 = arith.addf %67, %68 : vector<2x128xf32>
    %70 = math.tanh %69 : vector<2x128xf32>
    %71 = arith.mulf %66, %70 : vector<2x128xf32>
    %c0_32 = arith.constant 0 : index
    %c0_33 = arith.constant 0 : index
    %72 = vector.load %arg9[%c0_32, %c0_33] : memref<2x128xf32, #tpu.memory_space<vmem>>, vector<2x128xf32>
    tpu.vector_store %arg9[%c0_32, %c0_33], %71 {strides = array<i32>} : memref<2x128xf32, #tpu.memory_space<vmem>>, vector<2x128xf32>,
    %c0_34 = arith.constant 0 : index
    %c0_35 = arith.constant 0 : index
    %73 = vector.load %arg10[%c0_34, %c0_35] : memref<2x128xf32, #tpu.memory_space<vmem>>, vector<2x128xf32>
    tpu.vector_store %arg10[%c0_34, %c0_35], %69 {strides = array<i32>} : memref<2x128xf32, #tpu.memory_space<vmem>>, vector<2x128xf32>,
    %c0_36 = arith.constant 0 : index
    %c0_37 = arith.constant 0 : index
    %c0_38 = arith.constant 0 : index
    %74 = vector.load %arg6[%c0_36, %c0_37, %c0_38] : memref<1x2x128xf32, #tpu.memory_space<vmem>>, vector<1x2x128xf32>
    %75 = vector.shape_cast %74 : vector<1x2x128xf32> to vector<2x128xf32>
    %76 = vector.shape_cast %71 : vector<2x128xf32> to vector<1x2x128xf32>
    tpu.vector_store %arg6[%c0_36, %c0_37, %c0_38], %76 {strides = array<i32>} : memref<1x2x128xf32, #tpu.memory_space<vmem>>, vector<1x2x128xf32>,
    return
  }
  func.func @transform_0(%arg0: i32) -> (i32, i32, i32) {
    %c0_i32 = arith.constant 0 : i32
    %c0_i32_0 = arith.constant 0 : i32
    %c0_i32_1 = arith.constant 0 : i32
    return %arg0, %c0_i32, %c0_i32_0 : i32, i32, i32
  }
  func.func @transform_1(%arg0: i32) -> (i32, i32, i32) {
    %c7_i32 = arith.constant 7 : i32
    %0 = arith.subi %c7_i32, %arg0 : i32
    %c0_i32 = arith.constant 0 : i32
    %c1_i32 = arith.constant 1 : i32
    %c0_i32_0 = arith.constant 0 : i32
    return %0, %c0_i32, %c1_i32 : i32, i32, i32
  }
  func.func @transform_2(%arg0: i32) -> (i32, i32) {
    %c0_i32 = arith.constant 0 : i32
    %c0_i32_0 = arith.constant 0 : i32
    %c0_i32_1 = arith.constant 0 : i32
    return %c0_i32, %c0_i32_0 : i32, i32
  }
  func.func @transform_3(%arg0: i32) -> (i32, i32) {
    %c0_i32 = arith.constant 0 : i32
    %c0_i32_0 = arith.constant 0 : i32
    %c0_i32_1 = arith.constant 0 : i32
    return %c0_i32, %c0_i32_0 : i32, i32
  }
  func.func @transform_4(%arg0: i32) -> (i32, i32, i32) {
    %c0_i32 = arith.constant 0 : i32
    %c0_i32_0 = arith.constant 0 : i32
    %c0_i32_1 = arith.constant 0 : i32
    return %arg0, %c0_i32, %c0_i32_0 : i32, i32, i32
  }
  func.func @transform_5(%arg0: i32) -> (i32, i32, i32) {
    %c7_i32 = arith.constant 7 : i32
    %0 = arith.subi %c7_i32, %arg0 : i32
    %c0_i32 = arith.constant 0 : i32
    %c0_i32_0 = arith.constant 0 : i32
    %c0_i32_1 = arith.constant 0 : i32
    return %0, %c0_i32, %c0_i32_0 : i32, i32, i32
  }
}

module attributes {stable_mosaic.version = 11 : i64} {
  func.func @_bilstm_kernel(%arg0: i32, %arg1: memref<1x2x512xf32, #tpu.memory_space<vmem>>, %arg2: memref<1x2x512xf32, #tpu.memory_space<vmem>>, %arg3: memref<128x512xf32, #tpu.memory_space<vmem>>, %arg4: memref<128x512xf32, #tpu.memory_space<vmem>>, %arg5: memref<1x2x128xf32, #tpu.memory_space<vmem>>, %arg6: memref<1x2x128xf32, #tpu.memory_space<vmem>>, %arg7: memref<2x128xf32, #tpu.memory_space<vmem>>, %arg8: memref<2x128xf32, #tpu.memory_space<vmem>>, %arg9: memref<2x128xf32, #tpu.memory_space<vmem>>, %arg10: memref<2x128xf32, #tpu.memory_space<vmem>>) attributes {dimension_semantics = [#tpu.dimension_semantics<arbitrary>], iteration_bounds = array<i64: 8>, scalar_prefetch = 0 : i64, scratch_operands = 4 : i64, tpu.core_type = #tpu.core_type<tc>, window_params = [{transform_indices = @transform_0, window_bounds = array<i64: 1, 2, 512>}, {transform_indices = @transform_1, window_bounds = array<i64: 1, 2, 512>}, {pipeline_mode = #tpu.pipeline_mode<synchronous>, transform_indices = @transform_2, window_bounds = array<i64: 128, 512>}, {pipeline_mode = #tpu.pipeline_mode<synchronous>, transform_indices = @transform_3, window_bounds = array<i64: 128, 512>}, {transform_indices = @transform_4, window_bounds = array<i64: 1, 2, 128>}, {transform_indices = @transform_5, window_bounds = array<i64: 1, 2, 128>}]} {
    %c0_i32 = arith.constant 0 : i32
    %0 = arith.cmpi eq, %arg0, %c0_i32 : i32
    %1 = arith.extui %0 : i1 to i32
    %c0_i32_0 = arith.constant 0 : i32
    %2 = arith.cmpi ne, %1, %c0_i32_0 : i32
    scf.if %2 {
      %cst_39 = arith.constant 0.000000e+00 : f32
      %77 = vector.broadcast %cst_39 : f32 to vector<2x128xf32>
      %c0_40 = arith.constant 0 : index
      %c0_41 = arith.constant 0 : index
      %78 = vector.load %arg7[%c0_40, %c0_41] : memref<2x128xf32, #tpu.memory_space<vmem>>, vector<2x128xf32>
      tpu.vector_store %arg7[%c0_40, %c0_41], %77 {strides = array<i32>} : memref<2x128xf32, #tpu.memory_space<vmem>>, vector<2x128xf32>,
      %cst_42 = arith.constant 0.000000e+00 : f32
      %79 = vector.broadcast %cst_42 : f32 to vector<2x128xf32>
      %c0_43 = arith.constant 0 : index
      %c0_44 = arith.constant 0 : index
      %80 = vector.load %arg8[%c0_43, %c0_44] : memref<2x128xf32, #tpu.memory_space<vmem>>, vector<2x128xf32>
      tpu.vector_store %arg8[%c0_43, %c0_44], %79 {strides = array<i32>} : memref<2x128xf32, #tpu.memory_space<vmem>>, vector<2x128xf32>,
      %cst_45 = arith.constant 0.000000e+00 : f32
      %81 = vector.broadcast %cst_45 : f32 to vector<2x128xf32>
      %c0_46 = arith.constant 0 : index
      %c0_47 = arith.constant 0 : index
      %82 = vector.load %arg9[%c0_46, %c0_47] : memref<2x128xf32, #tpu.memory_space<vmem>>, vector<2x128xf32>
      tpu.vector_store %arg9[%c0_46, %c0_47], %81 {strides = array<i32>} : memref<2x128xf32, #tpu.memory_space<vmem>>, vector<2x128xf32>,
      %cst_48 = arith.constant 0.000000e+00 : f32
      %83 = vector.broadcast %cst_48 : f32 to vector<2x128xf32>
      %c0_49 = arith.constant 0 : index
      %c0_50 = arith.constant 0 : index
      %84 = vector.load %arg10[%c0_49, %c0_50] : memref<2x128xf32, #tpu.memory_space<vmem>>, vector<2x128xf32>
      tpu.vector_store %arg10[%c0_49, %c0_50], %83 {strides = array<i32>} : memref<2x128xf32, #tpu.memory_space<vmem>>, vector<2x128xf32>,
    } else {
    }
    %c0 = arith.constant 0 : index
    %c0_1 = arith.constant 0 : index
    %c0_2 = arith.constant 0 : index
    %3 = vector.load %arg1[%c0, %c0_1, %c0_2] : memref<1x2x512xf32, #tpu.memory_space<vmem>>, vector<1x2x512xf32>
    %4 = vector.shape_cast %3 : vector<1x2x512xf32> to vector<2x512xf32>
    %c0_3 = arith.constant 0 : index
    %c0_4 = arith.constant 0 : index
    %5 = vector.load %arg7[%c0_3, %c0_4] : memref<2x128xf32, #tpu.memory_space<vmem>>, vector<2x128xf32>
    %c0_5 = arith.constant 0 : index
    %c0_6 = arith.constant 0 : index
    %6 = vector.load %arg3[%c0_5, %c0_6] : memref<128x512xf32, #tpu.memory_space<vmem>>, vector<128x512xf32>
    %cst = arith.constant dense<0.000000e+00> : vector<2x512xf32>
    %7 = tpu.matmul %5, %6, %cst {dimension_numbers = #tpu.dot_dimension_numbers<[1], [0], [0], [1], [0, 0, 1, 1], [], []>} : vector<2x128xf32>, vector<128x512xf32>, vector<2x512xf32> -> vector<2x512xf32>
    %8 = arith.addf %4, %7 : vector<2x512xf32>
    %c0_7 = arith.constant 0 : index
    %c0_8 = arith.constant 0 : index
    %9 = vector.load %arg8[%c0_7, %c0_8] : memref<2x128xf32, #tpu.memory_space<vmem>>, vector<2x128xf32>
    %10 = vector.extract_strided_slice %8 {offsets = [0, 0], sizes = [2, 128], strides = [1, 1]} : vector<2x512xf32> to vector<2x128xf32>
    %11 = arith.negf %10 : vector<2x128xf32>
    %12 = math.exp %11 : vector<2x128xf32>
    %cst_9 = arith.constant 1.000000e+00 : f32
    %13 = vector.broadcast %cst_9 : f32 to vector<2x128xf32>
    %14 = arith.addf %13, %12 : vector<2x128xf32>
    %15 = arith.divf %13, %14 : vector<2x128xf32>
    %16 = vector.extract_strided_slice %8 {offsets = [0, 128], sizes = [2, 128], strides = [1, 1]} : vector<2x512xf32> to vector<2x128xf32>
    %17 = arith.negf %16 : vector<2x128xf32>
    %18 = math.exp %17 : vector<2x128xf32>
    %cst_10 = arith.constant 1.000000e+00 : f32
    %19 = vector.broadcast %cst_10 : f32 to vector<2x128xf32>
    %20 = arith.addf %19, %18 : vector<2x128xf32>
    %21 = arith.divf %19, %20 : vector<2x128xf32>
    %22 = vector.extract_strided_slice %8 {offsets = [0, 256], sizes = [2, 128], strides = [1, 1]} : vector<2x512xf32> to vector<2x128xf32>
    %23 = math.tanh %22 : vector<2x128xf32>
    %24 = vector.extract_strided_slice %8 {offsets = [0, 384], sizes = [2, 128], strides = [1, 1]} : vector<2x512xf32> to vector<2x128xf32>
    %25 = arith.negf %24 : vector<2x128xf32>
    %26 = math.exp %25 : vector<2x128xf32>
    %cst_11 = arith.constant 1.000000e+00 : f32
    %27 = vector.broadcast %cst_11 : f32 to vector<2x128xf32>
    %28 = arith.addf %27, %26 : vector<2x128xf32>
    %29 = arith.divf %27, %28 : vector<2x128xf32>
    %30 = arith.mulf %21, %9 : vector<2x128xf32>
    %31 = arith.mulf %15, %23 : vector<2x128xf32>
    %32 = arith.addf %30, %31 : vector<2x128xf32>
    %33 = math.tanh %32 : vector<2x128xf32>
    %34 = arith.mulf %29, %33 : vector<2x128xf32>
    %c0_12 = arith.constant 0 : index
    %c0_13 = arith.constant 0 : index
    %35 = vector.load %arg7[%c0_12, %c0_13] : memref<2x128xf32, #tpu.memory_space<vmem>>, vector<2x128xf32>
    tpu.vector_store %arg7[%c0_12, %c0_13], %34 {strides = array<i32>} : memref<2x128xf32, #tpu.memory_space<vmem>>, vector<2x128xf32>,
    %c0_14 = arith.constant 0 : index
    %c0_15 = arith.constant 0 : index
    %36 = vector.load %arg8[%c0_14, %c0_15] : memref<2x128xf32, #tpu.memory_space<vmem>>, vector<2x128xf32>
    tpu.vector_store %arg8[%c0_14, %c0_15], %32 {strides = array<i32>} : memref<2x128xf32, #tpu.memory_space<vmem>>, vector<2x128xf32>,
    %c0_16 = arith.constant 0 : index
    %c0_17 = arith.constant 0 : index
    %c0_18 = arith.constant 0 : index
    %37 = vector.load %arg5[%c0_16, %c0_17, %c0_18] : memref<1x2x128xf32, #tpu.memory_space<vmem>>, vector<1x2x128xf32>
    %38 = vector.shape_cast %37 : vector<1x2x128xf32> to vector<2x128xf32>
    %39 = vector.shape_cast %34 : vector<2x128xf32> to vector<1x2x128xf32>
    tpu.vector_store %arg5[%c0_16, %c0_17, %c0_18], %39 {strides = array<i32>} : memref<1x2x128xf32, #tpu.memory_space<vmem>>, vector<1x2x128xf32>,
    %c0_19 = arith.constant 0 : index
    %c0_20 = arith.constant 0 : index
    %c0_21 = arith.constant 0 : index
    %40 = vector.load %arg2[%c0_19, %c0_20, %c0_21] : memref<1x2x512xf32, #tpu.memory_space<vmem>>, vector<1x2x512xf32>
    %41 = vector.shape_cast %40 : vector<1x2x512xf32> to vector<2x512xf32>
    %c0_22 = arith.constant 0 : index
    %c0_23 = arith.constant 0 : index
    %42 = vector.load %arg9[%c0_22, %c0_23] : memref<2x128xf32, #tpu.memory_space<vmem>>, vector<2x128xf32>
    %c0_24 = arith.constant 0 : index
    %c0_25 = arith.constant 0 : index
    %43 = vector.load %arg4[%c0_24, %c0_25] : memref<128x512xf32, #tpu.memory_space<vmem>>, vector<128x512xf32>
    %cst_26 = arith.constant dense<0.000000e+00> : vector<2x512xf32>
    %44 = tpu.matmul %42, %43, %cst_26 {dimension_numbers = #tpu.dot_dimension_numbers<[1], [0], [0], [1], [0, 0, 1, 1], [], []>} : vector<2x128xf32>, vector<128x512xf32>, vector<2x512xf32> -> vector<2x512xf32>
    %45 = arith.addf %41, %44 : vector<2x512xf32>
    %c0_27 = arith.constant 0 : index
    %c0_28 = arith.constant 0 : index
    %46 = vector.load %arg10[%c0_27, %c0_28] : memref<2x128xf32, #tpu.memory_space<vmem>>, vector<2x128xf32>
    %47 = vector.extract_strided_slice %45 {offsets = [0, 0], sizes = [2, 128], strides = [1, 1]} : vector<2x512xf32> to vector<2x128xf32>
    %48 = arith.negf %47 : vector<2x128xf32>
    %49 = math.exp %48 : vector<2x128xf32>
    %cst_29 = arith.constant 1.000000e+00 : f32
    %50 = vector.broadcast %cst_29 : f32 to vector<2x128xf32>
    %51 = arith.addf %50, %49 : vector<2x128xf32>
    %52 = arith.divf %50, %51 : vector<2x128xf32>
    %53 = vector.extract_strided_slice %45 {offsets = [0, 128], sizes = [2, 128], strides = [1, 1]} : vector<2x512xf32> to vector<2x128xf32>
    %54 = arith.negf %53 : vector<2x128xf32>
    %55 = math.exp %54 : vector<2x128xf32>
    %cst_30 = arith.constant 1.000000e+00 : f32
    %56 = vector.broadcast %cst_30 : f32 to vector<2x128xf32>
    %57 = arith.addf %56, %55 : vector<2x128xf32>
    %58 = arith.divf %56, %57 : vector<2x128xf32>
    %59 = vector.extract_strided_slice %45 {offsets = [0, 256], sizes = [2, 128], strides = [1, 1]} : vector<2x512xf32> to vector<2x128xf32>
    %60 = math.tanh %59 : vector<2x128xf32>
    %61 = vector.extract_strided_slice %45 {offsets = [0, 384], sizes = [2, 128], strides = [1, 1]} : vector<2x512xf32> to vector<2x128xf32>
    %62 = arith.negf %61 : vector<2x128xf32>
    %63 = math.exp %62 : vector<2x128xf32>
    %cst_31 = arith.constant 1.000000e+00 : f32
    %64 = vector.broadcast %cst_31 : f32 to vector<2x128xf32>
    %65 = arith.addf %64, %63 : vector<2x128xf32>
    %66 = arith.divf %64, %65 : vector<2x128xf32>
    %67 = arith.mulf %58, %46 : vector<2x128xf32>
    %68 = arith.mulf %52, %60 : vector<2x128xf32>
    %69 = arith.addf %67, %68 : vector<2x128xf32>
    %70 = math.tanh %69 : vector<2x128xf32>
    %71 = arith.mulf %66, %70 : vector<2x128xf32>
    %c0_32 = arith.constant 0 : index
    %c0_33 = arith.constant 0 : index
    %72 = vector.load %arg9[%c0_32, %c0_33] : memref<2x128xf32, #tpu.memory_space<vmem>>, vector<2x128xf32>
    tpu.vector_store %arg9[%c0_32, %c0_33], %71 {strides = array<i32>} : memref<2x128xf32, #tpu.memory_space<vmem>>, vector<2x128xf32>,
    %c0_34 = arith.constant 0 : index
    %c0_35 = arith.constant 0 : index
    %73 = vector.load %arg10[%c0_34, %c0_35] : memref<2x128xf32, #tpu.memory_space<vmem>>, vector<2x128xf32>
    tpu.vector_store %arg10[%c0_34, %c0_35], %69 {strides = array<i32>} : memref<2x128xf32, #tpu.memory_space<vmem>>, vector<2x128xf32>,
    %c0_36 = arith.constant 0 : index
    %c0_37 = arith.constant 0 : index
    %c0_38 = arith.constant 0 : index
    %74 = vector.load %arg6[%c0_36, %c0_37, %c0_38] : memref<1x2x128xf32, #tpu.memory_space<vmem>>, vector<1x2x128xf32>
    %75 = vector.shape_cast %74 : vector<1x2x128xf32> to vector<2x128xf32>
    %76 = vector.shape_cast %71 : vector<2x128xf32> to vector<1x2x128xf32>
    tpu.vector_store %arg6[%c0_36, %c0_37, %c0_38], %76 {strides = array<i32>} : memref<1x2x128xf32, #tpu.memory_space<vmem>>, vector<1x2x128xf32>,
    return
  }
  func.func @transform_0(%arg0: i32) -> (i32, i32, i32) {
    %c0_i32 = arith.constant 0 : i32
    %c0_i32_0 = arith.constant 0 : i32
    %c0_i32_1 = arith.constant 0 : i32
    return %arg0, %c0_i32, %c0_i32_0 : i32, i32, i32
  }
  func.func @transform_1(%arg0: i32) -> (i32, i32, i32) {
    %c7_i32 = arith.constant 7 : i32
    %0 = arith.subi %c7_i32, %arg0 : i32
    %c0_i32 = arith.constant 0 : i32
    %c1_i32 = arith.constant 1 : i32
    %c0_i32_0 = arith.constant 0 : i32
    return %0, %c0_i32, %c1_i32 : i32, i32, i32
  }
  func.func @transform_2(%arg0: i32) -> (i32, i32) {
    %c0_i32 = arith.constant 0 : i32
    %c0_i32_0 = arith.constant 0 : i32
    %c0_i32_1 = arith.constant 0 : i32
    return %c0_i32, %c0_i32_0 : i32, i32
  }
  func.func @transform_3(%arg0: i32) -> (i32, i32) {
    %c0_i32 = arith.constant 0 : i32
    %c0_i32_0 = arith.constant 0 : i32
    %c0_i32_1 = arith.constant 0 : i32
    return %c0_i32, %c0_i32_0 : i32, i32
  }
  func.func @transform_4(%arg0: i32) -> (i32, i32, i32) {
    %c0_i32 = arith.constant 0 : i32
    %c0_i32_0 = arith.constant 0 : i32
    %c0_i32_1 = arith.constant 0 : i32
    return %arg0, %c0_i32, %c0_i32_0 : i32, i32, i32
  }
  func.func @transform_5(%arg0: i32) -> (i32, i32, i32) {
    %c7_i32 = arith.constant 7 : i32
    %0 = arith.subi %c7_i32, %arg0 : i32
    %c0_i32 = arith.constant 0 : i32
    %c0_i32_0 = arith.constant 0 : i32
    %c0_i32_1 = arith.constant 0 : i32
    return %0, %c0_i32, %c0_i32_0 : i32, i32, i32
  }
}

module attributes {stable_mosaic.version = 11 : i64} {
  func.func @_linear_kernel(%arg0: memref<16x256xf32, #tpu.memory_space<vmem>>, %arg1: memref<256x1024xf32, #tpu.memory_space<vmem>>, %arg2: memref<1x1024xf32, #tpu.memory_space<vmem>>, %arg3: memref<16x1024xf32, #tpu.memory_space<vmem>>) attributes {dimension_semantics = [], scalar_prefetch = 0 : i64, scratch_operands = 0 : i64, tpu.core_type = #tpu.core_type<tc>} {
    %c0 = arith.constant 0 : index
    %c0_0 = arith.constant 0 : index
    %0 = vector.load %arg0[%c0, %c0_0] : memref<16x256xf32, #tpu.memory_space<vmem>>, vector<16x256xf32>
    %c0_1 = arith.constant 0 : index
    %c0_2 = arith.constant 0 : index
    %1 = vector.load %arg1[%c0_1, %c0_2] : memref<256x1024xf32, #tpu.memory_space<vmem>>, vector<256x1024xf32>
    %cst = arith.constant dense<0.000000e+00> : vector<16x1024xf32>
    %2 = tpu.matmul %0, %1, %cst {dimension_numbers = #tpu.dot_dimension_numbers<[1], [0], [0], [1], [0, 0, 1, 1], [], []>} : vector<16x256xf32>, vector<256x1024xf32>, vector<16x1024xf32> -> vector<16x1024xf32>
    %c0_3 = arith.constant 0 : index
    %c0_4 = arith.constant 0 : index
    %3 = vector.load %arg2[%c0_3, %c0_4] : memref<1x1024xf32, #tpu.memory_space<vmem>>, vector<1x1024xf32>
    %4 = vector.broadcast %3 : vector<1x1024xf32> to vector<16x1024xf32>
    %5 = arith.addf %2, %4 : vector<16x1024xf32>
    %c0_5 = arith.constant 0 : index
    %c0_6 = arith.constant 0 : index
    %6 = vector.load %arg3[%c0_5, %c0_6] : memref<16x1024xf32, #tpu.memory_space<vmem>>, vector<16x1024xf32>
    tpu.vector_store %arg3[%c0_5, %c0_6], %5 {strides = array<i32>} : memref<16x1024xf32, #tpu.memory_space<vmem>>, vector<16x1024xf32>,
    return
  }
}

module attributes {stable_mosaic.version = 11 : i64} {
  func.func @_attn_block_kernel(%arg0: memref<16x256xf32, #tpu.memory_space<vmem>>, %arg1: memref<16x256xf32, #tpu.memory_space<vmem>>, %arg2: memref<4x256x64xf32, #tpu.memory_space<vmem>>, %arg3: memref<4x256x64xf32, #tpu.memory_space<vmem>>, %arg4: memref<4x256x64xf32, #tpu.memory_space<vmem>>, %arg5: memref<4x1x64xf32, #tpu.memory_space<vmem>>, %arg6: memref<4x1x64xf32, #tpu.memory_space<vmem>>, %arg7: memref<4x1x64xf32, #tpu.memory_space<vmem>>, %arg8: memref<4x64x256xf32, #tpu.memory_space<vmem>>, %arg9: memref<1x256xf32, #tpu.memory_space<vmem>>, %arg10: memref<1x256xf32, #tpu.memory_space<vmem>>, %arg11: memref<1x256xf32, #tpu.memory_space<vmem>>, %arg12: memref<16x256xf32, #tpu.memory_space<vmem>>) attributes {dimension_semantics = [], scalar_prefetch = 0 : i64, scratch_operands = 0 : i64, tpu.core_type = #tpu.core_type<tc>} {
    %c0 = arith.constant 0 : index
    %c0_0 = arith.constant 0 : index
    %0 = vector.load %arg0[%c0, %c0_0] : memref<16x256xf32, #tpu.memory_space<vmem>>, vector<16x256xf32>
    %c0_1 = arith.constant 0 : index
    %c0_2 = arith.constant 0 : index
    %1 = vector.load %arg1[%c0_1, %c0_2] : memref<16x256xf32, #tpu.memory_space<vmem>>, vector<16x256xf32>
    %cst = arith.constant 0.000000e+00 : f32
    %2 = vector.broadcast %cst : f32 to vector<16x256xf32>
    %c0_3 = arith.constant 0 : index
    %c0_4 = arith.constant 0 : index
    %c0_5 = arith.constant 0 : index
    %3 = vector.load %arg2[%c0_3, %c0_4, %c0_5] : memref<4x256x64xf32, #tpu.memory_space<vmem>>, vector<1x256x64xf32>
    %4 = vector.shape_cast %3 : vector<1x256x64xf32> to vector<256x64xf32>
    %cst_6 = arith.constant dense<0.000000e+00> : vector<16x64xf32>
    %5 = tpu.matmul %0, %4, %cst_6 {dimension_numbers = #tpu.dot_dimension_numbers<[1], [0], [0], [1], [0, 0, 1, 1], [], []>} : vector<16x256xf32>, vector<256x64xf32>, vector<16x64xf32> -> vector<16x64xf32>
    %c0_7 = arith.constant 0 : index
    %c0_8 = arith.constant 0 : index
    %c0_9 = arith.constant 0 : index
    %6 = vector.load %arg5[%c0_7, %c0_8, %c0_9] : memref<4x1x64xf32, #tpu.memory_space<vmem>>, vector<1x1x64xf32>
    %7 = vector.shape_cast %6 : vector<1x1x64xf32> to vector<1x64xf32>
    %8 = vector.broadcast %7 : vector<1x64xf32> to vector<16x64xf32>
    %9 = arith.addf %5, %8 : vector<16x64xf32>
    %10 = vector.shape_cast %9 : vector<16x64xf32> to vector<2x8x64xf32>
    %c0_10 = arith.constant 0 : index
    %c0_11 = arith.constant 0 : index
    %c0_12 = arith.constant 0 : index
    %11 = vector.load %arg3[%c0_10, %c0_11, %c0_12] : memref<4x256x64xf32, #tpu.memory_space<vmem>>, vector<1x256x64xf32>
    %12 = vector.shape_cast %11 : vector<1x256x64xf32> to vector<256x64xf32>
    %cst_13 = arith.constant dense<0.000000e+00> : vector<16x64xf32>
    %13 = tpu.matmul %1, %12, %cst_13 {dimension_numbers = #tpu.dot_dimension_numbers<[1], [0], [0], [1], [0, 0, 1, 1], [], []>} : vector<16x256xf32>, vector<256x64xf32>, vector<16x64xf32> -> vector<16x64xf32>
    %c0_14 = arith.constant 0 : index
    %c0_15 = arith.constant 0 : index
    %c0_16 = arith.constant 0 : index
    %14 = vector.load %arg6[%c0_14, %c0_15, %c0_16] : memref<4x1x64xf32, #tpu.memory_space<vmem>>, vector<1x1x64xf32>
    %15 = vector.shape_cast %14 : vector<1x1x64xf32> to vector<1x64xf32>
    %16 = vector.broadcast %15 : vector<1x64xf32> to vector<16x64xf32>
    %17 = arith.addf %13, %16 : vector<16x64xf32>
    %18 = vector.shape_cast %17 : vector<16x64xf32> to vector<2x8x64xf32>
    %c0_17 = arith.constant 0 : index
    %c0_18 = arith.constant 0 : index
    %c0_19 = arith.constant 0 : index
    %19 = vector.load %arg4[%c0_17, %c0_18, %c0_19] : memref<4x256x64xf32, #tpu.memory_space<vmem>>, vector<1x256x64xf32>
    %20 = vector.shape_cast %19 : vector<1x256x64xf32> to vector<256x64xf32>
    %cst_20 = arith.constant dense<0.000000e+00> : vector<16x64xf32>
    %21 = tpu.matmul %1, %20, %cst_20 {dimension_numbers = #tpu.dot_dimension_numbers<[1], [0], [0], [1], [0, 0, 1, 1], [], []>} : vector<16x256xf32>, vector<256x64xf32>, vector<16x64xf32> -> vector<16x64xf32>
    %c0_21 = arith.constant 0 : index
    %c0_22 = arith.constant 0 : index
    %c0_23 = arith.constant 0 : index
    %22 = vector.load %arg7[%c0_21, %c0_22, %c0_23] : memref<4x1x64xf32, #tpu.memory_space<vmem>>, vector<1x1x64xf32>
    %23 = vector.shape_cast %22 : vector<1x1x64xf32> to vector<1x64xf32>
    %24 = vector.broadcast %23 : vector<1x64xf32> to vector<16x64xf32>
    %25 = arith.addf %21, %24 : vector<16x64xf32>
    %26 = vector.shape_cast %25 : vector<16x64xf32> to vector<2x8x64xf32>
    "tpu.trace_start"() <{level = 10 : i32, message = "bqd,bkd->bqk"}> : () -> ()
    %cst_24 = arith.constant dense<0.000000e+00> : vector<2x8x8xf32>
    %27 = tpu.matmul %10, %18, %cst_24 {dimension_numbers = #tpu.dot_dimension_numbers<[2], [2], [1], [1], [0, 0, 0, 1, 1, 1], [0], [0]>} : vector<2x8x64xf32>, vector<2x8x64xf32>, vector<2x8x8xf32> -> vector<2x8x8xf32>
    "tpu.trace_stop"() : () -> ()
    %cst_25 = arith.constant 1.250000e-01 : f32
    %28 = vector.broadcast %cst_25 : f32 to vector<2x8x8xf32>
    %29 = arith.mulf %27, %28 : vector<2x8x8xf32>
    %cst_26 = arith.constant dense<0xFF800000> : vector<2x8xf32>
    %30 = vector.multi_reduction <maximumf>, %29, %cst_26 [2] : vector<2x8x8xf32> to vector<2x8xf32>
    %31 = vector.shape_cast %30 : vector<2x8xf32> to vector<2x8x1xf32>
    %32 = vector.broadcast %31 : vector<2x8x1xf32> to vector<2x8x8xf32>
    %33 = arith.subf %29, %32 : vector<2x8x8xf32>
    %34 = math.exp %33 : vector<2x8x8xf32>
    %cst_27 = arith.constant dense<0.000000e+00> : vector<2x8xf32>
    %35 = vector.multi_reduction <add>, %34, %cst_27 [2] : vector<2x8x8xf32> to vector<2x8xf32>
    %36 = vector.shape_cast %35 : vector<2x8xf32> to vector<2x8x1xf32>
    %37 = tpu.reciprocal %36 {approx = true} : vector<2x8x1xf32> -> vector<2x8x1xf32>
    %38 = vector.broadcast %37 : vector<2x8x1xf32> to vector<2x8x8xf32>
    %39 = arith.mulf %34, %38 : vector<2x8x8xf32>
    "tpu.trace_start"() <{level = 10 : i32, message = "bqk,bkd->bqd"}> : () -> ()
    %cst_28 = arith.constant dense<0.000000e+00> : vector<2x8x64xf32>
    %40 = tpu.matmul %39, %26, %cst_28 {dimension_numbers = #tpu.dot_dimension_numbers<[2], [1], [1], [2], [0, 0, 0, 1, 1, 2], [0], [0]>} : vector<2x8x8xf32>, vector<2x8x64xf32>, vector<2x8x64xf32> -> vector<2x8x64xf32>
    "tpu.trace_stop"() : () -> ()
    %41 = vector.shape_cast %40 : vector<2x8x64xf32> to vector<16x64xf32>
    %c0_29 = arith.constant 0 : index
    %c0_30 = arith.constant 0 : index
    %c0_31 = arith.constant 0 : index
    %42 = vector.load %arg8[%c0_29, %c0_30, %c0_31] : memref<4x64x256xf32, #tpu.memory_space<vmem>>, vector<1x64x256xf32>
    %43 = vector.shape_cast %42 : vector<1x64x256xf32> to vector<64x256xf32>
    %cst_32 = arith.constant dense<0.000000e+00> : vector<16x256xf32>
    %44 = tpu.matmul %41, %43, %cst_32 {dimension_numbers = #tpu.dot_dimension_numbers<[1], [0], [0], [1], [0, 0, 1, 1], [], []>} : vector<16x64xf32>, vector<64x256xf32>, vector<16x256xf32> -> vector<16x256xf32>
    %45 = arith.addf %2, %44 : vector<16x256xf32>
    %c1 = arith.constant 1 : index
    %c0_33 = arith.constant 0 : index
    %c0_34 = arith.constant 0 : index
    %46 = vector.load %arg2[%c1, %c0_33, %c0_34] : memref<4x256x64xf32, #tpu.memory_space<vmem>>, vector<1x256x64xf32>
    %47 = vector.shape_cast %46 : vector<1x256x64xf32> to vector<256x64xf32>
    %cst_35 = arith.constant dense<0.000000e+00> : vector<16x64xf32>
    %48 = tpu.matmul %0, %47, %cst_35 {dimension_numbers = #tpu.dot_dimension_numbers<[1], [0], [0], [1], [0, 0, 1, 1], [], []>} : vector<16x256xf32>, vector<256x64xf32>, vector<16x64xf32> -> vector<16x64xf32>
    %c1_36 = arith.constant 1 : index
    %c0_37 = arith.constant 0 : index
    %c0_38 = arith.constant 0 : index
    %49 = vector.load %arg5[%c1_36, %c0_37, %c0_38] : memref<4x1x64xf32, #tpu.memory_space<vmem>>, vector<1x1x64xf32>
    %50 = vector.shape_cast %49 : vector<1x1x64xf32> to vector<1x64xf32>
    %51 = vector.broadcast %50 : vector<1x64xf32> to vector<16x64xf32>
    %52 = arith.addf %48, %51 : vector<16x64xf32>
    %53 = vector.shape_cast %52 : vector<16x64xf32> to vector<2x8x64xf32>
    %c1_39 = arith.constant 1 : index
    %c0_40 = arith.constant 0 : index
    %c0_41 = arith.constant 0 : index
    %54 = vector.load %arg3[%c1_39, %c0_40, %c0_41] : memref<4x256x64xf32, #tpu.memory_space<vmem>>, vector<1x256x64xf32>
    %55 = vector.shape_cast %54 : vector<1x256x64xf32> to vector<256x64xf32>
    %cst_42 = arith.constant dense<0.000000e+00> : vector<16x64xf32>
    %56 = tpu.matmul %1, %55, %cst_42 {dimension_numbers = #tpu.dot_dimension_numbers<[1], [0], [0], [1], [0, 0, 1, 1], [], []>} : vector<16x256xf32>, vector<256x64xf32>, vector<16x64xf32> -> vector<16x64xf32>
    %c1_43 = arith.constant 1 : index
    %c0_44 = arith.constant 0 : index
    %c0_45 = arith.constant 0 : index
    %57 = vector.load %arg6[%c1_43, %c0_44, %c0_45] : memref<4x1x64xf32, #tpu.memory_space<vmem>>, vector<1x1x64xf32>
    %58 = vector.shape_cast %57 : vector<1x1x64xf32> to vector<1x64xf32>
    %59 = vector.broadcast %58 : vector<1x64xf32> to vector<16x64xf32>
    %60 = arith.addf %56, %59 : vector<16x64xf32>
    %61 = vector.shape_cast %60 : vector<16x64xf32> to vector<2x8x64xf32>
    %c1_46 = arith.constant 1 : index
    %c0_47 = arith.constant 0 : index
    %c0_48 = arith.constant 0 : index
    %62 = vector.load %arg4[%c1_46, %c0_47, %c0_48] : memref<4x256x64xf32, #tpu.memory_space<vmem>>, vector<1x256x64xf32>
    %63 = vector.shape_cast %62 : vector<1x256x64xf32> to vector<256x64xf32>
    %cst_49 = arith.constant dense<0.000000e+00> : vector<16x64xf32>
    %64 = tpu.matmul %1, %63, %cst_49 {dimension_numbers = #tpu.dot_dimension_numbers<[1], [0], [0], [1], [0, 0, 1, 1], [], []>} : vector<16x256xf32>, vector<256x64xf32>, vector<16x64xf32> -> vector<16x64xf32>
    %c1_50 = arith.constant 1 : index
    %c0_51 = arith.constant 0 : index
    %c0_52 = arith.constant 0 : index
    %65 = vector.load %arg7[%c1_50, %c0_51, %c0_52] : memref<4x1x64xf32, #tpu.memory_space<vmem>>, vector<1x1x64xf32>
    %66 = vector.shape_cast %65 : vector<1x1x64xf32> to vector<1x64xf32>
    %67 = vector.broadcast %66 : vector<1x64xf32> to vector<16x64xf32>
    %68 = arith.addf %64, %67 : vector<16x64xf32>
    %69 = vector.shape_cast %68 : vector<16x64xf32> to vector<2x8x64xf32>
    "tpu.trace_start"() <{level = 10 : i32, message = "bqd,bkd->bqk"}> : () -> ()
    %cst_53 = arith.constant dense<0.000000e+00> : vector<2x8x8xf32>
    %70 = tpu.matmul %53, %61, %cst_53 {dimension_numbers = #tpu.dot_dimension_numbers<[2], [2], [1], [1], [0, 0, 0, 1, 1, 1], [0], [0]>} : vector<2x8x64xf32>, vector<2x8x64xf32>, vector<2x8x8xf32> -> vector<2x8x8xf32>
    "tpu.trace_stop"() : () -> ()
    %cst_54 = arith.constant 1.250000e-01 : f32
    %71 = vector.broadcast %cst_54 : f32 to vector<2x8x8xf32>
    %72 = arith.mulf %70, %71 : vector<2x8x8xf32>
    %cst_55 = arith.constant dense<0xFF800000> : vector<2x8xf32>
    %73 = vector.multi_reduction <maximumf>, %72, %cst_55 [2] : vector<2x8x8xf32> to vector<2x8xf32>
    %74 = vector.shape_cast %73 : vector<2x8xf32> to vector<2x8x1xf32>
    %75 = vector.broadcast %74 : vector<2x8x1xf32> to vector<2x8x8xf32>
    %76 = arith.subf %72, %75 : vector<2x8x8xf32>
    %77 = math.exp %76 : vector<2x8x8xf32>
    %cst_56 = arith.constant dense<0.000000e+00> : vector<2x8xf32>
    %78 = vector.multi_reduction <add>, %77, %cst_56 [2] : vector<2x8x8xf32> to vector<2x8xf32>
    %79 = vector.shape_cast %78 : vector<2x8xf32> to vector<2x8x1xf32>
    %80 = tpu.reciprocal %79 {approx = true} : vector<2x8x1xf32> -> vector<2x8x1xf32>
    %81 = vector.broadcast %80 : vector<2x8x1xf32> to vector<2x8x8xf32>
    %82 = arith.mulf %77, %81 : vector<2x8x8xf32>
    "tpu.trace_start"() <{level = 10 : i32, message = "bqk,bkd->bqd"}> : () -> ()
    %cst_57 = arith.constant dense<0.000000e+00> : vector<2x8x64xf32>
    %83 = tpu.matmul %82, %69, %cst_57 {dimension_numbers = #tpu.dot_dimension_numbers<[2], [1], [1], [2], [0, 0, 0, 1, 1, 2], [0], [0]>} : vector<2x8x8xf32>, vector<2x8x64xf32>, vector<2x8x64xf32> -> vector<2x8x64xf32>
    "tpu.trace_stop"() : () -> ()
    %84 = vector.shape_cast %83 : vector<2x8x64xf32> to vector<16x64xf32>
    %c1_58 = arith.constant 1 : index
    %c0_59 = arith.constant 0 : index
    %c0_60 = arith.constant 0 : index
    %85 = vector.load %arg8[%c1_58, %c0_59, %c0_60] : memref<4x64x256xf32, #tpu.memory_space<vmem>>, vector<1x64x256xf32>
    %86 = vector.shape_cast %85 : vector<1x64x256xf32> to vector<64x256xf32>
    %cst_61 = arith.constant dense<0.000000e+00> : vector<16x256xf32>
    %87 = tpu.matmul %84, %86, %cst_61 {dimension_numbers = #tpu.dot_dimension_numbers<[1], [0], [0], [1], [0, 0, 1, 1], [], []>} : vector<16x64xf32>, vector<64x256xf32>, vector<16x256xf32> -> vector<16x256xf32>
    %88 = arith.addf %45, %87 : vector<16x256xf32>
    %c2 = arith.constant 2 : index
    %c0_62 = arith.constant 0 : index
    %c0_63 = arith.constant 0 : index
    %89 = vector.load %arg2[%c2, %c0_62, %c0_63] : memref<4x256x64xf32, #tpu.memory_space<vmem>>, vector<1x256x64xf32>
    %90 = vector.shape_cast %89 : vector<1x256x64xf32> to vector<256x64xf32>
    %cst_64 = arith.constant dense<0.000000e+00> : vector<16x64xf32>
    %91 = tpu.matmul %0, %90, %cst_64 {dimension_numbers = #tpu.dot_dimension_numbers<[1], [0], [0], [1], [0, 0, 1, 1], [], []>} : vector<16x256xf32>, vector<256x64xf32>, vector<16x64xf32> -> vector<16x64xf32>
    %c2_65 = arith.constant 2 : index
    %c0_66 = arith.constant 0 : index
    %c0_67 = arith.constant 0 : index
    %92 = vector.load %arg5[%c2_65, %c0_66, %c0_67] : memref<4x1x64xf32, #tpu.memory_space<vmem>>, vector<1x1x64xf32>
    %93 = vector.shape_cast %92 : vector<1x1x64xf32> to vector<1x64xf32>
    %94 = vector.broadcast %93 : vector<1x64xf32> to vector<16x64xf32>
    %95 = arith.addf %91, %94 : vector<16x64xf32>
    %96 = vector.shape_cast %95 : vector<16x64xf32> to vector<2x8x64xf32>
    %c2_68 = arith.constant 2 : index
    %c0_69 = arith.constant 0 : index
    %c0_70 = arith.constant 0 : index
    %97 = vector.load %arg3[%c2_68, %c0_69, %c0_70] : memref<4x256x64xf32, #tpu.memory_space<vmem>>, vector<1x256x64xf32>
    %98 = vector.shape_cast %97 : vector<1x256x64xf32> to vector<256x64xf32>
    %cst_71 = arith.constant dense<0.000000e+00> : vector<16x64xf32>
    %99 = tpu.matmul %1, %98, %cst_71 {dimension_numbers = #tpu.dot_dimension_numbers<[1], [0], [0], [1], [0, 0, 1, 1], [], []>} : vector<16x256xf32>, vector<256x64xf32>, vector<16x64xf32> -> vector<16x64xf32>
    %c2_72 = arith.constant 2 : index
    %c0_73 = arith.constant 0 : index
    %c0_74 = arith.constant 0 : index
    %100 = vector.load %arg6[%c2_72, %c0_73, %c0_74] : memref<4x1x64xf32, #tpu.memory_space<vmem>>, vector<1x1x64xf32>
    %101 = vector.shape_cast %100 : vector<1x1x64xf32> to vector<1x64xf32>
    %102 = vector.broadcast %101 : vector<1x64xf32> to vector<16x64xf32>
    %103 = arith.addf %99, %102 : vector<16x64xf32>
    %104 = vector.shape_cast %103 : vector<16x64xf32> to vector<2x8x64xf32>
    %c2_75 = arith.constant 2 : index
    %c0_76 = arith.constant 0 : index
    %c0_77 = arith.constant 0 : index
    %105 = vector.load %arg4[%c2_75, %c0_76, %c0_77] : memref<4x256x64xf32, #tpu.memory_space<vmem>>, vector<1x256x64xf32>
    %106 = vector.shape_cast %105 : vector<1x256x64xf32> to vector<256x64xf32>
    %cst_78 = arith.constant dense<0.000000e+00> : vector<16x64xf32>
    %107 = tpu.matmul %1, %106, %cst_78 {dimension_numbers = #tpu.dot_dimension_numbers<[1], [0], [0], [1], [0, 0, 1, 1], [], []>} : vector<16x256xf32>, vector<256x64xf32>, vector<16x64xf32> -> vector<16x64xf32>
    %c2_79 = arith.constant 2 : index
    %c0_80 = arith.constant 0 : index
    %c0_81 = arith.constant 0 : index
    %108 = vector.load %arg7[%c2_79, %c0_80, %c0_81] : memref<4x1x64xf32, #tpu.memory_space<vmem>>, vector<1x1x64xf32>
    %109 = vector.shape_cast %108 : vector<1x1x64xf32> to vector<1x64xf32>
    %110 = vector.broadcast %109 : vector<1x64xf32> to vector<16x64xf32>
    %111 = arith.addf %107, %110 : vector<16x64xf32>
    %112 = vector.shape_cast %111 : vector<16x64xf32> to vector<2x8x64xf32>
    "tpu.trace_start"() <{level = 10 : i32, message = "bqd,bkd->bqk"}> : () -> ()
    %cst_82 = arith.constant dense<0.000000e+00> : vector<2x8x8xf32>
    %113 = tpu.matmul %96, %104, %cst_82 {dimension_numbers = #tpu.dot_dimension_numbers<[2], [2], [1], [1], [0, 0, 0, 1, 1, 1], [0], [0]>} : vector<2x8x64xf32>, vector<2x8x64xf32>, vector<2x8x8xf32> -> vector<2x8x8xf32>
    "tpu.trace_stop"() : () -> ()
    %cst_83 = arith.constant 1.250000e-01 : f32
    %114 = vector.broadcast %cst_83 : f32 to vector<2x8x8xf32>
    %115 = arith.mulf %113, %114 : vector<2x8x8xf32>
    %cst_84 = arith.constant dense<0xFF800000> : vector<2x8xf32>
    %116 = vector.multi_reduction <maximumf>, %115, %cst_84 [2] : vector<2x8x8xf32> to vector<2x8xf32>
    %117 = vector.shape_cast %116 : vector<2x8xf32> to vector<2x8x1xf32>
    %118 = vector.broadcast %117 : vector<2x8x1xf32> to vector<2x8x8xf32>
    %119 = arith.subf %115, %118 : vector<2x8x8xf32>
    %120 = math.exp %119 : vector<2x8x8xf32>
    %cst_85 = arith.constant dense<0.000000e+00> : vector<2x8xf32>
    %121 = vector.multi_reduction <add>, %120, %cst_85 [2] : vector<2x8x8xf32> to vector<2x8xf32>
    %122 = vector.shape_cast %121 : vector<2x8xf32> to vector<2x8x1xf32>
    %123 = tpu.reciprocal %122 {approx = true} : vector<2x8x1xf32> -> vector<2x8x1xf32>
    %124 = vector.broadcast %123 : vector<2x8x1xf32> to vector<2x8x8xf32>
    %125 = arith.mulf %120, %124 : vector<2x8x8xf32>
    "tpu.trace_start"() <{level = 10 : i32, message = "bqk,bkd->bqd"}> : () -> ()
    %cst_86 = arith.constant dense<0.000000e+00> : vector<2x8x64xf32>
    %126 = tpu.matmul %125, %112, %cst_86 {dimension_numbers = #tpu.dot_dimension_numbers<[2], [1], [1], [2], [0, 0, 0, 1, 1, 2], [0], [0]>} : vector<2x8x8xf32>, vector<2x8x64xf32>, vector<2x8x64xf32> -> vector<2x8x64xf32>
    "tpu.trace_stop"() : () -> ()
    %127 = vector.shape_cast %126 : vector<2x8x64xf32> to vector<16x64xf32>
    %c2_87 = arith.constant 2 : index
    %c0_88 = arith.constant 0 : index
    %c0_89 = arith.constant 0 : index
    %128 = vector.load %arg8[%c2_87, %c0_88, %c0_89] : memref<4x64x256xf32, #tpu.memory_space<vmem>>, vector<1x64x256xf32>
    %129 = vector.shape_cast %128 : vector<1x64x256xf32> to vector<64x256xf32>
    %cst_90 = arith.constant dense<0.000000e+00> : vector<16x256xf32>
    %130 = tpu.matmul %127, %129, %cst_90 {dimension_numbers = #tpu.dot_dimension_numbers<[1], [0], [0], [1], [0, 0, 1, 1], [], []>} : vector<16x64xf32>, vector<64x256xf32>, vector<16x256xf32> -> vector<16x256xf32>
    %131 = arith.addf %88, %130 : vector<16x256xf32>
    %c3 = arith.constant 3 : index
    %c0_91 = arith.constant 0 : index
    %c0_92 = arith.constant 0 : index
    %132 = vector.load %arg2[%c3, %c0_91, %c0_92] : memref<4x256x64xf32, #tpu.memory_space<vmem>>, vector<1x256x64xf32>
    %133 = vector.shape_cast %132 : vector<1x256x64xf32> to vector<256x64xf32>
    %cst_93 = arith.constant dense<0.000000e+00> : vector<16x64xf32>
    %134 = tpu.matmul %0, %133, %cst_93 {dimension_numbers = #tpu.dot_dimension_numbers<[1], [0], [0], [1], [0, 0, 1, 1], [], []>} : vector<16x256xf32>, vector<256x64xf32>, vector<16x64xf32> -> vector<16x64xf32>
    %c3_94 = arith.constant 3 : index
    %c0_95 = arith.constant 0 : index
    %c0_96 = arith.constant 0 : index
    %135 = vector.load %arg5[%c3_94, %c0_95, %c0_96] : memref<4x1x64xf32, #tpu.memory_space<vmem>>, vector<1x1x64xf32>
    %136 = vector.shape_cast %135 : vector<1x1x64xf32> to vector<1x64xf32>
    %137 = vector.broadcast %136 : vector<1x64xf32> to vector<16x64xf32>
    %138 = arith.addf %134, %137 : vector<16x64xf32>
    %139 = vector.shape_cast %138 : vector<16x64xf32> to vector<2x8x64xf32>
    %c3_97 = arith.constant 3 : index
    %c0_98 = arith.constant 0 : index
    %c0_99 = arith.constant 0 : index
    %140 = vector.load %arg3[%c3_97, %c0_98, %c0_99] : memref<4x256x64xf32, #tpu.memory_space<vmem>>, vector<1x256x64xf32>
    %141 = vector.shape_cast %140 : vector<1x256x64xf32> to vector<256x64xf32>
    %cst_100 = arith.constant dense<0.000000e+00> : vector<16x64xf32>
    %142 = tpu.matmul %1, %141, %cst_100 {dimension_numbers = #tpu.dot_dimension_numbers<[1], [0], [0], [1], [0, 0, 1, 1], [], []>} : vector<16x256xf32>, vector<256x64xf32>, vector<16x64xf32> -> vector<16x64xf32>
    %c3_101 = arith.constant 3 : index
    %c0_102 = arith.constant 0 : index
    %c0_103 = arith.constant 0 : index
    %143 = vector.load %arg6[%c3_101, %c0_102, %c0_103] : memref<4x1x64xf32, #tpu.memory_space<vmem>>, vector<1x1x64xf32>
    %144 = vector.shape_cast %143 : vector<1x1x64xf32> to vector<1x64xf32>
    %145 = vector.broadcast %144 : vector<1x64xf32> to vector<16x64xf32>
    %146 = arith.addf %142, %145 : vector<16x64xf32>
    %147 = vector.shape_cast %146 : vector<16x64xf32> to vector<2x8x64xf32>
    %c3_104 = arith.constant 3 : index
    %c0_105 = arith.constant 0 : index
    %c0_106 = arith.constant 0 : index
    %148 = vector.load %arg4[%c3_104, %c0_105, %c0_106] : memref<4x256x64xf32, #tpu.memory_space<vmem>>, vector<1x256x64xf32>
    %149 = vector.shape_cast %148 : vector<1x256x64xf32> to vector<256x64xf32>
    %cst_107 = arith.constant dense<0.000000e+00> : vector<16x64xf32>
    %150 = tpu.matmul %1, %149, %cst_107 {dimension_numbers = #tpu.dot_dimension_numbers<[1], [0], [0], [1], [0, 0, 1, 1], [], []>} : vector<16x256xf32>, vector<256x64xf32>, vector<16x64xf32> -> vector<16x64xf32>
    %c3_108 = arith.constant 3 : index
    %c0_109 = arith.constant 0 : index
    %c0_110 = arith.constant 0 : index
    %151 = vector.load %arg7[%c3_108, %c0_109, %c0_110] : memref<4x1x64xf32, #tpu.memory_space<vmem>>, vector<1x1x64xf32>
    %152 = vector.shape_cast %151 : vector<1x1x64xf32> to vector<1x64xf32>
    %153 = vector.broadcast %152 : vector<1x64xf32> to vector<16x64xf32>
    %154 = arith.addf %150, %153 : vector<16x64xf32>
    %155 = vector.shape_cast %154 : vector<16x64xf32> to vector<2x8x64xf32>
    "tpu.trace_start"() <{level = 10 : i32, message = "bqd,bkd->bqk"}> : () -> ()
    %cst_111 = arith.constant dense<0.000000e+00> : vector<2x8x8xf32>
    %156 = tpu.matmul %139, %147, %cst_111 {dimension_numbers = #tpu.dot_dimension_numbers<[2], [2], [1], [1], [0, 0, 0, 1, 1, 1], [0], [0]>} : vector<2x8x64xf32>, vector<2x8x64xf32>, vector<2x8x8xf32> -> vector<2x8x8xf32>
    "tpu.trace_stop"() : () -> ()
    %cst_112 = arith.constant 1.250000e-01 : f32
    %157 = vector.broadcast %cst_112 : f32 to vector<2x8x8xf32>
    %158 = arith.mulf %156, %157 : vector<2x8x8xf32>
    %cst_113 = arith.constant dense<0xFF800000> : vector<2x8xf32>
    %159 = vector.multi_reduction <maximumf>, %158, %cst_113 [2] : vector<2x8x8xf32> to vector<2x8xf32>
    %160 = vector.shape_cast %159 : vector<2x8xf32> to vector<2x8x1xf32>
    %161 = vector.broadcast %160 : vector<2x8x1xf32> to vector<2x8x8xf32>
    %162 = arith.subf %158, %161 : vector<2x8x8xf32>
    %163 = math.exp %162 : vector<2x8x8xf32>
    %cst_114 = arith.constant dense<0.000000e+00> : vector<2x8xf32>
    %164 = vector.multi_reduction <add>, %163, %cst_114 [2] : vector<2x8x8xf32> to vector<2x8xf32>
    %165 = vector.shape_cast %164 : vector<2x8xf32> to vector<2x8x1xf32>
    %166 = tpu.reciprocal %165 {approx = true} : vector<2x8x1xf32> -> vector<2x8x1xf32>
    %167 = vector.broadcast %166 : vector<2x8x1xf32> to vector<2x8x8xf32>
    %168 = arith.mulf %163, %167 : vector<2x8x8xf32>
    "tpu.trace_start"() <{level = 10 : i32, message = "bqk,bkd->bqd"}> : () -> ()
    %cst_115 = arith.constant dense<0.000000e+00> : vector<2x8x64xf32>
    %169 = tpu.matmul %168, %155, %cst_115 {dimension_numbers = #tpu.dot_dimension_numbers<[2], [1], [1], [2], [0, 0, 0, 1, 1, 2], [0], [0]>} : vector<2x8x8xf32>, vector<2x8x64xf32>, vector<2x8x64xf32> -> vector<2x8x64xf32>
    "tpu.trace_stop"() : () -> ()
    %170 = vector.shape_cast %169 : vector<2x8x64xf32> to vector<16x64xf32>
    %c3_116 = arith.constant 3 : index
    %c0_117 = arith.constant 0 : index
    %c0_118 = arith.constant 0 : index
    %171 = vector.load %arg8[%c3_116, %c0_117, %c0_118] : memref<4x64x256xf32, #tpu.memory_space<vmem>>, vector<1x64x256xf32>
    %172 = vector.shape_cast %171 : vector<1x64x256xf32> to vector<64x256xf32>
    %cst_119 = arith.constant dense<0.000000e+00> : vector<16x256xf32>
    %173 = tpu.matmul %170, %172, %cst_119 {dimension_numbers = #tpu.dot_dimension_numbers<[1], [0], [0], [1], [0, 0, 1, 1], [], []>} : vector<16x64xf32>, vector<64x256xf32>, vector<16x256xf32> -> vector<16x256xf32>
    %174 = arith.addf %131, %173 : vector<16x256xf32>
    %175 = arith.addf %0, %174 : vector<16x256xf32>
    %c0_120 = arith.constant 0 : index
    %c0_121 = arith.constant 0 : index
    %176 = vector.load %arg9[%c0_120, %c0_121] : memref<1x256xf32, #tpu.memory_space<vmem>>, vector<1x256xf32>
    %177 = vector.broadcast %176 : vector<1x256xf32> to vector<16x256xf32>
    %178 = arith.addf %175, %177 : vector<16x256xf32>
    %cst_122 = arith.constant dense<0.000000e+00> : vector<16xf32>
    %179 = vector.multi_reduction <add>, %178, %cst_122 [1] : vector<16x256xf32> to vector<16xf32>
    %180 = vector.shape_cast %179 : vector<16xf32> to vector<16x1xf32>
    %cst_123 = arith.constant 2.560000e+02 : f32
    %181 = vector.broadcast %cst_123 : f32 to vector<16x1xf32>
    %182 = arith.divf %180, %181 : vector<16x1xf32>
    %183 = vector.broadcast %182 : vector<16x1xf32> to vector<16x256xf32>
    %184 = arith.subf %178, %183 : vector<16x256xf32>
    %185 = arith.mulf %184, %184 : vector<16x256xf32>
    %cst_124 = arith.constant dense<0.000000e+00> : vector<16xf32>
    %186 = vector.multi_reduction <add>, %185, %cst_124 [1] : vector<16x256xf32> to vector<16xf32>
    %187 = vector.shape_cast %186 : vector<16xf32> to vector<16x1xf32>
    %cst_125 = arith.constant 2.560000e+02 : f32
    %188 = vector.broadcast %cst_125 : f32 to vector<16x1xf32>
    %189 = arith.divf %187, %188 : vector<16x1xf32>
    %190 = vector.broadcast %182 : vector<16x1xf32> to vector<16x256xf32>
    %191 = arith.subf %178, %190 : vector<16x256xf32>
    %cst_126 = arith.constant 9.99999974E-6 : f32
    %192 = vector.broadcast %cst_126 : f32 to vector<16x1xf32>
    %193 = arith.addf %189, %192 : vector<16x1xf32>
    %194 = math.rsqrt %193 : vector<16x1xf32>
    %195 = vector.broadcast %194 : vector<16x1xf32> to vector<16x256xf32>
    %196 = arith.mulf %191, %195 : vector<16x256xf32>
    %c0_127 = arith.constant 0 : index
    %c0_128 = arith.constant 0 : index
    %197 = vector.load %arg10[%c0_127, %c0_128] : memref<1x256xf32, #tpu.memory_space<vmem>>, vector<1x256xf32>
    %198 = vector.broadcast %197 : vector<1x256xf32> to vector<16x256xf32>
    %199 = arith.mulf %196, %198 : vector<16x256xf32>
    %c0_129 = arith.constant 0 : index
    %c0_130 = arith.constant 0 : index
    %200 = vector.load %arg11[%c0_129, %c0_130] : memref<1x256xf32, #tpu.memory_space<vmem>>, vector<1x256xf32>
    %201 = vector.broadcast %200 : vector<1x256xf32> to vector<16x256xf32>
    %202 = arith.addf %199, %201 : vector<16x256xf32>
    %c0_131 = arith.constant 0 : index
    %c0_132 = arith.constant 0 : index
    %203 = vector.load %arg12[%c0_131, %c0_132] : memref<16x256xf32, #tpu.memory_space<vmem>>, vector<16x256xf32>
    tpu.vector_store %arg12[%c0_131, %c0_132], %202 {strides = array<i32>} : memref<16x256xf32, #tpu.memory_space<vmem>>, vector<16x256xf32>,
    return
  }
}

module attributes {stable_mosaic.version = 11 : i64} {
  func.func @_ffn_block_kernel(%arg0: memref<16x256xf32, #tpu.memory_space<vmem>>, %arg1: memref<256x1024xf32, #tpu.memory_space<vmem>>, %arg2: memref<1x1024xf32, #tpu.memory_space<vmem>>, %arg3: memref<1024x256xf32, #tpu.memory_space<vmem>>, %arg4: memref<1x256xf32, #tpu.memory_space<vmem>>, %arg5: memref<1x256xf32, #tpu.memory_space<vmem>>, %arg6: memref<1x256xf32, #tpu.memory_space<vmem>>, %arg7: memref<16x256xf32, #tpu.memory_space<vmem>>) attributes {dimension_semantics = [], scalar_prefetch = 0 : i64, scratch_operands = 0 : i64, tpu.core_type = #tpu.core_type<tc>} {
    %c0 = arith.constant 0 : index
    %c0_0 = arith.constant 0 : index
    %0 = vector.load %arg0[%c0, %c0_0] : memref<16x256xf32, #tpu.memory_space<vmem>>, vector<16x256xf32>
    %c0_1 = arith.constant 0 : index
    %c0_2 = arith.constant 0 : index
    %1 = vector.load %arg1[%c0_1, %c0_2] : memref<256x1024xf32, #tpu.memory_space<vmem>>, vector<256x1024xf32>
    %cst = arith.constant dense<0.000000e+00> : vector<16x1024xf32>
    %2 = tpu.matmul %0, %1, %cst {dimension_numbers = #tpu.dot_dimension_numbers<[1], [0], [0], [1], [0, 0, 1, 1], [], []>} : vector<16x256xf32>, vector<256x1024xf32>, vector<16x1024xf32> -> vector<16x1024xf32>
    %c0_3 = arith.constant 0 : index
    %c0_4 = arith.constant 0 : index
    %3 = vector.load %arg2[%c0_3, %c0_4] : memref<1x1024xf32, #tpu.memory_space<vmem>>, vector<1x1024xf32>
    %4 = vector.broadcast %3 : vector<1x1024xf32> to vector<16x1024xf32>
    %5 = arith.addf %2, %4 : vector<16x1024xf32>
    %cst_5 = arith.constant 0.000000e+00 : f32
    %6 = vector.broadcast %cst_5 : f32 to vector<16x1024xf32>
    %7 = arith.maximumf %5, %6 : vector<16x1024xf32>
    %c0_6 = arith.constant 0 : index
    %c0_7 = arith.constant 0 : index
    %8 = vector.load %arg3[%c0_6, %c0_7] : memref<1024x256xf32, #tpu.memory_space<vmem>>, vector<1024x256xf32>
    %cst_8 = arith.constant dense<0.000000e+00> : vector<16x256xf32>
    %9 = tpu.matmul %7, %8, %cst_8 {dimension_numbers = #tpu.dot_dimension_numbers<[1], [0], [0], [1], [0, 0, 1, 1], [], []>} : vector<16x1024xf32>, vector<1024x256xf32>, vector<16x256xf32> -> vector<16x256xf32>
    %10 = arith.addf %0, %9 : vector<16x256xf32>
    %c0_9 = arith.constant 0 : index
    %c0_10 = arith.constant 0 : index
    %11 = vector.load %arg4[%c0_9, %c0_10] : memref<1x256xf32, #tpu.memory_space<vmem>>, vector<1x256xf32>
    %12 = vector.broadcast %11 : vector<1x256xf32> to vector<16x256xf32>
    %13 = arith.addf %10, %12 : vector<16x256xf32>
    %cst_11 = arith.constant dense<0.000000e+00> : vector<16xf32>
    %14 = vector.multi_reduction <add>, %13, %cst_11 [1] : vector<16x256xf32> to vector<16xf32>
    %15 = vector.shape_cast %14 : vector<16xf32> to vector<16x1xf32>
    %cst_12 = arith.constant 2.560000e+02 : f32
    %16 = vector.broadcast %cst_12 : f32 to vector<16x1xf32>
    %17 = arith.divf %15, %16 : vector<16x1xf32>
    %18 = vector.broadcast %17 : vector<16x1xf32> to vector<16x256xf32>
    %19 = arith.subf %13, %18 : vector<16x256xf32>
    %20 = arith.mulf %19, %19 : vector<16x256xf32>
    %cst_13 = arith.constant dense<0.000000e+00> : vector<16xf32>
    %21 = vector.multi_reduction <add>, %20, %cst_13 [1] : vector<16x256xf32> to vector<16xf32>
    %22 = vector.shape_cast %21 : vector<16xf32> to vector<16x1xf32>
    %cst_14 = arith.constant 2.560000e+02 : f32
    %23 = vector.broadcast %cst_14 : f32 to vector<16x1xf32>
    %24 = arith.divf %22, %23 : vector<16x1xf32>
    %25 = vector.broadcast %17 : vector<16x1xf32> to vector<16x256xf32>
    %26 = arith.subf %13, %25 : vector<16x256xf32>
    %cst_15 = arith.constant 9.99999974E-6 : f32
    %27 = vector.broadcast %cst_15 : f32 to vector<16x1xf32>
    %28 = arith.addf %24, %27 : vector<16x1xf32>
    %29 = math.rsqrt %28 : vector<16x1xf32>
    %30 = vector.broadcast %29 : vector<16x1xf32> to vector<16x256xf32>
    %31 = arith.mulf %26, %30 : vector<16x256xf32>
    %c0_16 = arith.constant 0 : index
    %c0_17 = arith.constant 0 : index
    %32 = vector.load %arg5[%c0_16, %c0_17] : memref<1x256xf32, #tpu.memory_space<vmem>>, vector<1x256xf32>
    %33 = vector.broadcast %32 : vector<1x256xf32> to vector<16x256xf32>
    %34 = arith.mulf %31, %33 : vector<16x256xf32>
    %c0_18 = arith.constant 0 : index
    %c0_19 = arith.constant 0 : index
    %35 = vector.load %arg6[%c0_18, %c0_19] : memref<1x256xf32, #tpu.memory_space<vmem>>, vector<1x256xf32>
    %36 = vector.broadcast %35 : vector<1x256xf32> to vector<16x256xf32>
    %37 = arith.addf %34, %36 : vector<16x256xf32>
    %c0_20 = arith.constant 0 : index
    %c0_21 = arith.constant 0 : index
    %38 = vector.load %arg7[%c0_20, %c0_21] : memref<16x256xf32, #tpu.memory_space<vmem>>, vector<16x256xf32>
    tpu.vector_store %arg7[%c0_20, %c0_21], %37 {strides = array<i32>} : memref<16x256xf32, #tpu.memory_space<vmem>>, vector<16x256xf32>,
    return
  }
}

module attributes {stable_mosaic.version = 11 : i64} {
  func.func @_ffn_block_kernel(%arg0: memref<16x256xf32, #tpu.memory_space<vmem>>, %arg1: memref<256x1024xf32, #tpu.memory_space<vmem>>, %arg2: memref<1x1024xf32, #tpu.memory_space<vmem>>, %arg3: memref<1024x256xf32, #tpu.memory_space<vmem>>, %arg4: memref<1x256xf32, #tpu.memory_space<vmem>>, %arg5: memref<1x256xf32, #tpu.memory_space<vmem>>, %arg6: memref<1x256xf32, #tpu.memory_space<vmem>>, %arg7: memref<16x256xf32, #tpu.memory_space<vmem>>) attributes {dimension_semantics = [], scalar_prefetch = 0 : i64, scratch_operands = 0 : i64, tpu.core_type = #tpu.core_type<tc>} {
    %c0 = arith.constant 0 : index
    %c0_0 = arith.constant 0 : index
    %0 = vector.load %arg0[%c0, %c0_0] : memref<16x256xf32, #tpu.memory_space<vmem>>, vector<16x256xf32>
    %c0_1 = arith.constant 0 : index
    %c0_2 = arith.constant 0 : index
    %1 = vector.load %arg1[%c0_1, %c0_2] : memref<256x1024xf32, #tpu.memory_space<vmem>>, vector<256x1024xf32>
    %cst = arith.constant dense<0.000000e+00> : vector<16x1024xf32>
    %2 = tpu.matmul %0, %1, %cst {dimension_numbers = #tpu.dot_dimension_numbers<[1], [0], [0], [1], [0, 0, 1, 1], [], []>} : vector<16x256xf32>, vector<256x1024xf32>, vector<16x1024xf32> -> vector<16x1024xf32>
    %c0_3 = arith.constant 0 : index
    %c0_4 = arith.constant 0 : index
    %3 = vector.load %arg2[%c0_3, %c0_4] : memref<1x1024xf32, #tpu.memory_space<vmem>>, vector<1x1024xf32>
    %4 = vector.broadcast %3 : vector<1x1024xf32> to vector<16x1024xf32>
    %5 = arith.addf %2, %4 : vector<16x1024xf32>
    %cst_5 = arith.constant 0.000000e+00 : f32
    %6 = vector.broadcast %cst_5 : f32 to vector<16x1024xf32>
    %7 = arith.maximumf %5, %6 : vector<16x1024xf32>
    %c0_6 = arith.constant 0 : index
    %c0_7 = arith.constant 0 : index
    %8 = vector.load %arg3[%c0_6, %c0_7] : memref<1024x256xf32, #tpu.memory_space<vmem>>, vector<1024x256xf32>
    %cst_8 = arith.constant dense<0.000000e+00> : vector<16x256xf32>
    %9 = tpu.matmul %7, %8, %cst_8 {dimension_numbers = #tpu.dot_dimension_numbers<[1], [0], [0], [1], [0, 0, 1, 1], [], []>} : vector<16x1024xf32>, vector<1024x256xf32>, vector<16x256xf32> -> vector<16x256xf32>
    %10 = arith.addf %0, %9 : vector<16x256xf32>
    %c0_9 = arith.constant 0 : index
    %c0_10 = arith.constant 0 : index
    %11 = vector.load %arg4[%c0_9, %c0_10] : memref<1x256xf32, #tpu.memory_space<vmem>>, vector<1x256xf32>
    %12 = vector.broadcast %11 : vector<1x256xf32> to vector<16x256xf32>
    %13 = arith.addf %10, %12 : vector<16x256xf32>
    %cst_11 = arith.constant dense<0.000000e+00> : vector<16xf32>
    %14 = vector.multi_reduction <add>, %13, %cst_11 [1] : vector<16x256xf32> to vector<16xf32>
    %15 = vector.shape_cast %14 : vector<16xf32> to vector<16x1xf32>
    %cst_12 = arith.constant 2.560000e+02 : f32
    %16 = vector.broadcast %cst_12 : f32 to vector<16x1xf32>
    %17 = arith.divf %15, %16 : vector<16x1xf32>
    %18 = vector.broadcast %17 : vector<16x1xf32> to vector<16x256xf32>
    %19 = arith.subf %13, %18 : vector<16x256xf32>
    %20 = arith.mulf %19, %19 : vector<16x256xf32>
    %cst_13 = arith.constant dense<0.000000e+00> : vector<16xf32>
    %21 = vector.multi_reduction <add>, %20, %cst_13 [1] : vector<16x256xf32> to vector<16xf32>
    %22 = vector.shape_cast %21 : vector<16xf32> to vector<16x1xf32>
    %cst_14 = arith.constant 2.560000e+02 : f32
    %23 = vector.broadcast %cst_14 : f32 to vector<16x1xf32>
    %24 = arith.divf %22, %23 : vector<16x1xf32>
    %25 = vector.broadcast %17 : vector<16x1xf32> to vector<16x256xf32>
    %26 = arith.subf %13, %25 : vector<16x256xf32>
    %cst_15 = arith.constant 9.99999974E-6 : f32
    %27 = vector.broadcast %cst_15 : f32 to vector<16x1xf32>
    %28 = arith.addf %24, %27 : vector<16x1xf32>
    %29 = math.rsqrt %28 : vector<16x1xf32>
    %30 = vector.broadcast %29 : vector<16x1xf32> to vector<16x256xf32>
    %31 = arith.mulf %26, %30 : vector<16x256xf32>
    %c0_16 = arith.constant 0 : index
    %c0_17 = arith.constant 0 : index
    %32 = vector.load %arg5[%c0_16, %c0_17] : memref<1x256xf32, #tpu.memory_space<vmem>>, vector<1x256xf32>
    %33 = vector.broadcast %32 : vector<1x256xf32> to vector<16x256xf32>
    %34 = arith.mulf %31, %33 : vector<16x256xf32>
    %c0_18 = arith.constant 0 : index
    %c0_19 = arith.constant 0 : index
    %35 = vector.load %arg6[%c0_18, %c0_19] : memref<1x256xf32, #tpu.memory_space<vmem>>, vector<1x256xf32>
    %36 = vector.broadcast %35 : vector<1x256xf32> to vector<16x256xf32>
    %37 = arith.addf %34, %36 : vector<16x256xf32>
    %c0_20 = arith.constant 0 : index
    %c0_21 = arith.constant 0 : index
    %38 = vector.load %arg7[%c0_20, %c0_21] : memref<16x256xf32, #tpu.memory_space<vmem>>, vector<16x256xf32>
    tpu.vector_store %arg7[%c0_20, %c0_21], %37 {strides = array<i32>} : memref<16x256xf32, #tpu.memory_space<vmem>>, vector<16x256xf32>,
    return
  }
}

module attributes {stable_mosaic.version = 11 : i64} {
  func.func @_head_kernel(%arg0: memref<16x256xf32, #tpu.memory_space<vmem>>, %arg1: memref<1x256xf32, #tpu.memory_space<vmem>>, %arg2: memref<1x256xf32, #tpu.memory_space<vmem>>, %arg3: memref<256x256xf32, #tpu.memory_space<vmem>>, %arg4: memref<1x256xf32, #tpu.memory_space<vmem>>, %arg5: memref<1x256xf32, #tpu.memory_space<vmem>>, %arg6: memref<1x1xf32, #tpu.memory_space<vmem>>, %arg7: memref<256x128xf32, #tpu.memory_space<vmem>>, %arg8: memref<1x128xf32, #tpu.memory_space<vmem>>, %arg9: memref<1x128xf32, #tpu.memory_space<vmem>>, %arg10: memref<1x1xf32, #tpu.memory_space<vmem>>, %arg11: memref<2x128xf32, #tpu.memory_space<vmem>>) attributes {dimension_semantics = [], scalar_prefetch = 0 : i64, scratch_operands = 0 : i64, tpu.core_type = #tpu.core_type<tc>} {
    %c0 = arith.constant 0 : index
    %c0_0 = arith.constant 0 : index
    %0 = vector.load %arg0[%c0, %c0_0] : memref<16x256xf32, #tpu.memory_space<vmem>>, vector<16x256xf32>
    %cst = arith.constant dense<0.000000e+00> : vector<16xf32>
    %1 = vector.multi_reduction <add>, %0, %cst [1] : vector<16x256xf32> to vector<16xf32>
    %2 = vector.shape_cast %1 : vector<16xf32> to vector<16x1xf32>
    %cst_1 = arith.constant 2.560000e+02 : f32
    %3 = vector.broadcast %cst_1 : f32 to vector<16x1xf32>
    %4 = arith.divf %2, %3 : vector<16x1xf32>
    %5 = vector.broadcast %4 : vector<16x1xf32> to vector<16x256xf32>
    %6 = arith.subf %0, %5 : vector<16x256xf32>
    %7 = arith.mulf %6, %6 : vector<16x256xf32>
    %cst_2 = arith.constant dense<0.000000e+00> : vector<16xf32>
    %8 = vector.multi_reduction <add>, %7, %cst_2 [1] : vector<16x256xf32> to vector<16xf32>
    %9 = vector.shape_cast %8 : vector<16xf32> to vector<16x1xf32>
    %cst_3 = arith.constant 2.560000e+02 : f32
    %10 = vector.broadcast %cst_3 : f32 to vector<16x1xf32>
    %11 = arith.divf %9, %10 : vector<16x1xf32>
    %12 = vector.broadcast %4 : vector<16x1xf32> to vector<16x256xf32>
    %13 = arith.subf %0, %12 : vector<16x256xf32>
    %cst_4 = arith.constant 9.99999974E-6 : f32
    %14 = vector.broadcast %cst_4 : f32 to vector<16x1xf32>
    %15 = arith.addf %11, %14 : vector<16x1xf32>
    %16 = math.rsqrt %15 : vector<16x1xf32>
    %17 = vector.broadcast %16 : vector<16x1xf32> to vector<16x256xf32>
    %18 = arith.mulf %13, %17 : vector<16x256xf32>
    %c0_5 = arith.constant 0 : index
    %c0_6 = arith.constant 0 : index
    %19 = vector.load %arg1[%c0_5, %c0_6] : memref<1x256xf32, #tpu.memory_space<vmem>>, vector<1x256xf32>
    %20 = vector.broadcast %19 : vector<1x256xf32> to vector<16x256xf32>
    %21 = arith.mulf %18, %20 : vector<16x256xf32>
    %c0_7 = arith.constant 0 : index
    %c0_8 = arith.constant 0 : index
    %22 = vector.load %arg2[%c0_7, %c0_8] : memref<1x256xf32, #tpu.memory_space<vmem>>, vector<1x256xf32>
    %23 = vector.broadcast %22 : vector<1x256xf32> to vector<16x256xf32>
    %24 = arith.addf %21, %23 : vector<16x256xf32>
    %c0_9 = arith.constant 0 : index
    %c0_10 = arith.constant 0 : index
    %25 = vector.load %arg3[%c0_9, %c0_10] : memref<256x256xf32, #tpu.memory_space<vmem>>, vector<256x256xf32>
    %cst_11 = arith.constant dense<0.000000e+00> : vector<16x256xf32>
    %26 = tpu.matmul %24, %25, %cst_11 {dimension_numbers = #tpu.dot_dimension_numbers<[1], [0], [0], [1], [0, 0, 1, 1], [], []>} : vector<16x256xf32>, vector<256x256xf32>, vector<16x256xf32> -> vector<16x256xf32>
    %c0_12 = arith.constant 0 : index
    %c0_13 = arith.constant 0 : index
    %27 = vector.load %arg4[%c0_12, %c0_13] : memref<1x256xf32, #tpu.memory_space<vmem>>, vector<1x256xf32>
    %28 = vector.broadcast %27 : vector<1x256xf32> to vector<16x256xf32>
    %29 = arith.addf %26, %28 : vector<16x256xf32>
    %30 = math.tanh %29 : vector<16x256xf32>
    %c0_14 = arith.constant 0 : index
    %c0_15 = arith.constant 0 : index
    %31 = vector.load %arg5[%c0_14, %c0_15] : memref<1x256xf32, #tpu.memory_space<vmem>>, vector<1x256xf32>
    %32 = vector.broadcast %31 : vector<1x256xf32> to vector<16x256xf32>
    %33 = arith.mulf %30, %32 : vector<16x256xf32>
    %cst_16 = arith.constant dense<0.000000e+00> : vector<16xf32>
    %34 = vector.multi_reduction <add>, %33, %cst_16 [1] : vector<16x256xf32> to vector<16xf32>
    %35 = vector.shape_cast %34 : vector<16xf32> to vector<16x1xf32>
    %c0_17 = arith.constant 0 : index
    %c0_18 = arith.constant 0 : index
    %36 = vector.load %arg6[%c0_17, %c0_18] : memref<1x1xf32, #tpu.memory_space<vmem>>, vector<1x1xf32>
    %37 = vector.broadcast %36 : vector<1x1xf32> to vector<16x1xf32>
    %38 = arith.addf %35, %37 : vector<16x1xf32>
    %39 = vector.shape_cast %38 : vector<16x1xf32> to vector<2x8x1xf32>
    %cst_19 = arith.constant dense<0xFF800000> : vector<2x1xf32>
    %40 = vector.multi_reduction <maximumf>, %39, %cst_19 [1] : vector<2x8x1xf32> to vector<2x1xf32>
    %41 = vector.shape_cast %40 : vector<2x1xf32> to vector<2x1x1xf32>
    %42 = vector.broadcast %41 : vector<2x1x1xf32> to vector<2x8x1xf32>
    %43 = arith.subf %39, %42 : vector<2x8x1xf32>
    %44 = math.exp %43 : vector<2x8x1xf32>
    %cst_20 = arith.constant dense<0.000000e+00> : vector<2x1xf32>
    %45 = vector.multi_reduction <add>, %44, %cst_20 [1] : vector<2x8x1xf32> to vector<2x1xf32>
    %46 = vector.shape_cast %45 : vector<2x1xf32> to vector<2x1x1xf32>
    %47 = tpu.reciprocal %46 {approx = true} : vector<2x1x1xf32> -> vector<2x1x1xf32>
    %48 = vector.broadcast %47 : vector<2x1x1xf32> to vector<2x8x1xf32>
    %49 = arith.mulf %44, %48 : vector<2x8x1xf32>
    %50 = vector.shape_cast %24 : vector<16x256xf32> to vector<2x8x256xf32>
    %51 = vector.broadcast %49 : vector<2x8x1xf32> to vector<2x8x256xf32>
    %52 = arith.mulf %50, %51 : vector<2x8x256xf32>
    %cst_21 = arith.constant dense<0.000000e+00> : vector<2x256xf32>
    %53 = vector.multi_reduction <add>, %52, %cst_21 [1] : vector<2x8x256xf32> to vector<2x256xf32>
    %c0_22 = arith.constant 0 : index
    %c0_23 = arith.constant 0 : index
    %54 = vector.load %arg7[%c0_22, %c0_23] : memref<256x128xf32, #tpu.memory_space<vmem>>, vector<256x128xf32>
    %cst_24 = arith.constant dense<0.000000e+00> : vector<2x128xf32>
    %55 = tpu.matmul %53, %54, %cst_24 {dimension_numbers = #tpu.dot_dimension_numbers<[1], [0], [0], [1], [0, 0, 1, 1], [], []>} : vector<2x256xf32>, vector<256x128xf32>, vector<2x128xf32> -> vector<2x128xf32>
    %c0_25 = arith.constant 0 : index
    %c0_26 = arith.constant 0 : index
    %56 = vector.load %arg8[%c0_25, %c0_26] : memref<1x128xf32, #tpu.memory_space<vmem>>, vector<1x128xf32>
    %57 = vector.broadcast %56 : vector<1x128xf32> to vector<2x128xf32>
    %58 = arith.addf %55, %57 : vector<2x128xf32>
    %cst_27 = arith.constant 0.000000e+00 : f32
    %59 = vector.broadcast %cst_27 : f32 to vector<2x128xf32>
    %60 = arith.maximumf %58, %59 : vector<2x128xf32>
    %c0_28 = arith.constant 0 : index
    %c0_29 = arith.constant 0 : index
    %61 = vector.load %arg9[%c0_28, %c0_29] : memref<1x128xf32, #tpu.memory_space<vmem>>, vector<1x128xf32>
    %62 = vector.broadcast %61 : vector<1x128xf32> to vector<2x128xf32>
    %63 = arith.mulf %60, %62 : vector<2x128xf32>
    %cst_30 = arith.constant dense<0.000000e+00> : vector<2xf32>
    %64 = vector.multi_reduction <add>, %63, %cst_30 [1] : vector<2x128xf32> to vector<2xf32>
    %65 = vector.shape_cast %64 : vector<2xf32> to vector<2x1xf32>
    %c0_31 = arith.constant 0 : index
    %c0_32 = arith.constant 0 : index
    %66 = vector.load %arg10[%c0_31, %c0_32] : memref<1x1xf32, #tpu.memory_space<vmem>>, vector<1x1xf32>
    %67 = vector.broadcast %66 : vector<1x1xf32> to vector<2x1xf32>
    %68 = arith.addf %65, %67 : vector<2x1xf32>
    %69 = vector.shape_cast %68 : vector<2x1xf32> to vector<2x1xf32>
    %70 = vector.broadcast %69 : vector<2x1xf32> to vector<2x128xf32>
    %c0_33 = arith.constant 0 : index
    %c0_34 = arith.constant 0 : index
    %71 = vector.load %arg11[%c0_33, %c0_34] : memref<2x128xf32, #tpu.memory_space<vmem>>, vector<2x128xf32>
    tpu.vector_store %arg11[%c0_33, %c0_34], %70 {strides = array<i32>} : memref<2x128xf32, #tpu.memory_space<vmem>>, vector<2x128xf32>,
    return
  }
}

</mosaic_0001>

<bundles_post_ra>
// kernel: emodel_forward.15
= control target key start
LH: loop header
LB: loop body
LE: loop exit
PB: predicated region body
PF: predicated region fallthrough
CT: control target
= control target key end

     0   :  { %vm50_vm0 = vcmask 130048   ;;  %s418_s1 = inlined_call_operand.vmem [shape: f32[16,1024], index: 1, kind: input, shape index: {}]   ;;  %s419_s0 = inlined_call_operand.vmem [shape: f32[16,16], index: 0, kind: input, shape index: {}]   ;;  %s420_s2 = inlined_call_operand.vmem [shape: f32[1,1024], index: 2, kind: input, shape index: {}]   ;;  %s421_s3 = inlined_call_operand.vmem [shape: f32[16,1024], index: 3, kind: output, shape index: {}]  }
   0x1   :  { %v26_v0 = vld [vmem:[%s418_s1 + $0x50] sm:$0xff]  ;;  %v27_v1 = vld [vmem:[%s418_s1 + $0x58] sm:$0xff]  ;;  %v14_v4 = vld [vmem:[%s419_s0] sm:$0xff] }
   0x2   :  { %v18_v2 = vld [vmem:[%s418_s1 + $0x10] sm:$0xff]  ;;  %117 = vmatpush.msra.mxu2 %v26_v0  ;;  %140 = vmatpush.msra.mxu3 %v27_v1  ;;  %v19_v3 = vld [vmem:[%s418_s1 + $0x18] sm:$0xff]  ;;  %v24_v7 = vld [vmem:[%s418_s1 + $0x40] sm:$0xff] }
   0x3   :  { %v30_v5 = vld [vmem:[%s418_s1 + $0x70] sm:$0xff]  ;;  %v31_v6 = vld [vmem:[%s418_s1 + $0x78] sm:$0xff]  ;;  %v25_v8 = vld [vmem:[%s418_s1 + $0x48] sm:$0xff]  ;;  %71 = vmatpush.msra.mxu0 %v24_v7 }
   0x4   :  { %118 = vmatpush.msra.mxu2 %v18_v2  ;;  %141 = vmatpush.msra.mxu3 %v19_v3  ;;  %v22_v9 = vld [vmem:[%s418_s1 + $0x30] sm:$0xff]  ;;  %v16_v10 = vld [vmem:[%s418_s1] sm:$0xff]  ;;  %v17_v11 = vld [vmem:[%s418_s1 + $0x8] sm:$0xff] }
   0x5   :  { %265 = vmatmul.msk.f32.vlgmr.msra.gmra.mxu2 %vm50_vm0, %v14_v4  ;;  %267 = vmatmul.msk.f32.vlgmr.msra.gmra.mxu3 %vm50_vm0, %v14_v4  ;;  %v23_v12 = vld [vmem:[%s418_s1 + $0x38] sm:$0xff]  ;;  %v28_v13 = vld [vmem:[%s418_s1 + $0x60] sm:$0xff]  ;;  %v29_v14 = vld [vmem:[%s418_s1 + $0x68] sm:$0xff] }
   0x6   :  { %209 = vmatpush.msrb.mxu2 %v30_v5  ;;  %232 = vmatpush.msrb.mxu3 %v31_v6  ;;  %v15_v15 = vld [vmem:[%s419_s0 + $0x8] sm:$0xff]  ;;  %v20_v16 = vld [vmem:[%s418_s1 + $0x20] sm:$0xff] }
   0x7   :  { %94 = vmatpush.msra.mxu1 %v25_v8  ;;  %72 = vmatpush.msra.mxu0 %v16_v10  ;;  %v21_v17 = vld [vmem:[%s418_s1 + $0x28] sm:$0xff]  ;;  %v32_v18 = vld [vmem:[%s420_s2] sm:$0xff] }
   0x8   :  { %210 = vmatpush.msrb.mxu2 %v22_v9  ;;  %233 = vmatpush.msrb.mxu3 %v23_v12  ;;  %v34_v19 = vperm.slane %v32_v18, 0  ;;  %v35_v20 = vperm.slane %v32_v18, 1  ;;  %v36_v21 = vperm.slane %v32_v18, 2  ;;  %v37_v22 = vperm.slane %v32_v18, 3 }
   0x9   :  { %95 = vmatpush.msra.mxu1 %v17_v11  ;;  %261 = vmatmul.msk.f32.vlgmr.msra.gmra.mxu0 %vm50_vm0, %v14_v4  ;;  %v38_v39 = vperm.slane %v32_v18, 4  ;;  %v39_v40 = vperm.slane %v32_v18, 5  ;;  %v40_v41 = vperm.slane %v32_v18, 6  ;;  %v41_v42 = vperm.slane %v32_v18, 7 }
   0xa   :  { %263 = vmatmul.msk.f32.vlgmr.msra.gmra.mxu1 %vm50_vm0, %v14_v4  ;;  %163 = vmatpush.msrb.mxu0 %v28_v13 }
   0xb   :  { %186 = vmatpush.msrb.mxu1 %v29_v14 }
   0xc   :  { %164 = vmatpush.msrb.mxu0 %v20_v16 }
   0xd   :  { %266 = vmatmul.msk.f32.gmra.mxu2 %vm50_vm0, %v15_v15  ;;  %268 = vmatmul.msk.f32.gmra.mxu3 %vm50_vm0, %v15_v15 }
   0xe   :  { %187 = vmatpush.msrb.mxu1 %v21_v17 }
  0x11   :  { %262 = vmatmul.msk.f32.gmra.mxu0 %vm50_vm0, %v15_v15 }
  0x12   :  { %264 = vmatmul.msk.f32.gmra.mxu1 %vm50_vm0, %v15_v15 }
  0x15   :  { %273 = vmatmul.msk.f32.vlgmr.msrb.gmra.mxu2 %vm50_vm0, %v14_v4  ;;  %275 = vmatmul.msk.f32.vlgmr.msrb.gmra.mxu3 %vm50_vm0, %v14_v4 }
  0x19   :  { %269 = vmatmul.msk.f32.vlgmr.msrb.gmra.mxu0 %vm50_vm0, %v14_v4 }
  0x1a   :  { %271 = vmatmul.msk.f32.vlgmr.msrb.gmra.mxu1 %vm50_vm0, %v14_v4 }
  0x1d   :  { %274 = vmatmul.msk.f32.gmra.mxu2 %vm50_vm0, %v15_v15  ;;  %276 = vmatmul.msk.f32.gmra.mxu3 %vm50_vm0, %v15_v15 }
  0x21   :  { %270 = vmatmul.msk.f32.gmra.mxu0 %vm50_vm0, %v15_v15 }
  0x22   :  { %272 = vmatmul.msk.f32.gmra.mxu1 %vm50_vm0, %v15_v15 }
  0x86   :  { %v74_v23 = vpop.f32.mrf.mxu0 }
  0x87   :  { %v97_v24 = vpop.f32.mrf.mxu1  ;;  %v75_v25 = vadd.f32 %v74_v23, %v34_v19 }
  0x88   :  { %v98_v26 = vadd.f32 %v97_v24, %v35_v20  ;;  %v120_v27 = vpop.f32.mrf.mxu2  ;;  %v143_v28 = vpop.f32.mrf.mxu3 }
  0x89   :  { %v121_v29 = vadd.f32 %v120_v27, %v36_v21  ;;  %v144_v30 = vadd.f32 %v143_v28, %v37_v22  ;;  %241 = vst [vmem:[%s421_s3] sm:$0xff] %v75_v25 }
  0x8a   :  { %242 = vst [vmem:[%s421_s3 + $0x8] sm:$0xff] %v98_v26 }
  0x8b   :  { %243 = vst [vmem:[%s421_s3 + $0x10] sm:$0xff] %v121_v29 }
  0x8c   :  { %244 = vst [vmem:[%s421_s3 + $0x18] sm:$0xff] %v144_v30 }
  0x8e   :  { %v77_v31 = vpop.f32.mrf.mxu0 }
  0x8f   :  { %v100_v32 = vpop.f32.mrf.mxu1  ;;  %v78_v33 = vadd.f32 %v77_v31, %v34_v19 }
  0x90   :  { %v101_v34 = vadd.f32 %v100_v32, %v35_v20  ;;  %v123_v35 = vpop.f32.mrf.mxu2  ;;  %v146_v36 = vpop.f32.mrf.mxu3 }
  0x91   :  { %v124_v37 = vadd.f32 %v123_v35, %v36_v21  ;;  %v147_v38 = vadd.f32 %v146_v36, %v37_v22  ;;  %249 = vst [vmem:[%s421_s3 + $0x40] sm:$0xff] %v78_v33 }
  0x92   :  { %250 = vst [vmem:[%s421_s3 + $0x48] sm:$0xff] %v101_v34 }
  0x93   :  { %251 = vst [vmem:[%s421_s3 + $0x50] sm:$0xff] %v124_v37 }
  0x94   :  { %252 = vst [vmem:[%s421_s3 + $0x58] sm:$0xff] %v147_v38 }
  0x96   :  { %v166_v43 = vpop.f32.mrf.mxu0 }
  0x97   :  { %v189_v44 = vpop.f32.mrf.mxu1  ;;  %v167_v45 = vadd.f32 %v166_v43, %v38_v39 }
  0x98   :  { %v190_v46 = vadd.f32 %v189_v44, %v39_v40  ;;  %v212_v47 = vpop.f32.mrf.mxu2  ;;  %v235_v48 = vpop.f32.mrf.mxu3 }
  0x99   :  { %v213_v49 = vadd.f32 %v212_v47, %v40_v41  ;;  %v236_v50 = vadd.f32 %v235_v48, %v41_v42  ;;  %245 = vst [vmem:[%s421_s3 + $0x20] sm:$0xff] %v167_v45 }
  0x9a   :  { %246 = vst [vmem:[%s421_s3 + $0x28] sm:$0xff] %v190_v46 }
  0x9b   :  { %247 = vst [vmem:[%s421_s3 + $0x30] sm:$0xff] %v213_v49 }
  0x9c   :  { %248 = vst [vmem:[%s421_s3 + $0x38] sm:$0xff] %v236_v50 }
  0x9e   :  { %v169_v51 = vpop.f32.mrf.mxu0 }
  0x9f   :  { %v192_v52 = vpop.f32.mrf.mxu1  ;;  %v170_v53 = vadd.f32 %v169_v51, %v38_v39 }
  0xa0   :  { %v193_v54 = vadd.f32 %v192_v52, %v39_v40  ;;  %v215_v55 = vpop.f32.mrf.mxu2  ;;  %v238_v56 = vpop.f32.mrf.mxu3 }
  0xa1   :  { %v216_v57 = vadd.f32 %v215_v55, %v40_v41  ;;  %v239_v58 = vadd.f32 %v238_v56, %v41_v42  ;;  %253 = vst [vmem:[%s421_s3 + $0x60] sm:$0xff] %v170_v53 }
  0xa2   :  { %254 = vst [vmem:[%s421_s3 + $0x68] sm:$0xff] %v193_v54 }
  0xa3   :  { %255 = vst [vmem:[%s421_s3 + $0x70] sm:$0xff] %v216_v57 }
  0xa4   :  { %256 = vst [vmem:[%s421_s3 + $0x78] sm:$0xff] %v239_v58 }

// kernel: emodel_forward.16
= control target key start
LH: loop header
LB: loop body
LE: loop exit
PB: predicated region body
PF: predicated region fallthrough
CT: control target
= control target key end

     0   :  { %11 = vsyncpa [#allocation7], 0  ;;  %s1033_s18 = smov 0   ;;  %s1297_s0 = inlined_call_operand.vmem [shape: f32[8,2,1024], index: 0, kind: input, shape index: {}, may-alias: {0,1}]   ;;  %s1298_s1 = inlined_call_operand.vmem [shape: f32[8,2,1024], index: 1, kind: input, shape index: {}, may-alias: {0,1}]   ;;  %s1299_s2 = inlined_call_operand.vmem [shape: f32[128,512], index: 2, kind: input, shape index: {}]   ;;  %s1300_s3 = inlined_call_operand.hbm [shape: f32[128,512], index: 3, kind: input, shape index: {}]   ;;  %s1301_s4 = inlined_call_operand.vmem [shape: f32[8,2,128], index: 4, kind: output, shape index: {0}]   ;;  %s1302_s5 = inlined_call_operand.vmem [shape: f32[8,2,128], index: 5, kind: output, shape index: {1}]  }
   0x1 LB: > { %s186_s21 = sshll.u32 %s1300_s3, 4  ;;  %s1042_s22 = sadd.s32 4294967295, %s997_s18   ;;  %s997_s18 = sphi %s1033_s18, %s17_s18   ;;  %s187_s21 = int_to_ptr.hbm [resolvable:$true] %s186_s21 }
   0x2   : > { %p880_p0 = scmp.ge.s32.totalorder %s997_s18, 1  ;;  %p172_p1 = scmp.lt.s32.totalorder %s997_s18, 9 }
   0x3   : > { %p881_p2 = scmp.ne.s32.totalorder %s1042_s22, 0  ;;  %p911_p3 = scmp.eq.s32.totalorder %s1042_s22, 0 }
   0x4   : > { %p173_p4 = pnand %p880_p0, %p172_p1  ;;  %s999_s23 = smov [#allocation6]  }
   0x5   : > { %s188_s24 = sshll.u32 %s999_s23, 4  ;;  %s1000_s25 = smov 512   ;;  %s189_s24 = int_to_ptr.vmem [resolvable:$true] %s188_s24 }
   0x6   : > { %p907_p5 = pneg %p173_p4  ;;  %s1001_s26 = smov 32  }
   0x7   : > { %223 = sbr.rel (%p173_p4) target bundleno = 278 (0x116), region = 36 }
   0x8   : > { %p908_p6 = pnand %p911_p3, %p907_p5 }
   0xa   : > { %910 = dma.hbm_to_vmem [thread:$0]  (!%p908_p6), %s187_s21, 8192, %s189_s24, [#allocation7], %s1000_s25, %s1000_s25, %s1001_s26  }
   0xc   : > { %992 = dma.done.wait (%p911_p3), [#allocation7], 8192  }
   0xd   : > { %994 = vsyncadd (%p911_p3), [#allocation7], 4294959104  ;;  %p263_p7 = scmp.lt.s32.totalorder %s1042_s22, 7  ;;  %s268_s27 = ssub.s32 7, %s1042_s22 }
   0xe   : > { %p269_p8 = scmp.lt.s32.totalorder %s268_s27, 7 }
   0xf   : > { %s264_s28 = scalar_select %p263_p7, %s1042_s22, 7 }
  0x10   : > { %s1308_s27 = smov (!%p269_p8, %s268_s27), 7 }
  0x11   : > { %s901_s29 = sshll.u32 %s264_s28, 4  ;;  %s889_s30 = sshll.u32 %s264_s28, 1 }
  0x12   : > { %s1054_s8 = scalar_lea.vmem %s1297_s0, %s901_s29  ;;  %s902_s9 = sshll.u32 %s1308_s27, 4 }
  0x13   : > { %s1059_s12 = scalar_lea.vmem %s1298_s1, %s902_s9  ;;  %s1064_s15 = scalar_lea.vmem %s1301_s4, %s889_s30 }
  0x14   : > { %s890_s16 = sshll.u32 %s1308_s27, 1  ;;  %289 = sbr.rel (%p881_p2) target bundleno = 30 (0x1e), region = 44 }
  0x15   : > { %s1069_s20 = scalar_lea.vmem %s1302_s5, %s890_s16 }
  0x19   : > { %v1002_v0 = vmov 0.0  }
  0x1a   : > { %290 = vst [vmem:[#allocation2] sm:$0x3] %v1002_v0 }
  0x1b   : > { %291 = vst [vmem:[#allocation3] sm:$0x3] %v1002_v0 }
  0x1c   : > { %292 = vst [vmem:[#allocation4] sm:$0x3] %v1002_v0 }
  0x1d   : > { %293 = vst [vmem:[#allocation5] sm:$0x3] %v1002_v0 }
  0x1e PF: > { %v358_v1 = vld [vmem:[%s1299_s2 + $0x1f0] sm:$0xff]  ;;  %v359_v2 = vld [vmem:[%s1299_s2 + $0x1f8] sm:$0xff]  ;;  %v357_v7 = vld [vmem:[%s1299_s2 + $0x1e8] sm:$0xff]  ;;  %vm447_vm0 = vcmask 1041408   ;;  %vm449_vm1 = vcmask 1045508   ;;  %vm451_vm2 = vcmask 1043456  }
  0x1f   : > { %v354_v3 = vld [vmem:[%s1299_s2 + $0x1d0] sm:$0xff]  ;;  %400 = vmatpush.msra.mxu2 %v358_v1  ;;  %420 = vmatpush.msra.mxu3 %v359_v2  ;;  %v355_v4 = vld [vmem:[%s1299_s2 + $0x1d8] sm:$0xff]  ;;  %v356_v8 = vld [vmem:[%s1299_s2 + $0x1e0] sm:$0xff] }
  0x20   : > { %v350_v5 = vld [vmem:[%s1299_s2 + $0x1b0] sm:$0xff]  ;;  %v351_v6 = vld [vmem:[%s1299_s2 + $0x1b8] sm:$0xff]  ;;  %v353_v9 = vld [vmem:[%s1299_s2 + $0x1c8] sm:$0xff]  ;;  %380 = vmatpush.msra.mxu1 %v357_v7  ;;  %360 = vmatpush.msra.mxu0 %v356_v8 }
  0x21   : > { %401 = vmatpush.msra.mxu2 %v354_v3  ;;  %421 = vmatpush.msra.mxu3 %v355_v4  ;;  %v346_v10 = vld [vmem:[%s1299_s2 + $0x190] sm:$0xff]  ;;  %v347_v11 = vld [vmem:[%s1299_s2 + $0x198] sm:$0xff]  ;;  %v352_v12 = vld [vmem:[%s1299_s2 + $0x1c0] sm:$0xff] }
  0x22   : > { %v349_v13 = vld [vmem:[%s1299_s2 + $0x1a8] sm:$0xff]  ;;  %v348_v14 = vld [vmem:[%s1299_s2 + $0x1a0] sm:$0xff]  ;;  %381 = vmatpush.msra.mxu1 %v353_v9  ;;  %v342_v15 = vld [vmem:[%s1299_s2 + $0x170] sm:$0xff]  ;;  %361 = vmatpush.msra.mxu0 %v352_v12 }
  0x23   : > { %402 = vmatpush.msra.mxu2 %v350_v5  ;;  %422 = vmatpush.msra.mxu3 %v351_v6  ;;  %v343_v16 = vld [vmem:[%s1299_s2 + $0x178] sm:$0xff]  ;;  %v345_v17 = vld [vmem:[%s1299_s2 + $0x188] sm:$0xff]  ;;  %v344_v18 = vld [vmem:[%s1299_s2 + $0x180] sm:$0xff] }
  0x24   : > { %382 = vmatpush.msra.mxu1 %v349_v13  ;;  %v338_v19 = vld [vmem:[%s1299_s2 + $0x150] sm:$0xff]  ;;  %v339_v20 = vld [vmem:[%s1299_s2 + $0x158] sm:$0xff]  ;;  %362 = vmatpush.msra.mxu0 %v348_v14  ;;  %v341_v21 = vld [vmem:[%s1299_s2 + $0x168] sm:$0xff] }
  0x25   : > { %403 = vmatpush.msra.mxu2 %v346_v10  ;;  %423 = vmatpush.msra.mxu3 %v347_v11  ;;  %v340_v22 = vld [vmem:[%s1299_s2 + $0x160] sm:$0xff]  ;;  %v334_v23 = vld [vmem:[%s1299_s2 + $0x130] sm:$0xff]  ;;  %v335_v24 = vld [vmem:[%s1299_s2 + $0x138] sm:$0xff] }
  0x26   : > { %383 = vmatpush.msra.mxu1 %v345_v17  ;;  %363 = vmatpush.msra.mxu0 %v344_v18  ;;  %v337_v25 = vld [vmem:[%s1299_s2 + $0x148] sm:$0xff]  ;;  %v336_v26 = vld [vmem:[%s1299_s2 + $0x140] sm:$0xff]  ;;  %v330_v27 = vld [vmem:[%s1299_s2 + $0x110] sm:$0xff] }
  0x27   : > { %404 = vmatpush.msra.mxu2 %v342_v15  ;;  %424 = vmatpush.msra.mxu3 %v343_v16  ;;  %v331_v28 = vld [vmem:[%s1299_s2 + $0x118] sm:$0xff]  ;;  %v333_v29 = vld [vmem:[%s1299_s2 + $0x128] sm:$0xff]  ;;  %v332_v30 = vld [vmem:[%s1299_s2 + $0x120] sm:$0xff] }
  0x28   : > { %384 = vmatpush.msra.mxu1 %v341_v21  ;;  %364 = vmatpush.msra.mxu0 %v340_v22  ;;  %v326_v31 = vld [vmem:[%s1299_s2 + $0xf0] sm:$0xff]  ;;  %v327_v32 = vld [vmem:[%s1299_s2 + $0xf8] sm:$0xff]  ;;  %v329_v33 = vld [vmem:[%s1299_s2 + $0x108] sm:$0xff] }
  0x29   : > { %405 = vmatpush.msra.mxu2 %v338_v19  ;;  %425 = vmatpush.msra.mxu3 %v339_v20  ;;  %v328_v34 = vld [vmem:[%s1299_s2 + $0x100] sm:$0xff]  ;;  %v322_v35 = vld [vmem:[%s1299_s2 + $0xd0] sm:$0xff]  ;;  %v323_v36 = vld [vmem:[%s1299_s2 + $0xd8] sm:$0xff] }
  0x2a   : > { %385 = vmatpush.msra.mxu1 %v337_v25  ;;  %365 = vmatpush.msra.mxu0 %v336_v26  ;;  %v325_v37 = vld [vmem:[%s1299_s2 + $0xe8] sm:$0xff]  ;;  %v324_v38 = vld [vmem:[%s1299_s2 + $0xe0] sm:$0xff]  ;;  %v318_v39 = vld [vmem:[%s1299_s2 + $0xb0] sm:$0xff] }
  0x2b   : > { %406 = vmatpush.msra.mxu2 %v334_v23  ;;  %426 = vmatpush.msra.mxu3 %v335_v24  ;;  %v319_v40 = vld [vmem:[%s1299_s2 + $0xb8] sm:$0xff]  ;;  %v321_v41 = vld [vmem:[%s1299_s2 + $0xc8] sm:$0xff]  ;;  %v320_v42 = vld [vmem:[%s1299_s2 + $0xc0] sm:$0xff] }
  0x2c   : > { %386 = vmatpush.msra.mxu1 %v333_v29  ;;  %366 = vmatpush.msra.mxu0 %v332_v30  ;;  %v314_v43 = vld [vmem:[%s1299_s2 + $0x90] sm:$0xff]  ;;  %v315_v44 = vld [vmem:[%s1299_s2 + $0x98] sm:$0xff]  ;;  %v317_v45 = vld [vmem:[%s1299_s2 + $0xa8] sm:$0xff] }
  0x2d   : > { %407 = vmatpush.msra.mxu2 %v330_v27  ;;  %427 = vmatpush.msra.mxu3 %v331_v28  ;;  %v316_v46 = vld [vmem:[%s1299_s2 + $0xa0] sm:$0xff]  ;;  %v310_v47 = vld [vmem:[%s1299_s2 + $0x70] sm:$0xff]  ;;  %v311_v48 = vld [vmem:[%s1299_s2 + $0x78] sm:$0xff] }
  0x2e   : > { %387 = vmatpush.msra.mxu1 %v329_v33  ;;  %367 = vmatpush.msra.mxu0 %v328_v34  ;;  %v313_v49 = vld [vmem:[%s1299_s2 + $0x88] sm:$0xff]  ;;  %v312_v50 = vld [vmem:[%s1299_s2 + $0x80] sm:$0xff]  ;;  %v306_v51 = vld [vmem:[%s1299_s2 + $0x50] sm:$0xff] }
  0x2f   : > { %408 = vmatpush.msra.mxu2 %v326_v31  ;;  %428 = vmatpush.msra.mxu3 %v327_v32  ;;  %v307_v52 = vld [vmem:[%s1299_s2 + $0x58] sm:$0xff]  ;;  %v309_v53 = vld [vmem:[%s1299_s2 + $0x68] sm:$0xff]  ;;  %v308_v54 = vld [vmem:[%s1299_s2 + $0x60] sm:$0xff] }
  0x30   : > { %388 = vmatpush.msra.mxu1 %v325_v37  ;;  %368 = vmatpush.msra.mxu0 %v324_v38  ;;  %v302_v55 = vld [vmem:[%s1299_s2 + $0x30] sm:$0xff]  ;;  %v303_v56 = vld [vmem:[%s1299_s2 + $0x38] sm:$0xff]  ;;  %v305_v57 = vld [vmem:[%s1299_s2 + $0x48] sm:$0xff] }
  0x31   : > { %409 = vmatpush.msra.mxu2 %v322_v35  ;;  %429 = vmatpush.msra.mxu3 %v323_v36  ;;  %v304_v58 = vld [vmem:[%s1299_s2 + $0x40] sm:$0xff]  ;;  %v298_v59 = vld [vmem:[%s1299_s2 + $0x10] sm:$0xff]  ;;  %v299_v60 = vld [vmem:[%s1299_s2 + $0x18] sm:$0xff] }
  0x32   : > { %389 = vmatpush.msra.mxu1 %v321_v41  ;;  %369 = vmatpush.msra.mxu0 %v320_v42  ;;  %v295_v61 = vld [vmem:[#allocation2] sm:$0x3]  ;;  %v593_v62 = vld [vmem:[#allocation6 + $0x1f0] sm:$0xff]  ;;  %v301_v0 = vld [vmem:[%s1299_s2 + $0x28] sm:$0xff] }
  0x33   : > { %410 = vmatpush.msra.mxu2 %v318_v39  ;;  %430 = vmatpush.msra.mxu3 %v319_v40  ;;  %v594_v63 = vld [vmem:[#allocation6 + $0x1f8] sm:$0xff]  ;;  %v589_v2 = vld [vmem:[#allocation6 + $0x1d0] sm:$0xff]  ;;  %v297_v4 = vld [vmem:[%s1299_s2 + $0x8] sm:$0xff] }
  0x34   : > { %390 = vmatpush.msra.mxu1 %v317_v45  ;;  %370 = vmatpush.msra.mxu0 %v316_v46  ;;  %v300_v1 = vld [vmem:[%s1299_s2 + $0x20] sm:$0xff]  ;;  %v585_v6 = vld [vmem:[#allocation6 + $0x1b0] sm:$0xff]  ;;  %v592_v8 = vld [vmem:[#allocation6 + $0x1e8] sm:$0xff] }
  0x35   : > { %411 = vmatpush.msra.mxu2 %v314_v43  ;;  %431 = vmatpush.msra.mxu3 %v315_v44  ;;  %v590_v3 = vld [vmem:[#allocation6 + $0x1d8] sm:$0xff]  ;;  %v581_v9 = vld [vmem:[#allocation6 + $0x190] sm:$0xff]  ;;  %v591_v11 = vld [vmem:[#allocation6 + $0x1e0] sm:$0xff] }
  0x36   : > { %391 = vmatpush.msra.mxu1 %v313_v49  ;;  %371 = vmatpush.msra.mxu0 %v312_v50  ;;  %v296_v5 = vld [vmem:[%s1299_s2] sm:$0xff]  ;;  %v588_v12 = vld [vmem:[#allocation6 + $0x1c8] sm:$0xff]  ;;  %v577_v13 = vld [vmem:[#allocation6 + $0x170] sm:$0xff] }
  0x37   : > { %412 = vmatpush.msra.mxu2 %v310_v47  ;;  %432 = vmatpush.msra.mxu3 %v311_v48  ;;  %v586_v7 = vld [vmem:[#allocation6 + $0x1b8] sm:$0xff]  ;;  %v587_v15 = vld [vmem:[#allocation6 + $0x1c0] sm:$0xff]  ;;  %v584_v16 = vld [vmem:[#allocation6 + $0x1a8] sm:$0xff] }
  0x38   : > { %392 = vmatpush.msra.mxu1 %v309_v53  ;;  %372 = vmatpush.msra.mxu0 %v308_v54  ;;  %v582_v10 = vld [vmem:[#allocation6 + $0x198] sm:$0xff]  ;;  %v573_v17 = vld [vmem:[#allocation6 + $0x150] sm:$0xff]  ;;  %v583_v19 = vld [vmem:[#allocation6 + $0x1a0] sm:$0xff] }
  0x39   : > { %413 = vmatpush.msra.mxu2 %v306_v51  ;;  %433 = vmatpush.msra.mxu3 %v307_v52  ;;  %v578_v14 = vld [vmem:[#allocation6 + $0x178] sm:$0xff]  ;;  %v580_v20 = vld [vmem:[#allocation6 + $0x188] sm:$0xff]  ;;  %v569_v21 = vld [vmem:[#allocation6 + $0x130] sm:$0xff] }
  0x3a   : > { %393 = vmatpush.msra.mxu1 %v305_v57  ;;  %373 = vmatpush.msra.mxu0 %v304_v58  ;;  %v574_v18 = vld [vmem:[#allocation6 + $0x158] sm:$0xff]  ;;  %v579_v23 = vld [vmem:[#allocation6 + $0x180] sm:$0xff]  ;;  %v576_v24 = vld [vmem:[#allocation6 + $0x168] sm:$0xff] }
  0x3b   : > { %414 = vmatpush.msra.mxu2 %v302_v55  ;;  %434 = vmatpush.msra.mxu3 %v303_v56  ;;  %v570_v22 = vld [vmem:[#allocation6 + $0x138] sm:$0xff]  ;;  %v565_v25 = vld [vmem:[#allocation6 + $0x110] sm:$0xff]  ;;  %v575_v27 = vld [vmem:[#allocation6 + $0x160] sm:$0xff] }
  0x3c   : > { %394 = vmatpush.msra.mxu1 %v301_v0  ;;  %374 = vmatpush.msra.mxu0 %v300_v1  ;;  %v566_v26 = vld [vmem:[#allocation6 + $0x118] sm:$0xff]  ;;  %v572_v28 = vld [vmem:[#allocation6 + $0x148] sm:$0xff]  ;;  %v561_v29 = vld [vmem:[#allocation6 + $0xf0] sm:$0xff] }
  0x3d   : > { %415 = vmatpush.msra.mxu2 %v298_v59  ;;  %435 = vmatpush.msra.mxu3 %v299_v60  ;;  %v562_v30 = vld [vmem:[#allocation6 + $0xf8] sm:$0xff]  ;;  %v571_v31 = vld [vmem:[#allocation6 + $0x140] sm:$0xff]  ;;  %v568_v32 = vld [vmem:[#allocation6 + $0x128] sm:$0xff] }
  0x3e   : > { %416 = vmatmul.f32.vlgmr.msra.gmra.mxu2 %v295_v61  ;;  %436 = vmatmul.f32.vlgmr.msra.gmra.mxu3 %v295_v61  ;;  %v557_v33 = vld [vmem:[#allocation6 + $0xd0] sm:$0xff]  ;;  %v558_v34 = vld [vmem:[#allocation6 + $0xd8] sm:$0xff]  ;;  %v567_v35 = vld [vmem:[#allocation6 + $0x120] sm:$0xff] }
  0x3f   : > { %635 = vmatpush.msrb.mxu2 %v593_v62  ;;  %655 = vmatpush.msrb.mxu3 %v594_v63  ;;  %v564_v36 = vld [vmem:[#allocation6 + $0x108] sm:$0xff]  ;;  %v553_v37 = vld [vmem:[#allocation6 + $0xb0] sm:$0xff]  ;;  %v554_v38 = vld [vmem:[#allocation6 + $0xb8] sm:$0xff] }
  0x40   : > { %395 = vmatpush.msra.mxu1 %v297_v4  ;;  %375 = vmatpush.msra.mxu0 %v296_v5  ;;  %v563_v39 = vld [vmem:[#allocation6 + $0x100] sm:$0xff]  ;;  %v560_v40 = vld [vmem:[#allocation6 + $0xe8] sm:$0xff]  ;;  %v549_v41 = vld [vmem:[#allocation6 + $0x90] sm:$0xff] }
  0x41   : > { %636 = vmatpush.msrb.mxu2 %v589_v2  ;;  %656 = vmatpush.msrb.mxu3 %v590_v3  ;;  %v550_v42 = vld [vmem:[#allocation6 + $0x98] sm:$0xff]  ;;  %v559_v43 = vld [vmem:[#allocation6 + $0xe0] sm:$0xff]  ;;  %v556_v44 = vld [vmem:[#allocation6 + $0xc8] sm:$0xff] }
  0x42   : > { %396 = vmatmul.f32.vlgmr.msra.gmra.mxu1 %v295_v61  ;;  %376 = vmatmul.f32.vlgmr.msra.gmra.mxu0 %v295_v61  ;;  %v545_v45 = vld [vmem:[#allocation6 + $0x70] sm:$0xff]  ;;  %v546_v46 = vld [vmem:[#allocation6 + $0x78] sm:$0xff]  ;;  %v555_v47 = vld [vmem:[#allocation6 + $0xc0] sm:$0xff] }
  0x43   : > { %637 = vmatpush.msrb.mxu2 %v585_v6  ;;  %657 = vmatpush.msrb.mxu3 %v586_v7  ;;  %v552_v48 = vld [vmem:[#allocation6 + $0xa8] sm:$0xff]  ;;  %v541_v49 = vld [vmem:[#allocation6 + $0x50] sm:$0xff]  ;;  %v542_v50 = vld [vmem:[#allocation6 + $0x58] sm:$0xff] }
  0x44   : > { %615 = vmatpush.msrb.mxu1 %v592_v8  ;;  %595 = vmatpush.msrb.mxu0 %v591_v11  ;;  %v551_v51 = vld [vmem:[#allocation6 + $0xa0] sm:$0xff]  ;;  %v548_v52 = vld [vmem:[#allocation6 + $0x88] sm:$0xff]  ;;  %v537_v53 = vld [vmem:[#allocation6 + $0x30] sm:$0xff] }
  0x45   : > { %638 = vmatpush.msrb.mxu2 %v581_v9  ;;  %658 = vmatpush.msrb.mxu3 %v582_v10  ;;  %v538_v54 = vld [vmem:[#allocation6 + $0x38] sm:$0xff]  ;;  %v547_v55 = vld [vmem:[#allocation6 + $0x80] sm:$0xff]  ;;  %v544_v56 = vld [vmem:[#allocation6 + $0x68] sm:$0xff] }
  0x46   : > { %616 = vmatpush.msrb.mxu1 %v588_v12  ;;  %596 = vmatpush.msrb.mxu0 %v587_v15  ;;  %v533_v57 = vld [vmem:[#allocation6 + $0x10] sm:$0xff]  ;;  %v534_v58 = vld [vmem:[#allocation6 + $0x18] sm:$0xff]  ;;  %v543_v60 = vld [vmem:[#allocation6 + $0x60] sm:$0xff] }
  0x47   : > { %639 = vmatpush.msrb.mxu2 %v577_v13  ;;  %659 = vmatpush.msrb.mxu3 %v578_v14  ;;  %v530_v59 = vld [vmem:[#allocation4] sm:$0x3]  ;;  %v540_v61 = vld [vmem:[#allocation6 + $0x48] sm:$0xff]  ;;  %v539_v62 = vld [vmem:[#allocation6 + $0x40] sm:$0xff] }
  0x48   : > { %617 = vmatpush.msrb.mxu1 %v584_v16  ;;  %597 = vmatpush.msrb.mxu0 %v583_v19  ;;  %v536_v63 = vld [vmem:[#allocation6 + $0x28] sm:$0xff]  ;;  %v535_v0 = vld [vmem:[#allocation6 + $0x20] sm:$0xff]  ;;  %v294_v10 = vld [vmem:[%s1054_s8] sm:$0xff] }
  0x49   : > { %640 = vmatpush.msrb.mxu2 %v573_v17  ;;  %660 = vmatpush.msrb.mxu3 %v574_v18  ;;  %v532_v1 = vld [vmem:[#allocation6 + $0x8] sm:$0xff]  ;;  %v531_v2 = vld [vmem:[#allocation6] sm:$0xff] }
  0x4a   : > { %618 = vmatpush.msrb.mxu1 %v580_v20  ;;  %598 = vmatpush.msrb.mxu0 %v579_v23 }
  0x4b   : > { %641 = vmatpush.msrb.mxu2 %v569_v21  ;;  %661 = vmatpush.msrb.mxu3 %v570_v22 }
  0x4c   : > { %619 = vmatpush.msrb.mxu1 %v576_v24  ;;  %599 = vmatpush.msrb.mxu0 %v575_v27 }
  0x4d   : > { %642 = vmatpush.msrb.mxu2 %v565_v25  ;;  %662 = vmatpush.msrb.mxu3 %v566_v26 }
  0x4e   : > { %620 = vmatpush.msrb.mxu1 %v572_v28  ;;  %600 = vmatpush.msrb.mxu0 %v571_v31 }
  0x4f   : > { %643 = vmatpush.msrb.mxu2 %v561_v29  ;;  %663 = vmatpush.msrb.mxu3 %v562_v30 }
  0x50   : > { %621 = vmatpush.msrb.mxu1 %v568_v32  ;;  %601 = vmatpush.msrb.mxu0 %v567_v35 }
  0x51   : > { %644 = vmatpush.msrb.mxu2 %v557_v33  ;;  %664 = vmatpush.msrb.mxu3 %v558_v34 }
  0x52   : > { %622 = vmatpush.msrb.mxu1 %v564_v36  ;;  %602 = vmatpush.msrb.mxu0 %v563_v39 }
  0x53   : > { %645 = vmatpush.msrb.mxu2 %v553_v37  ;;  %665 = vmatpush.msrb.mxu3 %v554_v38 }
  0x54   : > { %623 = vmatpush.msrb.mxu1 %v560_v40  ;;  %603 = vmatpush.msrb.mxu0 %v559_v43 }
  0x55   : > { %646 = vmatpush.msrb.mxu2 %v549_v41  ;;  %666 = vmatpush.msrb.mxu3 %v550_v42 }
  0x56   : > { %624 = vmatpush.msrb.mxu1 %v556_v44  ;;  %604 = vmatpush.msrb.mxu0 %v555_v47 }
  0x57   : > { %647 = vmatpush.msrb.mxu2 %v545_v45  ;;  %667 = vmatpush.msrb.mxu3 %v546_v46 }
  0x58   : > { %625 = vmatpush.msrb.mxu1 %v552_v48  ;;  %605 = vmatpush.msrb.mxu0 %v551_v51 }
  0x59   : > { %648 = vmatpush.msrb.mxu2 %v541_v49  ;;  %668 = vmatpush.msrb.mxu3 %v542_v50 }
  0x5a   : > { %626 = vmatpush.msrb.mxu1 %v548_v52  ;;  %606 = vmatpush.msrb.mxu0 %v547_v55 }
  0x5b   : > { %649 = vmatpush.msrb.mxu2 %v537_v53  ;;  %669 = vmatpush.msrb.mxu3 %v538_v54 }
  0x5c   : > { %627 = vmatpush.msrb.mxu1 %v544_v56  ;;  %607 = vmatpush.msrb.mxu0 %v543_v60 }
  0x5d   : > { %650 = vmatpush.msrb.mxu2 %v533_v57  ;;  %670 = vmatpush.msrb.mxu3 %v534_v58  ;;  %v895_v58 = vld [vmem:[%s1059_s12 + $0x8] sm:$0xff] }
  0x5e   : > { %651 = vmatmul.f32.vlgmr.msrb.gmra.mxu2 %v530_v59  ;;  %671 = vmatmul.f32.vlgmr.msrb.gmra.mxu3 %v530_v59 }
  0x5f   : > { %628 = vmatpush.msrb.mxu1 %v540_v61  ;;  %608 = vmatpush.msrb.mxu0 %v539_v62 }
  0x61   : > { %629 = vmatpush.msrb.mxu1 %v536_v63  ;;  %609 = vmatpush.msrb.mxu0 %v535_v0 }
  0x63   : > { %630 = vmatpush.msrb.mxu1 %v532_v1  ;;  %610 = vmatpush.msrb.mxu0 %v531_v2 }
  0x64   : > { %631 = vmatmul.f32.vlgmr.msrb.gmra.mxu1 %v530_v59  ;;  %611 = vmatmul.f32.vlgmr.msrb.gmra.mxu0 %v530_v59  ;;  %v455_v59 = vld [vmem:[#allocation3] sm:$0x3] }
  0xbf   : > { %v397_v3 = vpop.f32.mrf.mxu1  ;;  %v377_v8 = vpop.f32.mrf.mxu0 }
  0xc0   : > { %v444_v5 = vrot.slane %v397_v3, 6 }
  0xc1   : > { %v417_v4 = vpop.f32.mrf.mxu2  ;;  %v437_v7 = vpop.f32.mrf.mxu3 }
  0xc2   : > { %v445_v6 = vrot.slane %v417_v4, 4  ;;  %v446_v9 = vrot.slane %v437_v7, 2  ;;  %v448_v11 = vsel %vm447_vm0, %v377_v8, %v444_v5 }
  0xc4   : > { %v450_v12 = vsel %vm449_vm1, %v445_v6, %v446_v9 }
  0xc5   : > { %v452_v13 = vsel %vm451_vm2, %v448_v11, %v450_v12 }
  0xc6   : > { %v454_v14 = vadd.f32 %v452_v13, %v294_v10 }
  0xc8   : > { %v892_v15 = vmul.f32 -1.442695, %v454_v14  ;;  %v476_v16 = vrot.slane %v454_v14, 2  ;;  %v500_v17 = vrot.slane %v454_v14, 6  ;;  %v497_v26 = vrot.slane %v454_v14, 4 }
  0xca   : > { %925 = vpow2.f32 %v892_v15  ;;  %v893_v18 = vmul.f32 -1.442695, %v476_v16  ;;  %v894_v19 = vmul.f32 -1.442695, %v500_v17 }
  0xcc   : > { %927 = vpow2.f32 %v893_v18 }
  0xcd   : > { %929 = vpow2.f32 %v894_v19 }
  0xd0   : > { %v926_v20 = vpop.eup %925 }
  0xd1   : > { %v459_v21 = vadd.f32 1.0, %v926_v20 }
  0xd2   : > { %v928_v22 = vpop.eup %927 }
  0xd3   : > { %v930_v23 = vpop.eup %929  ;;  %931 = vrcp.f32 %v459_v21  ;;  %v481_v24 = vadd.f32 1.0, %v928_v22  ;;  %v471_v29 = vand.u32 2147483648, %v459_v21  ;;  %vm465_vm3 = vweird.f32 %v459_v21 }
  0xd4   : > { %v1269_v25 = vadd.f32 1.0, %v930_v23  ;;  %v469_v32 = vand.u32 2147483647, %v459_v21 }
  0xd5   : > { %933 = vrcp.f32 %v481_v24  ;;  %v472_v36 = vor.u32 1.1754944e-38, %v471_v29  ;;  %v493_v37 = vand.u32 2147483648, %v481_v24  ;;  %vm487_vm6 = vweird.f32 %v481_v24 }
  0xd6   : > { %935 = vrcp.f32 %v1269_v25  ;;  %v491_v41 = vand.u32 2147483647, %v481_v24  ;;  %vm470_vm8 = vcmp.eq.f32.partialorder %v469_v32, 8.507059e+37  ;;  %vm511_vm11 = vweird.f32 %v1269_v25 }
  0xd7   : > { %937 = vtanh.f32 %v497_v26  ;;  %v494_v52 = vor.u32 1.1754944e-38, %v493_v37  ;;  %v515_v4 = vand.u32 2147483647, %v1269_v25  ;;  %v517_v5 = vand.u32 2147483648, %v1269_v25 }
  0xd8   : > { %vm492_vm10 = vcmp.eq.f32.partialorder %v491_v41, 8.507059e+37 }
  0xd9   : > { %v932_v27 = vpop.eup %931  ;;  %v518_v14 = vor.u32 1.1754944e-38, %v517_v5  ;;  %vm516_vm14 = vcmp.eq.f32.partialorder %v515_v4, 8.507059e+37 }
  0xda   : > { %v461_v28 = vmul.f32 %v932_v27, %v459_v21  ;;  %vm466_vm4 = vweird.f32 %v932_v27 }
  0xdb   : > { %v934_v30 = vpop.eup %933  ;;  %vm1273_vm5 = vmor %vm465_vm3, %vm466_vm4 }
  0xdc   : > { %v462_v31 = vsub.f32 1.0, %v461_v28  ;;  %v936_v33 = vpop.eup %935  ;;  %v483_v34 = vmul.f32 %v934_v30, %v481_v24  ;;  %vm488_vm7 = vweird.f32 %v934_v30 }
  0xdd   : > { %v507_v38 = vmul.f32 %v936_v33, %v1269_v25  ;;  %v938_v45 = vpop.eup %937  ;;  %vm1279_vm9 = vmor %vm487_vm6, %vm488_vm7  ;;  %vm512_vm12 = vweird.f32 %v936_v33 }
  0xde   : > { %v463_v35 = vmul.f32 %v932_v27, %v462_v31  ;;  %v484_v40 = vsub.f32 1.0, %v483_v34  ;;  %vm513_vm13 = vmor %vm511_vm11, %vm512_vm12 }
  0xdf   : > { %v508_v43 = vsub.f32 1.0, %v507_v38 }
  0xe0   : > { %v464_v42 = vadd.f32 %v932_v27, %v463_v35  ;;  %v485_v46 = vmul.f32 %v934_v30, %v484_v40 }
  0xe1   : > { %v652_v44 = vpop.f32.mrf.mxu2  ;;  %v632_v47 = vpop.f32.mrf.mxu1  ;;  %v509_v60 = vmul.f32 %v936_v33, %v508_v43 }
  0xe2   : > { %v680_v48 = vrot.slane %v652_v44, 4  ;;  %v672_v49 = vpop.f32.mrf.mxu3  ;;  %v468_v50 = vsel %vm1273_vm5, %v932_v27, %v464_v42  ;;  %v679_v53 = vrot.slane %v632_v47, 6  ;;  %v612_v55 = vpop.f32.mrf.mxu0  ;;  %v486_v57 = vadd.f32 %v934_v30, %v485_v46 }
  0xe3   : > { %v681_v54 = vrot.slane %v672_v49, 2  ;;  %v473_v56 = vsel %vm470_vm8, %v472_v36, %v468_v50  ;;  %v510_v7 = vadd.f32 %v936_v33, %v509_v60 }
  0xe4   : > { %v682_v62 = vsel %vm447_vm0, %v612_v55, %v679_v53  ;;  %v490_v63 = vsel %vm1279_vm9, %v934_v30, %v486_v57  ;;  %v522_v0 = vmul.f32 %v938_v45, %v473_v56  ;;  %v687_v45 = vld [vmem:[#allocation5] sm:$0x3] }
  0xe5   : > { %v683_v61 = vsel %vm449_vm1, %v680_v48, %v681_v54  ;;  %v495_v2 = vsel %vm492_vm10, %v494_v52, %v490_v63  ;;  %v514_v15 = vsel %vm513_vm13, %v936_v33, %v510_v7 }
  0xe6   : > { %v684_v1 = vsel %vm451_vm2, %v682_v62, %v683_v61  ;;  %v521_v6 = vmul.f32 %v495_v2, %v455_v59  ;;  %v519_v16 = vsel %vm516_vm14, %v518_v14, %v514_v15 }
  0xe7   : > { %v686_v3 = vadd.f32 %v895_v58, %v684_v1 }
  0xe8   : > { %v523_v11 = vadd.f32 %v522_v0, %v521_v6 }
  0xe9   : > { %v896_v8 = vmul.f32 -1.442695, %v686_v3  ;;  %v708_v9 = vrot.slane %v686_v3, 2  ;;  %v732_v10 = vrot.slane %v686_v3, 6  ;;  %v729_v29 = vrot.slane %v686_v3, 4 }
  0xea   : > { %527 = vst [vmem:[#allocation3] sm:$0x3] %v523_v11 }
  0xeb   : > { %939 = vpow2.f32 %v896_v8  ;;  %v897_v12 = vmul.f32 -1.442695, %v708_v9  ;;  %v898_v13 = vmul.f32 -1.442695, %v732_v10 }
  0xec   : > { %941 = vtanh.f32 %v523_v11 }
  0xed   : > { %943 = vpow2.f32 %v897_v12 }
  0xee   : > { %945 = vpow2.f32 %v898_v13 }
  0xf1   : > { %v940_v17 = vpop.eup %939 }
  0xf2   : > { %v942_v18 = vpop.eup %941  ;;  %v691_v19 = vadd.f32 1.0, %v940_v17 }
  0xf3   : > { %v944_v20 = vpop.eup %943  ;;  %v525_v21 = vmul.f32 %v942_v18, %v519_v16 }
  0xf4   : > { %947 = vrcp.f32 %v691_v19  ;;  %v946_v22 = vpop.eup %945  ;;  %v713_v23 = vadd.f32 1.0, %v944_v20  ;;  %v703_v33 = vand.u32 2147483648, %v691_v19  ;;  %v701_v35 = vand.u32 2147483647, %v691_v19 }
  0xf5   : > { %526 = vst [vmem:[#allocation2] sm:$0x3] %v525_v21  ;;  %v737_v24 = vadd.f32 1.0, %v946_v22  ;;  %vm697_vm0 = vweird.f32 %v691_v19 }
  0xf6   : > { %528 = vst [vmem:[%s1064_s15] sm:$0x3] %v525_v21  ;;  %949 = vrcp.f32 %v713_v23  ;;  %v725_v38 = vand.u32 2147483648, %v713_v23  ;;  %v723_v40 = vand.u32 2147483647, %v713_v23  ;;  %v704_v42 = vor.u32 1.1754944e-38, %v703_v33 }
  0xf7   : > { %951 = vrcp.f32 %v737_v24  ;;  %vm702_vm3 = vcmp.eq.f32.partialorder %v701_v35, 8.507059e+37  ;;  %vm719_vm4 = vweird.f32 %v713_v23  ;;  %v749_v56 = vand.u32 2147483648, %v737_v24 }
  0xf8   : > { %953 = vtanh.f32 %v729_v29  ;;  %v726_v47 = vor.u32 1.1754944e-38, %v725_v38  ;;  %vm724_vm6 = vcmp.eq.f32.partialorder %v723_v40, 8.507059e+37  ;;  %vm743_vm8 = vweird.f32 %v737_v24 }
  0xf9   : > { %v747_v57 = vand.u32 2147483647, %v737_v24  ;;  %v750_v59 = vor.u32 1.1754944e-38, %v749_v56 }
  0xfa   : > { %v948_v25 = vpop.eup %947 }
  0xfb   : > { %v693_v26 = vmul.f32 %v948_v25, %v691_v19  ;;  %vm698_vm15 = vweird.f32 %v948_v25  ;;  %vm748_vm10 = vcmp.eq.f32.partialorder %v747_v57, 8.507059e+37 }
  0xfc   : > { %v950_v27 = vpop.eup %949  ;;  %vm699_vm1 = vmor %vm697_vm0, %vm698_vm15 }
  0xfd   : > { %v694_v28 = vsub.f32 1.0, %v693_v26  ;;  %v952_v30 = vpop.eup %951  ;;  %v715_v31 = vmul.f32 %v950_v27, %v713_v23  ;;  %vm720_vm2 = vweird.f32 %v950_v27 }
  0xfe   : > { %v739_v34 = vmul.f32 %v952_v30, %v737_v24  ;;  %vm721_vm5 = vmor %vm719_vm4, %vm720_vm2  ;;  %v954_v49 = vpop.eup %953  ;;  %vm744_vm7 = vweird.f32 %v952_v30 }
  0xff   : > { %v695_v32 = vmul.f32 %v948_v25, %v694_v28  ;;  %v716_v36 = vsub.f32 1.0, %v715_v31  ;;  %vm745_vm9 = vmor %vm743_vm8, %vm744_vm7 }
 0x100   : > { %v740_v43 = vsub.f32 1.0, %v739_v34 }
 0x101   : > { %v696_v37 = vadd.f32 %v948_v25, %v695_v32  ;;  %v717_v39 = vmul.f32 %v950_v27, %v716_v36 }
 0x102   : > { %v741_v51 = vmul.f32 %v952_v30, %v740_v43 }
 0x103   : > { %v700_v41 = vsel %vm699_vm1, %v948_v25, %v696_v37  ;;  %v718_v44 = vadd.f32 %v950_v27, %v717_v39 }
 0x104   : > { %v705_v46 = vsel %vm702_vm3, %v704_v42, %v700_v41  ;;  %v742_v55 = vadd.f32 %v952_v30, %v741_v51 }
 0x105   : > { %v722_v48 = vsel %vm721_vm5, %v950_v27, %v718_v44  ;;  %v754_v53 = vmul.f32 %v954_v49, %v705_v46 }
 0x106   : > { %v727_v50 = vsel %vm724_vm6, %v726_v47, %v722_v48  ;;  %v746_v58 = vsel %vm745_vm9, %v952_v30, %v742_v55 }
 0x107   : > { %v753_v52 = vmul.f32 %v727_v50, %v687_v45  ;;  %v751_v61 = vsel %vm748_vm10, %v750_v59, %v746_v58 }
 0x109   : > { %v755_v54 = vadd.f32 %v754_v53, %v753_v52 }
 0x10b   : > { %955 = vtanh.f32 %v755_v54  ;;  %759 = vst [vmem:[#allocation5] sm:$0x3] %v755_v54 }
 0x111   : > { %v956_v60 = vpop.eup %955 }
 0x112   : > { %v757_v62 = vmul.f32 %v956_v60, %v751_v61 }
 0x114   : > { %758 = vst [vmem:[#allocation4] sm:$0x3] %v757_v62 }
 0x115   : > { %760 = vst [vmem:[%s1069_s20] sm:$0x3] %v757_v62 }
 0x116 PF: > { %s17_s18 = sadd.s32 1, %s997_s18  }
 0x117   : > { %p14_p9 = scmp.ge.s32.totalorder %s17_s18, 10  }
 0x119   :  { %16 = sbr.rel (!%p14_p9) target bundleno = 1 (0x1), region = 90 }
 0x11e   :  { %797 = vsyncpa [#allocation7], 1 }
 0x11f   :  { %799 = vsyncpa [#allocation7 + $0x1], 1 }

// kernel: emodel_forward.18
= control target key start
LH: loop header
LB: loop body
LE: loop exit
PB: predicated region body
PF: predicated region fallthrough
CT: control target
= control target key end

     0   :  { %11 = vsyncpa [#allocation7], 0  ;;  %s1200_s0 = inlined_call_operand.vmem [shape: f32[8,2,1024], index: 0, kind: input, shape index: {}, may-alias: {0,1}]   ;;  %s1201_s1 = inlined_call_operand.vmem [shape: f32[8,2,1024], index: 1, kind: input, shape index: {}, may-alias: {0,1}]   ;;  %s1202_s2 = inlined_call_operand.hbm [shape: f32[128,512], index: 2, kind: input, shape index: {}]   ;;  %s1203_s3 = inlined_call_operand.hbm [shape: f32[128,512], index: 3, kind: input, shape index: {}]   ;;  %s1204_s4 = inlined_call_operand.vmem [shape: f32[8,2,128], index: 4, kind: output, shape index: {0}]   ;;  %s1205_s5 = inlined_call_operand.vmem [shape: f32[8,2,128], index: 5, kind: output, shape index: {1}]  }
   0x1   :  { %12 = vsyncpa [#allocation9], 0  ;;  %s1107_s18 = smov 0  }
   0x2 LB: > { %s184_s21 = sshll.u32 %s1202_s2, 4  ;;  %s1116_s22 = sadd.s32 4294967295, %s1070_s18   ;;  %s1070_s18 = sphi %s1107_s18, %s18_s18   ;;  %s185_s21 = int_to_ptr.hbm [resolvable:$true] %s184_s21 }
   0x3   : > { %p907_p0 = scmp.ge.s32.totalorder %s1070_s18, 1  ;;  %p173_p1 = scmp.lt.s32.totalorder %s1070_s18, 9 }
   0x4   : > { %p908_p2 = scmp.ne.s32.totalorder %s1116_s22, 0  ;;  %p947_p3 = scmp.eq.s32.totalorder %s1116_s22, 0 }
   0x5   : > { %p1122_p4 = pnand %p907_p0, %p173_p1  ;;  %s1072_s24 = smov [#allocation6]  }
   0x6   : > { %s186_s25 = sshll.u32 %s1072_s24, 4  ;;  %s198_s28 = sshll.u32 %s1203_s3, 4  ;;  %s187_s25 = int_to_ptr.vmem [resolvable:$true] %s186_s25  ;;  %s199_s28 = int_to_ptr.hbm [resolvable:$true] %s198_s28 }
   0x7   : > { %p940_p5 = pneg %p1122_p4  ;;  %s1073_s29 = smov [#allocation8]  }
   0x8   : > { %s200_s30 = sshll.u32 %s1073_s29, 4  ;;  %s1074_s6 = smov 512   ;;  %s201_s30 = int_to_ptr.vmem [resolvable:$true] %s200_s30 }
   0x9   : > { %p941_p6 = pnand %p947_p3, %p940_p5  ;;  %s1075_s7 = smov 32  }
   0xa   : > { %235 = sbr.rel (%p1122_p4) target bundleno = 283 (0x11b), region = 36 }
   0xb   : > { %943 = dma.hbm_to_vmem [thread:$0]  (!%p941_p6), %s185_s21, 8192, %s187_s25, [#allocation7], %s1074_s6, %s1074_s6, %s1075_s7  }
   0xc   : > { %946 = dma.hbm_to_vmem [thread:$0]  (!%p941_p6), %s199_s28, 8192, %s201_s30, [#allocation9], %s1074_s6, %s1074_s6, %s1075_s7  }
   0xf   : > { %1061 = dma.done.wait (%p947_p3), [#allocation7], 8192  }
  0x10   : > { %1063 = vsyncadd (%p947_p3), [#allocation7], 4294959104 }
  0x11   : > { %1065 = dma.done.wait (%p947_p3), [#allocation9], 8192  }
  0x12   : > { %1067 = vsyncadd (%p947_p3), [#allocation9], 4294959104  ;;  %p280_p7 = scmp.lt.s32.totalorder %s1116_s22, 7  ;;  %s285_s8 = ssub.s32 7, %s1116_s22 }
  0x13   : > { %p286_p8 = scmp.lt.s32.totalorder %s285_s8, 7 }
  0x14   : > { %s281_s9 = scalar_select %p280_p7, %s1116_s22, 7 }
  0x15   : > { %s1212_s8 = smov (!%p286_p8, %s285_s8), 7 }
  0x16   : > { %s930_s10 = sshll.u32 %s281_s9, 4  ;;  %s918_s11 = sshll.u32 %s281_s9, 1 }
  0x17   : > { %s1149_s14 = scalar_lea.vmem %s1200_s0, %s930_s10  ;;  %s931_s15 = sshll.u32 %s1212_s8, 4 }
  0x18   : > { %s1154_s19 = scalar_lea.vmem %s1201_s1, %s931_s15  ;;  %s1159_s23 = scalar_lea.vmem %s1204_s4, %s918_s11 }
  0x19   : > { %s919_s24 = sshll.u32 %s1212_s8, 1  ;;  %306 = sbr.rel (%p908_p2) target bundleno = 35 (0x23), region = 48 }
  0x1a   : > { %s1164_s27 = scalar_lea.vmem %s1205_s5, %s919_s24 }
  0x1e   : > { %v1076_v0 = vmov 0.0  }
  0x1f   : > { %307 = vst [vmem:[#allocation2] sm:$0x3] %v1076_v0 }
  0x20   : > { %308 = vst [vmem:[#allocation3] sm:$0x3] %v1076_v0 }
  0x21   : > { %309 = vst [vmem:[#allocation4] sm:$0x3] %v1076_v0 }
  0x22   : > { %310 = vst [vmem:[#allocation5] sm:$0x3] %v1076_v0 }
  0x23 PF: > { %v375_v1 = vld [vmem:[#allocation6 + $0x1f0] sm:$0xff]  ;;  %v376_v2 = vld [vmem:[#allocation6 + $0x1f8] sm:$0xff]  ;;  %v374_v7 = vld [vmem:[#allocation6 + $0x1e8] sm:$0xff]  ;;  %vm464_vm0 = vcmask 1041408   ;;  %vm466_vm1 = vcmask 1045508   ;;  %vm468_vm2 = vcmask 1043456  }
  0x24   : > { %v371_v3 = vld [vmem:[#allocation6 + $0x1d0] sm:$0xff]  ;;  %417 = vmatpush.msra.mxu2 %v375_v1  ;;  %437 = vmatpush.msra.mxu3 %v376_v2  ;;  %v372_v4 = vld [vmem:[#allocation6 + $0x1d8] sm:$0xff]  ;;  %v373_v8 = vld [vmem:[#allocation6 + $0x1e0] sm:$0xff] }
  0x25   : > { %v367_v5 = vld [vmem:[#allocation6 + $0x1b0] sm:$0xff]  ;;  %v368_v6 = vld [vmem:[#allocation6 + $0x1b8] sm:$0xff]  ;;  %v370_v9 = vld [vmem:[#allocation6 + $0x1c8] sm:$0xff]  ;;  %397 = vmatpush.msra.mxu1 %v374_v7  ;;  %377 = vmatpush.msra.mxu0 %v373_v8 }
  0x26   : > { %418 = vmatpush.msra.mxu2 %v371_v3  ;;  %438 = vmatpush.msra.mxu3 %v372_v4  ;;  %v363_v10 = vld [vmem:[#allocation6 + $0x190] sm:$0xff]  ;;  %v364_v11 = vld [vmem:[#allocation6 + $0x198] sm:$0xff]  ;;  %v369_v12 = vld [vmem:[#allocation6 + $0x1c0] sm:$0xff] }
  0x27   : > { %v366_v13 = vld [vmem:[#allocation6 + $0x1a8] sm:$0xff]  ;;  %v365_v14 = vld [vmem:[#allocation6 + $0x1a0] sm:$0xff]  ;;  %398 = vmatpush.msra.mxu1 %v370_v9  ;;  %v359_v15 = vld [vmem:[#allocation6 + $0x170] sm:$0xff]  ;;  %378 = vmatpush.msra.mxu0 %v369_v12 }
  0x28   : > { %419 = vmatpush.msra.mxu2 %v367_v5  ;;  %439 = vmatpush.msra.mxu3 %v368_v6  ;;  %v360_v16 = vld [vmem:[#allocation6 + $0x178] sm:$0xff]  ;;  %v362_v17 = vld [vmem:[#allocation6 + $0x188] sm:$0xff]  ;;  %v361_v18 = vld [vmem:[#allocation6 + $0x180] sm:$0xff] }
  0x29   : > { %399 = vmatpush.msra.mxu1 %v366_v13  ;;  %v355_v19 = vld [vmem:[#allocation6 + $0x150] sm:$0xff]  ;;  %v356_v20 = vld [vmem:[#allocation6 + $0x158] sm:$0xff]  ;;  %379 = vmatpush.msra.mxu0 %v365_v14  ;;  %v358_v21 = vld [vmem:[#allocation6 + $0x168] sm:$0xff] }
  0x2a   : > { %420 = vmatpush.msra.mxu2 %v363_v10  ;;  %440 = vmatpush.msra.mxu3 %v364_v11  ;;  %v357_v22 = vld [vmem:[#allocation6 + $0x160] sm:$0xff]  ;;  %v351_v23 = vld [vmem:[#allocation6 + $0x130] sm:$0xff]  ;;  %v352_v24 = vld [vmem:[#allocation6 + $0x138] sm:$0xff] }
  0x2b   : > { %400 = vmatpush.msra.mxu1 %v362_v17  ;;  %380 = vmatpush.msra.mxu0 %v361_v18  ;;  %v354_v25 = vld [vmem:[#allocation6 + $0x148] sm:$0xff]  ;;  %v353_v26 = vld [vmem:[#allocation6 + $0x140] sm:$0xff]  ;;  %v347_v27 = vld [vmem:[#allocation6 + $0x110] sm:$0xff] }
  0x2c   : > { %421 = vmatpush.msra.mxu2 %v359_v15  ;;  %441 = vmatpush.msra.mxu3 %v360_v16  ;;  %v348_v28 = vld [vmem:[#allocation6 + $0x118] sm:$0xff]  ;;  %v350_v29 = vld [vmem:[#allocation6 + $0x128] sm:$0xff]  ;;  %v349_v30 = vld [vmem:[#allocation6 + $0x120] sm:$0xff] }
  0x2d   : > { %401 = vmatpush.msra.mxu1 %v358_v21  ;;  %381 = vmatpush.msra.mxu0 %v357_v22  ;;  %v343_v31 = vld [vmem:[#allocation6 + $0xf0] sm:$0xff]  ;;  %v344_v32 = vld [vmem:[#allocation6 + $0xf8] sm:$0xff]  ;;  %v346_v33 = vld [vmem:[#allocation6 + $0x108] sm:$0xff] }
  0x2e   : > { %422 = vmatpush.msra.mxu2 %v355_v19  ;;  %442 = vmatpush.msra.mxu3 %v356_v20  ;;  %v345_v34 = vld [vmem:[#allocation6 + $0x100] sm:$0xff]  ;;  %v339_v35 = vld [vmem:[#allocation6 + $0xd0] sm:$0xff]  ;;  %v340_v36 = vld [vmem:[#allocation6 + $0xd8] sm:$0xff] }
  0x2f   : > { %402 = vmatpush.msra.mxu1 %v354_v25  ;;  %382 = vmatpush.msra.mxu0 %v353_v26  ;;  %v342_v37 = vld [vmem:[#allocation6 + $0xe8] sm:$0xff]  ;;  %v341_v38 = vld [vmem:[#allocation6 + $0xe0] sm:$0xff]  ;;  %v335_v39 = vld [vmem:[#allocation6 + $0xb0] sm:$0xff] }
  0x30   : > { %423 = vmatpush.msra.mxu2 %v351_v23  ;;  %443 = vmatpush.msra.mxu3 %v352_v24  ;;  %v336_v40 = vld [vmem:[#allocation6 + $0xb8] sm:$0xff]  ;;  %v338_v41 = vld [vmem:[#allocation6 + $0xc8] sm:$0xff]  ;;  %v337_v42 = vld [vmem:[#allocation6 + $0xc0] sm:$0xff] }
  0x31   : > { %403 = vmatpush.msra.mxu1 %v350_v29  ;;  %383 = vmatpush.msra.mxu0 %v349_v30  ;;  %v331_v43 = vld [vmem:[#allocation6 + $0x90] sm:$0xff]  ;;  %v332_v44 = vld [vmem:[#allocation6 + $0x98] sm:$0xff]  ;;  %v334_v45 = vld [vmem:[#allocation6 + $0xa8] sm:$0xff] }
  0x32   : > { %424 = vmatpush.msra.mxu2 %v347_v27  ;;  %444 = vmatpush.msra.mxu3 %v348_v28  ;;  %v333_v46 = vld [vmem:[#allocation6 + $0xa0] sm:$0xff]  ;;  %v327_v47 = vld [vmem:[#allocation6 + $0x70] sm:$0xff]  ;;  %v328_v48 = vld [vmem:[#allocation6 + $0x78] sm:$0xff] }
  0x33   : > { %404 = vmatpush.msra.mxu1 %v346_v33  ;;  %384 = vmatpush.msra.mxu0 %v345_v34  ;;  %v330_v49 = vld [vmem:[#allocation6 + $0x88] sm:$0xff]  ;;  %v329_v50 = vld [vmem:[#allocation6 + $0x80] sm:$0xff]  ;;  %v323_v51 = vld [vmem:[#allocation6 + $0x50] sm:$0xff] }
  0x34   : > { %425 = vmatpush.msra.mxu2 %v343_v31  ;;  %445 = vmatpush.msra.mxu3 %v344_v32  ;;  %v324_v52 = vld [vmem:[#allocation6 + $0x58] sm:$0xff]  ;;  %v326_v53 = vld [vmem:[#allocation6 + $0x68] sm:$0xff]  ;;  %v325_v54 = vld [vmem:[#allocation6 + $0x60] sm:$0xff] }
  0x35   : > { %405 = vmatpush.msra.mxu1 %v342_v37  ;;  %385 = vmatpush.msra.mxu0 %v341_v38  ;;  %v319_v55 = vld [vmem:[#allocation6 + $0x30] sm:$0xff]  ;;  %v320_v56 = vld [vmem:[#allocation6 + $0x38] sm:$0xff]  ;;  %v322_v57 = vld [vmem:[#allocation6 + $0x48] sm:$0xff] }
  0x36   : > { %426 = vmatpush.msra.mxu2 %v339_v35  ;;  %446 = vmatpush.msra.mxu3 %v340_v36  ;;  %v321_v58 = vld [vmem:[#allocation6 + $0x40] sm:$0xff]  ;;  %v315_v59 = vld [vmem:[#allocation6 + $0x10] sm:$0xff]  ;;  %v316_v60 = vld [vmem:[#allocation6 + $0x18] sm:$0xff] }
  0x37   : > { %406 = vmatpush.msra.mxu1 %v338_v41  ;;  %386 = vmatpush.msra.mxu0 %v337_v42  ;;  %v312_v61 = vld [vmem:[#allocation2] sm:$0x3]  ;;  %v610_v62 = vld [vmem:[#allocation8 + $0x1f0] sm:$0xff]  ;;  %v318_v0 = vld [vmem:[#allocation6 + $0x28] sm:$0xff] }
  0x38   : > { %427 = vmatpush.msra.mxu2 %v335_v39  ;;  %447 = vmatpush.msra.mxu3 %v336_v40  ;;  %v611_v63 = vld [vmem:[#allocation8 + $0x1f8] sm:$0xff]  ;;  %v317_v1 = vld [vmem:[#allocation6 + $0x20] sm:$0xff]  ;;  %v606_v2 = vld [vmem:[#allocation8 + $0x1d0] sm:$0xff] }
  0x39   : > { %407 = vmatpush.msra.mxu1 %v334_v45  ;;  %387 = vmatpush.msra.mxu0 %v333_v46  ;;  %v607_v3 = vld [vmem:[#allocation8 + $0x1d8] sm:$0xff]  ;;  %v314_v4 = vld [vmem:[#allocation6 + $0x8] sm:$0xff]  ;;  %v313_v5 = vld [vmem:[#allocation6] sm:$0xff] }
  0x3a   : > { %428 = vmatpush.msra.mxu2 %v331_v43  ;;  %448 = vmatpush.msra.mxu3 %v332_v44  ;;  %v602_v6 = vld [vmem:[#allocation8 + $0x1b0] sm:$0xff]  ;;  %v603_v7 = vld [vmem:[#allocation8 + $0x1b8] sm:$0xff]  ;;  %v609_v8 = vld [vmem:[#allocation8 + $0x1e8] sm:$0xff] }
  0x3b   : > { %408 = vmatpush.msra.mxu1 %v330_v49  ;;  %388 = vmatpush.msra.mxu0 %v329_v50  ;;  %v598_v9 = vld [vmem:[#allocation8 + $0x190] sm:$0xff]  ;;  %v599_v10 = vld [vmem:[#allocation8 + $0x198] sm:$0xff]  ;;  %v608_v11 = vld [vmem:[#allocation8 + $0x1e0] sm:$0xff] }
  0x3c   : > { %429 = vmatpush.msra.mxu2 %v327_v47  ;;  %449 = vmatpush.msra.mxu3 %v328_v48  ;;  %v605_v12 = vld [vmem:[#allocation8 + $0x1c8] sm:$0xff]  ;;  %v594_v13 = vld [vmem:[#allocation8 + $0x170] sm:$0xff]  ;;  %v595_v14 = vld [vmem:[#allocation8 + $0x178] sm:$0xff] }
  0x3d   : > { %409 = vmatpush.msra.mxu1 %v326_v53  ;;  %389 = vmatpush.msra.mxu0 %v325_v54  ;;  %v604_v15 = vld [vmem:[#allocation8 + $0x1c0] sm:$0xff]  ;;  %v601_v16 = vld [vmem:[#allocation8 + $0x1a8] sm:$0xff]  ;;  %v590_v17 = vld [vmem:[#allocation8 + $0x150] sm:$0xff] }
  0x3e   : > { %430 = vmatpush.msra.mxu2 %v323_v51  ;;  %450 = vmatpush.msra.mxu3 %v324_v52  ;;  %v591_v18 = vld [vmem:[#allocation8 + $0x158] sm:$0xff]  ;;  %v600_v19 = vld [vmem:[#allocation8 + $0x1a0] sm:$0xff]  ;;  %v597_v20 = vld [vmem:[#allocation8 + $0x188] sm:$0xff] }
  0x3f   : > { %410 = vmatpush.msra.mxu1 %v322_v57  ;;  %390 = vmatpush.msra.mxu0 %v321_v58  ;;  %v586_v21 = vld [vmem:[#allocation8 + $0x130] sm:$0xff]  ;;  %v587_v22 = vld [vmem:[#allocation8 + $0x138] sm:$0xff]  ;;  %v596_v23 = vld [vmem:[#allocation8 + $0x180] sm:$0xff] }
  0x40   : > { %431 = vmatpush.msra.mxu2 %v319_v55  ;;  %451 = vmatpush.msra.mxu3 %v320_v56  ;;  %v593_v24 = vld [vmem:[#allocation8 + $0x168] sm:$0xff]  ;;  %v582_v25 = vld [vmem:[#allocation8 + $0x110] sm:$0xff]  ;;  %v583_v26 = vld [vmem:[#allocation8 + $0x118] sm:$0xff] }
  0x41   : > { %411 = vmatpush.msra.mxu1 %v318_v0  ;;  %391 = vmatpush.msra.mxu0 %v317_v1  ;;  %v592_v27 = vld [vmem:[#allocation8 + $0x160] sm:$0xff]  ;;  %v589_v28 = vld [vmem:[#allocation8 + $0x148] sm:$0xff]  ;;  %v578_v29 = vld [vmem:[#allocation8 + $0xf0] sm:$0xff] }
  0x42   : > { %432 = vmatpush.msra.mxu2 %v315_v59  ;;  %452 = vmatpush.msra.mxu3 %v316_v60  ;;  %v579_v30 = vld [vmem:[#allocation8 + $0xf8] sm:$0xff]  ;;  %v588_v31 = vld [vmem:[#allocation8 + $0x140] sm:$0xff]  ;;  %v585_v32 = vld [vmem:[#allocation8 + $0x128] sm:$0xff] }
  0x43   : > { %433 = vmatmul.f32.vlgmr.msra.gmra.mxu2 %v312_v61  ;;  %453 = vmatmul.f32.vlgmr.msra.gmra.mxu3 %v312_v61  ;;  %v574_v33 = vld [vmem:[#allocation8 + $0xd0] sm:$0xff]  ;;  %v575_v34 = vld [vmem:[#allocation8 + $0xd8] sm:$0xff]  ;;  %v584_v35 = vld [vmem:[#allocation8 + $0x120] sm:$0xff] }
  0x44   : > { %652 = vmatpush.msrb.mxu2 %v610_v62  ;;  %672 = vmatpush.msrb.mxu3 %v611_v63  ;;  %v581_v36 = vld [vmem:[#allocation8 + $0x108] sm:$0xff]  ;;  %v570_v37 = vld [vmem:[#allocation8 + $0xb0] sm:$0xff]  ;;  %v571_v38 = vld [vmem:[#allocation8 + $0xb8] sm:$0xff] }
  0x45   : > { %412 = vmatpush.msra.mxu1 %v314_v4  ;;  %392 = vmatpush.msra.mxu0 %v313_v5  ;;  %v580_v39 = vld [vmem:[#allocation8 + $0x100] sm:$0xff]  ;;  %v577_v40 = vld [vmem:[#allocation8 + $0xe8] sm:$0xff]  ;;  %v566_v41 = vld [vmem:[#allocation8 + $0x90] sm:$0xff] }
  0x46   : > { %653 = vmatpush.msrb.mxu2 %v606_v2  ;;  %673 = vmatpush.msrb.mxu3 %v607_v3  ;;  %v567_v42 = vld [vmem:[#allocation8 + $0x98] sm:$0xff]  ;;  %v576_v43 = vld [vmem:[#allocation8 + $0xe0] sm:$0xff]  ;;  %v573_v44 = vld [vmem:[#allocation8 + $0xc8] sm:$0xff] }
  0x47   : > { %413 = vmatmul.f32.vlgmr.msra.gmra.mxu1 %v312_v61  ;;  %393 = vmatmul.f32.vlgmr.msra.gmra.mxu0 %v312_v61  ;;  %v562_v45 = vld [vmem:[#allocation8 + $0x70] sm:$0xff]  ;;  %v563_v46 = vld [vmem:[#allocation8 + $0x78] sm:$0xff]  ;;  %v572_v47 = vld [vmem:[#allocation8 + $0xc0] sm:$0xff] }
  0x48   : > { %654 = vmatpush.msrb.mxu2 %v602_v6  ;;  %674 = vmatpush.msrb.mxu3 %v603_v7  ;;  %v569_v48 = vld [vmem:[#allocation8 + $0xa8] sm:$0xff]  ;;  %v558_v49 = vld [vmem:[#allocation8 + $0x50] sm:$0xff]  ;;  %v559_v50 = vld [vmem:[#allocation8 + $0x58] sm:$0xff] }
  0x49   : > { %632 = vmatpush.msrb.mxu1 %v609_v8  ;;  %612 = vmatpush.msrb.mxu0 %v608_v11  ;;  %v568_v51 = vld [vmem:[#allocation8 + $0xa0] sm:$0xff]  ;;  %v565_v52 = vld [vmem:[#allocation8 + $0x88] sm:$0xff]  ;;  %v554_v53 = vld [vmem:[#allocation8 + $0x30] sm:$0xff] }
  0x4a   : > { %655 = vmatpush.msrb.mxu2 %v598_v9  ;;  %675 = vmatpush.msrb.mxu3 %v599_v10  ;;  %v555_v54 = vld [vmem:[#allocation8 + $0x38] sm:$0xff]  ;;  %v564_v55 = vld [vmem:[#allocation8 + $0x80] sm:$0xff]  ;;  %v561_v56 = vld [vmem:[#allocation8 + $0x68] sm:$0xff] }
  0x4b   : > { %633 = vmatpush.msrb.mxu1 %v605_v12  ;;  %613 = vmatpush.msrb.mxu0 %v604_v15  ;;  %v550_v57 = vld [vmem:[#allocation8 + $0x10] sm:$0xff]  ;;  %v551_v58 = vld [vmem:[#allocation8 + $0x18] sm:$0xff]  ;;  %v560_v60 = vld [vmem:[#allocation8 + $0x60] sm:$0xff] }
  0x4c   : > { %656 = vmatpush.msrb.mxu2 %v594_v13  ;;  %676 = vmatpush.msrb.mxu3 %v595_v14  ;;  %v547_v59 = vld [vmem:[#allocation4] sm:$0x3]  ;;  %v557_v61 = vld [vmem:[#allocation8 + $0x48] sm:$0xff]  ;;  %v556_v62 = vld [vmem:[#allocation8 + $0x40] sm:$0xff] }
  0x4d   : > { %634 = vmatpush.msrb.mxu1 %v601_v16  ;;  %614 = vmatpush.msrb.mxu0 %v600_v19  ;;  %v553_v63 = vld [vmem:[#allocation8 + $0x28] sm:$0xff]  ;;  %v552_v0 = vld [vmem:[#allocation8 + $0x20] sm:$0xff]  ;;  %v311_v10 = vld [vmem:[%s1149_s14] sm:$0xff] }
  0x4e   : > { %657 = vmatpush.msrb.mxu2 %v590_v17  ;;  %677 = vmatpush.msrb.mxu3 %v591_v18  ;;  %v549_v1 = vld [vmem:[#allocation8 + $0x8] sm:$0xff]  ;;  %v548_v2 = vld [vmem:[#allocation8] sm:$0xff] }
  0x4f   : > { %635 = vmatpush.msrb.mxu1 %v597_v20  ;;  %615 = vmatpush.msrb.mxu0 %v596_v23 }
  0x50   : > { %658 = vmatpush.msrb.mxu2 %v586_v21  ;;  %678 = vmatpush.msrb.mxu3 %v587_v22 }
  0x51   : > { %636 = vmatpush.msrb.mxu1 %v593_v24  ;;  %616 = vmatpush.msrb.mxu0 %v592_v27 }
  0x52   : > { %659 = vmatpush.msrb.mxu2 %v582_v25  ;;  %679 = vmatpush.msrb.mxu3 %v583_v26 }
  0x53   : > { %637 = vmatpush.msrb.mxu1 %v589_v28  ;;  %617 = vmatpush.msrb.mxu0 %v588_v31 }
  0x54   : > { %660 = vmatpush.msrb.mxu2 %v578_v29  ;;  %680 = vmatpush.msrb.mxu3 %v579_v30 }
  0x55   : > { %638 = vmatpush.msrb.mxu1 %v585_v32  ;;  %618 = vmatpush.msrb.mxu0 %v584_v35 }
  0x56   : > { %661 = vmatpush.msrb.mxu2 %v574_v33  ;;  %681 = vmatpush.msrb.mxu3 %v575_v34 }
  0x57   : > { %639 = vmatpush.msrb.mxu1 %v581_v36  ;;  %619 = vmatpush.msrb.mxu0 %v580_v39 }
  0x58   : > { %662 = vmatpush.msrb.mxu2 %v570_v37  ;;  %682 = vmatpush.msrb.mxu3 %v571_v38 }
  0x59   : > { %640 = vmatpush.msrb.mxu1 %v577_v40  ;;  %620 = vmatpush.msrb.mxu0 %v576_v43 }
  0x5a   : > { %663 = vmatpush.msrb.mxu2 %v566_v41  ;;  %683 = vmatpush.msrb.mxu3 %v567_v42 }
  0x5b   : > { %641 = vmatpush.msrb.mxu1 %v573_v44  ;;  %621 = vmatpush.msrb.mxu0 %v572_v47 }
  0x5c   : > { %664 = vmatpush.msrb.mxu2 %v562_v45  ;;  %684 = vmatpush.msrb.mxu3 %v563_v46 }
  0x5d   : > { %642 = vmatpush.msrb.mxu1 %v569_v48  ;;  %622 = vmatpush.msrb.mxu0 %v568_v51 }
  0x5e   : > { %665 = vmatpush.msrb.mxu2 %v558_v49  ;;  %685 = vmatpush.msrb.mxu3 %v559_v50 }
  0x5f   : > { %643 = vmatpush.msrb.mxu1 %v565_v52  ;;  %623 = vmatpush.msrb.mxu0 %v564_v55 }
  0x60   : > { %666 = vmatpush.msrb.mxu2 %v554_v53  ;;  %686 = vmatpush.msrb.mxu3 %v555_v54 }
  0x61   : > { %644 = vmatpush.msrb.mxu1 %v561_v56  ;;  %624 = vmatpush.msrb.mxu0 %v560_v60 }
  0x62   : > { %667 = vmatpush.msrb.mxu2 %v550_v57  ;;  %687 = vmatpush.msrb.mxu3 %v551_v58  ;;  %v924_v58 = vld [vmem:[%s1154_s19 + $0x8] sm:$0xff] }
  0x63   : > { %668 = vmatmul.f32.vlgmr.msrb.gmra.mxu2 %v547_v59  ;;  %688 = vmatmul.f32.vlgmr.msrb.gmra.mxu3 %v547_v59 }
  0x64   : > { %645 = vmatpush.msrb.mxu1 %v557_v61  ;;  %625 = vmatpush.msrb.mxu0 %v556_v62 }
  0x66   : > { %646 = vmatpush.msrb.mxu1 %v553_v63  ;;  %626 = vmatpush.msrb.mxu0 %v552_v0 }
  0x68   : > { %647 = vmatpush.msrb.mxu1 %v549_v1  ;;  %627 = vmatpush.msrb.mxu0 %v548_v2 }
  0x69   : > { %648 = vmatmul.f32.vlgmr.msrb.gmra.mxu1 %v547_v59  ;;  %628 = vmatmul.f32.vlgmr.msrb.gmra.mxu0 %v547_v59  ;;  %v472_v59 = vld [vmem:[#allocation3] sm:$0x3] }
  0xc4   : > { %v414_v3 = vpop.f32.mrf.mxu1  ;;  %v394_v8 = vpop.f32.mrf.mxu0 }
  0xc5   : > { %v461_v5 = vrot.slane %v414_v3, 6 }
  0xc6   : > { %v434_v4 = vpop.f32.mrf.mxu2  ;;  %v454_v7 = vpop.f32.mrf.mxu3 }
  0xc7   : > { %v462_v6 = vrot.slane %v434_v4, 4  ;;  %v463_v9 = vrot.slane %v454_v7, 2  ;;  %v465_v11 = vsel %vm464_vm0, %v394_v8, %v461_v5 }
  0xc9   : > { %v467_v12 = vsel %vm466_vm1, %v462_v6, %v463_v9 }
  0xca   : > { %v469_v13 = vsel %vm468_vm2, %v465_v11, %v467_v12 }
  0xcb   : > { %v471_v14 = vadd.f32 %v469_v13, %v311_v10 }
  0xcd   : > { %v921_v15 = vmul.f32 -1.442695, %v471_v14  ;;  %v493_v16 = vrot.slane %v471_v14, 2  ;;  %v517_v17 = vrot.slane %v471_v14, 6  ;;  %v514_v26 = vrot.slane %v471_v14, 4 }
  0xcf   : > { %964 = vpow2.f32 %v921_v15  ;;  %v922_v18 = vmul.f32 -1.442695, %v493_v16  ;;  %v923_v19 = vmul.f32 -1.442695, %v517_v17 }
  0xd1   : > { %966 = vpow2.f32 %v922_v18 }
  0xd2   : > { %968 = vpow2.f32 %v923_v19 }
  0xd5   : > { %v965_v20 = vpop.eup %964 }
  0xd6   : > { %v476_v21 = vadd.f32 1.0, %v965_v20 }
  0xd7   : > { %v967_v22 = vpop.eup %966 }
  0xd8   : > { %v969_v23 = vpop.eup %968  ;;  %970 = vrcp.f32 %v476_v21  ;;  %v498_v24 = vadd.f32 1.0, %v967_v22  ;;  %v488_v29 = vand.u32 2147483648, %v476_v21  ;;  %vm482_vm3 = vweird.f32 %v476_v21 }
  0xd9   : > { %v1172_v25 = vadd.f32 1.0, %v969_v23  ;;  %v486_v32 = vand.u32 2147483647, %v476_v21 }
  0xda   : > { %972 = vrcp.f32 %v498_v24  ;;  %v489_v36 = vor.u32 1.1754944e-38, %v488_v29  ;;  %v510_v37 = vand.u32 2147483648, %v498_v24  ;;  %vm504_vm6 = vweird.f32 %v498_v24 }
  0xdb   : > { %974 = vrcp.f32 %v1172_v25  ;;  %v508_v41 = vand.u32 2147483647, %v498_v24  ;;  %vm487_vm8 = vcmp.eq.f32.partialorder %v486_v32, 8.507059e+37  ;;  %vm528_vm11 = vweird.f32 %v1172_v25 }
  0xdc   : > { %976 = vtanh.f32 %v514_v26  ;;  %v511_v52 = vor.u32 1.1754944e-38, %v510_v37  ;;  %v532_v4 = vand.u32 2147483647, %v1172_v25  ;;  %v534_v5 = vand.u32 2147483648, %v1172_v25 }
  0xdd   : > { %vm509_vm10 = vcmp.eq.f32.partialorder %v508_v41, 8.507059e+37 }
  0xde   : > { %v971_v27 = vpop.eup %970  ;;  %v535_v14 = vor.u32 1.1754944e-38, %v534_v5  ;;  %vm533_vm14 = vcmp.eq.f32.partialorder %v532_v4, 8.507059e+37 }
  0xdf   : > { %v478_v28 = vmul.f32 %v971_v27, %v476_v21  ;;  %vm483_vm4 = vweird.f32 %v971_v27 }
  0xe0   : > { %v973_v30 = vpop.eup %972  ;;  %vm1176_vm5 = vmor %vm482_vm3, %vm483_vm4 }
  0xe1   : > { %v479_v31 = vsub.f32 1.0, %v478_v28  ;;  %v975_v33 = vpop.eup %974  ;;  %v500_v34 = vmul.f32 %v973_v30, %v498_v24  ;;  %vm505_vm7 = vweird.f32 %v973_v30 }
  0xe2   : > { %v524_v38 = vmul.f32 %v975_v33, %v1172_v25  ;;  %v977_v45 = vpop.eup %976  ;;  %vm1182_vm9 = vmor %vm504_vm6, %vm505_vm7  ;;  %vm529_vm12 = vweird.f32 %v975_v33 }
  0xe3   : > { %v480_v35 = vmul.f32 %v971_v27, %v479_v31  ;;  %v501_v40 = vsub.f32 1.0, %v500_v34  ;;  %vm530_vm13 = vmor %vm528_vm11, %vm529_vm12 }
  0xe4   : > { %v525_v43 = vsub.f32 1.0, %v524_v38 }
  0xe5   : > { %v481_v42 = vadd.f32 %v971_v27, %v480_v35  ;;  %v502_v46 = vmul.f32 %v973_v30, %v501_v40 }
  0xe6   : > { %v669_v44 = vpop.f32.mrf.mxu2  ;;  %v649_v47 = vpop.f32.mrf.mxu1  ;;  %v526_v60 = vmul.f32 %v975_v33, %v525_v43 }
  0xe7   : > { %v697_v48 = vrot.slane %v669_v44, 4  ;;  %v689_v49 = vpop.f32.mrf.mxu3  ;;  %v485_v50 = vsel %vm1176_vm5, %v971_v27, %v481_v42  ;;  %v696_v53 = vrot.slane %v649_v47, 6  ;;  %v629_v55 = vpop.f32.mrf.mxu0  ;;  %v503_v57 = vadd.f32 %v973_v30, %v502_v46 }
  0xe8   : > { %v698_v54 = vrot.slane %v689_v49, 2  ;;  %v490_v56 = vsel %vm487_vm8, %v489_v36, %v485_v50  ;;  %v527_v7 = vadd.f32 %v975_v33, %v526_v60 }
  0xe9   : > { %v699_v62 = vsel %vm464_vm0, %v629_v55, %v696_v53  ;;  %v507_v63 = vsel %vm1182_vm9, %v973_v30, %v503_v57  ;;  %v539_v0 = vmul.f32 %v977_v45, %v490_v56  ;;  %v704_v45 = vld [vmem:[#allocation5] sm:$0x3] }
  0xea   : > { %v700_v61 = vsel %vm466_vm1, %v697_v48, %v698_v54  ;;  %v512_v2 = vsel %vm509_vm10, %v511_v52, %v507_v63  ;;  %v531_v15 = vsel %vm530_vm13, %v975_v33, %v527_v7 }
  0xeb   : > { %v701_v1 = vsel %vm468_vm2, %v699_v62, %v700_v61  ;;  %v538_v6 = vmul.f32 %v512_v2, %v472_v59  ;;  %v536_v16 = vsel %vm533_vm14, %v535_v14, %v531_v15 }
  0xec   : > { %v703_v3 = vadd.f32 %v924_v58, %v701_v1 }
  0xed   : > { %v540_v11 = vadd.f32 %v539_v0, %v538_v6 }
  0xee   : > { %v925_v8 = vmul.f32 -1.442695, %v703_v3  ;;  %v725_v9 = vrot.slane %v703_v3, 2  ;;  %v749_v10 = vrot.slane %v703_v3, 6  ;;  %v746_v29 = vrot.slane %v703_v3, 4 }
  0xef   : > { %544 = vst [vmem:[#allocation3] sm:$0x3] %v540_v11 }
  0xf0   : > { %978 = vpow2.f32 %v925_v8  ;;  %v926_v12 = vmul.f32 -1.442695, %v725_v9  ;;  %v927_v13 = vmul.f32 -1.442695, %v749_v10 }
  0xf1   : > { %980 = vtanh.f32 %v540_v11 }
  0xf2   : > { %982 = vpow2.f32 %v926_v12 }
  0xf3   : > { %984 = vpow2.f32 %v927_v13 }
  0xf6   : > { %v979_v17 = vpop.eup %978 }
  0xf7   : > { %v981_v18 = vpop.eup %980  ;;  %v708_v19 = vadd.f32 1.0, %v979_v17 }
  0xf8   : > { %v983_v20 = vpop.eup %982  ;;  %v542_v21 = vmul.f32 %v981_v18, %v536_v16 }
  0xf9   : > { %986 = vrcp.f32 %v708_v19  ;;  %v985_v22 = vpop.eup %984  ;;  %v730_v23 = vadd.f32 1.0, %v983_v20  ;;  %v720_v33 = vand.u32 2147483648, %v708_v19  ;;  %v718_v35 = vand.u32 2147483647, %v708_v19 }
  0xfa   : > { %543 = vst [vmem:[#allocation2] sm:$0x3] %v542_v21  ;;  %v754_v24 = vadd.f32 1.0, %v985_v22  ;;  %vm714_vm0 = vweird.f32 %v708_v19 }
  0xfb   : > { %545 = vst [vmem:[%s1159_s23] sm:$0x3] %v542_v21  ;;  %988 = vrcp.f32 %v730_v23  ;;  %v742_v38 = vand.u32 2147483648, %v730_v23  ;;  %v740_v40 = vand.u32 2147483647, %v730_v23  ;;  %v721_v42 = vor.u32 1.1754944e-38, %v720_v33 }
  0xfc   : > { %990 = vrcp.f32 %v754_v24  ;;  %vm719_vm3 = vcmp.eq.f32.partialorder %v718_v35, 8.507059e+37  ;;  %vm736_vm4 = vweird.f32 %v730_v23  ;;  %v766_v56 = vand.u32 2147483648, %v754_v24 }
  0xfd   : > { %992 = vtanh.f32 %v746_v29  ;;  %v743_v47 = vor.u32 1.1754944e-38, %v742_v38  ;;  %vm741_vm6 = vcmp.eq.f32.partialorder %v740_v40, 8.507059e+37  ;;  %vm760_vm8 = vweird.f32 %v754_v24 }
  0xfe   : > { %v764_v57 = vand.u32 2147483647, %v754_v24  ;;  %v767_v59 = vor.u32 1.1754944e-38, %v766_v56 }
  0xff   : > { %v987_v25 = vpop.eup %986 }
 0x100   : > { %v710_v26 = vmul.f32 %v987_v25, %v708_v19  ;;  %vm715_vm15 = vweird.f32 %v987_v25  ;;  %vm765_vm10 = vcmp.eq.f32.partialorder %v764_v57, 8.507059e+37 }
 0x101   : > { %v989_v27 = vpop.eup %988  ;;  %vm716_vm1 = vmor %vm714_vm0, %vm715_vm15 }
 0x102   : > { %v711_v28 = vsub.f32 1.0, %v710_v26  ;;  %v991_v30 = vpop.eup %990  ;;  %v732_v31 = vmul.f32 %v989_v27, %v730_v23  ;;  %vm737_vm2 = vweird.f32 %v989_v27 }
 0x103   : > { %v756_v34 = vmul.f32 %v991_v30, %v754_v24  ;;  %vm738_vm5 = vmor %vm736_vm4, %vm737_vm2  ;;  %v993_v49 = vpop.eup %992  ;;  %vm761_vm7 = vweird.f32 %v991_v30 }
 0x104   : > { %v712_v32 = vmul.f32 %v987_v25, %v711_v28  ;;  %v733_v36 = vsub.f32 1.0, %v732_v31  ;;  %vm762_vm9 = vmor %vm760_vm8, %vm761_vm7 }
 0x105   : > { %v757_v43 = vsub.f32 1.0, %v756_v34 }
 0x106   : > { %v713_v37 = vadd.f32 %v987_v25, %v712_v32  ;;  %v734_v39 = vmul.f32 %v989_v27, %v733_v36 }
 0x107   : > { %v758_v51 = vmul.f32 %v991_v30, %v757_v43 }
 0x108   : > { %v717_v41 = vsel %vm716_vm1, %v987_v25, %v713_v37  ;;  %v735_v44 = vadd.f32 %v989_v27, %v734_v39 }
 0x109   : > { %v722_v46 = vsel %vm719_vm3, %v721_v42, %v717_v41  ;;  %v759_v55 = vadd.f32 %v991_v30, %v758_v51 }
 0x10a   : > { %v739_v48 = vsel %vm738_vm5, %v989_v27, %v735_v44  ;;  %v771_v53 = vmul.f32 %v993_v49, %v722_v46 }
 0x10b   : > { %v744_v50 = vsel %vm741_vm6, %v743_v47, %v739_v48  ;;  %v763_v58 = vsel %vm762_vm9, %v991_v30, %v759_v55 }
 0x10c   : > { %v770_v52 = vmul.f32 %v744_v50, %v704_v45  ;;  %v768_v61 = vsel %vm765_vm10, %v767_v59, %v763_v58 }
 0x10e   : > { %v772_v54 = vadd.f32 %v771_v53, %v770_v52 }
 0x110   : > { %994 = vtanh.f32 %v772_v54  ;;  %776 = vst [vmem:[#allocation5] sm:$0x3] %v772_v54 }
 0x116   : > { %v995_v60 = vpop.eup %994 }
 0x117   : > { %v774_v62 = vmul.f32 %v995_v60, %v768_v61 }
 0x119   : > { %775 = vst [vmem:[#allocation4] sm:$0x3] %v774_v62 }
 0x11a   : > { %777 = vst [vmem:[%s1164_s27] sm:$0x3] %v774_v62 }
 0x11b PF: > { %s18_s18 = sadd.s32 1, %s1070_s18  }
 0x11c   : > { %p15_p9 = scmp.ge.s32.totalorder %s18_s18, 10  }
 0x11e   :  { %17 = sbr.rel (!%p15_p9) target bundleno = 2 (0x2), region = 94 }
 0x123   :  { %814 = vsyncpa [#allocation7], 1 }
 0x124   :  { %816 = vsyncpa [#allocation7 + $0x1], 1 }
 0x125   :  { %817 = vsyncpa [#allocation9], 1 }

// kernel: emodel_forward.17
= control target key start
LH: loop header
LB: loop body
LE: loop exit
PB: predicated region body
PF: predicated region fallthrough
CT: control target
= control target key end

     0   :  { %8 = vsyncpa [#allocation3], 0  ;;  %s726_s15 = smov [#allocation2]   ;;  %s727_s17 = smov 1024   ;;  %s865_s0 = inlined_call_operand.vmem [shape: f32[16,256], index: 0, kind: input, shape index: {}]   ;;  %s866_s1 = inlined_call_operand.hbm [shape: f32[256,1024], index: 1, kind: input, shape index: {}]   ;;  %s867_s2 = inlined_call_operand.vmem [shape: f32[1,1024], index: 2, kind: input, shape index: {}]   ;;  %s868_s3 = inlined_call_operand.vmem [shape: f32[16,1024], index: 3, kind: output, shape index: {}]  }
   0x1   :  { %s15_s14 = sshll.u32 %s866_s1, 4  ;;  %s17_s16 = sshll.u32 %s726_s15, 4  ;;  %s16_s14 = int_to_ptr.hbm [resolvable:$true] %s15_s14  ;;  %s18_s16 = int_to_ptr.vmem [resolvable:$true] %s17_s16 }
   0x2   :  { %s728_s18 = smov 64  }
   0x3   :  { %23 = dma.hbm_to_vmem [thread:$0]  %s16_s14, 32768, %s18_s16, [#allocation3], %s727_s17, %s727_s17, %s728_s18  }
   0x4   :  { %724 = dma.done.wait [#allocation3], 32768  }
   0x5   :  { %725 = vsyncadd [#allocation3], 4294934528  ;;  %v155_v0 = vld [vmem:[#allocation2 + $0x3c8] sm:$0xff]  ;;  %v154_v4 = vld [vmem:[#allocation2 + $0x3c0] sm:$0xff] }
   0x6   :  { %v147_v1 = vld [vmem:[#allocation2 + $0x388] sm:$0xff]  ;;  %354 = vmatpush.msra.mxu2 %v155_v0  ;;  %308 = vmatpush.msra.mxu0 %v154_v4  ;;  %v146_v7 = vld [vmem:[#allocation2 + $0x380] sm:$0xff]  ;;  %v157_v61 = vld [vmem:[#allocation2 + $0x3d8] sm:$0xff] }
   0x7   :  { %v283_v2 = vld [vmem:[#allocation2 + $0x7c8] sm:$0xff]  ;;  %v282_v9 = vld [vmem:[#allocation2 + $0x7c0] sm:$0xff]  ;;  %v285_v62 = vld [vmem:[#allocation2 + $0x7d8] sm:$0xff] }
   0x8   :  { %377 = vmatpush.msra.mxu3 %v283_v2  ;;  %v275_v3 = vld [vmem:[#allocation2 + $0x788] sm:$0xff]  ;;  %355 = vmatpush.msra.mxu2 %v147_v1  ;;  %v138_v11 = vld [vmem:[#allocation2 + $0x340] sm:$0xff]  ;;  %v149_v1 = vld [vmem:[#allocation2 + $0x398] sm:$0xff] }
   0x9   :  { %v139_v5 = vld [vmem:[#allocation2 + $0x348] sm:$0xff]  ;;  %309 = vmatpush.msra.mxu0 %v146_v7  ;;  %331 = vmatpush.msra.mxu1 %v282_v9  ;;  %v274_v12 = vld [vmem:[#allocation2 + $0x780] sm:$0xff]  ;;  %v277_v2 = vld [vmem:[#allocation2 + $0x798] sm:$0xff] }
   0xa   :  { %v267_v6 = vld [vmem:[#allocation2 + $0x748] sm:$0xff]  ;;  %378 = vmatpush.msra.mxu3 %v275_v3  ;;  %356 = vmatpush.msra.mxu2 %v139_v5  ;;  %v130_v13 = vld [vmem:[#allocation2 + $0x300] sm:$0xff]  ;;  %v156_v3 = vld [vmem:[#allocation2 + $0x3d0] sm:$0xff] }
   0xb   :  { %v131_v8 = vld [vmem:[#allocation2 + $0x308] sm:$0xff]  ;;  %v266_v14 = vld [vmem:[#allocation2 + $0x740] sm:$0xff]  ;;  %310 = vmatpush.msra.mxu0 %v138_v11  ;;  %332 = vmatpush.msra.mxu1 %v274_v12  ;;  %v141_v5 = vld [vmem:[#allocation2 + $0x358] sm:$0xff] }
   0xc   :  { %v259_v10 = vld [vmem:[#allocation2 + $0x708] sm:$0xff]  ;;  %379 = vmatpush.msra.mxu3 %v267_v6  ;;  %357 = vmatpush.msra.mxu2 %v131_v8  ;;  %v122_v17 = vld [vmem:[#allocation2 + $0x2c0] sm:$0xff]  ;;  %v269_v6 = vld [vmem:[#allocation2 + $0x758] sm:$0xff] }
   0xd   :  { %v123_v15 = vld [vmem:[#allocation2 + $0x2c8] sm:$0xff]  ;;  %v258_v18 = vld [vmem:[#allocation2 + $0x700] sm:$0xff]  ;;  %311 = vmatpush.msra.mxu0 %v130_v13  ;;  %333 = vmatpush.msra.mxu1 %v266_v14  ;;  %v148_v7 = vld [vmem:[#allocation2 + $0x390] sm:$0xff] }
   0xe   :  { %v251_v16 = vld [vmem:[#allocation2 + $0x6c8] sm:$0xff]  ;;  %380 = vmatpush.msra.mxu3 %v259_v10  ;;  %358 = vmatpush.msra.mxu2 %v123_v15  ;;  %v114_v21 = vld [vmem:[#allocation2 + $0x280] sm:$0xff]  ;;  %v284_v8 = vld [vmem:[#allocation2 + $0x7d0] sm:$0xff] }
   0xf   :  { %v115_v19 = vld [vmem:[#allocation2 + $0x288] sm:$0xff]  ;;  %v250_v22 = vld [vmem:[#allocation2 + $0x6c0] sm:$0xff]  ;;  %312 = vmatpush.msra.mxu0 %v122_v17  ;;  %334 = vmatpush.msra.mxu1 %v258_v18  ;;  %v133_v9 = vld [vmem:[#allocation2 + $0x318] sm:$0xff] }
  0x10   :  { %v243_v20 = vld [vmem:[#allocation2 + $0x688] sm:$0xff]  ;;  %381 = vmatpush.msra.mxu3 %v251_v16  ;;  %359 = vmatpush.msra.mxu2 %v115_v19  ;;  %v106_v25 = vld [vmem:[#allocation2 + $0x240] sm:$0xff]  ;;  %v261_v10 = vld [vmem:[#allocation2 + $0x718] sm:$0xff] }
  0x11   :  { %v107_v23 = vld [vmem:[#allocation2 + $0x248] sm:$0xff]  ;;  %v242_v26 = vld [vmem:[#allocation2 + $0x680] sm:$0xff]  ;;  %313 = vmatpush.msra.mxu0 %v114_v21  ;;  %335 = vmatpush.msra.mxu1 %v250_v22  ;;  %v140_v11 = vld [vmem:[#allocation2 + $0x350] sm:$0xff] }
  0x12   :  { %v235_v24 = vld [vmem:[#allocation2 + $0x648] sm:$0xff]  ;;  %382 = vmatpush.msra.mxu3 %v243_v20  ;;  %360 = vmatpush.msra.mxu2 %v107_v23  ;;  %v98_v29 = vld [vmem:[#allocation2 + $0x200] sm:$0xff]  ;;  %v276_v12 = vld [vmem:[#allocation2 + $0x790] sm:$0xff] }
  0x13   :  { %v99_v27 = vld [vmem:[#allocation2 + $0x208] sm:$0xff]  ;;  %v234_v30 = vld [vmem:[#allocation2 + $0x640] sm:$0xff]  ;;  %314 = vmatpush.msra.mxu0 %v106_v25  ;;  %336 = vmatpush.msra.mxu1 %v242_v26  ;;  %v125_v13 = vld [vmem:[#allocation2 + $0x2d8] sm:$0xff] }
  0x14   :  { %v227_v28 = vld [vmem:[#allocation2 + $0x608] sm:$0xff]  ;;  %383 = vmatpush.msra.mxu3 %v235_v24  ;;  %361 = vmatpush.msra.mxu2 %v99_v27  ;;  %v90_v33 = vld [vmem:[#allocation2 + $0x1c0] sm:$0xff]  ;;  %v253_v14 = vld [vmem:[#allocation2 + $0x6d8] sm:$0xff] }
  0x15   :  { %v91_v31 = vld [vmem:[#allocation2 + $0x1c8] sm:$0xff]  ;;  %v226_v34 = vld [vmem:[#allocation2 + $0x600] sm:$0xff]  ;;  %315 = vmatpush.msra.mxu0 %v98_v29  ;;  %337 = vmatpush.msra.mxu1 %v234_v30  ;;  %v132_v15 = vld [vmem:[#allocation2 + $0x310] sm:$0xff] }
  0x16   :  { %v219_v32 = vld [vmem:[#allocation2 + $0x5c8] sm:$0xff]  ;;  %384 = vmatpush.msra.mxu3 %v227_v28  ;;  %362 = vmatpush.msra.mxu2 %v91_v31  ;;  %v82_v37 = vld [vmem:[#allocation2 + $0x180] sm:$0xff]  ;;  %v268_v16 = vld [vmem:[#allocation2 + $0x750] sm:$0xff] }
  0x17   :  { %v83_v35 = vld [vmem:[#allocation2 + $0x188] sm:$0xff]  ;;  %v218_v38 = vld [vmem:[#allocation2 + $0x5c0] sm:$0xff]  ;;  %316 = vmatpush.msra.mxu0 %v90_v33  ;;  %338 = vmatpush.msra.mxu1 %v226_v34  ;;  %v117_v17 = vld [vmem:[#allocation2 + $0x298] sm:$0xff] }
  0x18   :  { %v211_v36 = vld [vmem:[#allocation2 + $0x588] sm:$0xff]  ;;  %385 = vmatpush.msra.mxu3 %v219_v32  ;;  %363 = vmatpush.msra.mxu2 %v83_v35  ;;  %v74_v41 = vld [vmem:[#allocation2 + $0x140] sm:$0xff]  ;;  %v245_v18 = vld [vmem:[#allocation2 + $0x698] sm:$0xff] }
  0x19   :  { %v75_v39 = vld [vmem:[#allocation2 + $0x148] sm:$0xff]  ;;  %v210_v42 = vld [vmem:[#allocation2 + $0x580] sm:$0xff]  ;;  %317 = vmatpush.msra.mxu0 %v82_v37  ;;  %339 = vmatpush.msra.mxu1 %v218_v38  ;;  %v124_v19 = vld [vmem:[#allocation2 + $0x2d0] sm:$0xff] }
  0x1a   :  { %v203_v40 = vld [vmem:[#allocation2 + $0x548] sm:$0xff]  ;;  %386 = vmatpush.msra.mxu3 %v211_v36  ;;  %364 = vmatpush.msra.mxu2 %v75_v39  ;;  %v66_v45 = vld [vmem:[#allocation2 + $0x100] sm:$0xff]  ;;  %v260_v20 = vld [vmem:[#allocation2 + $0x710] sm:$0xff] }
  0x1b   :  { %v67_v43 = vld [vmem:[#allocation2 + $0x108] sm:$0xff]  ;;  %v202_v46 = vld [vmem:[#allocation2 + $0x540] sm:$0xff]  ;;  %318 = vmatpush.msra.mxu0 %v74_v41  ;;  %340 = vmatpush.msra.mxu1 %v210_v42  ;;  %v109_v21 = vld [vmem:[#allocation2 + $0x258] sm:$0xff] }
  0x1c   :  { %v195_v44 = vld [vmem:[#allocation2 + $0x508] sm:$0xff]  ;;  %387 = vmatpush.msra.mxu3 %v203_v40  ;;  %365 = vmatpush.msra.mxu2 %v67_v43  ;;  %v58_v49 = vld [vmem:[#allocation2 + $0xc0] sm:$0xff]  ;;  %v237_v22 = vld [vmem:[#allocation2 + $0x658] sm:$0xff] }
  0x1d   :  { %v59_v47 = vld [vmem:[#allocation2 + $0xc8] sm:$0xff]  ;;  %v194_v50 = vld [vmem:[#allocation2 + $0x500] sm:$0xff]  ;;  %319 = vmatpush.msra.mxu0 %v66_v45  ;;  %341 = vmatpush.msra.mxu1 %v202_v46  ;;  %v116_v23 = vld [vmem:[#allocation2 + $0x290] sm:$0xff] }
  0x1e   :  { %v187_v48 = vld [vmem:[#allocation2 + $0x4c8] sm:$0xff]  ;;  %388 = vmatpush.msra.mxu3 %v195_v44  ;;  %366 = vmatpush.msra.mxu2 %v59_v47  ;;  %v50_v53 = vld [vmem:[#allocation2 + $0x80] sm:$0xff]  ;;  %v252_v24 = vld [vmem:[#allocation2 + $0x6d0] sm:$0xff] }
  0x1f   :  { %v51_v51 = vld [vmem:[#allocation2 + $0x88] sm:$0xff]  ;;  %v186_v54 = vld [vmem:[#allocation2 + $0x4c0] sm:$0xff]  ;;  %320 = vmatpush.msra.mxu0 %v58_v49  ;;  %342 = vmatpush.msra.mxu1 %v194_v50  ;;  %v101_v25 = vld [vmem:[#allocation2 + $0x218] sm:$0xff] }
  0x20   :  { %v179_v52 = vld [vmem:[#allocation2 + $0x488] sm:$0xff]  ;;  %389 = vmatpush.msra.mxu3 %v187_v48  ;;  %367 = vmatpush.msra.mxu2 %v51_v51  ;;  %v42_v57 = vld [vmem:[#allocation2 + $0x40] sm:$0xff]  ;;  %v229_v26 = vld [vmem:[#allocation2 + $0x618] sm:$0xff] }
  0x21   :  { %v43_v55 = vld [vmem:[#allocation2 + $0x48] sm:$0xff]  ;;  %v178_v58 = vld [vmem:[#allocation2 + $0x480] sm:$0xff]  ;;  %321 = vmatpush.msra.mxu0 %v50_v53  ;;  %343 = vmatpush.msra.mxu1 %v186_v54  ;;  %v108_v27 = vld [vmem:[#allocation2 + $0x250] sm:$0xff] }
  0x22   :  { %v171_v56 = vld [vmem:[#allocation2 + $0x448] sm:$0xff]  ;;  %390 = vmatpush.msra.mxu3 %v179_v52  ;;  %368 = vmatpush.msra.mxu2 %v43_v55  ;;  %v34_v63 = vld [vmem:[#allocation2] sm:$0xff]  ;;  %v244_v28 = vld [vmem:[#allocation2 + $0x690] sm:$0xff] }
  0x23   :  { %v35_v59 = vld [vmem:[#allocation2 + $0x8] sm:$0xff]  ;;  %322 = vmatpush.msra.mxu0 %v42_v57  ;;  %344 = vmatpush.msra.mxu1 %v178_v58  ;;  %v170_v0 = vld [vmem:[#allocation2 + $0x440] sm:$0xff]  ;;  %v93_v29 = vld [vmem:[#allocation2 + $0x1d8] sm:$0xff] }
  0x24   :  { %v163_v60 = vld [vmem:[#allocation2 + $0x408] sm:$0xff]  ;;  %391 = vmatpush.msra.mxu3 %v171_v56  ;;  %369 = vmatpush.msra.mxu2 %v35_v59  ;;  %v162_v4 = vld [vmem:[#allocation2 + $0x400] sm:$0xff]  ;;  %v221_v30 = vld [vmem:[#allocation2 + $0x5d8] sm:$0xff] }
  0x25   :  { %323 = vmatpush.msra.mxu0 %v34_v63  ;;  %345 = vmatpush.msra.mxu1 %v170_v0  ;;  %v100_v31 = vld [vmem:[#allocation2 + $0x210] sm:$0xff]  ;;  %v85_v33 = vld [vmem:[#allocation2 + $0x198] sm:$0xff]  ;;  %v755_v55 = vld [vmem:[%s865_s0] sm:$0xff] }
  0x26   :  { %392 = vmatpush.msra.mxu3 %v163_v60  ;;  %446 = vmatpush.msrb.mxu2 %v157_v61  ;;  %v236_v32 = vld [vmem:[#allocation2 + $0x650] sm:$0xff]  ;;  %v213_v34 = vld [vmem:[#allocation2 + $0x598] sm:$0xff]  ;;  %v159_v59 = vld [vmem:[#allocation2 + $0x3e8] sm:$0xff] }
  0x27   :  { %400 = vmatpush.msrb.mxu0 %v156_v3  ;;  %346 = vmatpush.msra.mxu1 %v162_v4  ;;  %v92_v35 = vld [vmem:[#allocation2 + $0x1d0] sm:$0xff]  ;;  %v77_v37 = vld [vmem:[#allocation2 + $0x158] sm:$0xff]  ;;  %v761_v61 = vld [vmem:[%s865_s0 + $0x8] sm:$0xff] }
  0x28   :  { %469 = vmatpush.msrb.mxu3 %v285_v62  ;;  %447 = vmatpush.msrb.mxu2 %v149_v1  ;;  %v228_v36 = vld [vmem:[#allocation2 + $0x610] sm:$0xff]  ;;  %v205_v38 = vld [vmem:[#allocation2 + $0x558] sm:$0xff]  ;;  %v151_v63 = vld [vmem:[#allocation2 + $0x3a8] sm:$0xff] }
  0x29   :  { %401 = vmatpush.msrb.mxu0 %v148_v7  ;;  %423 = vmatpush.msrb.mxu1 %v284_v8  ;;  %v84_v39 = vld [vmem:[#allocation2 + $0x190] sm:$0xff]  ;;  %v69_v41 = vld [vmem:[#allocation2 + $0x118] sm:$0xff]  ;;  %v287_v0 = vld [vmem:[#allocation2 + $0x7e8] sm:$0xff] }
  0x2a   :  { %470 = vmatpush.msrb.mxu3 %v277_v2  ;;  %448 = vmatpush.msrb.mxu2 %v141_v5  ;;  %v220_v40 = vld [vmem:[#allocation2 + $0x5d0] sm:$0xff]  ;;  %v197_v42 = vld [vmem:[#allocation2 + $0x518] sm:$0xff]  ;;  %v143_v3 = vld [vmem:[#allocation2 + $0x368] sm:$0xff] }
  0x2b   :  { %402 = vmatpush.msrb.mxu0 %v140_v11  ;;  %424 = vmatpush.msrb.mxu1 %v276_v12  ;;  %v76_v43 = vld [vmem:[#allocation2 + $0x150] sm:$0xff]  ;;  %v61_v45 = vld [vmem:[#allocation2 + $0xd8] sm:$0xff]  ;;  %v279_v4 = vld [vmem:[#allocation2 + $0x7a8] sm:$0xff] }
  0x2c   :  { %471 = vmatpush.msrb.mxu3 %v269_v6  ;;  %449 = vmatpush.msrb.mxu2 %v133_v9  ;;  %v212_v44 = vld [vmem:[#allocation2 + $0x590] sm:$0xff]  ;;  %v189_v46 = vld [vmem:[#allocation2 + $0x4d8] sm:$0xff]  ;;  %v158_v6 = vld [vmem:[#allocation2 + $0x3e0] sm:$0xff] }
  0x2d   :  { %403 = vmatpush.msrb.mxu0 %v132_v15  ;;  %425 = vmatpush.msrb.mxu1 %v268_v16  ;;  %v68_v47 = vld [vmem:[#allocation2 + $0x110] sm:$0xff]  ;;  %v53_v49 = vld [vmem:[#allocation2 + $0x98] sm:$0xff]  ;;  %v135_v7 = vld [vmem:[#allocation2 + $0x328] sm:$0xff] }
  0x2e   :  { %472 = vmatpush.msrb.mxu3 %v261_v10  ;;  %450 = vmatpush.msrb.mxu2 %v125_v13  ;;  %v204_v48 = vld [vmem:[#allocation2 + $0x550] sm:$0xff]  ;;  %v181_v50 = vld [vmem:[#allocation2 + $0x498] sm:$0xff]  ;;  %v271_v8 = vld [vmem:[#allocation2 + $0x768] sm:$0xff] }
  0x2f   :  { %404 = vmatpush.msrb.mxu0 %v124_v19  ;;  %426 = vmatpush.msrb.mxu1 %v260_v20  ;;  %v60_v51 = vld [vmem:[#allocation2 + $0xd0] sm:$0xff]  ;;  %v45_v53 = vld [vmem:[#allocation2 + $0x58] sm:$0xff]  ;;  %v150_v10 = vld [vmem:[#allocation2 + $0x3a0] sm:$0xff] }
  0x30   :  { %473 = vmatpush.msrb.mxu3 %v253_v14  ;;  %451 = vmatpush.msrb.mxu2 %v117_v17  ;;  %v196_v52 = vld [vmem:[#allocation2 + $0x510] sm:$0xff]  ;;  %v173_v54 = vld [vmem:[#allocation2 + $0x458] sm:$0xff]  ;;  %v286_v11 = vld [vmem:[#allocation2 + $0x7e0] sm:$0xff] }
  0x31   :  { %405 = vmatpush.msrb.mxu0 %v116_v23  ;;  %427 = vmatpush.msrb.mxu1 %v252_v24  ;;  %v52_v56 = vld [vmem:[#allocation2 + $0x90] sm:$0xff]  ;;  %v37_v57 = vld [vmem:[#allocation2 + $0x18] sm:$0xff]  ;;  %v127_v12 = vld [vmem:[#allocation2 + $0x2e8] sm:$0xff] }
  0x32   :  { %474 = vmatpush.msrb.mxu3 %v245_v18  ;;  %452 = vmatpush.msrb.mxu2 %v109_v21  ;;  %v188_v58 = vld [vmem:[#allocation2 + $0x4d0] sm:$0xff]  ;;  %v165_v60 = vld [vmem:[#allocation2 + $0x418] sm:$0xff]  ;;  %v263_v13 = vld [vmem:[#allocation2 + $0x728] sm:$0xff] }
  0x33   :  { %406 = vmatpush.msrb.mxu0 %v108_v27  ;;  %428 = vmatpush.msrb.mxu1 %v244_v28  ;;  %v44_v62 = vld [vmem:[#allocation2 + $0x50] sm:$0xff]  ;;  %v142_v14 = vld [vmem:[#allocation2 + $0x360] sm:$0xff]  ;;  %v119_v16 = vld [vmem:[#allocation2 + $0x2a8] sm:$0xff] }
  0x34   :  { %475 = vmatpush.msrb.mxu3 %v237_v22  ;;  %453 = vmatpush.msrb.mxu2 %v101_v25  ;;  %v180_v1 = vld [vmem:[#allocation2 + $0x490] sm:$0xff]  ;;  %v278_v15 = vld [vmem:[#allocation2 + $0x7a0] sm:$0xff]  ;;  %v255_v17 = vld [vmem:[#allocation2 + $0x6e8] sm:$0xff] }
  0x35   :  { %407 = vmatpush.msrb.mxu0 %v100_v31  ;;  %429 = vmatpush.msrb.mxu1 %v236_v32  ;;  %v36_v2 = vld [vmem:[#allocation2 + $0x10] sm:$0xff]  ;;  %v134_v18 = vld [vmem:[#allocation2 + $0x320] sm:$0xff]  ;;  %v111_v20 = vld [vmem:[#allocation2 + $0x268] sm:$0xff] }
  0x36   :  { %476 = vmatpush.msrb.mxu3 %v229_v26  ;;  %454 = vmatpush.msrb.mxu2 %v93_v29  ;;  %v172_v5 = vld [vmem:[#allocation2 + $0x450] sm:$0xff]  ;;  %v270_v19 = vld [vmem:[#allocation2 + $0x760] sm:$0xff]  ;;  %v247_v21 = vld [vmem:[#allocation2 + $0x6a8] sm:$0xff] }
  0x37   :  { %408 = vmatpush.msrb.mxu0 %v92_v35  ;;  %430 = vmatpush.msrb.mxu1 %v228_v36  ;;  %v164_v9 = vld [vmem:[#allocation2 + $0x410] sm:$0xff]  ;;  %v126_v22 = vld [vmem:[#allocation2 + $0x2e0] sm:$0xff]  ;;  %v103_v24 = vld [vmem:[#allocation2 + $0x228] sm:$0xff] }
  0x38   :  { %477 = vmatpush.msrb.mxu3 %v221_v30  ;;  %455 = vmatpush.msrb.mxu2 %v85_v33  ;;  %v262_v23 = vld [vmem:[#allocation2 + $0x720] sm:$0xff]  ;;  %v239_v25 = vld [vmem:[#allocation2 + $0x668] sm:$0xff] }
  0x39   :  { %409 = vmatpush.msrb.mxu0 %v84_v39  ;;  %431 = vmatpush.msrb.mxu1 %v220_v40  ;;  %v118_v26 = vld [vmem:[#allocation2 + $0x2a0] sm:$0xff]  ;;  %v95_v28 = vld [vmem:[#allocation2 + $0x1e8] sm:$0xff] }
  0x3a   :  { %478 = vmatpush.msrb.mxu3 %v213_v34  ;;  %456 = vmatpush.msrb.mxu2 %v77_v37  ;;  %v254_v27 = vld [vmem:[#allocation2 + $0x6e0] sm:$0xff]  ;;  %v231_v29 = vld [vmem:[#allocation2 + $0x628] sm:$0xff] }
  0x3b   :  { %410 = vmatpush.msrb.mxu0 %v76_v43  ;;  %432 = vmatpush.msrb.mxu1 %v212_v44  ;;  %v110_v30 = vld [vmem:[#allocation2 + $0x260] sm:$0xff]  ;;  %v87_v32 = vld [vmem:[#allocation2 + $0x1a8] sm:$0xff]  ;;  %v775_v43 = vld [vmem:[%s865_s0 + $0x18] sm:$0xff] }
  0x3c   :  { %479 = vmatpush.msrb.mxu3 %v205_v38  ;;  %457 = vmatpush.msrb.mxu2 %v69_v41  ;;  %v246_v31 = vld [vmem:[#allocation2 + $0x6a0] sm:$0xff]  ;;  %v223_v33 = vld [vmem:[#allocation2 + $0x5e8] sm:$0xff]  ;;  %v769_v38 = vld [vmem:[%s865_s0 + $0x10] sm:$0xff] }
  0x3d   :  { %411 = vmatpush.msrb.mxu0 %v68_v47  ;;  %433 = vmatpush.msrb.mxu1 %v204_v48  ;;  %v102_v34 = vld [vmem:[#allocation2 + $0x220] sm:$0xff]  ;;  %v79_v36 = vld [vmem:[#allocation2 + $0x168] sm:$0xff] }
  0x3e   :  { %480 = vmatpush.msrb.mxu3 %v197_v42  ;;  %458 = vmatpush.msrb.mxu2 %v61_v45  ;;  %v238_v35 = vld [vmem:[#allocation2 + $0x660] sm:$0xff]  ;;  %v215_v37 = vld [vmem:[#allocation2 + $0x5a8] sm:$0xff] }
  0x3f   :  { %412 = vmatpush.msrb.mxu0 %v60_v51  ;;  %434 = vmatpush.msrb.mxu1 %v196_v52  ;;  %v94_v39 = vld [vmem:[#allocation2 + $0x1e0] sm:$0xff]  ;;  %v71_v41 = vld [vmem:[#allocation2 + $0x128] sm:$0xff] }
  0x40   :  { %481 = vmatpush.msrb.mxu3 %v189_v46  ;;  %459 = vmatpush.msrb.mxu2 %v53_v49  ;;  %v230_v40 = vld [vmem:[#allocation2 + $0x620] sm:$0xff]  ;;  %v207_v42 = vld [vmem:[#allocation2 + $0x568] sm:$0xff] }
  0x41   :  { %370 = vmatmul.f32.vlgmr.msra.gmra.mxu2 %v755_v55  ;;  %413 = vmatpush.msrb.mxu0 %v52_v56  ;;  %v86_v44 = vld [vmem:[#allocation2 + $0x1a0] sm:$0xff]  ;;  %v63_v46 = vld [vmem:[#allocation2 + $0xe8] sm:$0xff] }
  0x42   :  { %482 = vmatpush.msrb.mxu3 %v181_v50  ;;  %460 = vmatpush.msrb.mxu2 %v45_v53  ;;  %v222_v45 = vld [vmem:[#allocation2 + $0x5e0] sm:$0xff]  ;;  %v199_v47 = vld [vmem:[#allocation2 + $0x528] sm:$0xff] }
  0x43   :  { %435 = vmatpush.msrb.mxu1 %v188_v58  ;;  %393 = vmatmul.f32.vlgmr.msra.gmra.mxu3 %v761_v61  ;;  %v78_v48 = vld [vmem:[#allocation2 + $0x160] sm:$0xff]  ;;  %v55_v50 = vld [vmem:[#allocation2 + $0xa8] sm:$0xff] }
  0x44   :  { %483 = vmatpush.msrb.mxu3 %v173_v54  ;;  %461 = vmatpush.msrb.mxu2 %v37_v57  ;;  %v214_v49 = vld [vmem:[#allocation2 + $0x5a0] sm:$0xff]  ;;  %v191_v51 = vld [vmem:[#allocation2 + $0x4e8] sm:$0xff] }
  0x45   :  { %414 = vmatpush.msrb.mxu0 %v44_v62  ;;  %436 = vmatpush.msrb.mxu1 %v180_v1  ;;  %v70_v52 = vld [vmem:[#allocation2 + $0x120] sm:$0xff]  ;;  %v47_v54 = vld [vmem:[#allocation2 + $0x68] sm:$0xff]  ;;  %v161_v62 = vld [vmem:[#allocation2 + $0x3f8] sm:$0xff] }
  0x46   :  { %538 = vmatpush.msra.mxu2 %v159_v59  ;;  %484 = vmatpush.msrb.mxu3 %v165_v60  ;;  %v206_v53 = vld [vmem:[#allocation2 + $0x560] sm:$0xff]  ;;  %v183_v56 = vld [vmem:[#allocation2 + $0x4a8] sm:$0xff] }
  0x47   :  { %415 = vmatpush.msrb.mxu0 %v36_v2  ;;  %437 = vmatpush.msrb.mxu1 %v172_v5  ;;  %v62_v57 = vld [vmem:[#allocation2 + $0xe0] sm:$0xff]  ;;  %v39_v59 = vld [vmem:[#allocation2 + $0x28] sm:$0xff]  ;;  %v153_v2 = vld [vmem:[#allocation2 + $0x3b8] sm:$0xff] }
  0x48   :  { %539 = vmatpush.msra.mxu2 %v151_v63  ;;  %561 = vmatpush.msra.mxu3 %v287_v0  ;;  %v198_v58 = vld [vmem:[#allocation2 + $0x520] sm:$0xff]  ;;  %v175_v60 = vld [vmem:[#allocation2 + $0x468] sm:$0xff] }
  0x49   :  { %324 = vmatmul.f32.vlgmr.msra.gmra.mxu0 %v755_v55  ;;  %438 = vmatpush.msrb.mxu1 %v164_v9  ;;  %v54_v63 = vld [vmem:[#allocation2 + $0xa0] sm:$0xff]  ;;  %v167_v1 = vld [vmem:[#allocation2 + $0x428] sm:$0xff] }
  0x4a   :  { %540 = vmatpush.msra.mxu2 %v143_v3  ;;  %562 = vmatpush.msra.mxu3 %v279_v4  ;;  %v190_v0 = vld [vmem:[#allocation2 + $0x4e0] sm:$0xff]  ;;  %v289_v3 = vld [vmem:[#allocation2 + $0x7f8] sm:$0xff] }
  0x4b   :  { %492 = vmatpush.msra.mxu0 %v158_v6  ;;  %347 = vmatmul.f32.vlgmr.msra.gmra.mxu1 %v761_v61  ;;  %v46_v4 = vld [vmem:[#allocation2 + $0x60] sm:$0xff]  ;;  %v145_v6 = vld [vmem:[#allocation2 + $0x378] sm:$0xff] }
  0x4c   :  { %541 = vmatpush.msra.mxu2 %v135_v7  ;;  %563 = vmatpush.msra.mxu3 %v271_v8  ;;  %v182_v5 = vld [vmem:[#allocation2 + $0x4a0] sm:$0xff]  ;;  %v281_v7 = vld [vmem:[#allocation2 + $0x7b8] sm:$0xff] }
  0x4d   :  { %493 = vmatpush.msra.mxu0 %v150_v10  ;;  %515 = vmatpush.msra.mxu1 %v286_v11  ;;  %v38_v8 = vld [vmem:[#allocation2 + $0x20] sm:$0xff]  ;;  %v160_v10 = vld [vmem:[#allocation2 + $0x3f0] sm:$0xff]  ;;  %v137_v11 = vld [vmem:[#allocation2 + $0x338] sm:$0xff] }
  0x4e   :  { %542 = vmatpush.msra.mxu2 %v127_v12  ;;  %564 = vmatpush.msra.mxu3 %v263_v13  ;;  %v174_v9 = vld [vmem:[#allocation2 + $0x460] sm:$0xff]  ;;  %v273_v12 = vld [vmem:[#allocation2 + $0x778] sm:$0xff] }
  0x4f   :  { %494 = vmatpush.msra.mxu0 %v142_v14  ;;  %516 = vmatpush.msra.mxu1 %v278_v15  ;;  %v166_v13 = vld [vmem:[#allocation2 + $0x420] sm:$0xff]  ;;  %v152_v14 = vld [vmem:[#allocation2 + $0x3b0] sm:$0xff] }
  0x50   :  { %543 = vmatpush.msra.mxu2 %v119_v16  ;;  %565 = vmatpush.msra.mxu3 %v255_v17  ;;  %v288_v15 = vld [vmem:[#allocation2 + $0x7f0] sm:$0xff]  ;;  %v129_v16 = vld [vmem:[#allocation2 + $0x2f8] sm:$0xff] }
  0x51   :  { %495 = vmatpush.msra.mxu0 %v134_v18  ;;  %517 = vmatpush.msra.mxu1 %v270_v19  ;;  %v265_v17 = vld [vmem:[#allocation2 + $0x738] sm:$0xff]  ;;  %v144_v18 = vld [vmem:[#allocation2 + $0x370] sm:$0xff] }
  0x52   :  { %544 = vmatpush.msra.mxu2 %v111_v20  ;;  %566 = vmatpush.msra.mxu3 %v247_v21  ;;  %v280_v19 = vld [vmem:[#allocation2 + $0x7b0] sm:$0xff]  ;;  %v121_v20 = vld [vmem:[#allocation2 + $0x2b8] sm:$0xff] }
  0x53   :  { %496 = vmatpush.msra.mxu0 %v126_v22  ;;  %518 = vmatpush.msra.mxu1 %v262_v23  ;;  %v257_v21 = vld [vmem:[#allocation2 + $0x6f8] sm:$0xff]  ;;  %v136_v22 = vld [vmem:[#allocation2 + $0x330] sm:$0xff] }
  0x54   :  { %545 = vmatpush.msra.mxu2 %v103_v24  ;;  %567 = vmatpush.msra.mxu3 %v239_v25  ;;  %v272_v23 = vld [vmem:[#allocation2 + $0x770] sm:$0xff]  ;;  %v113_v24 = vld [vmem:[#allocation2 + $0x278] sm:$0xff] }
  0x55   :  { %497 = vmatpush.msra.mxu0 %v118_v26  ;;  %519 = vmatpush.msra.mxu1 %v254_v27  ;;  %v249_v25 = vld [vmem:[#allocation2 + $0x6b8] sm:$0xff]  ;;  %v128_v26 = vld [vmem:[#allocation2 + $0x2f0] sm:$0xff] }
  0x56   :  { %546 = vmatpush.msra.mxu2 %v95_v28  ;;  %568 = vmatpush.msra.mxu3 %v231_v29  ;;  %v264_v27 = vld [vmem:[#allocation2 + $0x730] sm:$0xff]  ;;  %v105_v28 = vld [vmem:[#allocation2 + $0x238] sm:$0xff] }
  0x57   :  { %498 = vmatpush.msra.mxu0 %v110_v30  ;;  %520 = vmatpush.msra.mxu1 %v246_v31  ;;  %v241_v29 = vld [vmem:[#allocation2 + $0x678] sm:$0xff]  ;;  %v120_v30 = vld [vmem:[#allocation2 + $0x2b0] sm:$0xff] }
  0x58   :  { %547 = vmatpush.msra.mxu2 %v87_v32  ;;  %569 = vmatpush.msra.mxu3 %v223_v33  ;;  %v256_v31 = vld [vmem:[#allocation2 + $0x6f0] sm:$0xff]  ;;  %v97_v32 = vld [vmem:[#allocation2 + $0x1f8] sm:$0xff] }
  0x59   :  { %499 = vmatpush.msra.mxu0 %v102_v34  ;;  %521 = vmatpush.msra.mxu1 %v238_v35  ;;  %v233_v33 = vld [vmem:[#allocation2 + $0x638] sm:$0xff]  ;;  %v112_v34 = vld [vmem:[#allocation2 + $0x270] sm:$0xff] }
  0x5a   :  { %548 = vmatpush.msra.mxu2 %v79_v36  ;;  %570 = vmatpush.msra.mxu3 %v215_v37  ;;  %v248_v35 = vld [vmem:[#allocation2 + $0x6b0] sm:$0xff]  ;;  %v89_v36 = vld [vmem:[#allocation2 + $0x1b8] sm:$0xff] }
  0x5b   :  { %373 = vmatmul.f32.gmra.mxu2 %v769_v38  ;;  %500 = vmatpush.msra.mxu0 %v94_v39  ;;  %v225_v37 = vld [vmem:[#allocation2 + $0x5f8] sm:$0xff]  ;;  %v104_v39 = vld [vmem:[#allocation2 + $0x230] sm:$0xff] }
  0x5c   :  { %522 = vmatpush.msra.mxu1 %v230_v40  ;;  %549 = vmatpush.msra.mxu2 %v71_v41  ;;  %v240_v40 = vld [vmem:[#allocation2 + $0x670] sm:$0xff]  ;;  %v81_v41 = vld [vmem:[#allocation2 + $0x178] sm:$0xff] }
  0x5d   :  { %571 = vmatpush.msra.mxu3 %v207_v42  ;;  %501 = vmatpush.msra.mxu0 %v86_v44  ;;  %v217_v42 = vld [vmem:[#allocation2 + $0x5b8] sm:$0xff]  ;;  %v96_v44 = vld [vmem:[#allocation2 + $0x1f0] sm:$0xff] }
  0x5e   :  { %396 = vmatmul.f32.gmra.mxu3 %v775_v43  ;;  %523 = vmatpush.msra.mxu1 %v222_v45  ;;  %v232_v45 = vld [vmem:[#allocation2 + $0x630] sm:$0xff] }
  0x5f   :  { %550 = vmatpush.msra.mxu2 %v63_v46  ;;  %572 = vmatpush.msra.mxu3 %v199_v47  ;;  %v73_v46 = vld [vmem:[#allocation2 + $0x138] sm:$0xff] }
  0x60   :  { %502 = vmatpush.msra.mxu0 %v78_v48  ;;  %524 = vmatpush.msra.mxu1 %v214_v49  ;;  %v209_v47 = vld [vmem:[#allocation2 + $0x578] sm:$0xff]  ;;  %v88_v48 = vld [vmem:[#allocation2 + $0x1b0] sm:$0xff] }
  0x61   :  { %551 = vmatpush.msra.mxu2 %v55_v50  ;;  %573 = vmatpush.msra.mxu3 %v191_v51  ;;  %v224_v49 = vld [vmem:[#allocation2 + $0x5f0] sm:$0xff]  ;;  %v65_v50 = vld [vmem:[#allocation2 + $0xf8] sm:$0xff] }
  0x62   :  { %327 = vmatmul.f32.gmra.mxu0 %v769_v38  ;;  %525 = vmatpush.msra.mxu1 %v206_v53  ;;  %v201_v51 = vld [vmem:[#allocation2 + $0x538] sm:$0xff]  ;;  %v216_v53 = vld [vmem:[#allocation2 + $0x5b0] sm:$0xff] }
  0x63   :  { %503 = vmatpush.msra.mxu0 %v70_v52  ;;  %552 = vmatpush.msra.mxu2 %v47_v54  ;;  %v80_v52 = vld [vmem:[#allocation2 + $0x170] sm:$0xff]  ;;  %v57_v54 = vld [vmem:[#allocation2 + $0xb8] sm:$0xff] }
  0x64   :  { %574 = vmatpush.msra.mxu3 %v183_v56  ;;  %350 = vmatmul.f32.gmra.mxu1 %v775_v43  ;;  %v193_v56 = vld [vmem:[#allocation2 + $0x4f8] sm:$0xff] }
  0x65   :  { %462 = vmatmul.f32.vlgmr.msrb.gmra.mxu2 %v755_v55  ;;  %504 = vmatpush.msra.mxu0 %v62_v57  ;;  %v72_v57 = vld [vmem:[#allocation2 + $0x130] sm:$0xff] }
  0x66   :  { %526 = vmatpush.msra.mxu1 %v198_v58  ;;  %553 = vmatpush.msra.mxu2 %v39_v59  ;;  %v208_v58 = vld [vmem:[#allocation2 + $0x570] sm:$0xff]  ;;  %v49_v59 = vld [vmem:[#allocation2 + $0x78] sm:$0xff] }
  0x67   :  { %575 = vmatpush.msra.mxu3 %v175_v60  ;;  %505 = vmatpush.msra.mxu0 %v54_v63  ;;  %v185_v60 = vld [vmem:[#allocation2 + $0x4b8] sm:$0xff]  ;;  %v200_v63 = vld [vmem:[#allocation2 + $0x530] sm:$0xff] }
  0x68   :  { %630 = vmatpush.msrb.mxu2 %v161_v62  ;;  %485 = vmatmul.f32.vlgmr.msrb.gmra.mxu3 %v761_v61  ;;  %v64_v62 = vld [vmem:[#allocation2 + $0xf0] sm:$0xff] }
  0x69   :  { %527 = vmatpush.msra.mxu1 %v190_v0  ;;  %576 = vmatpush.msra.mxu3 %v167_v1  ;;  %v41_v0 = vld [vmem:[#allocation2 + $0x38] sm:$0xff] }
  0x6a   :  { %631 = vmatpush.msrb.mxu2 %v153_v2  ;;  %506 = vmatpush.msra.mxu0 %v46_v4  ;;  %v177_v1 = vld [vmem:[#allocation2 + $0x478] sm:$0xff]  ;;  %v56_v2 = vld [vmem:[#allocation2 + $0xb0] sm:$0xff] }
  0x6b   :  { %653 = vmatpush.msrb.mxu3 %v289_v3  ;;  %528 = vmatpush.msra.mxu1 %v182_v5  ;;  %v192_v3 = vld [vmem:[#allocation2 + $0x4f0] sm:$0xff]  ;;  %v169_v4 = vld [vmem:[#allocation2 + $0x438] sm:$0xff] }
  0x6c   :  { %632 = vmatpush.msrb.mxu2 %v145_v6  ;;  %416 = vmatmul.f32.vlgmr.msrb.gmra.mxu0 %v755_v55  ;;  %v48_v5 = vld [vmem:[#allocation2 + $0x70] sm:$0xff] }
  0x6d   :  { %654 = vmatpush.msrb.mxu3 %v281_v7  ;;  %507 = vmatpush.msra.mxu0 %v38_v8  ;;  %v184_v6 = vld [vmem:[#allocation2 + $0x4b0] sm:$0xff] }
  0x6e   :  { %529 = vmatpush.msra.mxu1 %v174_v9  ;;  %633 = vmatpush.msrb.mxu2 %v137_v11  ;;  %v40_v7 = vld [vmem:[#allocation2 + $0x30] sm:$0xff] }
  0x6f   :  { %584 = vmatpush.msrb.mxu0 %v160_v10  ;;  %655 = vmatpush.msrb.mxu3 %v273_v12  ;;  %v176_v8 = vld [vmem:[#allocation2 + $0x470] sm:$0xff]  ;;  %v807_v10 = vld [vmem:[%s867_s2] sm:$0xff] }
  0x70   :  { %439 = vmatmul.f32.vlgmr.msrb.gmra.mxu1 %v761_v61  ;;  %465 = vmatmul.f32.gmra.mxu2 %v769_v38  ;;  %v168_v9 = vld [vmem:[#allocation2 + $0x430] sm:$0xff]  ;;  %v293_v11 = vperm.slane %v807_v10, 1 }
  0x71   :  { %530 = vmatpush.msra.mxu1 %v166_v13  ;;  %585 = vmatpush.msrb.mxu0 %v152_v14 }
  0x72   :  { %634 = vmatpush.msrb.mxu2 %v129_v16  ;;  %656 = vmatpush.msrb.mxu3 %v265_v17 }
  0x73   :  { %607 = vmatpush.msrb.mxu1 %v288_v15  ;;  %488 = vmatmul.f32.gmra.mxu3 %v775_v43 }
  0x74   :  { %586 = vmatpush.msrb.mxu0 %v144_v18  ;;  %635 = vmatpush.msrb.mxu2 %v121_v20 }
  0x75   :  { %608 = vmatpush.msrb.mxu1 %v280_v19  ;;  %657 = vmatpush.msrb.mxu3 %v257_v21 }
  0x76   :  { %587 = vmatpush.msrb.mxu0 %v136_v22  ;;  %636 = vmatpush.msrb.mxu2 %v113_v24 }
  0x77   :  { %609 = vmatpush.msrb.mxu1 %v272_v23  ;;  %658 = vmatpush.msrb.mxu3 %v249_v25  ;;  %v295_v25 = vperm.slane %v807_v10, 3 }
  0x78   :  { %419 = vmatmul.f32.gmra.mxu0 %v769_v38  ;;  %637 = vmatpush.msrb.mxu2 %v105_v28 }
  0x79   :  { %588 = vmatpush.msrb.mxu0 %v128_v26  ;;  %610 = vmatpush.msrb.mxu1 %v264_v27  ;;  %v294_v26 = vperm.slane %v807_v10, 2 }
  0x7a   :  { %659 = vmatpush.msrb.mxu3 %v241_v29  ;;  %442 = vmatmul.f32.gmra.mxu1 %v775_v43 }
  0x7b   :  { %554 = vmatmul.f32.vlgmr.msra.gmra.mxu2 %v755_v55  ;;  %589 = vmatpush.msrb.mxu0 %v120_v30 }
  0x7c   :  { %611 = vmatpush.msrb.mxu1 %v256_v31  ;;  %638 = vmatpush.msrb.mxu2 %v97_v32 }
  0x7d   :  { %660 = vmatpush.msrb.mxu3 %v233_v33  ;;  %590 = vmatpush.msrb.mxu0 %v112_v34 }
  0x7e   :  { %577 = vmatmul.f32.vlgmr.msra.gmra.mxu3 %v761_v61  ;;  %612 = vmatpush.msrb.mxu1 %v248_v35 }
  0x7f   :  { %639 = vmatpush.msrb.mxu2 %v89_v36  ;;  %661 = vmatpush.msrb.mxu3 %v225_v37 }
  0x80   :  { %591 = vmatpush.msrb.mxu0 %v104_v39  ;;  %613 = vmatpush.msrb.mxu1 %v240_v40 }
  0x81   :  { %640 = vmatpush.msrb.mxu2 %v81_v41  ;;  %662 = vmatpush.msrb.mxu3 %v217_v42 }
  0x82   :  { %508 = vmatmul.f32.vlgmr.msra.gmra.mxu0 %v755_v55  ;;  %614 = vmatpush.msrb.mxu1 %v232_v45  ;;  %v297_v45 = vperm.slane %v807_v10, 5 }
  0x83   :  { %592 = vmatpush.msrb.mxu0 %v96_v44  ;;  %641 = vmatpush.msrb.mxu2 %v73_v46  ;;  %v296_v46 = vperm.slane %v807_v10, 4 }
  0x84   :  { %663 = vmatpush.msrb.mxu3 %v209_v47  ;;  %531 = vmatmul.f32.vlgmr.msra.gmra.mxu1 %v761_v61 }
  0x85   :  { %557 = vmatmul.f32.gmra.mxu2 %v769_v38  ;;  %593 = vmatpush.msrb.mxu0 %v88_v48 }
  0x86   :  { %615 = vmatpush.msrb.mxu1 %v224_v49  ;;  %642 = vmatpush.msrb.mxu2 %v65_v50 }
  0x87   :  { %664 = vmatpush.msrb.mxu3 %v201_v51  ;;  %594 = vmatpush.msrb.mxu0 %v80_v52 }
  0x88   :  { %580 = vmatmul.f32.gmra.mxu3 %v775_v43  ;;  %616 = vmatpush.msrb.mxu1 %v216_v53 }
  0x89   :  { %643 = vmatpush.msrb.mxu2 %v57_v54  ;;  %665 = vmatpush.msrb.mxu3 %v193_v56 }
  0x8a   :  { %595 = vmatpush.msrb.mxu0 %v72_v57  ;;  %617 = vmatpush.msrb.mxu1 %v208_v58 }
  0x8b   :  { %644 = vmatpush.msrb.mxu2 %v49_v59  ;;  %666 = vmatpush.msrb.mxu3 %v185_v60 }
  0x8c   :  { %511 = vmatmul.f32.gmra.mxu0 %v769_v38  ;;  %618 = vmatpush.msrb.mxu1 %v200_v63 }
  0x8d   :  { %596 = vmatpush.msrb.mxu0 %v64_v62  ;;  %645 = vmatpush.msrb.mxu2 %v41_v0 }
  0x8e   :  { %667 = vmatpush.msrb.mxu3 %v177_v1  ;;  %534 = vmatmul.f32.gmra.mxu1 %v775_v43  ;;  %v298_v1 = vperm.slane %v807_v10, 6 }
  0x8f   :  { %646 = vmatmul.f32.vlgmr.msrb.gmra.mxu2 %v755_v55  ;;  %597 = vmatpush.msrb.mxu0 %v56_v2  ;;  %v299_v2 = vperm.slane %v807_v10, 7 }
  0x90   :  { %619 = vmatpush.msrb.mxu1 %v192_v3  ;;  %668 = vmatpush.msrb.mxu3 %v169_v4 }
  0x91   :  { %669 = vmatmul.f32.vlgmr.msrb.gmra.mxu3 %v761_v61  ;;  %598 = vmatpush.msrb.mxu0 %v48_v5 }
  0x92   :  { %620 = vmatpush.msrb.mxu1 %v184_v6 }
  0x93   :  { %599 = vmatpush.msrb.mxu0 %v40_v7 }
  0x94   :  { %621 = vmatpush.msrb.mxu1 %v176_v8  ;;  %600 = vmatmul.f32.vlgmr.msrb.gmra.mxu0 %v755_v55  ;;  %v292_v55 = vperm.slane %v807_v10, 0 }
  0x96   :  { %622 = vmatpush.msrb.mxu1 %v168_v9 }
  0x97   :  { %649 = vmatmul.f32.gmra.mxu2 %v769_v38  ;;  %623 = vmatmul.f32.vlgmr.msrb.gmra.mxu1 %v761_v61 }
  0x99   :  { %672 = vmatmul.f32.gmra.mxu3 %v775_v43 }
  0x9c   :  { %603 = vmatmul.f32.gmra.mxu0 %v769_v38 }
  0x9f   :  { %626 = vmatmul.f32.gmra.mxu1 %v775_v43 }
  0xc4   :  { %v371_v12 = vpop.f32.mrf.mxu2 }
  0xc5   :  { %v372_v14 = vadd.f32 %v371_v12, %v293_v11 }
  0xc6   :  { %v325_v13 = vpop.f32.mrf.mxu0  ;;  %v394_v61 = vpop.f32.mrf.mxu3 }
  0xc7   :  { %v326_v15 = vadd.f32 %v325_v13, %v292_v55  ;;  %v395_v17 = vadd.f32 %v394_v61, %v372_v14 }
  0xc8   :  { %v348_v16 = vpop.f32.mrf.mxu1 }
  0xc9   :  { %v349_v18 = vadd.f32 %v348_v16, %v326_v15  ;;  %677 = vst [vmem:[%s868_s3 + $0x8] sm:$0xff] %v395_v17 }
  0xcb   :  { %676 = vst [vmem:[%s868_s3] sm:$0xff] %v349_v18 }
  0xde   :  { %v374_v38 = vpop.f32.mrf.mxu2 }
  0xdf   :  { %v328_v43 = vpop.f32.mrf.mxu0  ;;  %v375_v19 = vadd.f32 %v374_v38, %v293_v11 }
  0xe0   :  { %v329_v20 = vadd.f32 %v328_v43, %v292_v55 }
  0xe1   :  { %v397_v21 = vpop.f32.mrf.mxu3  ;;  %v351_v22 = vpop.f32.mrf.mxu1 }
  0xe2   :  { %v398_v23 = vadd.f32 %v397_v21, %v375_v19  ;;  %v352_v24 = vadd.f32 %v351_v22, %v329_v20 }
  0xe4   :  { %685 = vst [vmem:[%s868_s3 + $0x48] sm:$0xff] %v398_v23 }
  0xe5   :  { %684 = vst [vmem:[%s868_s3 + $0x40] sm:$0xff] %v352_v24 }
  0xe8   :  { %v463_v27 = vpop.f32.mrf.mxu2 }
  0xe9   :  { %v464_v28 = vadd.f32 %v463_v27, %v295_v25  ;;  %v417_v29 = vpop.f32.mrf.mxu0 }
  0xea   :  { %v418_v30 = vadd.f32 %v417_v29, %v294_v26 }
  0xeb   :  { %v486_v31 = vpop.f32.mrf.mxu3 }
  0xec   :  { %v487_v32 = vadd.f32 %v486_v31, %v464_v28 }
  0xed   :  { %v440_v33 = vpop.f32.mrf.mxu1 }
  0xee   :  { %v441_v34 = vadd.f32 %v440_v33, %v418_v30  ;;  %679 = vst [vmem:[%s868_s3 + $0x18] sm:$0xff] %v487_v32 }
  0xf0   :  { %678 = vst [vmem:[%s868_s3 + $0x10] sm:$0xff] %v441_v34 }
  0xf3   :  { %v466_v35 = vpop.f32.mrf.mxu2 }
  0xf4   :  { %v467_v37 = vadd.f32 %v466_v35, %v295_v25 }
  0xf5   :  { %v420_v36 = vpop.f32.mrf.mxu0 }
  0xf6   :  { %v421_v39 = vadd.f32 %v420_v36, %v294_v26  ;;  %v489_v40 = vpop.f32.mrf.mxu3 }
  0xf7   :  { %v443_v41 = vpop.f32.mrf.mxu1  ;;  %v490_v42 = vadd.f32 %v489_v40, %v467_v37 }
  0xf8   :  { %v444_v44 = vadd.f32 %v443_v41, %v421_v39 }
  0xf9   :  { %687 = vst [vmem:[%s868_s3 + $0x58] sm:$0xff] %v490_v42 }
  0xfa   :  { %686 = vst [vmem:[%s868_s3 + $0x50] sm:$0xff] %v444_v44 }
  0xfe   :  { %v555_v47 = vpop.f32.mrf.mxu2 }
  0xff   :  { %v509_v48 = vpop.f32.mrf.mxu0  ;;  %v556_v49 = vadd.f32 %v555_v47, %v297_v45 }
 0x100   :  { %v510_v50 = vadd.f32 %v509_v48, %v296_v46 }
 0x101   :  { %v578_v51 = vpop.f32.mrf.mxu3  ;;  %v532_v52 = vpop.f32.mrf.mxu1 }
 0x102   :  { %v579_v53 = vadd.f32 %v578_v51, %v556_v49  ;;  %v533_v54 = vadd.f32 %v532_v52, %v510_v50 }
 0x104   :  { %681 = vst [vmem:[%s868_s3 + $0x28] sm:$0xff] %v579_v53 }
 0x105   :  { %680 = vst [vmem:[%s868_s3 + $0x20] sm:$0xff] %v533_v54 }
 0x108   :  { %v558_v56 = vpop.f32.mrf.mxu2 }
 0x109   :  { %v512_v57 = vpop.f32.mrf.mxu0  ;;  %v559_v58 = vadd.f32 %v558_v56, %v297_v45 }
 0x10a   :  { %v513_v59 = vadd.f32 %v512_v57, %v296_v46 }
 0x10b   :  { %v581_v60 = vpop.f32.mrf.mxu3  ;;  %v535_v62 = vpop.f32.mrf.mxu1 }
 0x10c   :  { %v582_v63 = vadd.f32 %v581_v60, %v559_v58  ;;  %v536_v0 = vadd.f32 %v535_v62, %v513_v59 }
 0x10e   :  { %689 = vst [vmem:[%s868_s3 + $0x68] sm:$0xff] %v582_v63 }
 0x10f   :  { %688 = vst [vmem:[%s868_s3 + $0x60] sm:$0xff] %v536_v0 }
 0x111   :  { %v601_v3 = vpop.f32.mrf.mxu0 }
 0x112   :  { %v647_v4 = vpop.f32.mrf.mxu2  ;;  %v602_v5 = vadd.f32 %v601_v3, %v298_v1 }
 0x113   :  { %v648_v6 = vadd.f32 %v647_v4, %v299_v2 }
 0x114   :  { %v624_v7 = vpop.f32.mrf.mxu1  ;;  %v670_v8 = vpop.f32.mrf.mxu3 }
 0x115   :  { %v625_v9 = vadd.f32 %v624_v7, %v602_v5  ;;  %v671_v11 = vadd.f32 %v670_v8, %v648_v6 }
 0x117   :  { %682 = vst [vmem:[%s868_s3 + $0x30] sm:$0xff] %v625_v9 }
 0x118   :  { %683 = vst [vmem:[%s868_s3 + $0x38] sm:$0xff] %v671_v11 }
 0x119   :  { %v604_v55 = vpop.f32.mrf.mxu0 }
 0x11a   :  { %v650_v12 = vpop.f32.mrf.mxu2  ;;  %v605_v13 = vadd.f32 %v604_v55, %v298_v1 }
 0x11b   :  { %v651_v10 = vadd.f32 %v650_v12, %v299_v2 }
 0x11c   :  { %v627_v14 = vpop.f32.mrf.mxu1  ;;  %v673_v15 = vpop.f32.mrf.mxu3 }
 0x11d   :  { %v628_v61 = vadd.f32 %v627_v14, %v605_v13  ;;  %v674_v16 = vadd.f32 %v673_v15, %v651_v10 }
 0x11f   :  { %690 = vst [vmem:[%s868_s3 + $0x70] sm:$0xff] %v628_v61 }
 0x120   :  { %691 = vst [vmem:[%s868_s3 + $0x78] sm:$0xff] %v674_v16 }
 0x121   :  { %696 = vsyncpa [#allocation3], 1 }

// kernel: emodel_forward.19
= control target key start
LH: loop header
LB: loop body
LE: loop exit
PB: predicated region body
PF: predicated region fallthrough
CT: control target
= control target key end

     0   :  { %vm295_vm0 = vcmask 523264   ;;  %vm350_vm1 = vcmask 64512   ;;  %s4082_s3 = inlined_call_operand.vmem [shape: f32[4,256,64], index: 3, kind: input, shape index: {}]   ;;  %s4083_s2 = inlined_call_operand.vmem [shape: f32[4,256,64], index: 2, kind: input, shape index: {}]   ;;  %s4084_s6 = inlined_call_operand.vmem [shape: f32[4,1,64], index: 6, kind: input, shape index: {}]   ;;  %s4085_s1 = inlined_call_operand.vmem [shape: f32[16,256], index: 1, kind: input, shape index: {}, may-alias: {0,1}]   ;;  %s4086_s0 = inlined_call_operand.vmem [shape: f32[16,256], index: 0, kind: input, shape index: {}, may-alias: {0,1}]   ;;  %s4087_s5 = inlined_call_operand.vmem [shape: f32[4,1,64], index: 5, kind: input, shape index: {}]   ;;  %s4088_s4 = inlined_call_operand.vmem [shape: f32[4,256,64], index: 4, kind: input, shape index: {}]   ;;  %s4089_s7 = inlined_call_operand.vmem [shape: f32[4,1,64], index: 7, kind: input, shape index: {}]   ;;  %s4090_s8 = inlined_call_operand.vmem [shape: f32[4,64,256], index: 8, kind: input, shape index: {}]   ;;  %s4091_s9 = inlined_call_operand.vmem [shape: f32[1,256], index: 9, kind: input, shape index: {}]   ;;  %s4092_s10 = inlined_call_operand.vmem [shape: f32[1,256], index: 10, kind: input, shape index: {}]   ;;  %s4093_s11 = inlined_call_operand.vmem [shape: f32[1,256], index: 11, kind: input, shape index: {}]   ;;  %s4094_s12 = inlined_call_operand.vmem [shape: f32[16,256], index: 12, kind: output, shape index: {}]  }
   0x1   :  { %v146_v0 = vld [vmem:[%s4082_s3 + $0x78] sm:$0xff]  ;;  %v145_v1 = vld [vmem:[%s4082_s3 + $0x70] sm:$0xff]  ;;  %v144_v4 = vld [vmem:[%s4082_s3 + $0x68] sm:$0xff] }
   0x2   :  { %v162_v2 = vld [vmem:[%s4082_s3 + $0xf8] sm:$0xff]  ;;  %167 = vmatpush.msra.mxu2 %v146_v0  ;;  %v161_v3 = vld [vmem:[%s4082_s3 + $0xf0] sm:$0xff]  ;;  %v160_v5 = vld [vmem:[%s4082_s3 + $0xe8] sm:$0xff] }
   0x3   :  { %190 = vmatpush.msra.mxu3 %v162_v2  ;;  %v143_v6 = vld [vmem:[%s4082_s3 + $0x60] sm:$0xff]  ;;  %v64_v7 = vld [vmem:[%s4083_s2 + $0x78] sm:$0xff]  ;;  %v63_v9 = vld [vmem:[%s4083_s2 + $0x70] sm:$0xff] }
   0x4   :  { %168 = vmatpush.msra.mxu2 %v145_v1  ;;  %v159_v8 = vld [vmem:[%s4082_s3 + $0xe0] sm:$0xff]  ;;  %85 = vmatpush.msra.mxu0 %v64_v7  ;;  %v80_v10 = vld [vmem:[%s4083_s2 + $0xf8] sm:$0xff]  ;;  %v62_v11 = vld [vmem:[%s4083_s2 + $0x68] sm:$0xff] }
   0x5   :  { %191 = vmatpush.msra.mxu3 %v161_v3  ;;  %v79_v12 = vld [vmem:[%s4083_s2 + $0xf0] sm:$0xff]  ;;  %v142_v13 = vld [vmem:[%s4082_s3 + $0x58] sm:$0xff]  ;;  %108 = vmatpush.msra.mxu1 %v80_v10  ;;  %v61_v15 = vld [vmem:[%s4083_s2 + $0x60] sm:$0xff] }
   0x6   :  { %169 = vmatpush.msra.mxu2 %v144_v4  ;;  %v158_v14 = vld [vmem:[%s4082_s3 + $0xd8] sm:$0xff]  ;;  %86 = vmatpush.msra.mxu0 %v63_v9  ;;  %v78_v16 = vld [vmem:[%s4083_s2 + $0xe8] sm:$0xff]  ;;  %v141_v17 = vld [vmem:[%s4082_s3 + $0x50] sm:$0xff] }
   0x7   :  { %192 = vmatpush.msra.mxu3 %v160_v5  ;;  %v157_v18 = vld [vmem:[%s4082_s3 + $0xd0] sm:$0xff]  ;;  %109 = vmatpush.msra.mxu1 %v79_v12  ;;  %v60_v19 = vld [vmem:[%s4083_s2 + $0x58] sm:$0xff]  ;;  %v77_v20 = vld [vmem:[%s4083_s2 + $0xe0] sm:$0xff] }
   0x8   :  { %170 = vmatpush.msra.mxu2 %v143_v6  ;;  %87 = vmatpush.msra.mxu0 %v62_v11  ;;  %v140_v21 = vld [vmem:[%s4082_s3 + $0x48] sm:$0xff]  ;;  %v59_v23 = vld [vmem:[%s4083_s2 + $0x50] sm:$0xff]  ;;  %v76_v24 = vld [vmem:[%s4083_s2 + $0xd8] sm:$0xff] }
   0x9   :  { %193 = vmatpush.msra.mxu3 %v159_v8  ;;  %v156_v22 = vld [vmem:[%s4082_s3 + $0xc8] sm:$0xff]  ;;  %110 = vmatpush.msra.mxu1 %v78_v16  ;;  %v139_v25 = vld [vmem:[%s4082_s3 + $0x40] sm:$0xff]  ;;  %v75_v28 = vld [vmem:[%s4083_s2 + $0xd0] sm:$0xff] }
   0xa   :  { %171 = vmatpush.msra.mxu2 %v142_v13  ;;  %88 = vmatpush.msra.mxu0 %v61_v15  ;;  %v155_v26 = vld [vmem:[%s4082_s3 + $0xc0] sm:$0xff]  ;;  %v58_v27 = vld [vmem:[%s4083_s2 + $0x48] sm:$0xff]  ;;  %v138_v29 = vld [vmem:[%s4082_s3 + $0x38] sm:$0xff] }
   0xb   :  { %194 = vmatpush.msra.mxu3 %v158_v14  ;;  %111 = vmatpush.msra.mxu1 %v77_v20  ;;  %v154_v30 = vld [vmem:[%s4082_s3 + $0xb8] sm:$0xff]  ;;  %v57_v31 = vld [vmem:[%s4083_s2 + $0x40] sm:$0xff]  ;;  %v74_v32 = vld [vmem:[%s4083_s2 + $0xc8] sm:$0xff] }
   0xc   :  { %172 = vmatpush.msra.mxu2 %v141_v17  ;;  %89 = vmatpush.msra.mxu0 %v60_v19  ;;  %v137_v33 = vld [vmem:[%s4082_s3 + $0x30] sm:$0xff]  ;;  %v56_v35 = vld [vmem:[%s4083_s2 + $0x38] sm:$0xff]  ;;  %v73_v36 = vld [vmem:[%s4083_s2 + $0xc0] sm:$0xff] }
   0xd   :  { %195 = vmatpush.msra.mxu3 %v157_v18  ;;  %112 = vmatpush.msra.mxu1 %v76_v24  ;;  %v153_v34 = vld [vmem:[%s4082_s3 + $0xb0] sm:$0xff]  ;;  %v136_v37 = vld [vmem:[%s4082_s3 + $0x28] sm:$0xff]  ;;  %v72_v40 = vld [vmem:[%s4083_s2 + $0xb8] sm:$0xff] }
   0xe   :  { %173 = vmatpush.msra.mxu2 %v140_v21  ;;  %90 = vmatpush.msra.mxu0 %v59_v23  ;;  %v152_v38 = vld [vmem:[%s4082_s3 + $0xa8] sm:$0xff]  ;;  %v55_v39 = vld [vmem:[%s4083_s2 + $0x30] sm:$0xff]  ;;  %v135_v41 = vld [vmem:[%s4082_s3 + $0x20] sm:$0xff] }
   0xf   :  { %196 = vmatpush.msra.mxu3 %v156_v22  ;;  %113 = vmatpush.msra.mxu1 %v75_v28  ;;  %v151_v42 = vld [vmem:[%s4082_s3 + $0xa0] sm:$0xff]  ;;  %v54_v43 = vld [vmem:[%s4083_s2 + $0x28] sm:$0xff]  ;;  %v71_v44 = vld [vmem:[%s4083_s2 + $0xb0] sm:$0xff] }
  0x10   :  { %174 = vmatpush.msra.mxu2 %v139_v25  ;;  %91 = vmatpush.msra.mxu0 %v58_v27  ;;  %v134_v45 = vld [vmem:[%s4082_s3 + $0x18] sm:$0xff]  ;;  %v133_v46 = vld [vmem:[%s4082_s3 + $0x10] sm:$0xff]  ;;  %v53_v49 = vld [vmem:[%s4083_s2 + $0x20] sm:$0xff] }
  0x11   :  { %197 = vmatpush.msra.mxu3 %v155_v26  ;;  %114 = vmatpush.msra.mxu1 %v74_v32  ;;  %v150_v47 = vld [vmem:[%s4082_s3 + $0x98] sm:$0xff]  ;;  %v149_v48 = vld [vmem:[%s4082_s3 + $0x90] sm:$0xff]  ;;  %v70_v50 = vld [vmem:[%s4083_s2 + $0xa8] sm:$0xff] }
  0x12   :  { %175 = vmatpush.msra.mxu2 %v138_v29  ;;  %92 = vmatpush.msra.mxu0 %v57_v31  ;;  %v52_v51 = vld [vmem:[%s4083_s2 + $0x18] sm:$0xff]  ;;  %v69_v52 = vld [vmem:[%s4083_s2 + $0xa0] sm:$0xff]  ;;  %v132_v53 = vld [vmem:[%s4082_s3 + $0x8] sm:$0xff] }
  0x13   :  { %198 = vmatpush.msra.mxu3 %v154_v30  ;;  %115 = vmatpush.msra.mxu1 %v73_v36  ;;  %v148_v54 = vld [vmem:[%s4082_s3 + $0x88] sm:$0xff]  ;;  %v51_v55 = vld [vmem:[%s4083_s2 + $0x10] sm:$0xff]  ;;  %v68_v56 = vld [vmem:[%s4083_s2 + $0x98] sm:$0xff] }
  0x14   :  { %176 = vmatpush.msra.mxu2 %v137_v33  ;;  %93 = vmatpush.msra.mxu0 %v56_v35  ;;  %v131_v57 = vld [vmem:[%s4082_s3] sm:$0xff]  ;;  %v2620_v60 = vld [vmem:[%s4085_s1 + $0x8] sm:$0xff]  ;;  %v67_v62 = vld [vmem:[%s4083_s2 + $0x90] sm:$0xff] }
  0x15   :  { %199 = vmatpush.msra.mxu3 %v153_v34  ;;  %116 = vmatpush.msra.mxu1 %v72_v40  ;;  %v147_v58 = vld [vmem:[%s4082_s3 + $0x80] sm:$0xff]  ;;  %v50_v61 = vld [vmem:[%s4083_s2 + $0x8] sm:$0xff]  ;;  %v2652_v4 = vld [vmem:[%s4085_s1 + $0x10] sm:$0xff] }
  0x16   :  { %177 = vmatpush.msra.mxu2 %v136_v37  ;;  %94 = vmatpush.msra.mxu0 %v55_v39  ;;  %v2615_v59 = vld [vmem:[%s4085_s1] sm:$0xff]  ;;  %v66_v0 = vld [vmem:[%s4083_s2 + $0x88] sm:$0xff]  ;;  %v2658_v5 = vld [vmem:[%s4085_s1 + $0x18] sm:$0xff] }
  0x17   :  { %200 = vmatpush.msra.mxu3 %v152_v38  ;;  %117 = vmatpush.msra.mxu1 %v71_v44  ;;  %v49_v63 = vld [vmem:[%s4083_s2] sm:$0xff]  ;;  %v2647_v3 = vld [vmem:[%s4086_s0 + $0x8] sm:$0xff]  ;;  %v2666_v6 = vld [vmem:[%s4086_s0 + $0x10] sm:$0xff] }
  0x18   :  { %178 = vmatpush.msra.mxu2 %v135_v41  ;;  %95 = vmatpush.msra.mxu0 %v54_v43  ;;  %v2639_v1 = vld [vmem:[%s4086_s0] sm:$0xff]  ;;  %v2671_v7 = vld [vmem:[%s4086_s0 + $0x18] sm:$0xff]  ;;  %v227_v27 = vld [vmem:[%s4088_s4 + $0x70] sm:$0xff] }
  0x19   :  { %201 = vmatpush.msra.mxu3 %v151_v42  ;;  %118 = vmatpush.msra.mxu1 %v70_v50  ;;  %v65_v2 = vld [vmem:[%s4083_s2 + $0x80] sm:$0xff]  ;;  %v228_v26 = vld [vmem:[%s4088_s4 + $0x78] sm:$0xff]  ;;  %v243_v29 = vld [vmem:[%s4088_s4 + $0xf0] sm:$0xff] }
  0x1a   :  { %179 = vmatpush.msra.mxu2 %v134_v45  ;;  %96 = vmatpush.msra.mxu0 %v53_v49  ;;  %v2310_v8 = vld [vmem:[%s4087_s5] ss:$0 sm:$0xff]  ;;  %v244_v28 = vld [vmem:[%s4088_s4 + $0xf8] sm:$0xff]  ;;  %v226_v30 = vld [vmem:[%s4088_s4 + $0x68] sm:$0xff] }
  0x1b   :  { %202 = vmatpush.msra.mxu3 %v150_v47  ;;  %119 = vmatpush.msra.mxu1 %v69_v52  ;;  %v2309_v9 = vld [vmem:[%s4084_s6] ss:$0 sm:$0xff]  ;;  %v242_v31 = vld [vmem:[%s4088_s4 + $0xe8] sm:$0xff]  ;;  %v224_v34 = vld [vmem:[%s4088_s4 + $0x58] sm:$0xff] }
  0x1c   :  { %180 = vmatpush.msra.mxu2 %v133_v46  ;;  %97 = vmatpush.msra.mxu0 %v52_v51  ;;  %v225_v32 = vld [vmem:[%s4088_s4 + $0x60] sm:$0xff]  ;;  %v240_v35 = vld [vmem:[%s4088_s4 + $0xd8] sm:$0xff]  ;;  %v223_v36 = vld [vmem:[%s4088_s4 + $0x50] sm:$0xff] }
  0x1d   :  { %203 = vmatpush.msra.mxu3 %v149_v48  ;;  %120 = vmatpush.msra.mxu1 %v68_v56  ;;  %v241_v33 = vld [vmem:[%s4088_s4 + $0xe0] sm:$0xff]  ;;  %v239_v37 = vld [vmem:[%s4088_s4 + $0xd0] sm:$0xff]  ;;  %v222_v38 = vld [vmem:[%s4088_s4 + $0x48] sm:$0xff] }
  0x1e   :  { %181 = vmatpush.msra.mxu2 %v132_v53  ;;  %98 = vmatpush.msra.mxu0 %v51_v55  ;;  %v238_v39 = vld [vmem:[%s4088_s4 + $0xc8] sm:$0xff]  ;;  %v221_v40 = vld [vmem:[%s4088_s4 + $0x40] sm:$0xff]  ;;  %v220_v42 = vld [vmem:[%s4088_s4 + $0x38] sm:$0xff] }
  0x1f   :  { %204 = vmatpush.msra.mxu3 %v148_v54  ;;  %121 = vmatpush.msra.mxu1 %v67_v62  ;;  %v237_v41 = vld [vmem:[%s4088_s4 + $0xc0] sm:$0xff]  ;;  %v236_v43 = vld [vmem:[%s4088_s4 + $0xb8] sm:$0xff]  ;;  %v219_v44 = vld [vmem:[%s4088_s4 + $0x30] sm:$0xff] }
  0x20   :  { %182 = vmatpush.msra.mxu2 %v131_v57  ;;  %99 = vmatpush.msra.mxu0 %v50_v61  ;;  %v235_v45 = vld [vmem:[%s4088_s4 + $0xb0] sm:$0xff]  ;;  %v218_v46 = vld [vmem:[%s4088_s4 + $0x28] sm:$0xff]  ;;  %v217_v49 = vld [vmem:[%s4088_s4 + $0x20] sm:$0xff] }
  0x21   :  { %205 = vmatpush.msra.mxu3 %v147_v58  ;;  %183 = vmatmul.f32.vlgmr.msra.gmra.mxu2 %v2615_v59  ;;  %v234_v47 = vld [vmem:[%s4088_s4 + $0xa8] sm:$0xff]  ;;  %v233_v50 = vld [vmem:[%s4088_s4 + $0xa0] sm:$0xff]  ;;  %v216_v52 = vld [vmem:[%s4088_s4 + $0x18] sm:$0xff] }
  0x22   :  { %206 = vmatmul.f32.vlgmr.msra.gmra.mxu3 %v2620_v60  ;;  %100 = vmatpush.msra.mxu0 %v49_v63  ;;  %v232_v53 = vld [vmem:[%s4088_s4 + $0x98] sm:$0xff]  ;;  %v215_v55 = vld [vmem:[%s4088_s4 + $0x10] sm:$0xff]  ;;  %v214_v57 = vld [vmem:[%s4088_s4 + $0x8] sm:$0xff] }
  0x23   :  { %122 = vmatpush.msra.mxu1 %v66_v0  ;;  %101 = vmatmul.f32.vlgmr.msra.gmra.mxu0 %v2639_v1  ;;  %v231_v56 = vld [vmem:[%s4088_s4 + $0x90] sm:$0xff]  ;;  %v230_v58 = vld [vmem:[%s4088_s4 + $0x88] sm:$0xff]  ;;  %v213_v62 = vld [vmem:[%s4088_s4] sm:$0xff] }
  0x24   :  { %249 = vmatpush.msrb.mxu0 %v228_v26  ;;  %v229_v63 = vld [vmem:[%s4088_s4 + $0x80] sm:$0xff] }
  0x25   :  { %123 = vmatpush.msra.mxu1 %v65_v2 }
  0x26   :  { %124 = vmatmul.f32.vlgmr.msra.gmra.mxu1 %v2647_v3  ;;  %250 = vmatpush.msrb.mxu0 %v227_v27 }
  0x27   :  { %272 = vmatpush.msrb.mxu1 %v244_v28 }
  0x28   :  { %251 = vmatpush.msrb.mxu0 %v226_v30 }
  0x29   :  { %186 = vmatmul.f32.gmra.mxu2 %v2652_v4  ;;  %273 = vmatpush.msrb.mxu1 %v243_v29 }
  0x2a   :  { %209 = vmatmul.f32.gmra.mxu3 %v2658_v5  ;;  %252 = vmatpush.msrb.mxu0 %v225_v32  ;;  %v1944_v32 = vld [vmem:[%s4083_s2 + $0x178] sm:$0xff] }
  0x2b   :  { %104 = vmatmul.f32.gmra.mxu0 %v2666_v6  ;;  %274 = vmatpush.msrb.mxu1 %v242_v31 }
  0x2c   :  { %253 = vmatpush.msrb.mxu0 %v224_v34  ;;  %v1942_v34 = vld [vmem:[%s4083_s2 + $0x168] sm:$0xff] }
  0x2d   :  { %275 = vmatpush.msrb.mxu1 %v241_v33  ;;  %v1943_v33 = vld [vmem:[%s4083_s2 + $0x170] sm:$0xff] }
  0x2e   :  { %127 = vmatmul.f32.gmra.mxu1 %v2671_v7  ;;  %254 = vmatpush.msrb.mxu0 %v223_v36 }
  0x2f   :  { %276 = vmatpush.msrb.mxu1 %v240_v35 }
  0x30   :  { %255 = vmatpush.msrb.mxu0 %v222_v38  ;;  %v1941_v38 = vld [vmem:[%s4083_s2 + $0x160] sm:$0xff] }
  0x31   :  { %277 = vmatpush.msrb.mxu1 %v239_v37 }
  0x32   :  { %256 = vmatpush.msrb.mxu0 %v221_v40  ;;  %v1960_v40 = vld [vmem:[%s4083_s2 + $0x1f8] sm:$0xff] }
  0x33   :  { %278 = vmatpush.msrb.mxu1 %v238_v39 }
  0x34   :  { %257 = vmatpush.msrb.mxu0 %v220_v42  ;;  %v1958_v42 = vld [vmem:[%s4083_s2 + $0x1e8] sm:$0xff] }
  0x35   :  { %279 = vmatpush.msrb.mxu1 %v237_v41  ;;  %v1959_v41 = vld [vmem:[%s4083_s2 + $0x1f0] sm:$0xff] }
  0x36   :  { %258 = vmatpush.msrb.mxu0 %v219_v44  ;;  %v1957_v44 = vld [vmem:[%s4083_s2 + $0x1e0] sm:$0xff] }
  0x37   :  { %280 = vmatpush.msrb.mxu1 %v236_v43  ;;  %v1940_v43 = vld [vmem:[%s4083_s2 + $0x158] sm:$0xff] }
  0x38   :  { %259 = vmatpush.msrb.mxu0 %v218_v46  ;;  %v1989_v46 = vld [vmem:[%s4082_s3 + $0x1d8] sm:$0xff] }
  0x39   :  { %281 = vmatpush.msrb.mxu1 %v235_v45  ;;  %v1972_v45 = vld [vmem:[%s4082_s3 + $0x150] sm:$0xff] }
  0x3a   :  { %260 = vmatpush.msrb.mxu0 %v217_v49  ;;  %v1971_v49 = vld [vmem:[%s4082_s3 + $0x148] sm:$0xff] }
  0x3b   :  { %282 = vmatpush.msrb.mxu1 %v234_v47  ;;  %v1939_v47 = vld [vmem:[%s4083_s2 + $0x150] sm:$0xff] }
  0x3c   :  { %261 = vmatpush.msrb.mxu0 %v216_v52  ;;  %v1955_v52 = vld [vmem:[%s4083_s2 + $0x1d0] sm:$0xff] }
  0x3d   :  { %283 = vmatpush.msrb.mxu1 %v233_v50  ;;  %v1988_v50 = vld [vmem:[%s4082_s3 + $0x1d0] sm:$0xff] }
  0x3e   :  { %262 = vmatpush.msrb.mxu0 %v215_v55  ;;  %v1937_v55 = vld [vmem:[%s4083_s2 + $0x140] sm:$0xff] }
  0x3f   :  { %284 = vmatpush.msrb.mxu1 %v232_v53  ;;  %v1970_v53 = vld [vmem:[%s4082_s3 + $0x140] sm:$0xff] }
  0x40   :  { %263 = vmatpush.msrb.mxu0 %v214_v57  ;;  %v1969_v57 = vld [vmem:[%s4082_s3 + $0x138] sm:$0xff] }
  0x41   :  { %285 = vmatpush.msrb.mxu1 %v231_v56  ;;  %v1954_v56 = vld [vmem:[%s4083_s2 + $0x1c8] sm:$0xff] }
  0x42   :  { %264 = vmatpush.msrb.mxu0 %v213_v62  ;;  %v1953_v62 = vld [vmem:[%s4083_s2 + $0x1c0] sm:$0xff] }
  0x43   :  { %286 = vmatpush.msrb.mxu1 %v230_v58  ;;  %265 = vmatmul.f32.vlgmr.msrb.gmra.mxu0 %v2615_v59  ;;  %v1986_v58 = vld [vmem:[%s4082_s3 + $0x1c0] sm:$0xff] }
  0x45   :  { %287 = vmatpush.msrb.mxu1 %v229_v63  ;;  %v1968_v63 = vld [vmem:[%s4082_s3 + $0x130] sm:$0xff] }
  0x46   :  { %288 = vmatmul.f32.vlgmr.msrb.gmra.mxu1 %v2620_v60 }
  0x4b   :  { %268 = vmatmul.f32.gmra.mxu0 %v2652_v4 }
  0x4e   :  { %291 = vmatmul.f32.gmra.mxu1 %v2658_v5 }
  0xa0   :  { %v102_v10 = vpop.f32.mrf.mxu0 }
  0xa1   :  { %v103_v13 = vadd.f32 %v2310_v8, %v102_v10  ;;  %v1993_v10 = vld [vmem:[%s4082_s3 + $0x1f8] sm:$0xff] }
  0xa2   :  { %580 = vmatpush.msra.mxu1 %v1993_v10  ;;  %v1984_v10 = vld [vmem:[%s4082_s3 + $0x1b0] sm:$0xff] }
  0xa3   :  { %v125_v15 = vpop.f32.mrf.mxu1 }
  0xa4   :  { %v184_v11 = vpop.f32.mrf.mxu2  ;;  %v126_v17 = vadd.f32 %v125_v15, %v103_v13  ;;  %v1992_v13 = vld [vmem:[%s4082_s3 + $0x1f0] sm:$0xff]  ;;  %v1974_v15 = vld [vmem:[%s4082_s3 + $0x160] sm:$0xff] }
  0xa5   :  { %v207_v12 = vpop.f32.mrf.mxu3  ;;  %v185_v14 = vadd.f32 %v2309_v9, %v184_v11  ;;  %581 = vmatpush.msra.mxu1 %v1992_v13  ;;  %v1966_v13 = vld [vmem:[%s4082_s3 + $0x120] sm:$0xff] }
  0xa7   :  { %v208_v16 = vadd.f32 %v207_v12, %v185_v14  ;;  %v1975_v12 = vld [vmem:[%s4082_s3 + $0x168] sm:$0xff] }
  0xa8   :  { %v105_v18 = vpop.f32.mrf.mxu0 }
  0xa9   :  { %1923 = vmatpush.xpose.msk.msrb.mxu2 %vm295_vm0, %v208_v16  ;;  %v106_v21 = vadd.f32 %v2310_v8, %v105_v18  ;;  %v1977_v8 = vld [vmem:[%s4082_s3 + $0x178] sm:$0xff]  ;;  %v1991_v16 = vld [vmem:[%s4082_s3 + $0x1e8] sm:$0xff] }
  0xaa   :  { %557 = vmatpush.msra.mxu0 %v1977_v8  ;;  %582 = vmatpush.msra.mxu1 %v1991_v16  ;;  %v1973_v18 = vld [vmem:[%s4082_s3 + $0x158] sm:$0xff]  ;;  %v1950_v16 = vld [vmem:[%s4083_s2 + $0x1a8] sm:$0xff] }
  0xab   :  { %v128_v23 = vpop.f32.mrf.mxu1  ;;  %v1952_v8 = vld [vmem:[%s4083_s2 + $0x1b8] sm:$0xff] }
  0xac   :  { %v187_v19 = vpop.f32.mrf.mxu2  ;;  %1924 = vmatmul.msk.f32.vlgmr.msrb.gmra.mxu2 %vm295_vm0, %v126_v17  ;;  %v129_v25 = vadd.f32 %v128_v23, %v106_v21 }
  0xad   :  { %v210_v20 = vpop.f32.mrf.mxu3  ;;  %v188_v22 = vadd.f32 %v2309_v9, %v187_v19  ;;  %v1976_v9 = vld [vmem:[%s4082_s3 + $0x170] sm:$0xff]  ;;  %v1990_v19 = vld [vmem:[%s4082_s3 + $0x1e0] sm:$0xff] }
  0xae   :  { %558 = vmatpush.msra.mxu0 %v1976_v9  ;;  %583 = vmatpush.msra.mxu1 %v1990_v19  ;;  %v1967_v9 = vld [vmem:[%s4082_s3 + $0x128] sm:$0xff]  ;;  %v1932_v19 = vld [vmem:[%s4083_s2 + $0x118] sm:$0xff] }
  0xaf   :  { %v211_v24 = vadd.f32 %v210_v20, %v188_v22 }
  0xb0   :  { %559 = vmatpush.msra.mxu0 %v1975_v12  ;;  %584 = vmatpush.msra.mxu1 %v1989_v46  ;;  %v1951_v12 = vld [vmem:[%s4083_s2 + $0x1b0] sm:$0xff]  ;;  %v2026_v46 = vld [vmem:[%s4088_s4 + $0x1f8] sm:$0xff] }
  0xb1   :  { %1925 = vmatpush.xpose.msk.msrb.mxu3 %vm295_vm0, %v211_v24 }
  0xb2   :  { %560 = vmatpush.msra.mxu0 %v1974_v15  ;;  %585 = vmatpush.msra.mxu1 %v1988_v50  ;;  %v1933_v15 = vld [vmem:[%s4083_s2 + $0x120] sm:$0xff]  ;;  %v2004_v50 = vld [vmem:[%s4088_s4 + $0x148] sm:$0xff] }
  0xb4   :  { %1926 = vmatmul.msk.f32.vlgmr.msrb.gmra.mxu3 %vm295_vm0, %v129_v25  ;;  %561 = vmatpush.msra.mxu0 %v1973_v18  ;;  %v2311_v25 = vld [vmem:[%s4089_s7] ss:$0 sm:$0xff] }
  0xb5   :  { %v1982_v18 = vld [vmem:[%s4082_s3 + $0x1a0] sm:$0xff] }
  0xb6   :  { %562 = vmatpush.msra.mxu0 %v1972_v45 }
  0xb8   :  { %563 = vmatpush.msra.mxu0 %v1971_v49  ;;  %v2024_v49 = vld [vmem:[%s4088_s4 + $0x1e8] sm:$0xff] }
  0xba   :  { %564 = vmatpush.msra.mxu0 %v1970_v53  ;;  %v2002_v53 = vld [vmem:[%s4088_s4 + $0x138] sm:$0xff] }
  0xbc   :  { %565 = vmatpush.msra.mxu0 %v1969_v57  ;;  %v1999_v57 = vld [vmem:[%s4088_s4 + $0x120] sm:$0xff] }
  0xbe   :  { %566 = vmatpush.msra.mxu0 %v1968_v63  ;;  %v1997_v63 = vld [vmem:[%s4088_s4 + $0x110] sm:$0xff] }
  0xc0   :  { %v266_v26 = vpop.f32.mrf.mxu0  ;;  %567 = vmatpush.msra.mxu0 %v1967_v9  ;;  %v2013_v9 = vld [vmem:[%s4088_s4 + $0x190] sm:$0xff] }
  0xc1   :  { %v267_v28 = vadd.f32 %v2311_v25, %v266_v26  ;;  %v1963_v26 = vld [vmem:[%s4082_s3 + $0x108] sm:$0xff] }
  0xc2   :  { %568 = vmatpush.msra.mxu0 %v1966_v13  ;;  %v2312_v13 = vld [vmem:[%s4084_s6 + $0x1] ss:$0 sm:$0xff] }
  0xc3   :  { %v289_v29 = vpop.f32.mrf.mxu1 }
  0xc4   :  { %v290_v31 = vadd.f32 %v289_v29, %v267_v28  ;;  %v1980_v28 = vld [vmem:[%s4082_s3 + $0x190] sm:$0xff]  ;;  %v1930_v29 = vld [vmem:[%s4083_s2 + $0x108] sm:$0xff] }
  0xc6   :  { %391 = vmatpush.msra.mxu2 %v290_v31  ;;  %v1962_v31 = vld [vmem:[%s4082_s3 + $0x100] sm:$0xff] }
  0xc8   :  { %473 = vmatpush.msrb.mxu2 %v1944_v32  ;;  %v269_v35 = vpop.f32.mrf.mxu0  ;;  %v1979_v32 = vld [vmem:[%s4082_s3 + $0x188] sm:$0xff] }
  0xc9   :  { %v270_v36 = vadd.f32 %v2311_v25, %v269_v35  ;;  %v1948_v25 = vld [vmem:[%s4083_s2 + $0x198] sm:$0xff]  ;;  %v1978_v35 = vld [vmem:[%s4082_s3 + $0x180] sm:$0xff] }
  0xca   :  { %474 = vmatpush.msrb.mxu2 %v1943_v33  ;;  %v1929_v33 = vld [vmem:[%s4083_s2 + $0x100] sm:$0xff] }
  0xcb   :  { %v292_v37 = vpop.f32.mrf.mxu1 }
  0xcc   :  { %475 = vmatpush.msrb.mxu2 %v1942_v34  ;;  %v293_v39 = vadd.f32 %v292_v37, %v270_v36  ;;  %v1946_v34 = vld [vmem:[%s4083_s2 + $0x188] sm:$0xff]  ;;  %v1945_v36 = vld [vmem:[%s4083_s2 + $0x180] sm:$0xff] }
  0xce   :  { %476 = vmatpush.msrb.mxu2 %v1941_v38  ;;  %414 = vmatpush.msra.mxu3 %v293_v39 }
  0xd0   :  { %496 = vmatpush.msrb.mxu3 %v1960_v40  ;;  %477 = vmatpush.msrb.mxu2 %v1940_v43  ;;  %v2008_v43 = vld [vmem:[%s4088_s4 + $0x168] sm:$0xff] }
  0xd2   :  { %497 = vmatpush.msrb.mxu3 %v1959_v41  ;;  %478 = vmatpush.msrb.mxu2 %v1939_v47  ;;  %v2010_v41 = vld [vmem:[%s4088_s4 + $0x178] sm:$0xff] }
  0xd3   :  { %v2006_v47 = vld [vmem:[%s4088_s4 + $0x158] sm:$0xff] }
  0xd4   :  { %498 = vmatpush.msrb.mxu3 %v1958_v42  ;;  %v2009_v42 = vld [vmem:[%s4088_s4 + $0x170] sm:$0xff] }
  0xd6   :  { %499 = vmatpush.msrb.mxu3 %v1957_v44 }
 0x12f   :  { %v319_v48 = vpop.f32.mrf.mxu2 }
 0x130   :  { %v348_v51 = vmul.f32 0.125, %v319_v48  ;;  %v1956_v48 = vld [vmem:[%s4083_s2 + $0x1d8] sm:$0xff] }
 0x131   :  { %500 = vmatpush.msrb.mxu3 %v1956_v48  ;;  %v2025_v48 = vld [vmem:[%s4088_s4 + $0x1f0] sm:$0xff] }
 0x132   :  { %v351_v54 = vsel %vm350_vm1, %v348_v51, -inf }
 0x133   :  { %352 = vmax.xlane.f32.xlu0 %v351_v54  ;;  %501 = vmatpush.msrb.mxu3 %v1955_v52  ;;  %v1987_v54 = vld [vmem:[%s4082_s3 + $0x1c8] sm:$0xff]  ;;  %v2022_v52 = vld [vmem:[%s4088_s4 + $0x1d8] sm:$0xff] }
 0x134   :  { %586 = vmatpush.msra.mxu1 %v1987_v54  ;;  %v2021_v54 = vld [vmem:[%s4088_s4 + $0x1d0] sm:$0xff] }
 0x135   :  { %502 = vmatpush.msrb.mxu3 %v1954_v56  ;;  %v2020_v56 = vld [vmem:[%s4088_s4 + $0x1c8] sm:$0xff] }
 0x136   :  { %587 = vmatpush.msra.mxu1 %v1986_v58  ;;  %v2018_v58 = vld [vmem:[%s4088_s4 + $0x1b8] sm:$0xff] }
 0x137   :  { %v345_v61 = vpop.f32.mrf.mxu3  ;;  %503 = vmatpush.msrb.mxu3 %v1953_v62  ;;  %v2017_v62 = vld [vmem:[%s4088_s4 + $0x1b0] sm:$0xff] }
 0x138   :  { %v349_v0 = vmul.f32 0.125, %v345_v61  ;;  %v1936_v61 = vld [vmem:[%s4083_s2 + $0x138] sm:$0xff] }
 0x139   :  { %504 = vmatpush.msrb.mxu3 %v1952_v8  ;;  %v1996_v8 = vld [vmem:[%s4088_s4 + $0x108] sm:$0xff] }
 0x13a   :  { %v354_v2 = vsel %vm350_vm1, %v349_v0, -inf }
 0x13b   :  { %355 = vmax.xlane.f32.xlu0 %v354_v2  ;;  %v1935_v2 = vld [vmem:[%s4083_s2 + $0x130] sm:$0xff]  ;;  %505 = vmatpush.msrb.mxu3 %v1951_v12  ;;  %v2011_v12 = vld [vmem:[%s4088_s4 + $0x180] sm:$0xff] }
 0x13d   :  { %506 = vmatpush.msrb.mxu3 %v1950_v16 }
 0x1a6   :  { %v353_v11 = vpop.xlane.xlu0 %352 }
 0x1a7   :  { %v357_v14 = vsub.f32 %v348_v51, %v353_v11  ;;  %v1938_v51 = vld [vmem:[%s4083_s2 + $0x148] sm:$0xff] }
 0x1a8   :  { %479 = vmatpush.msrb.mxu2 %v1938_v51  ;;  %v1934_v11 = vld [vmem:[%s4083_s2 + $0x128] sm:$0xff]  ;;  %v2003_v51 = vld [vmem:[%s4088_s4 + $0x140] sm:$0xff] }
 0x1a9   :  { %v359_v17 = vmul.f32 1.442695, %v357_v14  ;;  %v1983_v14 = vld [vmem:[%s4082_s3 + $0x1a8] sm:$0xff] }
 0x1aa   :  { %480 = vmatpush.msrb.mxu2 %v1937_v55  ;;  %v2001_v55 = vld [vmem:[%s4088_s4 + $0x130] sm:$0xff] }
 0x1ab   :  { %2321 = vpow2.f32 %v359_v17  ;;  %v1965_v17 = vld [vmem:[%s4082_s3 + $0x118] sm:$0xff] }
 0x1ac   :  { %481 = vmatpush.msrb.mxu2 %v1936_v61  ;;  %569 = vmatpush.msra.mxu0 %v1965_v17  ;;  %v1998_v61 = vld [vmem:[%s4088_s4 + $0x118] sm:$0xff] }
 0x1ae   :  { %v356_v20 = vpop.xlane.xlu0 %355  ;;  %482 = vmatpush.msrb.mxu2 %v1935_v2  ;;  %v2014_v2 = vld [vmem:[%s4088_s4 + $0x198] sm:$0xff] }
 0x1af   :  { %v358_v21 = vsub.f32 %v349_v0, %v356_v20  ;;  %v1985_v0 = vld [vmem:[%s4082_s3 + $0x1b8] sm:$0xff]  ;;  %v1949_v20 = vld [vmem:[%s4083_s2 + $0x1a0] sm:$0xff] }
 0x1b0   :  { %588 = vmatpush.msra.mxu1 %v1985_v0  ;;  %483 = vmatpush.msrb.mxu2 %v1934_v11  ;;  %v2016_v0 = vld [vmem:[%s4088_s4 + $0x1a8] sm:$0xff] }
 0x1b1   :  { %v2814_v22 = vpop.eup %2321  ;;  %v361_v23 = vmul.f32 1.442695, %v358_v21  ;;  %v1964_v21 = vld [vmem:[%s4082_s3 + $0x110] sm:$0xff]  ;;  %507 = vmatpush.msrb.mxu3 %v1949_v20  ;;  %v2012_v11 = vld [vmem:[%s4088_s4 + $0x188] sm:$0xff] }
 0x1b2   :  { %v363_v24 = vsel %vm350_vm1, %v2814_v22, 0.0  ;;  %589 = vmatpush.msra.mxu1 %v1984_v10  ;;  %484 = vmatpush.msrb.mxu2 %v1933_v15  ;;  %v1995_v10 = vld [vmem:[%s4088_s4 + $0x100] sm:$0xff] }
 0x1b3   :  { %2323 = vpow2.f32 %v361_v23  ;;  %364 = vadd.xlane.f32.xlu1 %v363_v24  ;;  %v1981_v23 = vld [vmem:[%s4082_s3 + $0x198] sm:$0xff]  ;;  %570 = vmatpush.msra.mxu0 %v1964_v21  ;;  %v1931_v24 = vld [vmem:[%s4083_s2 + $0x110] sm:$0xff] }
 0x1b4   :  { %590 = vmatpush.msra.mxu1 %v1983_v14  ;;  %485 = vmatpush.msrb.mxu2 %v1932_v19  ;;  %v429_v19 = vld [vmem:[%s4090_s8 + $0x50] sm:$0xff] }
 0x1b5   :  { %508 = vmatpush.msrb.mxu3 %v1948_v25  ;;  %571 = vmatpush.msra.mxu0 %v1963_v26  ;;  %v423_v25 = vld [vmem:[%s4090_s8 + $0x20] sm:$0xff]  ;;  %v432_v26 = vld [vmem:[%s4090_s8 + $0x68] sm:$0xff] }
 0x1b6   :  { %591 = vmatpush.msra.mxu1 %v1982_v18  ;;  %486 = vmatpush.msrb.mxu2 %v1931_v24  ;;  %v433_v18 = vld [vmem:[%s4090_s8 + $0x70] sm:$0xff] }
 0x1b7   :  { %572 = vmatpush.msra.mxu0 %v1962_v31  ;;  %v425_v24 = vld [vmem:[%s4090_s8 + $0x30] sm:$0xff]  ;;  %v428_v31 = vld [vmem:[%s4090_s8 + $0x48] sm:$0xff] }
 0x1b8   :  { %592 = vmatpush.msra.mxu1 %v1981_v23  ;;  %487 = vmatpush.msrb.mxu2 %v1930_v29  ;;  %v430_v29 = vld [vmem:[%s4090_s8 + $0x58] sm:$0xff] }
 0x1b9   :  { %v2821_v27 = vpop.eup %2323  ;;  %573 = vmatmul.f32.vlgmr.msra.gmra.mxu0 %v2615_v59 }
 0x1ba   :  { %v366_v30 = vsel %vm350_vm1, %v2821_v27, 0.0  ;;  %593 = vmatpush.msra.mxu1 %v1980_v28  ;;  %488 = vmatpush.msrb.mxu2 %v1929_v33  ;;  %v421_v28 = vld [vmem:[%s4090_s8 + $0x10] sm:$0xff]  ;;  %v424_v33 = vld [vmem:[%s4090_s8 + $0x28] sm:$0xff] }
 0x1bb   :  { %367 = vadd.xlane.f32.xlu1 %v366_v30  ;;  %v1947_v30 = vld [vmem:[%s4083_s2 + $0x190] sm:$0xff] }
 0x1bc   :  { %509 = vmatpush.msrb.mxu3 %v1947_v30  ;;  %594 = vmatpush.msra.mxu1 %v1979_v32  ;;  %v419_v30 = vld [vmem:[%s4090_s8] sm:$0xff]  ;;  %v426_v32 = vld [vmem:[%s4090_s8 + $0x38] sm:$0xff] }
 0x1be   :  { %510 = vmatpush.msrb.mxu3 %v1946_v34  ;;  %595 = vmatpush.msra.mxu1 %v1978_v35  ;;  %v422_v34 = vld [vmem:[%s4090_s8 + $0x18] sm:$0xff] }
 0x1bf   :  { %596 = vmatmul.f32.vlgmr.msra.gmra.mxu1 %v2620_v60 }
 0x1c0   :  { %511 = vmatpush.msrb.mxu3 %v1945_v36  ;;  %v420_v36 = vld [vmem:[%s4090_s8 + $0x8] sm:$0xff] }
 0x1c1   :  { %576 = vmatmul.f32.gmra.mxu0 %v2652_v4 }
 0x1c7   :  { %599 = vmatmul.f32.gmra.mxu1 %v2658_v5 }
 0x226   :  { %v365_v37 = vpop.xlane.xlu1 %364 }
 0x227   :  { %2325 = vrcp.f32 %v365_v37 }
 0x22d   :  { %v2326_v38 = vpop.eup %2325 }
 0x22e   :  { %v371_v39 = vmul.f32 %v2326_v38, %v2814_v22  ;;  %v368_v40 = vpop.xlane.xlu1 %367  ;;  %v2007_v22 = vld [vmem:[%s4088_s4 + $0x160] sm:$0xff] }
 0x22f   :  { %2327 = vrcp.f32 %v368_v40 }
 0x230   :  { %1927 = vmatmul.msk.f32.vlgmr.msra.gmra.mxu2 %vm350_vm1, %v371_v39  ;;  %v2313_v39 = vld [vmem:[%s4087_s5 + $0x1] ss:$0 sm:$0xff] }
 0x231   :  { %641 = vmatpush.msra.mxu2 %v2010_v41 }
 0x233   :  { %642 = vmatpush.msra.mxu2 %v2009_v42 }
 0x235   :  { %v2328_v44 = vpop.eup %2327  ;;  %643 = vmatpush.msra.mxu2 %v2008_v43 }
 0x236   :  { %v372_v45 = vmul.f32 %v2328_v44, %v2821_v27  ;;  %v2005_v27 = vld [vmem:[%s4088_s4 + $0x150] sm:$0xff]  ;;  %v574_v14 = vpop.f32.mrf.mxu0 }
 0x237   :  { %644 = vmatpush.msra.mxu2 %v2007_v22  ;;  %v575_v15 = vadd.f32 %v2312_v13, %v574_v14  ;;  %v2044_v14 = vld [vmem:[%s4090_s8 + $0xd0] sm:$0xff] }
 0x238   :  { %1928 = vmatmul.msk.f32.vlgmr.msra.gmra.mxu3 %vm350_vm1, %v372_v45  ;;  %489 = vmatmul.f32.vlgmr.msrb.gmra.mxu2 %v2639_v1  ;;  %v2023_v1 = vld [vmem:[%s4088_s4 + $0x1e0] sm:$0xff] }
 0x239   :  { %664 = vmatpush.msra.mxu3 %v2026_v46  ;;  %645 = vmatpush.msra.mxu2 %v2006_v47  ;;  %v2314_v46 = vld [vmem:[%s4089_s7 + $0x1] ss:$0 sm:$0xff] }
 0x23b   :  { %665 = vmatpush.msra.mxu3 %v2025_v48  ;;  %646 = vmatpush.msra.mxu2 %v2005_v27 }
 0x23c   :  { %v597_v16 = vpop.f32.mrf.mxu1 }
 0x23d   :  { %666 = vmatpush.msra.mxu3 %v2024_v49  ;;  %647 = vmatpush.msra.mxu2 %v2004_v50  ;;  %v598_v17 = vadd.f32 %v597_v16, %v575_v15  ;;  %v2045_v15 = vld [vmem:[%s4090_s8 + $0xd8] sm:$0xff] }
 0x23e   :  { %v2106_v16 = vld [vmem:[%s4082_s3 + $0x278] sm:$0xff] }
 0x23f   :  { %667 = vmatpush.msra.mxu3 %v2023_v1  ;;  %648 = vmatpush.msra.mxu2 %v2003_v51 }
 0x240   :  { %512 = vmatmul.f32.vlgmr.msrb.gmra.mxu3 %v2647_v3  ;;  %492 = vmatmul.f32.gmra.mxu2 %v2666_v6  ;;  %v2000_v3 = vld [vmem:[%s4088_s4 + $0x128] sm:$0xff]  ;;  %v2019_v6 = vld [vmem:[%s4088_s4 + $0x1c0] sm:$0xff] }
 0x241   :  { %668 = vmatpush.msra.mxu3 %v2022_v52  ;;  %649 = vmatpush.msra.mxu2 %v2002_v53 }
 0x243   :  { %669 = vmatpush.msra.mxu3 %v2021_v54  ;;  %650 = vmatpush.msra.mxu2 %v2001_v55 }
 0x244   :  { %v600_v21 = vpop.f32.mrf.mxu1 }
 0x245   :  { %670 = vmatpush.msra.mxu3 %v2020_v56  ;;  %651 = vmatpush.msra.mxu2 %v2000_v3 }
 0x247   :  { %671 = vmatpush.msra.mxu3 %v2019_v6  ;;  %652 = vmatpush.msra.mxu2 %v1999_v57 }
 0x248   :  { %515 = vmatmul.f32.gmra.mxu3 %v2671_v7  ;;  %v2015_v7 = vld [vmem:[%s4088_s4 + $0x1a0] sm:$0xff] }
 0x249   :  { %672 = vmatpush.msra.mxu3 %v2018_v58  ;;  %653 = vmatpush.msra.mxu2 %v1998_v61 }
 0x24b   :  { %673 = vmatpush.msra.mxu3 %v2017_v62  ;;  %654 = vmatpush.msra.mxu2 %v1997_v63 }
 0x24d   :  { %674 = vmatpush.msra.mxu3 %v2016_v0  ;;  %655 = vmatpush.msra.mxu2 %v1996_v8 }
 0x24f   :  { %675 = vmatpush.msra.mxu3 %v2015_v7  ;;  %656 = vmatpush.msra.mxu2 %v1995_v10  ;;  %v2048_v10 = vld [vmem:[%s4090_s8 + $0xf0] sm:$0xff] }
 0x250   :  { %657 = vmatmul.f32.vlgmr.msra.gmra.mxu2 %v2615_v59  ;;  %v431_v59 = vld [vmem:[%s4090_s8 + $0x60] sm:$0xff] }
 0x251   :  { %676 = vmatpush.msra.mxu3 %v2014_v2  ;;  %2028 = vmatpush.xpose.msk.msrb.mxu2 %vm295_vm0, %v598_v17  ;;  %v2105_v17 = vld [vmem:[%s4082_s3 + $0x270] sm:$0xff] }
 0x253   :  { %677 = vmatpush.msra.mxu3 %v2013_v9 }
 0x255   :  { %678 = vmatpush.msra.mxu3 %v2012_v11  ;;  %892 = vmatpush.msra.mxu2 %v433_v18  ;;  %v2046_v11 = vld [vmem:[%s4090_s8 + $0xe0] sm:$0xff]  ;;  %v2122_v18 = vld [vmem:[%s4082_s3 + $0x2f8] sm:$0xff] }
 0x257   :  { %679 = vmatpush.msra.mxu3 %v2011_v12  ;;  %893 = vmatpush.msra.mxu2 %v431_v59  ;;  %v2049_v12 = vld [vmem:[%s4090_s8 + $0xf8] sm:$0xff]  ;;  %v2042_v59 = vld [vmem:[%s4090_s8 + $0xc0] sm:$0xff] }
 0x258   :  { %680 = vmatmul.f32.vlgmr.msra.gmra.mxu3 %v2620_v60  ;;  %660 = vmatmul.f32.gmra.mxu2 %v2652_v4  ;;  %v577_v60 = vpop.f32.mrf.mxu0  ;;  %v427_v4 = vld [vmem:[%s4090_s8 + $0x40] sm:$0xff] }
 0x259   :  { %v578_v20 = vadd.f32 %v2312_v13, %v577_v60  ;;  %894 = vmatpush.msra.mxu2 %v429_v19  ;;  %v2047_v13 = vld [vmem:[%s4090_s8 + $0xe8] sm:$0xff] }
 0x25a   :  { %v2043_v60 = vld [vmem:[%s4090_s8 + $0xc8] sm:$0xff] }
 0x25b   :  { %v601_v23 = vadd.f32 %v600_v21, %v578_v20  ;;  %895 = vmatpush.msra.mxu2 %v427_v4  ;;  %v2104_v19 = vld [vmem:[%s4082_s3 + $0x268] sm:$0xff]  ;;  %v2121_v20 = vld [vmem:[%s4082_s3 + $0x2f0] sm:$0xff]  ;;  %v2041_v4 = vld [vmem:[%s4090_s8 + $0xb8] sm:$0xff] }
 0x25c   :  { %v2040_v21 = vld [vmem:[%s4090_s8 + $0xb0] sm:$0xff] }
 0x25d   :  { %2030 = vmatpush.xpose.msk.msrb.mxu3 %vm295_vm0, %v601_v23  ;;  %896 = vmatpush.msra.mxu2 %v425_v24  ;;  %v2120_v23 = vld [vmem:[%s4082_s3 + $0x2e8] sm:$0xff]  ;;  %v2103_v24 = vld [vmem:[%s4082_s3 + $0x260] sm:$0xff] }
 0x25f   :  { %897 = vmatpush.msra.mxu2 %v423_v25  ;;  %v2038_v25 = vld [vmem:[%s4090_s8 + $0xa0] sm:$0xff] }
 0x260   :  { %683 = vmatmul.f32.gmra.mxu3 %v2658_v5  ;;  %v434_v5 = vld [vmem:[%s4090_s8 + $0x78] sm:$0xff] }
 0x261   :  { %915 = vmatpush.msra.mxu3 %v434_v5  ;;  %898 = vmatpush.msra.mxu2 %v421_v28  ;;  %v2119_v5 = vld [vmem:[%s4082_s3 + $0x2e0] sm:$0xff]  ;;  %v2102_v28 = vld [vmem:[%s4082_s3 + $0x258] sm:$0xff] }
 0x263   :  { %916 = vmatpush.msra.mxu3 %v432_v26  ;;  %899 = vmatpush.msra.mxu2 %v419_v30  ;;  %v2039_v26 = vld [vmem:[%s4090_s8 + $0xa8] sm:$0xff]  ;;  %v2036_v30 = vld [vmem:[%s4090_s8 + $0x90] sm:$0xff] }
 0x265   :  { %917 = vmatpush.msra.mxu3 %v430_v29  ;;  %v2118_v29 = vld [vmem:[%s4082_s3 + $0x2d8] sm:$0xff] }
 0x267   :  { %918 = vmatpush.msra.mxu3 %v428_v31  ;;  %v2037_v31 = vld [vmem:[%s4090_s8 + $0x98] sm:$0xff] }
 0x269   :  { %919 = vmatpush.msra.mxu3 %v426_v32  ;;  %v2101_v32 = vld [vmem:[%s4082_s3 + $0x250] sm:$0xff] }
 0x26b   :  { %920 = vmatpush.msra.mxu3 %v424_v33  ;;  %v2117_v33 = vld [vmem:[%s4082_s3 + $0x2d0] sm:$0xff] }
 0x26d   :  { %921 = vmatpush.msra.mxu3 %v422_v34  ;;  %v2034_v34 = vld [vmem:[%s4090_s8 + $0x80] sm:$0xff] }
 0x26f   :  { %922 = vmatpush.msra.mxu3 %v420_v36  ;;  %v2100_v36 = vld [vmem:[%s4082_s3 + $0x248] sm:$0xff] }
 0x2b3   :  { %v393_v35 = vpop.f32.mrf.mxu2 }
 0x2bb   :  { %v416_v37 = vpop.f32.mrf.mxu3  ;;  %v490_v38 = vpop.f32.mrf.mxu2 }
 0x2bc   :  { %v491_v40 = vadd.f32 %v2313_v39, %v490_v38 }
 0x2c3   :  { %v513_v41 = vpop.f32.mrf.mxu3  ;;  %v493_v43 = vpop.f32.mrf.mxu2 }
 0x2c4   :  { %v514_v42 = vadd.f32 %v513_v41, %v491_v40  ;;  %v494_v22 = vadd.f32 %v2313_v39, %v493_v43  ;;  %v2099_v39 = vld [vmem:[%s4082_s3 + $0x240] sm:$0xff]  ;;  %v2098_v41 = vld [vmem:[%s4082_s3 + $0x238] sm:$0xff]  ;;  %v2097_v43 = vld [vmem:[%s4082_s3 + $0x230] sm:$0xff] }
 0x2c5   :  { %v2115_v40 = vld [vmem:[%s4082_s3 + $0x2c0] sm:$0xff] }
 0x2c6   :  { %2029 = vmatmul.msk.f32.vlgmr.msrb.gmra.mxu2 %vm295_vm0, %v514_v42  ;;  %v2114_v42 = vld [vmem:[%s4082_s3 + $0x2b8] sm:$0xff] }
 0x2c7   :  { %1052 = vmatpush.msrb.mxu2 %v2106_v16  ;;  %v2063_v16 = vld [vmem:[%s4083_s2 + $0x228] sm:$0xff] }
 0x2c9   :  { %1053 = vmatpush.msrb.mxu2 %v2105_v17  ;;  %v2080_v17 = vld [vmem:[%s4083_s2 + $0x2b0] sm:$0xff] }
 0x2cb   :  { %v516_v44 = vpop.f32.mrf.mxu3  ;;  %1054 = vmatpush.msrb.mxu2 %v2104_v19  ;;  %v2079_v19 = vld [vmem:[%s4083_s2 + $0x2a8] sm:$0xff] }
 0x2cc   :  { %v517_v45 = vadd.f32 %v516_v44, %v494_v22  ;;  %v2113_v22 = vld [vmem:[%s4082_s3 + $0x2b0] sm:$0xff] }
 0x2cd   :  { %1055 = vmatpush.msrb.mxu2 %v2103_v24  ;;  %v2060_v24 = vld [vmem:[%s4083_s2 + $0x210] sm:$0xff] }
 0x2ce   :  { %2031 = vmatmul.msk.f32.vlgmr.msrb.gmra.mxu3 %vm295_vm0, %v517_v45  ;;  %2054 = vmatmul.msk.f32.vlgmr.msra.gmra.mxu2 %vm295_vm0, %v393_v35  ;;  %v2096_v45 = vld [vmem:[%s4082_s3 + $0x228] sm:$0xff] }
 0x2cf   :  { %1075 = vmatpush.msrb.mxu3 %v2122_v18  ;;  %1056 = vmatpush.msrb.mxu2 %v2102_v28  ;;  %v2091_v18 = vld [vmem:[%s4082_s3 + $0x200] sm:$0xff]  ;;  %v2076_v28 = vld [vmem:[%s4083_s2 + $0x290] sm:$0xff] }
 0x2d1   :  { %1076 = vmatpush.msrb.mxu3 %v2121_v20  ;;  %1057 = vmatpush.msrb.mxu2 %v2101_v32  ;;  %v2107_v20 = vld [vmem:[%s4082_s3 + $0x280] sm:$0xff] }
 0x2d2   :  { %v2074_v32 = vld [vmem:[%s4083_s2 + $0x280] sm:$0xff] }
 0x2d3   :  { %v658_v47 = vpop.f32.mrf.mxu2  ;;  %1077 = vmatpush.msrb.mxu3 %v2120_v23  ;;  %1058 = vmatpush.msrb.mxu2 %v2100_v36  ;;  %v2078_v23 = vld [vmem:[%s4083_s2 + $0x2a0] sm:$0xff] }
 0x2d4   :  { %v659_v48 = vadd.f32 %v2314_v46, %v658_v47  ;;  %v3452_v36 = vld [vmem:[%s4086_s0] sm:$0xff] }
 0x2d5   :  { %1078 = vmatpush.msrb.mxu3 %v2119_v5  ;;  %1059 = vmatpush.msrb.mxu2 %v2099_v39  ;;  %v2077_v5 = vld [vmem:[%s4083_s2 + $0x298] sm:$0xff] }
 0x2d6   :  { %2055 = vmatmul.msk.f32.gmra.mxu2 %vm295_vm0, %v416_v37  ;;  %2056 = vmatmul.msk.f32.vlgmr.msra.gmra.mxu3 %vm295_vm0, %v393_v35  ;;  %v2035_v35 = vld [vmem:[%s4090_s8 + $0x88] sm:$0xff]  ;;  %v3470_v39 = vld [vmem:[%s4086_s0 + $0x18] sm:$0xff] }
 0x2d7   :  { %1079 = vmatpush.msrb.mxu3 %v2118_v29  ;;  %1060 = vmatpush.msrb.mxu2 %v2098_v41  ;;  %v2058_v29 = vld [vmem:[%s4083_s2 + $0x200] sm:$0xff] }
 0x2d9   :  { %1080 = vmatpush.msrb.mxu3 %v2117_v33  ;;  %1061 = vmatpush.msrb.mxu2 %v2097_v43  ;;  %v3442_v33 = vld [vmem:[%s4085_s1 + $0x18] sm:$0xff] }
 0x2db   :  { %v681_v27 = vpop.f32.mrf.mxu3  ;;  %v661_v50 = vpop.f32.mrf.mxu2  ;;  %1062 = vmatpush.msrb.mxu2 %v2096_v45 }
 0x2dc   :  { %v682_v49 = vadd.f32 %v681_v27, %v659_v48  ;;  %v662_v1 = vadd.f32 %v2314_v46, %v661_v50  ;;  %v2073_v48 = vld [vmem:[%s4083_s2 + $0x278] sm:$0xff]  ;;  %v2112_v27 = vld [vmem:[%s4082_s3 + $0x2a8] sm:$0xff]  ;;  %v2072_v50 = vld [vmem:[%s4083_s2 + $0x270] sm:$0xff] }
 0x2de   :  { %2057 = vmatmul.msk.f32.gmra.mxu3 %vm295_vm0, %v416_v37  ;;  %781 = vmatpush.msrb.mxu0 %v682_v49  ;;  %v2116_v37 = vld [vmem:[%s4082_s3 + $0x2c8] sm:$0xff]  ;;  %v2095_v49 = vld [vmem:[%s4082_s3 + $0x220] sm:$0xff] }
 0x2df   :  { %1081 = vmatpush.msrb.mxu3 %v2116_v37  ;;  %1063 = vmatpush.msrb.mxu2 %v2095_v49  ;;  %v3458_v37 = vld [vmem:[%s4086_s0 + $0x8] sm:$0xff] }
 0x2e0   :  { %840 = vmatpush.msra.mxu0 %v2048_v10  ;;  %v2093_v10 = vld [vmem:[%s4082_s3 + $0x210] sm:$0xff] }
 0x2e1   :  { %1082 = vmatpush.msrb.mxu3 %v2115_v40 }
 0x2e2   :  { %841 = vmatpush.msra.mxu0 %v2046_v11  ;;  %v2110_v11 = vld [vmem:[%s4082_s3 + $0x298] sm:$0xff] }
 0x2e3   :  { %v684_v51 = vpop.f32.mrf.mxu3  ;;  %1083 = vmatpush.msrb.mxu3 %v2114_v42 }
 0x2e4   :  { %v685_v52 = vadd.f32 %v684_v51, %v662_v1  ;;  %842 = vmatpush.msra.mxu0 %v2044_v14  ;;  %v2071_v1 = vld [vmem:[%s4083_s2 + $0x268] sm:$0xff]  ;;  %v2070_v51 = vld [vmem:[%s4083_s2 + $0x260] sm:$0xff] }
 0x2e5   :  { %1084 = vmatpush.msrb.mxu3 %v2113_v22  ;;  %v2092_v14 = vld [vmem:[%s4082_s3 + $0x208] sm:$0xff]  ;;  %v2315_v22 = vld [vmem:[%s4084_s6 + $0x2] ss:$0 sm:$0xff] }
 0x2e6   :  { %804 = vmatpush.msrb.mxu1 %v685_v52  ;;  %843 = vmatpush.msra.mxu0 %v2042_v59  ;;  %v2108_v59 = vld [vmem:[%s4082_s3 + $0x288] sm:$0xff] }
 0x2e7   :  { %1085 = vmatpush.msrb.mxu3 %v2112_v27 }
 0x2e8   :  { %863 = vmatpush.msra.mxu1 %v2049_v12  ;;  %844 = vmatpush.msra.mxu0 %v2040_v21  ;;  %v2064_v12 = vld [vmem:[%s4083_s2 + $0x230] sm:$0xff]  ;;  %v3397_v21 = vld [vmem:[%s4085_s1] sm:$0xff] }
 0x2ea   :  { %864 = vmatpush.msra.mxu1 %v2047_v13  ;;  %845 = vmatpush.msra.mxu0 %v2038_v25  ;;  %v2081_v13 = vld [vmem:[%s4083_s2 + $0x2b8] sm:$0xff]  ;;  %v3415_v25 = vld [vmem:[%s4085_s1 + $0x8] sm:$0xff] }
 0x2ec   :  { %865 = vmatpush.msra.mxu1 %v2045_v15  ;;  %846 = vmatpush.msra.mxu0 %v2036_v30  ;;  %v2109_v15 = vld [vmem:[%s4082_s3 + $0x290] sm:$0xff]  ;;  %v2075_v30 = vld [vmem:[%s4083_s2 + $0x288] sm:$0xff] }
 0x2ee   :  { %866 = vmatpush.msra.mxu1 %v2043_v60  ;;  %847 = vmatpush.msra.mxu0 %v2034_v34  ;;  %v2062_v60 = vld [vmem:[%s4083_s2 + $0x220] sm:$0xff] }
 0x2f0   :  { %867 = vmatpush.msra.mxu1 %v2041_v4  ;;  %v2061_v4 = vld [vmem:[%s4083_s2 + $0x218] sm:$0xff] }
 0x2f2   :  { %868 = vmatpush.msra.mxu1 %v2039_v26  ;;  %v2059_v26 = vld [vmem:[%s4083_s2 + $0x208] sm:$0xff] }
 0x2f4   :  { %869 = vmatpush.msra.mxu1 %v2037_v31  ;;  %v3433_v31 = vld [vmem:[%s4085_s1 + $0x10] sm:$0xff] }
 0x2f6   :  { %870 = vmatpush.msra.mxu1 %v2035_v35 }
 0x349   :  { %v710_v53 = vpop.f32.mrf.mxu2 }
 0x34a   :  { %v739_v54 = vmul.f32 0.125, %v710_v53 }
 0x34c   :  { %v741_v55 = vsel %vm350_vm1, %v739_v54, -inf }
 0x34d   :  { %742 = vmax.xlane.f32.xlu2 %v741_v55  ;;  %v2069_v55 = vld [vmem:[%s4083_s2 + $0x258] sm:$0xff] }
 0x351   :  { %v736_v56 = vpop.f32.mrf.mxu3  ;;  %v3473_v40 = vpop.f32.mrf.mxu2 }
 0x352   :  { %v740_v3 = vmul.f32 0.125, %v736_v56  ;;  %v2088_v56 = vld [vmem:[%s4083_s2 + $0x2f0] sm:$0xff] }
 0x354   :  { %v744_v6 = vsel %vm350_vm1, %v740_v3, -inf }
 0x355   :  { %745 = vmax.xlane.f32.xlu2 %v744_v6  ;;  %v2087_v6 = vld [vmem:[%s4083_s2 + $0x2e8] sm:$0xff] }
 0x359   :  { %v3475_v41 = vpop.f32.mrf.mxu3  ;;  %v904_v42 = vpop.f32.mrf.mxu2 }
 0x361   :  { %v927_v43 = vpop.f32.mrf.mxu3 }
 0x3c0   :  { %v743_v57 = vpop.xlane.xlu2 %742 }
 0x3c1   :  { %v747_v58 = vsub.f32 %v739_v54, %v743_v57  ;;  %v2089_v54 = vld [vmem:[%s4083_s2 + $0x2f8] sm:$0xff]  ;;  %v2067_v57 = vld [vmem:[%s4083_s2 + $0x248] sm:$0xff] }
 0x3c3   :  { %v749_v61 = vmul.f32 1.442695, %v747_v58  ;;  %v2086_v58 = vld [vmem:[%s4083_s2 + $0x2e0] sm:$0xff] }
 0x3c5   :  { %2329 = vpow2.f32 %v749_v61  ;;  %v2085_v61 = vld [vmem:[%s4083_s2 + $0x2d8] sm:$0xff] }
 0x3c8   :  { %v746_v62 = vpop.xlane.xlu2 %745 }
 0x3c9   :  { %v748_v63 = vsub.f32 %v740_v3, %v746_v62  ;;  %v2068_v3 = vld [vmem:[%s4083_s2 + $0x250] sm:$0xff] }
 0x3ca   :  { %v2084_v62 = vld [vmem:[%s4083_s2 + $0x2d0] sm:$0xff] }
 0x3cb   :  { %v3169_v0 = vpop.eup %2329  ;;  %v751_v7 = vmul.f32 1.442695, %v748_v63  ;;  %v2066_v63 = vld [vmem:[%s4083_s2 + $0x240] sm:$0xff] }
 0x3cc   :  { %v753_v2 = vsel %vm350_vm1, %v3169_v0, 0.0 }
 0x3cd   :  { %2331 = vpow2.f32 %v751_v7  ;;  %754 = vadd.xlane.f32.xlu0 %v753_v2  ;;  %v2094_v7 = vld [vmem:[%s4082_s3 + $0x218] sm:$0xff]  ;;  %v2111_v2 = vld [vmem:[%s4082_s3 + $0x2a0] sm:$0xff] }
 0x3ce   :  { %1064 = vmatpush.msrb.mxu2 %v2094_v7  ;;  %1086 = vmatpush.msrb.mxu3 %v2111_v2  ;;  %v2139_v7 = vld [vmem:[%s4088_s4 + $0x278] sm:$0xff]  ;;  %v2138_v2 = vld [vmem:[%s4088_s4 + $0x270] sm:$0xff] }
 0x3d0   :  { %1065 = vmatpush.msrb.mxu2 %v2093_v10  ;;  %1087 = vmatpush.msrb.mxu3 %v2110_v11  ;;  %v2137_v10 = vld [vmem:[%s4088_s4 + $0x268] sm:$0xff] }
 0x3d1   :  { %v2153_v11 = vld [vmem:[%s4088_s4 + $0x2e8] sm:$0xff] }
 0x3d2   :  { %1066 = vmatpush.msrb.mxu2 %v2092_v14  ;;  %1088 = vmatpush.msrb.mxu3 %v2109_v15  ;;  %v2135_v14 = vld [vmem:[%s4088_s4 + $0x258] sm:$0xff] }
 0x3d3   :  { %v3173_v8 = vpop.eup %2331  ;;  %v2151_v15 = vld [vmem:[%s4088_s4 + $0x2d8] sm:$0xff] }
 0x3d4   :  { %v756_v9 = vsel %vm350_vm1, %v3173_v8, 0.0  ;;  %1067 = vmatpush.msrb.mxu2 %v2091_v18  ;;  %1089 = vmatpush.msrb.mxu3 %v2108_v59  ;;  %v2133_v18 = vld [vmem:[%s4088_s4 + $0x248] sm:$0xff] }
 0x3d5   :  { %757 = vadd.xlane.f32.xlu1 %v756_v9  ;;  %v2082_v9 = vld [vmem:[%s4083_s2 + $0x2c0] sm:$0xff]  ;;  %1068 = vmatmul.f32.vlgmr.msrb.gmra.mxu2 %v3397_v21  ;;  %v2149_v59 = vld [vmem:[%s4088_s4 + $0x2c8] sm:$0xff] }
 0x3d6   :  { %1090 = vmatpush.msrb.mxu3 %v2107_v20  ;;  %v2131_v20 = vld [vmem:[%s4088_s4 + $0x238] sm:$0xff] }
 0x3d7   :  { %1091 = vmatmul.f32.vlgmr.msrb.gmra.mxu3 %v3415_v25 }
 0x3dd   :  { %1071 = vmatmul.f32.gmra.mxu2 %v3433_v31 }
 0x3df   :  { %1094 = vmatmul.f32.gmra.mxu3 %v3442_v33 }
 0x440   :  { %v755_v38 = vpop.xlane.xlu0 %754 }
 0x441   :  { %2333 = vrcp.f32 %v755_v38  ;;  %v3464_v38 = vld [vmem:[%s4086_s0 + $0x10] sm:$0xff] }
 0x447   :  { %v2334_v44 = vpop.eup %2333 }
 0x448   :  { %v761_v46 = vmul.f32 %v2334_v44, %v3169_v0  ;;  %v758_v47 = vpop.xlane.xlu1 %757  ;;  %v2083_v0 = vld [vmem:[%s4083_s2 + $0x2c8] sm:$0xff] }
 0x449   :  { %2335 = vrcp.f32 %v758_v47 }
 0x44a   :  { %2032 = vmatmul.msk.f32.vlgmr.msrb.gmra.mxu0 %vm350_vm1, %v761_v46 }
 0x44b   :  { %968 = vmatpush.msrb.mxu0 %v2073_v48 }
 0x44d   :  { %969 = vmatpush.msrb.mxu0 %v2072_v50 }
 0x44f   :  { %v2336_v52 = vpop.eup %2335  ;;  %970 = vmatpush.msrb.mxu0 %v2071_v1 }
 0x450   :  { %v762_v53 = vmul.f32 %v2336_v52, %v3173_v8  ;;  %v2065_v8 = vld [vmem:[%s4083_s2 + $0x238] sm:$0xff] }
 0x451   :  { %971 = vmatpush.msrb.mxu0 %v2070_v51 }
 0x452   :  { %2033 = vmatmul.msk.f32.vlgmr.msrb.gmra.mxu1 %vm350_vm1, %v762_v53 }
 0x453   :  { %991 = vmatpush.msrb.mxu1 %v2089_v54  ;;  %972 = vmatpush.msrb.mxu0 %v2069_v55 }
 0x455   :  { %992 = vmatpush.msrb.mxu1 %v2088_v56  ;;  %973 = vmatpush.msrb.mxu0 %v2068_v3  ;;  %v2316_v56 = vld [vmem:[%s4087_s5 + $0x2] ss:$0 sm:$0xff] }
 0x457   :  { %993 = vmatpush.msrb.mxu1 %v2087_v6  ;;  %974 = vmatpush.msrb.mxu0 %v2067_v57 }
 0x458   :  { %v1069_v44 = vpop.f32.mrf.mxu2 }
 0x459   :  { %994 = vmatpush.msrb.mxu1 %v2086_v58  ;;  %975 = vmatpush.msrb.mxu0 %v2066_v63  ;;  %v1070_v45 = vadd.f32 %v2315_v22, %v1069_v44  ;;  %v2126_v44 = vld [vmem:[%s4088_s4 + $0x210] sm:$0xff] }
 0x45a   :  { %v1092_v46 = vpop.f32.mrf.mxu3 }
 0x45b   :  { %995 = vmatpush.msrb.mxu1 %v2085_v61  ;;  %976 = vmatpush.msrb.mxu0 %v2065_v8  ;;  %v1093_v47 = vadd.f32 %v1092_v46, %v1070_v45  ;;  %v2155_v8 = vld [vmem:[%s4088_s4 + $0x2f8] sm:$0xff]  ;;  %v2125_v46 = vld [vmem:[%s4088_s4 + $0x208] sm:$0xff] }
 0x45c   :  { %v2143_v45 = vld [vmem:[%s4088_s4 + $0x298] sm:$0xff] }
 0x45d   :  { %996 = vmatpush.msrb.mxu1 %v2084_v62  ;;  %977 = vmatpush.msrb.mxu0 %v2064_v12  ;;  %v2136_v12 = vld [vmem:[%s4088_s4 + $0x260] sm:$0xff] }
 0x45e   :  { %2157 = vmatpush.xpose.msk.msra.mxu2 %vm295_vm0, %v1093_v47  ;;  %v2142_v47 = vld [vmem:[%s4088_s4 + $0x290] sm:$0xff] }
 0x45f   :  { %997 = vmatpush.msrb.mxu1 %v2083_v0  ;;  %978 = vmatpush.msrb.mxu0 %v2063_v16  ;;  %v2134_v16 = vld [vmem:[%s4088_s4 + $0x250] sm:$0xff] }
 0x460   :  { %v1072_v48 = vpop.f32.mrf.mxu2 }
 0x461   :  { %998 = vmatpush.msrb.mxu1 %v2082_v9  ;;  %979 = vmatpush.msrb.mxu0 %v2062_v60  ;;  %v1073_v27 = vadd.f32 %v2315_v22, %v1072_v48  ;;  %v2154_v9 = vld [vmem:[%s4088_s4 + $0x2f0] sm:$0xff]  ;;  %v2132_v60 = vld [vmem:[%s4088_s4 + $0x240] sm:$0xff] }
 0x462   :  { %v1095_v49 = vpop.f32.mrf.mxu3  ;;  %v2124_v48 = vld [vmem:[%s4088_s4 + $0x200] sm:$0xff] }
 0x463   :  { %999 = vmatpush.msrb.mxu1 %v2081_v13  ;;  %980 = vmatpush.msrb.mxu0 %v2061_v4  ;;  %v1096_v50 = vadd.f32 %v1095_v49, %v1073_v27  ;;  %v2152_v13 = vld [vmem:[%s4088_s4 + $0x2e0] sm:$0xff]  ;;  %v2147_v4 = vld [vmem:[%s4088_s4 + $0x2b8] sm:$0xff]  ;;  %v2141_v27 = vld [vmem:[%s4088_s4 + $0x288] sm:$0xff] }
 0x464   :  { %v2140_v49 = vld [vmem:[%s4088_s4 + $0x280] sm:$0xff] }
 0x465   :  { %1000 = vmatpush.msrb.mxu1 %v2080_v17  ;;  %981 = vmatpush.msrb.mxu0 %v2060_v24  ;;  %v2150_v17 = vld [vmem:[%s4088_s4 + $0x2d0] sm:$0xff] }
 0x466   :  { %2159 = vmatpush.xpose.msk.msra.mxu3 %vm295_vm0, %v1096_v50  ;;  %v2146_v24 = vld [vmem:[%s4088_s4 + $0x2b0] sm:$0xff] }
 0x467   :  { %1001 = vmatpush.msrb.mxu1 %v2079_v19  ;;  %982 = vmatpush.msrb.mxu0 %v2059_v26  ;;  %v2148_v19 = vld [vmem:[%s4088_s4 + $0x2c0] sm:$0xff]  ;;  %v2145_v26 = vld [vmem:[%s4088_s4 + $0x2a8] sm:$0xff] }
 0x469   :  { %1002 = vmatpush.msrb.mxu1 %v2078_v23  ;;  %983 = vmatpush.msrb.mxu0 %v2058_v29  ;;  %v2130_v23 = vld [vmem:[%s4088_s4 + $0x230] sm:$0xff]  ;;  %v2128_v29 = vld [vmem:[%s4088_s4 + $0x220] sm:$0xff] }
 0x46b   :  { %1003 = vmatpush.msrb.mxu1 %v2077_v5  ;;  %v2129_v5 = vld [vmem:[%s4088_s4 + $0x228] sm:$0xff] }
 0x46d   :  { %1004 = vmatpush.msrb.mxu1 %v2076_v28 }
 0x46f   :  { %1005 = vmatpush.msrb.mxu1 %v2075_v30  ;;  %v2144_v30 = vld [vmem:[%s4088_s4 + $0x2a0] sm:$0xff] }
 0x471   :  { %1006 = vmatpush.msrb.mxu1 %v2074_v32 }
 0x4c7   :  { %v783_v34 = vpop.f32.mrf.mxu0 }
 0x4c8   :  { %2050 = vmatmul.msk.f32.vlgmr.msra.gmra.mxu0 %vm295_vm0, %v783_v34  ;;  %2052 = vmatmul.msk.f32.vlgmr.msra.gmra.mxu1 %vm295_vm0, %v783_v34  ;;  %v2127_v34 = vld [vmem:[%s4088_s4 + $0x218] sm:$0xff] }
 0x4c9   :  { %1136 = vmatpush.msra.mxu0 %v2139_v7  ;;  %1159 = vmatpush.msra.mxu1 %v2155_v8 }
 0x4cb   :  { %1137 = vmatpush.msra.mxu0 %v2138_v2  ;;  %1160 = vmatpush.msra.mxu1 %v2154_v9 }
 0x4cd   :  { %1138 = vmatpush.msra.mxu0 %v2137_v10  ;;  %1161 = vmatpush.msra.mxu1 %v2153_v11 }
 0x4cf   :  { %v806_v35 = vpop.f32.mrf.mxu1  ;;  %1139 = vmatpush.msra.mxu0 %v2136_v12  ;;  %1162 = vmatpush.msra.mxu1 %v2152_v13  ;;  %v2177_v13 = vld [vmem:[%s4090_s8 + $0x170] sm:$0xff] }
 0x4d0   :  { %2051 = vmatmul.msk.f32.gmra.mxu0 %vm295_vm0, %v806_v35  ;;  %2053 = vmatmul.msk.f32.gmra.mxu1 %vm295_vm0, %v806_v35 }
 0x4d1   :  { %1140 = vmatpush.msra.mxu0 %v2135_v14  ;;  %1163 = vmatpush.msra.mxu1 %v2151_v15  ;;  %v2175_v14 = vld [vmem:[%s4090_s8 + $0x160] sm:$0xff]  ;;  %v2178_v15 = vld [vmem:[%s4090_s8 + $0x178] sm:$0xff] }
 0x4d3   :  { %1141 = vmatpush.msra.mxu0 %v2134_v16  ;;  %1164 = vmatpush.msra.mxu1 %v2150_v17  ;;  %v2176_v16 = vld [vmem:[%s4090_s8 + $0x168] sm:$0xff]  ;;  %v2173_v17 = vld [vmem:[%s4090_s8 + $0x150] sm:$0xff] }
 0x4d5   :  { %1142 = vmatpush.msra.mxu0 %v2133_v18  ;;  %1165 = vmatpush.msra.mxu1 %v2149_v59  ;;  %v2174_v18 = vld [vmem:[%s4090_s8 + $0x158] sm:$0xff]  ;;  %v2171_v59 = vld [vmem:[%s4090_s8 + $0x140] sm:$0xff] }
 0x4d7   :  { %1143 = vmatpush.msra.mxu0 %v2132_v60  ;;  %1166 = vmatpush.msra.mxu1 %v2148_v19  ;;  %v2172_v60 = vld [vmem:[%s4090_s8 + $0x148] sm:$0xff]  ;;  %v2169_v19 = vld [vmem:[%s4090_s8 + $0x130] sm:$0xff] }
 0x4d8   :  { %984 = vmatmul.f32.vlgmr.msrb.gmra.mxu0 %v3452_v36  ;;  %1007 = vmatmul.f32.vlgmr.msrb.gmra.mxu1 %v3458_v37 }
 0x4d9   :  { %1144 = vmatpush.msra.mxu0 %v2131_v20  ;;  %1167 = vmatpush.msra.mxu1 %v2147_v4  ;;  %v2170_v20 = vld [vmem:[%s4090_s8 + $0x138] sm:$0xff]  ;;  %v2167_v4 = vld [vmem:[%s4090_s8 + $0x120] sm:$0xff] }
 0x4db   :  { %1145 = vmatpush.msra.mxu0 %v2130_v23  ;;  %1168 = vmatpush.msra.mxu1 %v2146_v24  ;;  %v2168_v23 = vld [vmem:[%s4090_s8 + $0x128] sm:$0xff]  ;;  %v2198_v24 = vld [vmem:[%s4083_s2 + $0x378] sm:$0xff] }
 0x4dd   :  { %1146 = vmatpush.msra.mxu0 %v2129_v5  ;;  %1169 = vmatpush.msra.mxu1 %v2145_v26  ;;  %v2197_v5 = vld [vmem:[%s4083_s2 + $0x370] sm:$0xff]  ;;  %v2214_v26 = vld [vmem:[%s4083_s2 + $0x3f8] sm:$0xff] }
 0x4df   :  { %1147 = vmatpush.msra.mxu0 %v2128_v29  ;;  %1170 = vmatpush.msra.mxu1 %v2144_v30  ;;  %v2166_v29 = vld [vmem:[%s4090_s8 + $0x118] sm:$0xff]  ;;  %v2196_v30 = vld [vmem:[%s4083_s2 + $0x368] sm:$0xff] }
 0x4e0   :  { %987 = vmatmul.f32.gmra.mxu0 %v3464_v38  ;;  %1010 = vmatmul.f32.gmra.mxu1 %v3470_v39 }
 0x4e1   :  { %1148 = vmatpush.msra.mxu0 %v2127_v34  ;;  %1171 = vmatpush.msra.mxu1 %v2143_v45  ;;  %v2163_v34 = vld [vmem:[%s4090_s8 + $0x100] sm:$0xff]  ;;  %v2231_v45 = vld [vmem:[%s4082_s3 + $0x378] sm:$0xff] }
 0x4e3   :  { %1149 = vmatpush.msra.mxu0 %v2126_v44  ;;  %1172 = vmatpush.msra.mxu1 %v2142_v47  ;;  %v2229_v47 = vld [vmem:[%s4082_s3 + $0x368] sm:$0xff] }
 0x4e5   :  { %1150 = vmatpush.msra.mxu0 %v2125_v46  ;;  %1173 = vmatpush.msra.mxu1 %v2141_v27  ;;  %v2230_v46 = vld [vmem:[%s4082_s3 + $0x370] sm:$0xff] }
 0x4e7   :  { %1151 = vmatpush.msra.mxu0 %v2124_v48  ;;  %1174 = vmatpush.msra.mxu1 %v2140_v49  ;;  %v2228_v48 = vld [vmem:[%s4082_s3 + $0x360] sm:$0xff] }
 0x4e8   :  { %1152 = vmatmul.f32.vlgmr.msra.gmra.mxu0 %v3397_v21  ;;  %1175 = vmatmul.f32.vlgmr.msra.gmra.mxu1 %v3415_v25 }
 0x4e9   :  { %1415 = vmatpush.msrb.mxu0 %v2198_v24  ;;  %1438 = vmatpush.msrb.mxu1 %v2214_v26  ;;  %v2190_v24 = vld [vmem:[%s4083_s2 + $0x338] sm:$0xff]  ;;  %v2218_v26 = vld [vmem:[%s4082_s3 + $0x310] sm:$0xff] }
 0x4eb   :  { %1416 = vmatpush.msrb.mxu0 %v2197_v5  ;;  %v2207_v5 = vld [vmem:[%s4083_s2 + $0x3c0] sm:$0xff] }
 0x4ed   :  { %1417 = vmatpush.msrb.mxu0 %v2196_v30  ;;  %v2206_v30 = vld [vmem:[%s4083_s2 + $0x3b8] sm:$0xff] }
 0x4f0   :  { %1155 = vmatmul.f32.gmra.mxu0 %v3433_v31  ;;  %1178 = vmatmul.f32.gmra.mxu1 %v3442_v33 }
 0x545   :  { %v3482_v1 = vpop.f32.mrf.mxu0  ;;  %v3484_v51 = vpop.f32.mrf.mxu1 }
 0x54d   :  { %v852_v52 = vpop.f32.mrf.mxu0  ;;  %v875_v53 = vpop.f32.mrf.mxu1 }
 0x54e   :  { %v3486_v54 = vadd.f32 %v904_v42, %v852_v52  ;;  %v3488_v55 = vadd.f32 %v927_v43, %v875_v53 }
 0x555   :  { %v985_v3 = vpop.f32.mrf.mxu0  ;;  %v1008_v6 = vpop.f32.mrf.mxu1 }
 0x556   :  { %v986_v57 = vadd.f32 %v2316_v56, %v985_v3 }
 0x558   :  { %v1009_v58 = vadd.f32 %v1008_v6, %v986_v57 }
 0x55a   :  { %2158 = vmatmul.msk.f32.vlgmr.msra.gmra.mxu2 %vm295_vm0, %v1009_v58 }
 0x55d   :  { %v988_v61 = vpop.f32.mrf.mxu0  ;;  %v1011_v62 = vpop.f32.mrf.mxu1 }
 0x55e   :  { %v989_v63 = vadd.f32 %v2316_v56, %v988_v61 }
 0x560   :  { %v1012_v0 = vadd.f32 %v1011_v62, %v989_v63  ;;  %v2317_v63 = vld [vmem:[%s4089_s7 + $0x2] ss:$0 sm:$0xff] }
 0x562   :  { %2160 = vmatmul.msk.f32.vlgmr.msra.gmra.mxu3 %vm295_vm0, %v1012_v0 }
 0x565   :  { %v1153_v0 = vpop.f32.mrf.mxu0  ;;  %v1176_v2 = vpop.f32.mrf.mxu1 }
 0x566   :  { %v1154_v7 = vadd.f32 %v2317_v63, %v1153_v0  ;;  %v2195_v0 = vld [vmem:[%s4083_s2 + $0x360] sm:$0xff] }
 0x567   :  { %1418 = vmatpush.msrb.mxu0 %v2195_v0 }
 0x568   :  { %v1177_v8 = vadd.f32 %v1176_v2, %v1154_v7  ;;  %v2212_v7 = vld [vmem:[%s4083_s2 + $0x3e8] sm:$0xff]  ;;  %v2223_v2 = vld [vmem:[%s4082_s3 + $0x338] sm:$0xff] }
 0x56a   :  { %1276 = vmatpush.msrb.mxu2 %v1177_v8  ;;  %v2240_v8 = vld [vmem:[%s4082_s3 + $0x3c0] sm:$0xff] }
 0x56c   :  { %1335 = vmatpush.msra.mxu2 %v2177_v13  ;;  %v2193_v13 = vld [vmem:[%s4083_s2 + $0x350] sm:$0xff] }
 0x56d   :  { %v1156_v9 = vpop.f32.mrf.mxu0  ;;  %v1179_v11 = vpop.f32.mrf.mxu1 }
 0x56e   :  { %v1157_v10 = vadd.f32 %v2317_v63, %v1156_v9  ;;  %1336 = vmatpush.msra.mxu2 %v2175_v14  ;;  %v2241_v63 = vld [vmem:[%s4082_s3 + $0x3c8] sm:$0xff]  ;;  %v2194_v9 = vld [vmem:[%s4083_s2 + $0x358] sm:$0xff] }
 0x56f   :  { %1419 = vmatpush.msrb.mxu0 %v2194_v9  ;;  %v2210_v14 = vld [vmem:[%s4083_s2 + $0x3d8] sm:$0xff] }
 0x570   :  { %v1180_v12 = vadd.f32 %v1179_v11, %v1157_v10  ;;  %1337 = vmatpush.msra.mxu2 %v2173_v17  ;;  %v2211_v10 = vld [vmem:[%s4083_s2 + $0x3e0] sm:$0xff]  ;;  %v2222_v11 = vld [vmem:[%s4082_s3 + $0x330] sm:$0xff]  ;;  %v2192_v17 = vld [vmem:[%s4083_s2 + $0x348] sm:$0xff] }
 0x571   :  { %1420 = vmatpush.msrb.mxu0 %v2193_v13 }
 0x572   :  { %1299 = vmatpush.msrb.mxu3 %v1180_v12  ;;  %1338 = vmatpush.msra.mxu2 %v2171_v59  ;;  %v2239_v12 = vld [vmem:[%s4082_s3 + $0x3b8] sm:$0xff]  ;;  %v2220_v59 = vld [vmem:[%s4082_s3 + $0x320] sm:$0xff] }
 0x573   :  { %1421 = vmatpush.msrb.mxu0 %v2192_v17 }
 0x574   :  { %1358 = vmatpush.msra.mxu3 %v2178_v15  ;;  %1339 = vmatpush.msra.mxu2 %v2169_v19  ;;  %v2221_v15 = vld [vmem:[%s4082_s3 + $0x328] sm:$0xff]  ;;  %v2191_v19 = vld [vmem:[%s4083_s2 + $0x340] sm:$0xff] }
 0x575   :  { %1422 = vmatpush.msrb.mxu0 %v2191_v19  ;;  %v2264_v19 = vld [vmem:[%s4088_s4 + $0x378] sm:$0xff] }
 0x576   :  { %1359 = vmatpush.msra.mxu3 %v2176_v16  ;;  %1340 = vmatpush.msra.mxu2 %v2167_v4  ;;  %v2238_v16 = vld [vmem:[%s4082_s3 + $0x3b0] sm:$0xff]  ;;  %v2219_v4 = vld [vmem:[%s4082_s3 + $0x318] sm:$0xff] }
 0x577   :  { %1423 = vmatpush.msrb.mxu0 %v2190_v24  ;;  %v2262_v24 = vld [vmem:[%s4088_s4 + $0x368] sm:$0xff] }
 0x578   :  { %1360 = vmatpush.msra.mxu3 %v2174_v18  ;;  %v2209_v18 = vld [vmem:[%s4083_s2 + $0x3d0] sm:$0xff] }
 0x57a   :  { %1361 = vmatpush.msra.mxu3 %v2172_v60  ;;  %v2237_v60 = vld [vmem:[%s4082_s3 + $0x3a8] sm:$0xff] }
 0x57c   :  { %1362 = vmatpush.msra.mxu3 %v2170_v20  ;;  %v2208_v20 = vld [vmem:[%s4083_s2 + $0x3c8] sm:$0xff] }
 0x57e   :  { %1363 = vmatpush.msra.mxu3 %v2168_v23  ;;  %v2236_v23 = vld [vmem:[%s4082_s3 + $0x3a0] sm:$0xff] }
 0x580   :  { %1364 = vmatpush.msra.mxu3 %v2166_v29  ;;  %v2189_v29 = vld [vmem:[%s4083_s2 + $0x330] sm:$0xff] }
 0x581   :  { %1424 = vmatpush.msrb.mxu0 %v2189_v29  ;;  %v2260_v29 = vld [vmem:[%s4088_s4 + $0x358] sm:$0xff] }
 0x5dd   :  { %v1205_v28 = vpop.f32.mrf.mxu2 }
 0x5de   :  { %v1234_v32 = vmul.f32 0.125, %v1205_v28  ;;  %v2165_v28 = vld [vmem:[%s4090_s8 + $0x110] sm:$0xff] }
 0x5df   :  { %1341 = vmatpush.msra.mxu2 %v2165_v28  ;;  %v2235_v28 = vld [vmem:[%s4082_s3 + $0x398] sm:$0xff] }
 0x5e0   :  { %v1236_v35 = vsel %vm350_vm1, %v1234_v32, -inf }
 0x5e1   :  { %1237 = vmax.xlane.f32.xlu2 %v1236_v35  ;;  %v2164_v35 = vld [vmem:[%s4090_s8 + $0x108] sm:$0xff]  ;;  %1342 = vmatpush.msra.mxu2 %v2163_v34  ;;  %v2234_v34 = vld [vmem:[%s4082_s3 + $0x390] sm:$0xff] }
 0x5e2   :  { %1365 = vmatpush.msra.mxu3 %v2164_v35  ;;  %v2188_v35 = vld [vmem:[%s4083_s2 + $0x328] sm:$0xff] }
 0x5e3   :  { %1425 = vmatpush.msrb.mxu0 %v2188_v35  ;;  %v2258_v35 = vld [vmem:[%s4088_s4 + $0x348] sm:$0xff] }
 0x5e5   :  { %v1231_v42 = vpop.f32.mrf.mxu3 }
 0x5e6   :  { %v1235_v43 = vmul.f32 0.125, %v1231_v42 }
 0x5e8   :  { %v1239_v22 = vsel %vm350_vm1, %v1235_v43, -inf }
 0x5e9   :  { %1240 = vmax.xlane.f32.xlu0 %v1239_v22 }
 0x654   :  { %v1238_v50 = vpop.xlane.xlu2 %1237 }
 0x655   :  { %v1242_v52 = vsub.f32 %v1234_v32, %v1238_v50  ;;  %v2213_v32 = vld [vmem:[%s4083_s2 + $0x3f0] sm:$0xff]  ;;  %v2247_v50 = vld [vmem:[%s4082_s3 + $0x3f8] sm:$0xff] }
 0x656   :  { %1439 = vmatpush.msrb.mxu1 %v2213_v32  ;;  %v2217_v32 = vld [vmem:[%s4082_s3 + $0x308] sm:$0xff] }
 0x657   :  { %v1244_v53 = vmul.f32 1.442695, %v1242_v52  ;;  %v2227_v52 = vld [vmem:[%s4082_s3 + $0x358] sm:$0xff] }
 0x658   :  { %1440 = vmatpush.msrb.mxu1 %v2212_v7 }
 0x659   :  { %2337 = vpow2.f32 %v1244_v53  ;;  %v2246_v53 = vld [vmem:[%s4082_s3 + $0x3f0] sm:$0xff] }
 0x65a   :  { %1441 = vmatpush.msrb.mxu1 %v2211_v10 }
 0x65c   :  { %v1241_v56 = vpop.xlane.xlu0 %1240  ;;  %1442 = vmatpush.msrb.mxu1 %v2210_v14 }
 0x65d   :  { %v1243_v3 = vsub.f32 %v1235_v43, %v1241_v56  ;;  %v2226_v56 = vld [vmem:[%s4082_s3 + $0x350] sm:$0xff] }
 0x65e   :  { %1443 = vmatpush.msrb.mxu1 %v2209_v18 }
 0x65f   :  { %v3597_v6 = vpop.eup %2337  ;;  %v1246_v57 = vmul.f32 1.442695, %v1243_v3  ;;  %v2245_v3 = vld [vmem:[%s4082_s3 + $0x3e8] sm:$0xff] }
 0x660   :  { %v1248_v58 = vsel %vm350_vm1, %v3597_v6, 0.0  ;;  %1444 = vmatpush.msrb.mxu1 %v2208_v20  ;;  %v2263_v20 = vld [vmem:[%s4088_s4 + $0x370] sm:$0xff] }
 0x661   :  { %2339 = vpow2.f32 %v1246_v57  ;;  %1249 = vadd.xlane.f32.xlu1 %v1248_v58  ;;  %v2244_v57 = vld [vmem:[%s4082_s3 + $0x3e0] sm:$0xff]  ;;  %v2243_v58 = vld [vmem:[%s4082_s3 + $0x3d8] sm:$0xff] }
 0x662   :  { %1445 = vmatpush.msrb.mxu1 %v2207_v5  ;;  %v2278_v5 = vld [vmem:[%s4088_s4 + $0x3e8] sm:$0xff] }
 0x664   :  { %1446 = vmatpush.msrb.mxu1 %v2206_v30  ;;  %v2276_v30 = vld [vmem:[%s4088_s4 + $0x3d8] sm:$0xff] }
 0x667   :  { %v3601_v61 = vpop.eup %2339 }
 0x668   :  { %v1251_v62 = vsel %vm350_vm1, %v3601_v61, 0.0 }
 0x669   :  { %1252 = vadd.xlane.f32.xlu2 %v1251_v62  ;;  %v2224_v62 = vld [vmem:[%s4082_s3 + $0x340] sm:$0xff] }
 0x6d4   :  { %v1250_v42 = vpop.xlane.xlu1 %1249 }
 0x6d5   :  { %2341 = vrcp.f32 %v1250_v42  ;;  %v2205_v42 = vld [vmem:[%s4083_s2 + $0x3b0] sm:$0xff] }
 0x6d6   :  { %1447 = vmatpush.msrb.mxu1 %v2205_v42  ;;  %v2274_v42 = vld [vmem:[%s4088_s4 + $0x3c8] sm:$0xff] }
 0x6db   :  { %v2342_v43 = vpop.eup %2341 }
 0x6dc   :  { %v1256_v22 = vmul.f32 %v2342_v43, %v3597_v6  ;;  %v1253_v44 = vpop.xlane.xlu2 %1252  ;;  %v2225_v6 = vld [vmem:[%s4082_s3 + $0x348] sm:$0xff]  ;;  %v2216_v43 = vld [vmem:[%s4082_s3 + $0x300] sm:$0xff] }
 0x6dd   :  { %2343 = vrcp.f32 %v1253_v44  ;;  %v2187_v44 = vld [vmem:[%s4083_s2 + $0x320] sm:$0xff] }
 0x6de   :  { %2161 = vmatmul.msk.f32.vlgmr.msrb.gmra.mxu2 %vm350_vm1, %v1256_v22  ;;  %v2233_v22 = vld [vmem:[%s4082_s3 + $0x388] sm:$0xff]  ;;  %1426 = vmatpush.msrb.mxu0 %v2187_v44  ;;  %v2256_v44 = vld [vmem:[%s4088_s4 + $0x338] sm:$0xff] }
 0x6df   :  { %1499 = vmatpush.msrb.mxu2 %v2231_v45  ;;  %v2204_v45 = vld [vmem:[%s4083_s2 + $0x3a8] sm:$0xff] }
 0x6e0   :  { %1448 = vmatpush.msrb.mxu1 %v2204_v45  ;;  %v2272_v45 = vld [vmem:[%s4088_s4 + $0x3b8] sm:$0xff] }
 0x6e1   :  { %1500 = vmatpush.msrb.mxu2 %v2230_v46  ;;  %v2232_v46 = vld [vmem:[%s4082_s3 + $0x380] sm:$0xff] }
 0x6e3   :  { %v2344_v27 = vpop.eup %2343  ;;  %1501 = vmatpush.msrb.mxu2 %v2229_v47  ;;  %v2186_v47 = vld [vmem:[%s4083_s2 + $0x318] sm:$0xff] }
 0x6e4   :  { %v1257_v49 = vmul.f32 %v2344_v27, %v3601_v61  ;;  %v2242_v61 = vld [vmem:[%s4082_s3 + $0x3d0] sm:$0xff]  ;;  %1427 = vmatpush.msrb.mxu0 %v2186_v47 }
 0x6e5   :  { %1502 = vmatpush.msrb.mxu2 %v2228_v48  ;;  %v2203_v48 = vld [vmem:[%s4083_s2 + $0x3a0] sm:$0xff]  ;;  %v2185_v27 = vld [vmem:[%s4083_s2 + $0x310] sm:$0xff] }
 0x6e6   :  { %2162 = vmatmul.msk.f32.vlgmr.msrb.gmra.mxu3 %vm350_vm1, %v1257_v49  ;;  %v2202_v49 = vld [vmem:[%s4083_s2 + $0x398] sm:$0xff]  ;;  %1449 = vmatpush.msrb.mxu1 %v2203_v48  ;;  %v2271_v47 = vld [vmem:[%s4088_s4 + $0x3b0] sm:$0xff]  ;;  %v2254_v48 = vld [vmem:[%s4088_s4 + $0x328] sm:$0xff] }
 0x6e7   :  { %1522 = vmatpush.msrb.mxu3 %v2247_v50  ;;  %1503 = vmatpush.msrb.mxu2 %v2227_v52  ;;  %v2184_v50 = vld [vmem:[%s4083_s2 + $0x308] sm:$0xff]  ;;  %v2201_v52 = vld [vmem:[%s4083_s2 + $0x390] sm:$0xff] }
 0x6e8   :  { %1428 = vmatpush.msrb.mxu0 %v2185_v27  ;;  %1450 = vmatpush.msrb.mxu1 %v2202_v49  ;;  %v2270_v27 = vld [vmem:[%s4088_s4 + $0x3a8] sm:$0xff] }
 0x6e9   :  { %1523 = vmatpush.msrb.mxu3 %v2246_v53  ;;  %1504 = vmatpush.msrb.mxu2 %v2226_v56  ;;  %v2183_v53 = vld [vmem:[%s4083_s2 + $0x300] sm:$0xff]  ;;  %v2200_v56 = vld [vmem:[%s4083_s2 + $0x388] sm:$0xff] }
 0x6ea   :  { %1429 = vmatpush.msrb.mxu0 %v2184_v50  ;;  %1451 = vmatpush.msrb.mxu1 %v2201_v52  ;;  %v2253_v50 = vld [vmem:[%s4088_s4 + $0x320] sm:$0xff] }
 0x6eb   :  { %1524 = vmatpush.msrb.mxu3 %v2245_v3  ;;  %1505 = vmatpush.msrb.mxu2 %v2225_v6  ;;  %v2199_v3 = vld [vmem:[%s4083_s2 + $0x380] sm:$0xff] }
 0x6ec   :  { %1430 = vmatpush.msrb.mxu0 %v2183_v53  ;;  %1452 = vmatpush.msrb.mxu1 %v2200_v56  ;;  %v2269_v52 = vld [vmem:[%s4088_s4 + $0x3a0] sm:$0xff]  ;;  %v2252_v56 = vld [vmem:[%s4088_s4 + $0x318] sm:$0xff] }
 0x6ed   :  { %1525 = vmatpush.msrb.mxu3 %v2244_v57  ;;  %1506 = vmatpush.msrb.mxu2 %v2224_v62 }
 0x6ee   :  { %1431 = vmatmul.f32.vlgmr.msrb.gmra.mxu0 %v3452_v36  ;;  %1453 = vmatpush.msrb.mxu1 %v2199_v3 }
 0x6ef   :  { %1526 = vmatpush.msrb.mxu3 %v2243_v58  ;;  %1507 = vmatpush.msrb.mxu2 %v2223_v2  ;;  %v902_v58 = vadd.f32 %v3473_v40, %v3482_v1  ;;  %v2319_v40 = vld [vmem:[%s4087_s5 + $0x3] ss:$0 sm:$0xff] }
 0x6f0   :  { %1454 = vmatmul.f32.vlgmr.msrb.gmra.mxu1 %v3458_v37  ;;  %1583 = vmatpush.msra.mxu0 %v2264_v19  ;;  %v2303_v19 = vld [vmem:[%s4090_s8 + $0x1f8] sm:$0xff] }
 0x6f1   :  { %1527 = vmatpush.msrb.mxu3 %v2242_v61  ;;  %1508 = vmatpush.msrb.mxu2 %v2222_v11 }
 0x6f2   :  { %1584 = vmatpush.msra.mxu0 %v2263_v20  ;;  %v2300_v20 = vld [vmem:[%s4090_s8 + $0x1e0] sm:$0xff] }
 0x6f3   :  { %1528 = vmatpush.msrb.mxu3 %v2241_v63  ;;  %1509 = vmatpush.msrb.mxu2 %v2221_v15 }
 0x6f4   :  { %1585 = vmatpush.msra.mxu0 %v2262_v24  ;;  %v2299_v24 = vld [vmem:[%s4090_s8 + $0x1d8] sm:$0xff] }
 0x6f5   :  { %1529 = vmatpush.msrb.mxu3 %v2240_v8  ;;  %1510 = vmatpush.msrb.mxu2 %v2220_v59 }
 0x6f6   :  { %1434 = vmatmul.f32.gmra.mxu0 %v3464_v38  ;;  %v925_v38 = vadd.f32 %v3475_v41, %v3484_v51  ;;  %v2318_v41 = vld [vmem:[%s4084_s6 + $0x3] ss:$0 sm:$0xff] }
 0x6f7   :  { %1530 = vmatpush.msrb.mxu3 %v2239_v12  ;;  %1511 = vmatpush.msrb.mxu2 %v2219_v4  ;;  %v2280_v4 = vld [vmem:[%s4088_s4 + $0x3f8] sm:$0xff] }
 0x6f8   :  { %1457 = vmatmul.f32.gmra.mxu1 %v3470_v39 }
 0x6f9   :  { %1531 = vmatpush.msrb.mxu3 %v2238_v16  ;;  %1512 = vmatpush.msrb.mxu2 %v2218_v26  ;;  %v2261_v26 = vld [vmem:[%s4088_s4 + $0x360] sm:$0xff] }
 0x6fa   :  { %1606 = vmatpush.msra.mxu1 %v2280_v4  ;;  %1586 = vmatpush.msra.mxu0 %v2261_v26  ;;  %v2301_v4 = vld [vmem:[%s4090_s8 + $0x1e8] sm:$0xff] }
 0x6fb   :  { %1532 = vmatpush.msrb.mxu3 %v2237_v60  ;;  %1513 = vmatpush.msrb.mxu2 %v2217_v32  ;;  %v2259_v32 = vld [vmem:[%s4088_s4 + $0x350] sm:$0xff]  ;;  %v2297_v26 = vld [vmem:[%s4090_s8 + $0x1c8] sm:$0xff] }
 0x6fc   :  { %1587 = vmatpush.msra.mxu0 %v2260_v29  ;;  %v2295_v29 = vld [vmem:[%s4090_s8 + $0x1b8] sm:$0xff] }
 0x6fd   :  { %1533 = vmatpush.msrb.mxu3 %v2236_v23  ;;  %1514 = vmatpush.msrb.mxu2 %v2216_v43  ;;  %v2279_v23 = vld [vmem:[%s4088_s4 + $0x3f0] sm:$0xff]  ;;  %v2257_v43 = vld [vmem:[%s4088_s4 + $0x340] sm:$0xff] }
 0x6fe   :  { %1607 = vmatpush.msra.mxu1 %v2279_v23  ;;  %1588 = vmatpush.msra.mxu0 %v2259_v32  ;;  %v2298_v23 = vld [vmem:[%s4090_s8 + $0x1d0] sm:$0xff]  ;;  %v2293_v32 = vld [vmem:[%s4090_s8 + $0x1a8] sm:$0xff] }
 0x6ff   :  { %1534 = vmatpush.msrb.mxu3 %v2235_v28  ;;  %v2277_v28 = vld [vmem:[%s4088_s4 + $0x3e0] sm:$0xff] }
 0x700   :  { %1608 = vmatpush.msra.mxu1 %v2278_v5  ;;  %1589 = vmatpush.msra.mxu0 %v2258_v35  ;;  %v2296_v5 = vld [vmem:[%s4090_s8 + $0x1c0] sm:$0xff]  ;;  %v2291_v35 = vld [vmem:[%s4090_s8 + $0x198] sm:$0xff] }
 0x701   :  { %1535 = vmatpush.msrb.mxu3 %v2234_v34  ;;  %v2275_v34 = vld [vmem:[%s4088_s4 + $0x3d0] sm:$0xff] }
 0x702   :  { %1609 = vmatpush.msra.mxu1 %v2277_v28  ;;  %1590 = vmatpush.msra.mxu0 %v2257_v43  ;;  %v2294_v28 = vld [vmem:[%s4090_s8 + $0x1b0] sm:$0xff] }
 0x703   :  { %1536 = vmatpush.msrb.mxu3 %v2233_v22  ;;  %v2273_v22 = vld [vmem:[%s4088_s4 + $0x3c0] sm:$0xff] }
 0x704   :  { %1610 = vmatpush.msra.mxu1 %v2276_v30  ;;  %1591 = vmatpush.msra.mxu0 %v2256_v44  ;;  %v2292_v30 = vld [vmem:[%s4090_s8 + $0x1a0] sm:$0xff] }
 0x705   :  { %1537 = vmatpush.msrb.mxu3 %v2232_v46  ;;  %v2255_v46 = vld [vmem:[%s4088_s4 + $0x330] sm:$0xff] }
 0x706   :  { %1611 = vmatpush.msra.mxu1 %v2275_v34  ;;  %1592 = vmatpush.msra.mxu0 %v2255_v46  ;;  %v2290_v34 = vld [vmem:[%s4090_s8 + $0x190] sm:$0xff] }
 0x708   :  { %1612 = vmatpush.msra.mxu1 %v2274_v42  ;;  %1593 = vmatpush.msra.mxu0 %v2254_v48  ;;  %v2289_v48 = vld [vmem:[%s4090_s8 + $0x188] sm:$0xff] }
 0x70a   :  { %1613 = vmatpush.msra.mxu1 %v2273_v22  ;;  %1594 = vmatpush.msra.mxu0 %v2253_v50  ;;  %v1828_v50 = vld [vmem:[%s4091_s9] sm:$0x3] }
 0x70c   :  { %1614 = vmatpush.msra.mxu1 %v2272_v45  ;;  %1595 = vmatpush.msra.mxu0 %v2252_v56 }
 0x70e   :  { %1615 = vmatpush.msra.mxu1 %v2271_v47  ;;  %v2288_v47 = vld [vmem:[%s4090_s8 + $0x180] sm:$0xff] }
 0x710   :  { %1616 = vmatpush.msra.mxu1 %v2270_v27 }
 0x712   :  { %1617 = vmatpush.msra.mxu1 %v2269_v52 }
 0x761   :  { %v1278_v6 = vpop.f32.mrf.mxu2 }
 0x762   :  { %2179 = vmatmul.msk.f32.vlgmr.msra.gmra.mxu2 %vm295_vm0, %v1278_v6  ;;  %2181 = vmatmul.msk.f32.vlgmr.msra.gmra.mxu3 %vm295_vm0, %v1278_v6 }
 0x769   :  { %v1301_v57 = vpop.f32.mrf.mxu3 }
 0x76a   :  { %2180 = vmatmul.msk.f32.gmra.mxu2 %vm295_vm0, %v1301_v57  ;;  %2182 = vmatmul.msk.f32.gmra.mxu3 %vm295_vm0, %v1301_v57 }
 0x76b   :  { %v1432_v9 = vpop.f32.mrf.mxu0 }
 0x76c   :  { %v1433_v11 = vadd.f32 %v2319_v40, %v1432_v9  ;;  %v2266_v9 = vld [vmem:[%s4088_s4 + $0x388] sm:$0xff] }
 0x76d   :  { %v1455_v1 = vpop.f32.mrf.mxu1 }
 0x772   :  { %1515 = vmatmul.f32.vlgmr.msrb.gmra.mxu2 %v3397_v21  ;;  %1538 = vmatmul.f32.vlgmr.msrb.gmra.mxu3 %v3415_v25 }
 0x775   :  { %v1458_v18 = vpop.f32.mrf.mxu1 }
 0x77a   :  { %1518 = vmatmul.f32.gmra.mxu2 %v3433_v31  ;;  %1541 = vmatmul.f32.gmra.mxu3 %v3442_v33 }
 0x7e5   :  { %v1344_v39 = vpop.f32.mrf.mxu2  ;;  %v1367_v61 = vpop.f32.mrf.mxu3 }
 0x7e6   :  { %v3868_v62 = vadd.f32 %v1344_v39, %v902_v58  ;;  %v3870_v63 = vadd.f32 %v1367_v61, %v925_v38  ;;  %v2251_v38 = vld [vmem:[%s4088_s4 + $0x310] sm:$0xff]  ;;  %v2268_v39 = vld [vmem:[%s4088_s4 + $0x398] sm:$0xff]  ;;  %v2250_v61 = vld [vmem:[%s4088_s4 + $0x308] sm:$0xff] }
 0x7e7   :  { %1596 = vmatpush.msra.mxu0 %v2251_v38  ;;  %1618 = vmatpush.msra.mxu1 %v2268_v39 }
 0x7e9   :  { %1597 = vmatpush.msra.mxu0 %v2250_v61 }
 0x7ed   :  { %v1347_v0 = vpop.f32.mrf.mxu2  ;;  %v1370_v7 = vpop.f32.mrf.mxu3 }
 0x7ee   :  { %v3873_v2 = vadd.f32 %v1347_v0, %v3486_v54  ;;  %v3876_v8 = vadd.f32 %v1370_v7, %v3488_v55  ;;  %v1456_v54 = vadd.f32 %v1455_v1, %v1433_v11  ;;  %v1435_v55 = vpop.f32.mrf.mxu0  ;;  %v2267_v0 = vld [vmem:[%s4088_s4 + $0x390] sm:$0xff]  ;;  %v2249_v7 = vld [vmem:[%s4088_s4 + $0x300] sm:$0xff] }
 0x7ef   :  { %v1436_v16 = vadd.f32 %v2319_v40, %v1435_v55  ;;  %1619 = vmatpush.msra.mxu1 %v2267_v0  ;;  %v2265_v40 = vld [vmem:[%s4088_s4 + $0x380] sm:$0xff]  ;;  %1598 = vmatpush.msra.mxu0 %v2249_v7 }
 0x7f0   :  { %1599 = vmatmul.f32.vlgmr.msra.gmra.mxu0 %v3397_v21 }
 0x7f1   :  { %v1459_v60 = vadd.f32 %v1458_v18, %v1436_v16  ;;  %1620 = vmatpush.msra.mxu1 %v2266_v9 }
 0x7f3   :  { %1621 = vmatpush.msra.mxu1 %v2265_v40 }
 0x7f4   :  { %1622 = vmatmul.f32.vlgmr.msra.gmra.mxu1 %v3415_v25  ;;  %v2320_v25 = vld [vmem:[%s4089_s7 + $0x3] ss:$0 sm:$0xff] }
 0x7f5   :  { %v1516_v51 = vpop.f32.mrf.mxu2  ;;  %v1539_v10 = vpop.f32.mrf.mxu3  ;;  %1805 = vmatpush.msrb.mxu1 %v2303_v19 }
 0x7f6   :  { %v1517_v12 = vadd.f32 %v2318_v41, %v1516_v51 }
 0x7f7   :  { %1806 = vmatpush.msrb.mxu1 %v2301_v4 }
 0x7f8   :  { %v1540_v13 = vadd.f32 %v1539_v10, %v1517_v12  ;;  %1602 = vmatmul.f32.gmra.mxu0 %v3433_v31 }
 0x7f9   :  { %1807 = vmatpush.msrb.mxu1 %v2299_v24 }
 0x7fa   :  { %2282 = vmatpush.xpose.msk.msra.mxu2 %vm295_vm0, %v1540_v13 }
 0x7fb   :  { %1808 = vmatpush.msrb.mxu1 %v2297_v26 }
 0x7fc   :  { %1625 = vmatmul.f32.gmra.mxu1 %v3442_v33 }
 0x7fd   :  { %v1519_v14 = vpop.f32.mrf.mxu2  ;;  %2283 = vmatmul.msk.f32.vlgmr.msra.gmra.mxu2 %vm295_vm0, %v1456_v54  ;;  %v1542_v15 = vpop.f32.mrf.mxu3  ;;  %1809 = vmatpush.msrb.mxu1 %v2295_v29 }
 0x7fe   :  { %v1520_v17 = vadd.f32 %v2318_v41, %v1519_v14 }
 0x7ff   :  { %1810 = vmatpush.msrb.mxu1 %v2293_v32 }
 0x800   :  { %v1543_v59 = vadd.f32 %v1542_v15, %v1520_v17 }
 0x801   :  { %1811 = vmatpush.msrb.mxu1 %v2291_v35 }
 0x802   :  { %2284 = vmatpush.xpose.msk.msra.mxu3 %vm295_vm0, %v1543_v59 }
 0x803   :  { %1812 = vmatpush.msrb.mxu1 %v2289_v48 }
 0x805   :  { %2285 = vmatmul.msk.f32.vlgmr.msra.gmra.mxu3 %vm295_vm0, %v1459_v60  ;;  %v2302_v60 = vld [vmem:[%s4090_s8 + $0x1f0] sm:$0xff] }
 0x806   :  { %1782 = vmatpush.msrb.mxu0 %v2302_v60 }
 0x808   :  { %1783 = vmatpush.msrb.mxu0 %v2300_v20 }
 0x80a   :  { %1784 = vmatpush.msrb.mxu0 %v2298_v23 }
 0x80c   :  { %1785 = vmatpush.msrb.mxu0 %v2296_v5 }
 0x80e   :  { %1786 = vmatpush.msrb.mxu0 %v2294_v28 }
 0x810   :  { %1787 = vmatpush.msrb.mxu0 %v2292_v30 }
 0x812   :  { %1788 = vmatpush.msrb.mxu0 %v2290_v34 }
 0x814   :  { %1789 = vmatpush.msrb.mxu0 %v2288_v47 }
 0x86d   :  { %v1600_v31 = vpop.f32.mrf.mxu0 }
 0x86e   :  { %v1601_v33 = vadd.f32 %v2320_v25, %v1600_v31 }
 0x871   :  { %v1623_v14 = vpop.f32.mrf.mxu1 }
 0x872   :  { %v1624_v15 = vadd.f32 %v1623_v14, %v1601_v33 }
 0x874   :  { %1723 = vmatpush.msrb.mxu2 %v1624_v15 }
 0x875   :  { %v1603_v16 = vpop.f32.mrf.mxu0 }
 0x876   :  { %v1604_v17 = vadd.f32 %v2320_v25, %v1603_v16 }
 0x879   :  { %v1626_v18 = vpop.f32.mrf.mxu1 }
 0x87a   :  { %v1627_v59 = vadd.f32 %v1626_v18, %v1604_v17 }
 0x87c   :  { %1746 = vmatpush.msrb.mxu3 %v1627_v59 }
 0x880   :  { %v1652_v49 = vpop.f32.mrf.mxu2 }
 0x881   :  { %v1681_v53 = vmul.f32 0.125, %v1652_v49 }
 0x883   :  { %v1683_v3 = vsel %vm350_vm1, %v1681_v53, -inf }
 0x884   :  { %1684 = vmax.xlane.f32.xlu0 %v1683_v3 }
 0x888   :  { %v1678_v6 = vpop.f32.mrf.mxu3 }
 0x889   :  { %v1682_v57 = vmul.f32 0.125, %v1678_v6  ;;  %v1830_v6 = vperm.slane %v1828_v50, 0 }
 0x88b   :  { %v1686_v58 = vsel %vm350_vm1, %v1682_v57, -inf }
 0x88c   :  { %1687 = vmax.xlane.f32.xlu1 %v1686_v58 }
 0x8f7   :  { %v1685_v41 = vpop.xlane.xlu0 %1684 }
 0x8f8   :  { %v1689_v1 = vsub.f32 %v1681_v53, %v1685_v41 }
 0x8fa   :  { %v1691_v51 = vmul.f32 1.442695, %v1689_v1 }
 0x8fc   :  { %2345 = vpow2.f32 %v1691_v51 }
 0x8ff   :  { %v1688_v10 = vpop.xlane.xlu1 %1687 }
 0x900   :  { %v1690_v11 = vsub.f32 %v1682_v57, %v1688_v10  ;;  %v1831_v57 = vperm.slane %v1828_v50, 1 }
 0x902   :  { %v2346_v12 = vpop.eup %2345  ;;  %v1693_v13 = vmul.f32 1.442695, %v1690_v11  ;;  %v2369_v11 = vmov 256.0  }
 0x903   :  { %v1695_v54 = vsel %vm350_vm1, %v2346_v12, 0.0 }
 0x904   :  { %2347 = vpow2.f32 %v1693_v13  ;;  %1696 = vadd.xlane.f32.xlu2 %v1695_v54 }
 0x90a   :  { %v2348_v21 = vpop.eup %2347 }
 0x90b   :  { %v1698_v55 = vsel %vm350_vm1, %v2348_v21, 0.0 }
 0x90c   :  { %1699 = vadd.xlane.f32.xlu0 %v1698_v55 }
 0x977   :  { %v1697_v42 = vpop.xlane.xlu2 %1696 }
 0x978   :  { %2349 = vrcp.f32 %v1697_v42  ;;  %v1895_v42 = vld [vmem:[%s4092_s10] sm:$0x3] }
 0x979   :  { %v1897_v47 = vperm.slane %v1895_v42, 0  ;;  %v1898_v48 = vperm.slane %v1895_v42, 1 }
 0x97e   :  { %v2350_v43 = vpop.eup %2349 }
 0x97f   :  { %v1703_v22 = vmul.f32 %v2350_v43, %v2346_v12  ;;  %v1700_v44 = vpop.xlane.xlu0 %1699 }
 0x980   :  { %2351 = vrcp.f32 %v1700_v44  ;;  %v1905_v44 = vld [vmem:[%s4093_s11] sm:$0x3] }
 0x981   :  { %2286 = vmatmul.msk.f32.vlgmr.msrb.gmra.mxu2 %vm350_vm1, %v1703_v22  ;;  %2353 = vrcp.f32 %v2369_v11  ;;  %v1907_v50 = vperm.slane %v1905_v44, 0 }
 0x986   :  { %v2352_v45 = vpop.eup %2351 }
 0x987   :  { %v1704_v46 = vmul.f32 %v2352_v45, %v2348_v21 }
 0x989   :  { %2287 = vmatmul.msk.f32.vlgmr.msrb.gmra.mxu3 %vm350_vm1, %v1704_v46 }
 0xa04   :  { %v1725_v27 = vpop.f32.mrf.mxu2 }
 0xa05   :  { %2304 = vmatmul.msk.f32.vlgmr.msrb.gmra.mxu0 %vm295_vm0, %v1725_v27  ;;  %2306 = vmatmul.msk.f32.vlgmr.msrb.gmra.mxu1 %vm295_vm0, %v1725_v27 }
 0xa0c   :  { %v1748_v49 = vpop.f32.mrf.mxu3 }
 0xa0d   :  { %2305 = vmatmul.msk.f32.gmra.mxu0 %vm295_vm0, %v1748_v49  ;;  %2307 = vmatmul.msk.f32.gmra.mxu1 %vm295_vm0, %v1748_v49 }
 0xa82   :  { %v1791_v52 = vpop.f32.mrf.mxu0  ;;  %v1814_v53 = vpop.f32.mrf.mxu1 }
 0xa83   :  { %v1820_v56 = vadd.f32 %v1791_v52, %v3868_v62  ;;  %v1821_v3 = vadd.f32 %v1814_v53, %v3870_v63  ;;  %v2367_v62 = vld [vmem:[%s4086_s0 + $0x10] sm:$0xff]  ;;  %v1908_v52 = vperm.slane %v1905_v44, 1 }
 0xa85   :  { %v1824_v58 = vadd.f32 %v3452_v36, %v1820_v56  ;;  %v1825_v38 = vadd.f32 %v3458_v37, %v1821_v3  ;;  %v2368_v36 = vld [vmem:[%s4086_s0 + $0x18] sm:$0xff] }
 0xa87   :  { %v1834_v39 = vadd.f32 %v1830_v6, %v1824_v58  ;;  %v1835_v61 = vadd.f32 %v1831_v57, %v1825_v38 }
 0xa89   :  { %v1838_v0 = vadd.f32 %v1835_v61, %v1834_v39 }
 0xa8a   :  { %v1794_v7 = vpop.f32.mrf.mxu0  ;;  %v1817_v9 = vpop.f32.mrf.mxu1 }
 0xa8b   :  { %v1822_v40 = vadd.f32 %v1794_v7, %v3873_v2  ;;  %v1823_v41 = vadd.f32 %v1817_v9, %v3876_v8  ;;  %1839 = vadd.xlane.f32.xlu1 %v1838_v0  ;;  %v2354_v2 = vpop.eup %2353 }
 0xa8c   :  { %v1845_v12 = vmul.f32 256.0, %v2354_v2  ;;  %vm1849_vm2 = vweird.f32 %v2354_v2 }
 0xa8d   :  { %v1826_v63 = vadd.f32 %v2367_v62, %v1822_v40  ;;  %v1827_v37 = vadd.f32 %v2368_v36, %v1823_v41 }
 0xa8e   :  { %v1846_v8 = vsub.f32 1.0, %v1845_v12 }
 0xa8f   :  { %v1836_v1 = vadd.f32 %v1830_v6, %v1826_v63  ;;  %v1837_v51 = vadd.f32 %v1831_v57, %v1827_v37 }
 0xa90   :  { %v1847_v13 = vmul.f32 %v2354_v2, %v1846_v8 }
 0xa91   :  { %v1841_v10 = vadd.f32 %v1837_v51, %v1836_v1 }
 0xa92   :  { %v1848_v54 = vadd.f32 %v2354_v2, %v1847_v13 }
 0xa93   :  { %1842 = vadd.xlane.f32.xlu2 %v1841_v10 }
 0xa94   :  { %v1850_v21 = vsel %vm1849_vm2, %v2354_v2, %v1848_v54 }
 0xafe   :  { %v1840_v55 = vpop.xlane.xlu1 %1839 }
 0xaff   :  { %v1851_v25 = vmul.f32 %v1850_v21, %v1840_v55 }
 0xb01   :  { %v1853_v31 = vsub.f32 %v1834_v39, %v1851_v25  ;;  %v1854_v33 = vsub.f32 %v1835_v61, %v1851_v25 }
 0xb03   :  { %v1857_v14 = vmul.f32 %v1853_v31, %v1853_v31  ;;  %v1858_v15 = vmul.f32 %v1854_v33, %v1854_v33 }
 0xb05   :  { %v1861_v16 = vadd.f32 %v1858_v15, %v1857_v14 }
 0xb06   :  { %v1843_v17 = vpop.xlane.xlu2 %1842 }
 0xb07   :  { %v1852_v18 = vmul.f32 %v1850_v21, %v1843_v17  ;;  %1862 = vadd.xlane.f32.xlu0 %v1861_v16 }
 0xb09   :  { %v1855_v59 = vsub.f32 %v1836_v1, %v1852_v18  ;;  %v1856_v60 = vsub.f32 %v1837_v51, %v1852_v18 }
 0xb0b   :  { %v1859_v19 = vmul.f32 %v1855_v59, %v1855_v59  ;;  %v1860_v20 = vmul.f32 %v1856_v60, %v1856_v60 }
 0xb0d   :  { %v1864_v4 = vadd.f32 %v1860_v20, %v1859_v19 }
 0xb0f   :  { %1865 = vadd.xlane.f32.xlu1 %v1864_v4 }
 0xb7a   :  { %v1863_v23 = vpop.xlane.xlu0 %1862 }
 0xb7b   :  { %v1867_v24 = vmul.f32 %v1863_v23, %v1850_v21 }
 0xb7d   :  { %v1869_v5 = vadd.f32 1e-05, %v1867_v24 }
 0xb7f   :  { %2355 = vrsqrt.f32 %v1869_v5  ;;  %vm1877_vm4 = vweird.f32 %v1869_v5 }
 0xb82   :  { %v1866_v26 = vpop.xlane.xlu1 %1865 }
 0xb83   :  { %v1868_v28 = vmul.f32 %v1866_v26, %v1850_v21 }
 0xb85   :  { %v2356_v29 = vpop.eup %2355  ;;  %v1870_v30 = vadd.f32 1e-05, %v1868_v28 }
 0xb86   :  { %v1872_v32 = vmul.f32 %v2356_v29, %v1869_v5  ;;  %vm1878_vm3 = vweird.f32 %v2356_v29 }
 0xb87   :  { %2357 = vrsqrt.f32 %v1870_v30  ;;  %vm1879_vm5 = vmor %vm1877_vm4, %vm1878_vm3  ;;  %vm1887_vm7 = vweird.f32 %v1870_v30 }
 0xb88   :  { %v1873_v34 = vmul.f32 %v2356_v29, %v1872_v32 }
 0xb8a   :  { %v1874_v35 = vmul.f32 0.5, %v1873_v34 }
 0xb8c   :  { %v1875_v43 = vsub.f32 1.5, %v1874_v35 }
 0xb8d   :  { %v2358_v22 = vpop.eup %2357 }
 0xb8e   :  { %v1876_v45 = vmul.f32 %v2356_v29, %v1875_v43  ;;  %v1882_v46 = vmul.f32 %v2358_v22, %v1870_v30  ;;  %vm1888_vm6 = vweird.f32 %v2358_v22 }
 0xb8f   :  { %vm1889_vm8 = vmor %vm1887_vm7, %vm1888_vm6 }
 0xb90   :  { %v1880_v27 = vsel %vm1879_vm5, %v2356_v29, %v1876_v45  ;;  %v1883_v49 = vmul.f32 %v2358_v22, %v1882_v46 }
 0xb91   :  { %v1891_v53 = vmul.f32 %v1880_v27, %v1853_v31  ;;  %v1892_v56 = vmul.f32 %v1880_v27, %v1854_v33 }
 0xb92   :  { %v1884_v3 = vmul.f32 0.5, %v1883_v49 }
 0xb93   :  { %v1901_v6 = vmul.f32 %v1897_v47, %v1891_v53  ;;  %v1902_v57 = vmul.f32 %v1898_v48, %v1892_v56 }
 0xb94   :  { %v1885_v58 = vsub.f32 1.5, %v1884_v3 }
 0xb95   :  { %v1911_v38 = vadd.f32 %v1907_v50, %v1901_v6  ;;  %v1912_v39 = vadd.f32 %v1908_v52, %v1902_v57 }
 0xb96   :  { %v1886_v61 = vmul.f32 %v2358_v22, %v1885_v58 }
 0xb97   :  { %1915 = vst [vmem:[%s4094_s12] sm:$0xff] %v1911_v38 }
 0xb98   :  { %1916 = vst [vmem:[%s4094_s12 + $0x8] sm:$0xff] %v1912_v39  ;;  %v1890_v0 = vsel %vm1889_vm8, %v2358_v22, %v1886_v61 }
 0xb99   :  { %v1893_v7 = vmul.f32 %v1890_v0, %v1855_v59  ;;  %v1894_v9 = vmul.f32 %v1890_v0, %v1856_v60 }
 0xb9b   :  { %v1903_v40 = vmul.f32 %v1897_v47, %v1893_v7  ;;  %v1904_v41 = vmul.f32 %v1898_v48, %v1894_v9 }
 0xb9d   :  { %v1913_v62 = vadd.f32 %v1907_v50, %v1903_v40  ;;  %v1914_v63 = vadd.f32 %v1908_v52, %v1904_v41 }
 0xb9f   :  { %1917 = vst [vmem:[%s4094_s12 + $0x10] sm:$0xff] %v1913_v62 }
 0xba0   :  { %1918 = vst [vmem:[%s4094_s12 + $0x18] sm:$0xff] %v1914_v63 }

// kernel: emodel_forward.20
= control target key start
LH: loop header
LB: loop body
LE: loop exit
PB: predicated region body
PF: predicated region fallthrough
CT: control target
= control target key end

     0   :  { %12 = vsyncpa [#allocation3], 0  ;;  %s1468_s27 = smov [#allocation2]   ;;  %s1469_s29 = smov 256   ;;  %s2510_s0 = inlined_call_operand.vmem [shape: f32[16,256], index: 0, kind: input, shape index: {}]   ;;  %s2511_s1 = inlined_call_operand.vmem [shape: f32[256,1024], index: 1, kind: input, shape index: {}]   ;;  %s2512_s2 = inlined_call_operand.vmem [shape: f32[1,1024], index: 2, kind: input, shape index: {}]   ;;  %s2513_s3 = inlined_call_operand.hbm [shape: f32[1024,256], index: 3, kind: input, shape index: {}]   ;;  %s2514_s4 = inlined_call_operand.vmem [shape: f32[1,256], index: 4, kind: input, shape index: {}]   ;;  %s2515_s5 = inlined_call_operand.vmem [shape: f32[1,256], index: 5, kind: input, shape index: {}]   ;;  %s2516_s6 = inlined_call_operand.vmem [shape: f32[1,256], index: 6, kind: input, shape index: {}]   ;;  %s2517_s7 = inlined_call_operand.vmem [shape: f32[16,256], index: 7, kind: output, shape index: {}]  }
   0x1   :  { %s23_s26 = sshll.u32 %s2513_s3, 4  ;;  %s25_s28 = sshll.u32 %s1468_s27, 4  ;;  %s24_s26 = int_to_ptr.hbm [resolvable:$true] %s23_s26  ;;  %s26_s28 = int_to_ptr.vmem [resolvable:$true] %s25_s28 }
   0x2   :  { %s1470_s30 = smov 16  }
   0x3   :  { %31 = dma.hbm_to_vmem [thread:$0]  %s24_s26, 32768, %s26_s28, [#allocation3], %s1469_s29, %s1469_s29, %s1470_s30  }
   0x4   :  { %1466 = dma.done.wait [#allocation3], 32768  }
   0x5   :  { %1467 = vsyncadd [#allocation3], 4294934528  ;;  %v166_v0 = vld [vmem:[%s2511_s1 + $0x3c0] sm:$0xff]  ;;  %v167_v1 = vld [vmem:[%s2511_s1 + $0x3c8] sm:$0xff] }
   0x6   :  { %v158_v2 = vld [vmem:[%s2511_s1 + $0x380] sm:$0xff]  ;;  %320 = vmatpush.msra.mxu0 %v166_v0  ;;  %366 = vmatpush.msra.mxu2 %v167_v1  ;;  %v159_v4 = vld [vmem:[%s2511_s1 + $0x388] sm:$0xff]  ;;  %v168_v62 = vld [vmem:[%s2511_s1 + $0x3d0] sm:$0xff] }
   0x7   :  { %v294_v3 = vld [vmem:[%s2511_s1 + $0x7c0] sm:$0xff]  ;;  %v295_v5 = vld [vmem:[%s2511_s1 + $0x7c8] sm:$0xff]  ;;  %v169_v63 = vld [vmem:[%s2511_s1 + $0x3d8] sm:$0xff] }
   0x8   :  { %343 = vmatpush.msra.mxu1 %v294_v3  ;;  %389 = vmatpush.msra.mxu3 %v295_v5  ;;  %v150_v6 = vld [vmem:[%s2511_s1 + $0x340] sm:$0xff]  ;;  %v151_v8 = vld [vmem:[%s2511_s1 + $0x348] sm:$0xff]  ;;  %v296_v3 = vld [vmem:[%s2511_s1 + $0x7d0] sm:$0xff] }
   0x9   :  { %v286_v7 = vld [vmem:[%s2511_s1 + $0x780] sm:$0xff]  ;;  %321 = vmatpush.msra.mxu0 %v158_v2  ;;  %367 = vmatpush.msra.mxu2 %v159_v4  ;;  %v287_v9 = vld [vmem:[%s2511_s1 + $0x788] sm:$0xff]  ;;  %v160_v2 = vld [vmem:[%s2511_s1 + $0x390] sm:$0xff] }
   0xa   :  { %v278_v10 = vld [vmem:[%s2511_s1 + $0x740] sm:$0xff]  ;;  %344 = vmatpush.msra.mxu1 %v286_v7  ;;  %390 = vmatpush.msra.mxu3 %v287_v9  ;;  %v143_v12 = vld [vmem:[%s2511_s1 + $0x308] sm:$0xff]  ;;  %v161_v4 = vld [vmem:[%s2511_s1 + $0x398] sm:$0xff] }
   0xb   :  { %v142_v11 = vld [vmem:[%s2511_s1 + $0x300] sm:$0xff]  ;;  %v279_v13 = vld [vmem:[%s2511_s1 + $0x748] sm:$0xff]  ;;  %322 = vmatpush.msra.mxu0 %v150_v6  ;;  %368 = vmatpush.msra.mxu2 %v151_v8  ;;  %v297_v5 = vld [vmem:[%s2511_s1 + $0x7d8] sm:$0xff] }
   0xc   :  { %v270_v14 = vld [vmem:[%s2511_s1 + $0x700] sm:$0xff]  ;;  %v271_v15 = vld [vmem:[%s2511_s1 + $0x708] sm:$0xff]  ;;  %345 = vmatpush.msra.mxu1 %v278_v10  ;;  %391 = vmatpush.msra.mxu3 %v279_v13  ;;  %v152_v6 = vld [vmem:[%s2511_s1 + $0x350] sm:$0xff] }
   0xd   :  { %v134_v16 = vld [vmem:[%s2511_s1 + $0x2c0] sm:$0xff]  ;;  %v135_v17 = vld [vmem:[%s2511_s1 + $0x2c8] sm:$0xff]  ;;  %323 = vmatpush.msra.mxu0 %v142_v11  ;;  %369 = vmatpush.msra.mxu2 %v143_v12  ;;  %v288_v7 = vld [vmem:[%s2511_s1 + $0x790] sm:$0xff] }
   0xe   :  { %v262_v18 = vld [vmem:[%s2511_s1 + $0x6c0] sm:$0xff]  ;;  %v263_v19 = vld [vmem:[%s2511_s1 + $0x6c8] sm:$0xff]  ;;  %346 = vmatpush.msra.mxu1 %v270_v14  ;;  %392 = vmatpush.msra.mxu3 %v271_v15  ;;  %v153_v8 = vld [vmem:[%s2511_s1 + $0x358] sm:$0xff] }
   0xf   :  { %v126_v20 = vld [vmem:[%s2511_s1 + $0x280] sm:$0xff]  ;;  %v127_v21 = vld [vmem:[%s2511_s1 + $0x288] sm:$0xff]  ;;  %324 = vmatpush.msra.mxu0 %v134_v16  ;;  %370 = vmatpush.msra.mxu2 %v135_v17  ;;  %v289_v9 = vld [vmem:[%s2511_s1 + $0x798] sm:$0xff] }
  0x10   :  { %v254_v22 = vld [vmem:[%s2511_s1 + $0x680] sm:$0xff]  ;;  %v255_v23 = vld [vmem:[%s2511_s1 + $0x688] sm:$0xff]  ;;  %347 = vmatpush.msra.mxu1 %v262_v18  ;;  %393 = vmatpush.msra.mxu3 %v263_v19  ;;  %v144_v10 = vld [vmem:[%s2511_s1 + $0x310] sm:$0xff] }
  0x11   :  { %v118_v24 = vld [vmem:[%s2511_s1 + $0x240] sm:$0xff]  ;;  %v119_v25 = vld [vmem:[%s2511_s1 + $0x248] sm:$0xff]  ;;  %325 = vmatpush.msra.mxu0 %v126_v20  ;;  %371 = vmatpush.msra.mxu2 %v127_v21  ;;  %v280_v11 = vld [vmem:[%s2511_s1 + $0x750] sm:$0xff] }
  0x12   :  { %v246_v26 = vld [vmem:[%s2511_s1 + $0x640] sm:$0xff]  ;;  %v247_v27 = vld [vmem:[%s2511_s1 + $0x648] sm:$0xff]  ;;  %348 = vmatpush.msra.mxu1 %v254_v22  ;;  %394 = vmatpush.msra.mxu3 %v255_v23  ;;  %v145_v12 = vld [vmem:[%s2511_s1 + $0x318] sm:$0xff] }
  0x13   :  { %v110_v28 = vld [vmem:[%s2511_s1 + $0x200] sm:$0xff]  ;;  %v111_v29 = vld [vmem:[%s2511_s1 + $0x208] sm:$0xff]  ;;  %326 = vmatpush.msra.mxu0 %v118_v24  ;;  %372 = vmatpush.msra.mxu2 %v119_v25  ;;  %v281_v13 = vld [vmem:[%s2511_s1 + $0x758] sm:$0xff] }
  0x14   :  { %v238_v30 = vld [vmem:[%s2511_s1 + $0x600] sm:$0xff]  ;;  %v239_v31 = vld [vmem:[%s2511_s1 + $0x608] sm:$0xff]  ;;  %349 = vmatpush.msra.mxu1 %v246_v26  ;;  %395 = vmatpush.msra.mxu3 %v247_v27  ;;  %v136_v14 = vld [vmem:[%s2511_s1 + $0x2d0] sm:$0xff] }
  0x15   :  { %v102_v32 = vld [vmem:[%s2511_s1 + $0x1c0] sm:$0xff]  ;;  %v103_v33 = vld [vmem:[%s2511_s1 + $0x1c8] sm:$0xff]  ;;  %327 = vmatpush.msra.mxu0 %v110_v28  ;;  %373 = vmatpush.msra.mxu2 %v111_v29  ;;  %v272_v15 = vld [vmem:[%s2511_s1 + $0x710] sm:$0xff] }
  0x16   :  { %v230_v34 = vld [vmem:[%s2511_s1 + $0x5c0] sm:$0xff]  ;;  %v231_v35 = vld [vmem:[%s2511_s1 + $0x5c8] sm:$0xff]  ;;  %350 = vmatpush.msra.mxu1 %v238_v30  ;;  %396 = vmatpush.msra.mxu3 %v239_v31  ;;  %v137_v16 = vld [vmem:[%s2511_s1 + $0x2d8] sm:$0xff] }
  0x17   :  { %v94_v36 = vld [vmem:[%s2511_s1 + $0x180] sm:$0xff]  ;;  %v95_v37 = vld [vmem:[%s2511_s1 + $0x188] sm:$0xff]  ;;  %328 = vmatpush.msra.mxu0 %v102_v32  ;;  %374 = vmatpush.msra.mxu2 %v103_v33  ;;  %v273_v17 = vld [vmem:[%s2511_s1 + $0x718] sm:$0xff] }
  0x18   :  { %v222_v38 = vld [vmem:[%s2511_s1 + $0x580] sm:$0xff]  ;;  %v223_v39 = vld [vmem:[%s2511_s1 + $0x588] sm:$0xff]  ;;  %351 = vmatpush.msra.mxu1 %v230_v34  ;;  %397 = vmatpush.msra.mxu3 %v231_v35  ;;  %v128_v18 = vld [vmem:[%s2511_s1 + $0x290] sm:$0xff] }
  0x19   :  { %v86_v40 = vld [vmem:[%s2511_s1 + $0x140] sm:$0xff]  ;;  %v87_v41 = vld [vmem:[%s2511_s1 + $0x148] sm:$0xff]  ;;  %329 = vmatpush.msra.mxu0 %v94_v36  ;;  %375 = vmatpush.msra.mxu2 %v95_v37  ;;  %v264_v19 = vld [vmem:[%s2511_s1 + $0x6d0] sm:$0xff] }
  0x1a   :  { %v214_v42 = vld [vmem:[%s2511_s1 + $0x540] sm:$0xff]  ;;  %v215_v43 = vld [vmem:[%s2511_s1 + $0x548] sm:$0xff]  ;;  %352 = vmatpush.msra.mxu1 %v222_v38  ;;  %398 = vmatpush.msra.mxu3 %v223_v39  ;;  %v129_v20 = vld [vmem:[%s2511_s1 + $0x298] sm:$0xff] }
  0x1b   :  { %v78_v44 = vld [vmem:[%s2511_s1 + $0x100] sm:$0xff]  ;;  %v79_v45 = vld [vmem:[%s2511_s1 + $0x108] sm:$0xff]  ;;  %330 = vmatpush.msra.mxu0 %v86_v40  ;;  %376 = vmatpush.msra.mxu2 %v87_v41  ;;  %v265_v21 = vld [vmem:[%s2511_s1 + $0x6d8] sm:$0xff] }
  0x1c   :  { %v206_v46 = vld [vmem:[%s2511_s1 + $0x500] sm:$0xff]  ;;  %v207_v47 = vld [vmem:[%s2511_s1 + $0x508] sm:$0xff]  ;;  %353 = vmatpush.msra.mxu1 %v214_v42  ;;  %399 = vmatpush.msra.mxu3 %v215_v43  ;;  %v120_v22 = vld [vmem:[%s2511_s1 + $0x250] sm:$0xff] }
  0x1d   :  { %v70_v48 = vld [vmem:[%s2511_s1 + $0xc0] sm:$0xff]  ;;  %v71_v49 = vld [vmem:[%s2511_s1 + $0xc8] sm:$0xff]  ;;  %331 = vmatpush.msra.mxu0 %v78_v44  ;;  %377 = vmatpush.msra.mxu2 %v79_v45  ;;  %v256_v23 = vld [vmem:[%s2511_s1 + $0x690] sm:$0xff] }
  0x1e   :  { %v198_v50 = vld [vmem:[%s2511_s1 + $0x4c0] sm:$0xff]  ;;  %v199_v51 = vld [vmem:[%s2511_s1 + $0x4c8] sm:$0xff]  ;;  %354 = vmatpush.msra.mxu1 %v206_v46  ;;  %400 = vmatpush.msra.mxu3 %v207_v47  ;;  %v121_v24 = vld [vmem:[%s2511_s1 + $0x258] sm:$0xff] }
  0x1f   :  { %v62_v52 = vld [vmem:[%s2511_s1 + $0x80] sm:$0xff]  ;;  %v63_v53 = vld [vmem:[%s2511_s1 + $0x88] sm:$0xff]  ;;  %332 = vmatpush.msra.mxu0 %v70_v48  ;;  %378 = vmatpush.msra.mxu2 %v71_v49  ;;  %v257_v25 = vld [vmem:[%s2511_s1 + $0x698] sm:$0xff] }
  0x20   :  { %v190_v54 = vld [vmem:[%s2511_s1 + $0x480] sm:$0xff]  ;;  %v191_v55 = vld [vmem:[%s2511_s1 + $0x488] sm:$0xff]  ;;  %355 = vmatpush.msra.mxu1 %v198_v50  ;;  %401 = vmatpush.msra.mxu3 %v199_v51  ;;  %v112_v26 = vld [vmem:[%s2511_s1 + $0x210] sm:$0xff] }
  0x21   :  { %v54_v56 = vld [vmem:[%s2511_s1 + $0x40] sm:$0xff]  ;;  %v55_v57 = vld [vmem:[%s2511_s1 + $0x48] sm:$0xff]  ;;  %333 = vmatpush.msra.mxu0 %v62_v52  ;;  %379 = vmatpush.msra.mxu2 %v63_v53  ;;  %v248_v27 = vld [vmem:[%s2511_s1 + $0x650] sm:$0xff] }
  0x22   :  { %v182_v58 = vld [vmem:[%s2511_s1 + $0x440] sm:$0xff]  ;;  %v183_v59 = vld [vmem:[%s2511_s1 + $0x448] sm:$0xff]  ;;  %356 = vmatpush.msra.mxu1 %v190_v54  ;;  %402 = vmatpush.msra.mxu3 %v191_v55  ;;  %v113_v28 = vld [vmem:[%s2511_s1 + $0x218] sm:$0xff] }
  0x23   :  { %v46_v60 = vld [vmem:[%s2511_s1] sm:$0xff]  ;;  %v47_v61 = vld [vmem:[%s2511_s1 + $0x8] sm:$0xff]  ;;  %334 = vmatpush.msra.mxu0 %v54_v56  ;;  %380 = vmatpush.msra.mxu2 %v55_v57  ;;  %v249_v29 = vld [vmem:[%s2511_s1 + $0x658] sm:$0xff] }
  0x24   :  { %357 = vmatpush.msra.mxu1 %v182_v58  ;;  %403 = vmatpush.msra.mxu3 %v183_v59  ;;  %v174_v0 = vld [vmem:[%s2511_s1 + $0x400] sm:$0xff]  ;;  %v175_v1 = vld [vmem:[%s2511_s1 + $0x408] sm:$0xff]  ;;  %v104_v31 = vld [vmem:[%s2511_s1 + $0x1d0] sm:$0xff] }
  0x25   :  { %335 = vmatpush.msra.mxu0 %v46_v60  ;;  %381 = vmatpush.msra.mxu2 %v47_v61  ;;  %v1800_v30 = vld [vmem:[%s2510_s0] sm:$0xff]  ;;  %v240_v32 = vld [vmem:[%s2511_s1 + $0x610] sm:$0xff]  ;;  %v105_v33 = vld [vmem:[%s2511_s1 + $0x1d8] sm:$0xff] }
  0x26   :  { %358 = vmatpush.msra.mxu1 %v174_v0  ;;  %404 = vmatpush.msra.mxu3 %v175_v1  ;;  %v241_v34 = vld [vmem:[%s2511_s1 + $0x618] sm:$0xff]  ;;  %v1819_v35 = vld [vmem:[%s2510_s0 + $0x8] sm:$0xff]  ;;  %v96_v36 = vld [vmem:[%s2511_s1 + $0x190] sm:$0xff] }
  0x27   :  { %412 = vmatpush.msrb.mxu0 %v168_v62  ;;  %458 = vmatpush.msrb.mxu2 %v169_v63  ;;  %v232_v37 = vld [vmem:[%s2511_s1 + $0x5d0] sm:$0xff]  ;;  %v97_v38 = vld [vmem:[%s2511_s1 + $0x198] sm:$0xff] }
  0x28   :  { %435 = vmatpush.msrb.mxu1 %v296_v3  ;;  %481 = vmatpush.msrb.mxu3 %v297_v5  ;;  %v233_v39 = vld [vmem:[%s2511_s1 + $0x5d8] sm:$0xff]  ;;  %v88_v40 = vld [vmem:[%s2511_s1 + $0x150] sm:$0xff]  ;;  %v171_v3 = vld [vmem:[%s2511_s1 + $0x3e8] sm:$0xff] }
  0x29   :  { %413 = vmatpush.msrb.mxu0 %v160_v2  ;;  %459 = vmatpush.msrb.mxu2 %v161_v4  ;;  %v224_v41 = vld [vmem:[%s2511_s1 + $0x590] sm:$0xff]  ;;  %v89_v42 = vld [vmem:[%s2511_s1 + $0x158] sm:$0xff]  ;;  %v170_v2 = vld [vmem:[%s2511_s1 + $0x3e0] sm:$0xff] }
  0x2a   :  { %436 = vmatpush.msrb.mxu1 %v288_v7  ;;  %482 = vmatpush.msrb.mxu3 %v289_v9  ;;  %v225_v43 = vld [vmem:[%s2511_s1 + $0x598] sm:$0xff]  ;;  %v80_v44 = vld [vmem:[%s2511_s1 + $0x110] sm:$0xff]  ;;  %v298_v7 = vld [vmem:[%s2511_s1 + $0x7e0] sm:$0xff] }
  0x2b   :  { %414 = vmatpush.msrb.mxu0 %v152_v6  ;;  %460 = vmatpush.msrb.mxu2 %v153_v8  ;;  %v216_v45 = vld [vmem:[%s2511_s1 + $0x550] sm:$0xff]  ;;  %v81_v46 = vld [vmem:[%s2511_s1 + $0x118] sm:$0xff]  ;;  %v162_v6 = vld [vmem:[%s2511_s1 + $0x3a0] sm:$0xff] }
  0x2c   :  { %437 = vmatpush.msrb.mxu1 %v280_v11  ;;  %483 = vmatpush.msrb.mxu3 %v281_v13  ;;  %v217_v47 = vld [vmem:[%s2511_s1 + $0x558] sm:$0xff]  ;;  %v1862_v48 = vld [vmem:[%s2510_s0 + $0x10] sm:$0xff]  ;;  %v163_v8 = vld [vmem:[%s2511_s1 + $0x3a8] sm:$0xff] }
  0x2d   :  { %415 = vmatpush.msrb.mxu0 %v144_v10  ;;  %461 = vmatpush.msrb.mxu2 %v145_v12  ;;  %v72_v49 = vld [vmem:[%s2511_s1 + $0xd0] sm:$0xff]  ;;  %v73_v51 = vld [vmem:[%s2511_s1 + $0xd8] sm:$0xff]  ;;  %v299_v9 = vld [vmem:[%s2511_s1 + $0x7e8] sm:$0xff] }
  0x2e   :  { %438 = vmatpush.msrb.mxu1 %v272_v15  ;;  %484 = vmatpush.msrb.mxu3 %v273_v17  ;;  %v208_v50 = vld [vmem:[%s2511_s1 + $0x510] sm:$0xff]  ;;  %v209_v52 = vld [vmem:[%s2511_s1 + $0x518] sm:$0xff]  ;;  %v154_v10 = vld [vmem:[%s2511_s1 + $0x360] sm:$0xff] }
  0x2f   :  { %416 = vmatpush.msrb.mxu0 %v136_v14  ;;  %462 = vmatpush.msrb.mxu2 %v137_v16  ;;  %v1881_v53 = vld [vmem:[%s2510_s0 + $0x18] sm:$0xff]  ;;  %v64_v54 = vld [vmem:[%s2511_s1 + $0x90] sm:$0xff]  ;;  %v290_v11 = vld [vmem:[%s2511_s1 + $0x7a0] sm:$0xff] }
  0x30   :  { %439 = vmatpush.msrb.mxu1 %v264_v19  ;;  %485 = vmatpush.msrb.mxu3 %v265_v21  ;;  %v200_v55 = vld [vmem:[%s2511_s1 + $0x4d0] sm:$0xff]  ;;  %v65_v56 = vld [vmem:[%s2511_s1 + $0x98] sm:$0xff]  ;;  %v155_v12 = vld [vmem:[%s2511_s1 + $0x368] sm:$0xff] }
  0x31   :  { %417 = vmatpush.msrb.mxu0 %v128_v18  ;;  %463 = vmatpush.msrb.mxu2 %v129_v20  ;;  %v201_v57 = vld [vmem:[%s2511_s1 + $0x4d8] sm:$0xff]  ;;  %v56_v58 = vld [vmem:[%s2511_s1 + $0x50] sm:$0xff]  ;;  %v291_v13 = vld [vmem:[%s2511_s1 + $0x7a8] sm:$0xff] }
  0x32   :  { %440 = vmatpush.msrb.mxu1 %v256_v23  ;;  %486 = vmatpush.msrb.mxu3 %v257_v25  ;;  %v192_v59 = vld [vmem:[%s2511_s1 + $0x490] sm:$0xff]  ;;  %v57_v60 = vld [vmem:[%s2511_s1 + $0x58] sm:$0xff]  ;;  %v146_v14 = vld [vmem:[%s2511_s1 + $0x320] sm:$0xff] }
  0x33   :  { %418 = vmatpush.msrb.mxu0 %v120_v22  ;;  %464 = vmatpush.msrb.mxu2 %v121_v24  ;;  %v193_v61 = vld [vmem:[%s2511_s1 + $0x498] sm:$0xff]  ;;  %v48_v62 = vld [vmem:[%s2511_s1 + $0x10] sm:$0xff]  ;;  %v282_v15 = vld [vmem:[%s2511_s1 + $0x760] sm:$0xff] }
  0x34   :  { %441 = vmatpush.msrb.mxu1 %v248_v27  ;;  %487 = vmatpush.msrb.mxu3 %v249_v29  ;;  %v184_v63 = vld [vmem:[%s2511_s1 + $0x450] sm:$0xff]  ;;  %v49_v0 = vld [vmem:[%s2511_s1 + $0x18] sm:$0xff]  ;;  %v147_v16 = vld [vmem:[%s2511_s1 + $0x328] sm:$0xff] }
  0x35   :  { %419 = vmatpush.msrb.mxu0 %v112_v26  ;;  %465 = vmatpush.msrb.mxu2 %v113_v28  ;;  %v185_v1 = vld [vmem:[%s2511_s1 + $0x458] sm:$0xff]  ;;  %v176_v4 = vld [vmem:[%s2511_s1 + $0x410] sm:$0xff]  ;;  %v283_v17 = vld [vmem:[%s2511_s1 + $0x768] sm:$0xff] }
  0x36   :  { %336 = vmatmul.f32.vlgmr.msra.gmra.mxu0 %v1800_v30  ;;  %382 = vmatmul.f32.vlgmr.msra.gmra.mxu2 %v1800_v30  ;;  %v177_v5 = vld [vmem:[%s2511_s1 + $0x418] sm:$0xff]  ;;  %v138_v18 = vld [vmem:[%s2511_s1 + $0x2e0] sm:$0xff]  ;;  %v139_v20 = vld [vmem:[%s2511_s1 + $0x2e8] sm:$0xff] }
  0x37   :  { %420 = vmatpush.msrb.mxu0 %v104_v31  ;;  %442 = vmatpush.msrb.mxu1 %v240_v32  ;;  %v274_v19 = vld [vmem:[%s2511_s1 + $0x720] sm:$0xff]  ;;  %v275_v21 = vld [vmem:[%s2511_s1 + $0x728] sm:$0xff] }
  0x38   :  { %466 = vmatpush.msrb.mxu2 %v105_v33  ;;  %488 = vmatpush.msrb.mxu3 %v241_v34  ;;  %v130_v22 = vld [vmem:[%s2511_s1 + $0x2a0] sm:$0xff]  ;;  %v131_v24 = vld [vmem:[%s2511_s1 + $0x2a8] sm:$0xff] }
  0x39   :  { %359 = vmatmul.f32.vlgmr.msra.gmra.mxu1 %v1819_v35  ;;  %405 = vmatmul.f32.vlgmr.msra.gmra.mxu3 %v1819_v35  ;;  %v266_v23 = vld [vmem:[%s2511_s1 + $0x6e0] sm:$0xff]  ;;  %v267_v25 = vld [vmem:[%s2511_s1 + $0x6e8] sm:$0xff] }
  0x3a   :  { %421 = vmatpush.msrb.mxu0 %v96_v36  ;;  %443 = vmatpush.msrb.mxu1 %v232_v37  ;;  %v122_v26 = vld [vmem:[%s2511_s1 + $0x260] sm:$0xff]  ;;  %v123_v28 = vld [vmem:[%s2511_s1 + $0x268] sm:$0xff] }
  0x3b   :  { %467 = vmatpush.msrb.mxu2 %v97_v38  ;;  %489 = vmatpush.msrb.mxu3 %v233_v39  ;;  %v258_v27 = vld [vmem:[%s2511_s1 + $0x6a0] sm:$0xff]  ;;  %v259_v29 = vld [vmem:[%s2511_s1 + $0x6a8] sm:$0xff] }
  0x3c   :  { %422 = vmatpush.msrb.mxu0 %v88_v40  ;;  %444 = vmatpush.msrb.mxu1 %v224_v41  ;;  %v114_v31 = vld [vmem:[%s2511_s1 + $0x220] sm:$0xff]  ;;  %v115_v33 = vld [vmem:[%s2511_s1 + $0x228] sm:$0xff] }
  0x3d   :  { %468 = vmatpush.msrb.mxu2 %v89_v42  ;;  %490 = vmatpush.msrb.mxu3 %v225_v43  ;;  %v250_v32 = vld [vmem:[%s2511_s1 + $0x660] sm:$0xff]  ;;  %v251_v34 = vld [vmem:[%s2511_s1 + $0x668] sm:$0xff] }
  0x3e   :  { %423 = vmatpush.msrb.mxu0 %v80_v44  ;;  %445 = vmatpush.msrb.mxu1 %v216_v45  ;;  %v106_v36 = vld [vmem:[%s2511_s1 + $0x1e0] sm:$0xff]  ;;  %v107_v38 = vld [vmem:[%s2511_s1 + $0x1e8] sm:$0xff] }
  0x3f   :  { %469 = vmatpush.msrb.mxu2 %v81_v46  ;;  %491 = vmatpush.msrb.mxu3 %v217_v47  ;;  %v242_v37 = vld [vmem:[%s2511_s1 + $0x620] sm:$0xff]  ;;  %v243_v39 = vld [vmem:[%s2511_s1 + $0x628] sm:$0xff] }
  0x40   :  { %339 = vmatmul.f32.gmra.mxu0 %v1862_v48  ;;  %385 = vmatmul.f32.gmra.mxu2 %v1862_v48  ;;  %v98_v40 = vld [vmem:[%s2511_s1 + $0x1a0] sm:$0xff]  ;;  %v99_v42 = vld [vmem:[%s2511_s1 + $0x1a8] sm:$0xff] }
  0x41   :  { %424 = vmatpush.msrb.mxu0 %v72_v49  ;;  %446 = vmatpush.msrb.mxu1 %v208_v50  ;;  %v234_v41 = vld [vmem:[%s2511_s1 + $0x5e0] sm:$0xff]  ;;  %v235_v43 = vld [vmem:[%s2511_s1 + $0x5e8] sm:$0xff] }
  0x42   :  { %470 = vmatpush.msrb.mxu2 %v73_v51  ;;  %492 = vmatpush.msrb.mxu3 %v209_v52  ;;  %v90_v44 = vld [vmem:[%s2511_s1 + $0x160] sm:$0xff]  ;;  %v91_v46 = vld [vmem:[%s2511_s1 + $0x168] sm:$0xff] }
  0x43   :  { %362 = vmatmul.f32.gmra.mxu1 %v1881_v53  ;;  %408 = vmatmul.f32.gmra.mxu3 %v1881_v53  ;;  %v226_v45 = vld [vmem:[%s2511_s1 + $0x5a0] sm:$0xff]  ;;  %v227_v47 = vld [vmem:[%s2511_s1 + $0x5a8] sm:$0xff] }
  0x44   :  { %425 = vmatpush.msrb.mxu0 %v64_v54  ;;  %447 = vmatpush.msrb.mxu1 %v200_v55  ;;  %v218_v49 = vld [vmem:[%s2511_s1 + $0x560] sm:$0xff]  ;;  %v83_v51 = vld [vmem:[%s2511_s1 + $0x128] sm:$0xff] }
  0x45   :  { %471 = vmatpush.msrb.mxu2 %v65_v56  ;;  %493 = vmatpush.msrb.mxu3 %v201_v57  ;;  %v82_v50 = vld [vmem:[%s2511_s1 + $0x120] sm:$0xff]  ;;  %v219_v52 = vld [vmem:[%s2511_s1 + $0x568] sm:$0xff] }
  0x46   :  { %426 = vmatpush.msrb.mxu0 %v56_v58  ;;  %448 = vmatpush.msrb.mxu1 %v192_v59  ;;  %v74_v54 = vld [vmem:[%s2511_s1 + $0xe0] sm:$0xff]  ;;  %v75_v56 = vld [vmem:[%s2511_s1 + $0xe8] sm:$0xff] }
  0x47   :  { %472 = vmatpush.msrb.mxu2 %v57_v60  ;;  %494 = vmatpush.msrb.mxu3 %v193_v61  ;;  %v210_v55 = vld [vmem:[%s2511_s1 + $0x520] sm:$0xff]  ;;  %v211_v57 = vld [vmem:[%s2511_s1 + $0x528] sm:$0xff] }
  0x48   :  { %427 = vmatpush.msrb.mxu0 %v48_v62  ;;  %449 = vmatpush.msrb.mxu1 %v184_v63  ;;  %v66_v58 = vld [vmem:[%s2511_s1 + $0xa0] sm:$0xff]  ;;  %v67_v60 = vld [vmem:[%s2511_s1 + $0xa8] sm:$0xff] }
  0x49   :  { %473 = vmatpush.msrb.mxu2 %v49_v0  ;;  %495 = vmatpush.msrb.mxu3 %v185_v1  ;;  %v202_v59 = vld [vmem:[%s2511_s1 + $0x4e0] sm:$0xff]  ;;  %v203_v61 = vld [vmem:[%s2511_s1 + $0x4e8] sm:$0xff] }
  0x4a   :  { %428 = vmatmul.f32.vlgmr.msrb.gmra.mxu0 %v1800_v30  ;;  %474 = vmatmul.f32.vlgmr.msrb.gmra.mxu2 %v1800_v30  ;;  %v58_v62 = vld [vmem:[%s2511_s1 + $0x60] sm:$0xff]  ;;  %v59_v0 = vld [vmem:[%s2511_s1 + $0x68] sm:$0xff] }
  0x4b   :  { %504 = vmatpush.msra.mxu0 %v170_v2  ;;  %550 = vmatpush.msra.mxu2 %v171_v3  ;;  %v194_v63 = vld [vmem:[%s2511_s1 + $0x4a0] sm:$0xff]  ;;  %v195_v1 = vld [vmem:[%s2511_s1 + $0x4a8] sm:$0xff] }
  0x4c   :  { %450 = vmatpush.msrb.mxu1 %v176_v4  ;;  %496 = vmatpush.msrb.mxu3 %v177_v5  ;;  %v50_v2 = vld [vmem:[%s2511_s1 + $0x20] sm:$0xff]  ;;  %v51_v4 = vld [vmem:[%s2511_s1 + $0x28] sm:$0xff] }
  0x4d   :  { %451 = vmatmul.f32.vlgmr.msrb.gmra.mxu1 %v1819_v35  ;;  %497 = vmatmul.f32.vlgmr.msrb.gmra.mxu3 %v1819_v35  ;;  %v186_v3 = vld [vmem:[%s2511_s1 + $0x460] sm:$0xff]  ;;  %v187_v5 = vld [vmem:[%s2511_s1 + $0x468] sm:$0xff] }
  0x4e   :  { %505 = vmatpush.msra.mxu0 %v162_v6  ;;  %527 = vmatpush.msra.mxu1 %v298_v7  ;;  %v172_v6 = vld [vmem:[%s2511_s1 + $0x3f0] sm:$0xff]  ;;  %v173_v7 = vld [vmem:[%s2511_s1 + $0x3f8] sm:$0xff] }
  0x4f   :  { %551 = vmatpush.msra.mxu2 %v163_v8  ;;  %573 = vmatpush.msra.mxu3 %v299_v9  ;;  %v178_v8 = vld [vmem:[%s2511_s1 + $0x420] sm:$0xff]  ;;  %v179_v9 = vld [vmem:[%s2511_s1 + $0x428] sm:$0xff] }
  0x50   :  { %506 = vmatpush.msra.mxu0 %v154_v10  ;;  %528 = vmatpush.msra.mxu1 %v290_v11  ;;  %v164_v10 = vld [vmem:[%s2511_s1 + $0x3b0] sm:$0xff] }
  0x51   :  { %552 = vmatpush.msra.mxu2 %v155_v12  ;;  %574 = vmatpush.msra.mxu3 %v291_v13  ;;  %v300_v11 = vld [vmem:[%s2511_s1 + $0x7f0] sm:$0xff]  ;;  %v165_v12 = vld [vmem:[%s2511_s1 + $0x3b8] sm:$0xff] }
  0x52   :  { %507 = vmatpush.msra.mxu0 %v146_v14  ;;  %529 = vmatpush.msra.mxu1 %v282_v15  ;;  %v301_v13 = vld [vmem:[%s2511_s1 + $0x7f8] sm:$0xff]  ;;  %v156_v14 = vld [vmem:[%s2511_s1 + $0x370] sm:$0xff] }
  0x53   :  { %553 = vmatpush.msra.mxu2 %v147_v16  ;;  %575 = vmatpush.msra.mxu3 %v283_v17  ;;  %v292_v15 = vld [vmem:[%s2511_s1 + $0x7b0] sm:$0xff]  ;;  %v157_v16 = vld [vmem:[%s2511_s1 + $0x378] sm:$0xff] }
  0x54   :  { %508 = vmatpush.msra.mxu0 %v138_v18  ;;  %530 = vmatpush.msra.mxu1 %v274_v19  ;;  %v293_v17 = vld [vmem:[%s2511_s1 + $0x7b8] sm:$0xff]  ;;  %v148_v18 = vld [vmem:[%s2511_s1 + $0x330] sm:$0xff] }
  0x55   :  { %554 = vmatpush.msra.mxu2 %v139_v20  ;;  %576 = vmatpush.msra.mxu3 %v275_v21  ;;  %v284_v19 = vld [vmem:[%s2511_s1 + $0x770] sm:$0xff]  ;;  %v149_v20 = vld [vmem:[%s2511_s1 + $0x338] sm:$0xff] }
  0x56   :  { %509 = vmatpush.msra.mxu0 %v130_v22  ;;  %531 = vmatpush.msra.mxu1 %v266_v23  ;;  %v285_v21 = vld [vmem:[%s2511_s1 + $0x778] sm:$0xff]  ;;  %v140_v22 = vld [vmem:[%s2511_s1 + $0x2f0] sm:$0xff] }
  0x57   :  { %555 = vmatpush.msra.mxu2 %v131_v24  ;;  %577 = vmatpush.msra.mxu3 %v267_v25  ;;  %v276_v23 = vld [vmem:[%s2511_s1 + $0x730] sm:$0xff]  ;;  %v141_v24 = vld [vmem:[%s2511_s1 + $0x2f8] sm:$0xff] }
  0x58   :  { %510 = vmatpush.msra.mxu0 %v122_v26  ;;  %532 = vmatpush.msra.mxu1 %v258_v27  ;;  %v277_v25 = vld [vmem:[%s2511_s1 + $0x738] sm:$0xff]  ;;  %v132_v26 = vld [vmem:[%s2511_s1 + $0x2b0] sm:$0xff] }
  0x59   :  { %556 = vmatpush.msra.mxu2 %v123_v28  ;;  %578 = vmatpush.msra.mxu3 %v259_v29  ;;  %v268_v27 = vld [vmem:[%s2511_s1 + $0x6f0] sm:$0xff]  ;;  %v133_v28 = vld [vmem:[%s2511_s1 + $0x2b8] sm:$0xff] }
  0x5a   :  { %511 = vmatpush.msra.mxu0 %v114_v31  ;;  %533 = vmatpush.msra.mxu1 %v250_v32  ;;  %v269_v29 = vld [vmem:[%s2511_s1 + $0x6f8] sm:$0xff]  ;;  %v124_v31 = vld [vmem:[%s2511_s1 + $0x270] sm:$0xff] }
  0x5b   :  { %557 = vmatpush.msra.mxu2 %v115_v33  ;;  %579 = vmatpush.msra.mxu3 %v251_v34  ;;  %v260_v32 = vld [vmem:[%s2511_s1 + $0x6b0] sm:$0xff]  ;;  %v125_v33 = vld [vmem:[%s2511_s1 + $0x278] sm:$0xff] }
  0x5c   :  { %512 = vmatpush.msra.mxu0 %v106_v36  ;;  %534 = vmatpush.msra.mxu1 %v242_v37  ;;  %v261_v34 = vld [vmem:[%s2511_s1 + $0x6b8] sm:$0xff]  ;;  %v116_v36 = vld [vmem:[%s2511_s1 + $0x230] sm:$0xff] }
  0x5d   :  { %558 = vmatpush.msra.mxu2 %v107_v38  ;;  %580 = vmatpush.msra.mxu3 %v243_v39  ;;  %v252_v37 = vld [vmem:[%s2511_s1 + $0x670] sm:$0xff]  ;;  %v117_v38 = vld [vmem:[%s2511_s1 + $0x238] sm:$0xff] }
  0x5e   :  { %477 = vmatmul.f32.gmra.mxu2 %v1862_v48  ;;  %513 = vmatpush.msra.mxu0 %v98_v40  ;;  %v253_v39 = vld [vmem:[%s2511_s1 + $0x678] sm:$0xff]  ;;  %v108_v40 = vld [vmem:[%s2511_s1 + $0x1f0] sm:$0xff] }
  0x5f   :  { %535 = vmatpush.msra.mxu1 %v234_v41  ;;  %559 = vmatpush.msra.mxu2 %v99_v42  ;;  %v244_v41 = vld [vmem:[%s2511_s1 + $0x630] sm:$0xff]  ;;  %v109_v42 = vld [vmem:[%s2511_s1 + $0x1f8] sm:$0xff] }
  0x60   :  { %581 = vmatpush.msra.mxu3 %v235_v43  ;;  %514 = vmatpush.msra.mxu0 %v90_v44  ;;  %v245_v43 = vld [vmem:[%s2511_s1 + $0x638] sm:$0xff]  ;;  %v100_v44 = vld [vmem:[%s2511_s1 + $0x1b0] sm:$0xff] }
  0x61   :  { %500 = vmatmul.f32.gmra.mxu3 %v1881_v53  ;;  %536 = vmatpush.msra.mxu1 %v226_v45  ;;  %v236_v45 = vld [vmem:[%s2511_s1 + $0x5f0] sm:$0xff] }
  0x62   :  { %560 = vmatpush.msra.mxu2 %v91_v46  ;;  %582 = vmatpush.msra.mxu3 %v227_v47  ;;  %v101_v46 = vld [vmem:[%s2511_s1 + $0x1b8] sm:$0xff] }
  0x63   :  { %431 = vmatmul.f32.gmra.mxu0 %v1862_v48  ;;  %537 = vmatpush.msra.mxu1 %v218_v49  ;;  %v237_v47 = vld [vmem:[%s2511_s1 + $0x5f8] sm:$0xff]  ;;  %v92_v49 = vld [vmem:[%s2511_s1 + $0x170] sm:$0xff] }
  0x64   :  { %515 = vmatpush.msra.mxu0 %v82_v50  ;;  %561 = vmatpush.msra.mxu2 %v83_v51  ;;  %v228_v50 = vld [vmem:[%s2511_s1 + $0x5b0] sm:$0xff]  ;;  %v93_v51 = vld [vmem:[%s2511_s1 + $0x178] sm:$0xff] }
  0x65   :  { %583 = vmatpush.msra.mxu3 %v219_v52  ;;  %454 = vmatmul.f32.gmra.mxu1 %v1881_v53  ;;  %v229_v52 = vld [vmem:[%s2511_s1 + $0x5b8] sm:$0xff] }
  0x66   :  { %516 = vmatpush.msra.mxu0 %v74_v54  ;;  %538 = vmatpush.msra.mxu1 %v210_v55  ;;  %v84_v54 = vld [vmem:[%s2511_s1 + $0x130] sm:$0xff] }
  0x67   :  { %562 = vmatpush.msra.mxu2 %v75_v56  ;;  %584 = vmatpush.msra.mxu3 %v211_v57  ;;  %v220_v55 = vld [vmem:[%s2511_s1 + $0x570] sm:$0xff]  ;;  %v85_v56 = vld [vmem:[%s2511_s1 + $0x138] sm:$0xff] }
  0x68   :  { %517 = vmatpush.msra.mxu0 %v66_v58  ;;  %539 = vmatpush.msra.mxu1 %v202_v59  ;;  %v221_v57 = vld [vmem:[%s2511_s1 + $0x578] sm:$0xff]  ;;  %v76_v58 = vld [vmem:[%s2511_s1 + $0xf0] sm:$0xff] }
  0x69   :  { %563 = vmatpush.msra.mxu2 %v67_v60  ;;  %585 = vmatpush.msra.mxu3 %v203_v61  ;;  %v212_v59 = vld [vmem:[%s2511_s1 + $0x530] sm:$0xff]  ;;  %v77_v60 = vld [vmem:[%s2511_s1 + $0xf8] sm:$0xff] }
  0x6a   :  { %518 = vmatpush.msra.mxu0 %v58_v62  ;;  %540 = vmatpush.msra.mxu1 %v194_v63  ;;  %v213_v61 = vld [vmem:[%s2511_s1 + $0x538] sm:$0xff]  ;;  %v68_v62 = vld [vmem:[%s2511_s1 + $0xb0] sm:$0xff] }
  0x6b   :  { %564 = vmatpush.msra.mxu2 %v59_v0  ;;  %586 = vmatpush.msra.mxu3 %v195_v1  ;;  %v204_v63 = vld [vmem:[%s2511_s1 + $0x4f0] sm:$0xff]  ;;  %v69_v0 = vld [vmem:[%s2511_s1 + $0xb8] sm:$0xff] }
  0x6c   :  { %519 = vmatpush.msra.mxu0 %v50_v2  ;;  %541 = vmatpush.msra.mxu1 %v186_v3  ;;  %v205_v1 = vld [vmem:[%s2511_s1 + $0x4f8] sm:$0xff]  ;;  %v60_v2 = vld [vmem:[%s2511_s1 + $0x70] sm:$0xff] }
  0x6d   :  { %565 = vmatpush.msra.mxu2 %v51_v4  ;;  %587 = vmatpush.msra.mxu3 %v187_v5  ;;  %v196_v3 = vld [vmem:[%s2511_s1 + $0x4b0] sm:$0xff]  ;;  %v61_v4 = vld [vmem:[%s2511_s1 + $0x78] sm:$0xff] }
  0x6e   :  { %520 = vmatmul.f32.vlgmr.msra.gmra.mxu0 %v1800_v30  ;;  %566 = vmatmul.f32.vlgmr.msra.gmra.mxu2 %v1800_v30  ;;  %v197_v5 = vld [vmem:[%s2511_s1 + $0x4b8] sm:$0xff] }
  0x6f   :  { %596 = vmatpush.msrb.mxu0 %v172_v6  ;;  %642 = vmatpush.msrb.mxu2 %v173_v7  ;;  %v52_v6 = vld [vmem:[%s2511_s1 + $0x30] sm:$0xff] }
  0x70   :  { %542 = vmatpush.msra.mxu1 %v178_v8  ;;  %588 = vmatpush.msra.mxu3 %v179_v9  ;;  %v188_v7 = vld [vmem:[%s2511_s1 + $0x470] sm:$0xff]  ;;  %v53_v8 = vld [vmem:[%s2511_s1 + $0x38] sm:$0xff] }
  0x71   :  { %543 = vmatmul.f32.vlgmr.msra.gmra.mxu1 %v1819_v35  ;;  %589 = vmatmul.f32.vlgmr.msra.gmra.mxu3 %v1819_v35  ;;  %v189_v9 = vld [vmem:[%s2511_s1 + $0x478] sm:$0xff] }
  0x72   :  { %597 = vmatpush.msrb.mxu0 %v164_v10  ;;  %619 = vmatpush.msrb.mxu1 %v300_v11  ;;  %v180_v10 = vld [vmem:[%s2511_s1 + $0x430] sm:$0xff]  ;;  %v181_v11 = vld [vmem:[%s2511_s1 + $0x438] sm:$0xff] }
  0x73   :  { %643 = vmatpush.msrb.mxu2 %v165_v12  ;;  %665 = vmatpush.msrb.mxu3 %v301_v13  ;;  %v734_v12 = vld [vmem:[#allocation2 + $0xf0] sm:$0xff] }
  0x74   :  { %598 = vmatpush.msrb.mxu0 %v156_v14  ;;  %620 = vmatpush.msrb.mxu1 %v292_v15  ;;  %v766_v13 = vld [vmem:[#allocation2 + $0x1f0] sm:$0xff]  ;;  %v732_v15 = vld [vmem:[#allocation2 + $0xe0] sm:$0xff] }
  0x75   :  { %644 = vmatpush.msrb.mxu2 %v157_v16  ;;  %666 = vmatpush.msrb.mxu3 %v293_v17  ;;  %v798_v14 = vld [vmem:[#allocation2 + $0x2f0] sm:$0xff]  ;;  %v764_v16 = vld [vmem:[#allocation2 + $0x1e0] sm:$0xff] }
  0x76   :  { %599 = vmatpush.msrb.mxu0 %v148_v18  ;;  %621 = vmatpush.msrb.mxu1 %v284_v19  ;;  %v796_v17 = vld [vmem:[#allocation2 + $0x2e0] sm:$0xff]  ;;  %v730_v18 = vld [vmem:[#allocation2 + $0xd0] sm:$0xff] }
  0x77   :  { %645 = vmatpush.msrb.mxu2 %v149_v20  ;;  %667 = vmatpush.msrb.mxu3 %v285_v21  ;;  %v762_v19 = vld [vmem:[#allocation2 + $0x1d0] sm:$0xff]  ;;  %v760_v20 = vld [vmem:[#allocation2 + $0x1c0] sm:$0xff] }
  0x78   :  { %523 = vmatmul.f32.gmra.mxu0 %v1862_v48  ;;  %569 = vmatmul.f32.gmra.mxu2 %v1862_v48  ;;  %v758_v21 = vld [vmem:[#allocation2 + $0x1b0] sm:$0xff] }
  0x79   :  { %600 = vmatpush.msrb.mxu0 %v140_v22  ;;  %622 = vmatpush.msrb.mxu1 %v276_v23  ;;  %v794_v22 = vld [vmem:[#allocation2 + $0x2d0] sm:$0xff] }
  0x7a   :  { %646 = vmatpush.msrb.mxu2 %v141_v24  ;;  %668 = vmatpush.msrb.mxu3 %v277_v25  ;;  %v830_v23 = vld [vmem:[#allocation2 + $0x3f0] sm:$0xff]  ;;  %v724_v24 = vld [vmem:[#allocation2 + $0xa0] sm:$0xff] }
  0x7b   :  { %546 = vmatmul.f32.gmra.mxu1 %v1881_v53  ;;  %592 = vmatmul.f32.gmra.mxu3 %v1881_v53  ;;  %v756_v25 = vld [vmem:[#allocation2 + $0x1a0] sm:$0xff] }
  0x7c   :  { %601 = vmatpush.msrb.mxu0 %v132_v26  ;;  %623 = vmatpush.msrb.mxu1 %v268_v27  ;;  %v792_v26 = vld [vmem:[#allocation2 + $0x2c0] sm:$0xff] }
  0x7d   :  { %647 = vmatpush.msrb.mxu2 %v133_v28  ;;  %669 = vmatpush.msrb.mxu3 %v269_v29  ;;  %v828_v27 = vld [vmem:[#allocation2 + $0x3e0] sm:$0xff]  ;;  %v722_v28 = vld [vmem:[#allocation2 + $0x90] sm:$0xff] }
  0x7e   :  { %602 = vmatpush.msrb.mxu0 %v124_v31  ;;  %624 = vmatpush.msrb.mxu1 %v260_v32  ;;  %v754_v29 = vld [vmem:[#allocation2 + $0x190] sm:$0xff]  ;;  %v720_v32 = vld [vmem:[#allocation2 + $0x80] sm:$0xff] }
  0x7f   :  { %648 = vmatpush.msrb.mxu2 %v125_v33  ;;  %670 = vmatpush.msrb.mxu3 %v261_v34  ;;  %v826_v31 = vld [vmem:[#allocation2 + $0x3d0] sm:$0xff]  ;;  %v752_v33 = vld [vmem:[#allocation2 + $0x180] sm:$0xff] }
  0x80   :  { %603 = vmatpush.msrb.mxu0 %v116_v36  ;;  %625 = vmatpush.msrb.mxu1 %v252_v37  ;;  %v824_v34 = vld [vmem:[#allocation2 + $0x3c0] sm:$0xff]  ;;  %v718_v36 = vld [vmem:[#allocation2 + $0x70] sm:$0xff] }
  0x81   :  { %649 = vmatpush.msrb.mxu2 %v117_v38  ;;  %671 = vmatpush.msrb.mxu3 %v253_v39  ;;  %v750_v37 = vld [vmem:[#allocation2 + $0x170] sm:$0xff] }
  0x82   :  { %604 = vmatpush.msrb.mxu0 %v108_v40  ;;  %626 = vmatpush.msrb.mxu1 %v244_v41  ;;  %v786_v38 = vld [vmem:[#allocation2 + $0x290] sm:$0xff]  ;;  %v716_v40 = vld [vmem:[#allocation2 + $0x60] sm:$0xff] }
  0x83   :  { %650 = vmatpush.msrb.mxu2 %v109_v42  ;;  %672 = vmatpush.msrb.mxu3 %v245_v43  ;;  %v822_v39 = vld [vmem:[#allocation2 + $0x3b0] sm:$0xff]  ;;  %v748_v41 = vld [vmem:[#allocation2 + $0x160] sm:$0xff] }
  0x84   :  { %605 = vmatpush.msrb.mxu0 %v100_v44  ;;  %627 = vmatpush.msrb.mxu1 %v236_v45  ;;  %v784_v42 = vld [vmem:[#allocation2 + $0x280] sm:$0xff]  ;;  %v714_v44 = vld [vmem:[#allocation2 + $0x50] sm:$0xff] }
  0x85   :  { %651 = vmatpush.msrb.mxu2 %v101_v46  ;;  %673 = vmatpush.msrb.mxu3 %v237_v47  ;;  %v820_v43 = vld [vmem:[#allocation2 + $0x3a0] sm:$0xff]  ;;  %v746_v45 = vld [vmem:[#allocation2 + $0x150] sm:$0xff] }
  0x86   :  { %606 = vmatpush.msrb.mxu0 %v92_v49  ;;  %628 = vmatpush.msrb.mxu1 %v228_v50  ;;  %v782_v46 = vld [vmem:[#allocation2 + $0x270] sm:$0xff]  ;;  %v712_v49 = vld [vmem:[#allocation2 + $0x40] sm:$0xff] }
  0x87   :  { %652 = vmatpush.msrb.mxu2 %v93_v51  ;;  %674 = vmatpush.msrb.mxu3 %v229_v52  ;;  %v818_v47 = vld [vmem:[#allocation2 + $0x390] sm:$0xff]  ;;  %v744_v50 = vld [vmem:[#allocation2 + $0x140] sm:$0xff] }
  0x88   :  { %607 = vmatpush.msrb.mxu0 %v84_v54  ;;  %629 = vmatpush.msrb.mxu1 %v220_v55  ;;  %v780_v51 = vld [vmem:[#allocation2 + $0x260] sm:$0xff]  ;;  %v710_v54 = vld [vmem:[#allocation2 + $0x30] sm:$0xff] }
  0x89   :  { %653 = vmatpush.msrb.mxu2 %v85_v56  ;;  %675 = vmatpush.msrb.mxu3 %v221_v57  ;;  %v816_v52 = vld [vmem:[#allocation2 + $0x380] sm:$0xff]  ;;  %v742_v55 = vld [vmem:[#allocation2 + $0x130] sm:$0xff] }
  0x8a   :  { %608 = vmatpush.msrb.mxu0 %v76_v58  ;;  %630 = vmatpush.msrb.mxu1 %v212_v59  ;;  %v778_v56 = vld [vmem:[#allocation2 + $0x250] sm:$0xff]  ;;  %v708_v58 = vld [vmem:[#allocation2 + $0x20] sm:$0xff] }
  0x8b   :  { %654 = vmatpush.msrb.mxu2 %v77_v60  ;;  %676 = vmatpush.msrb.mxu3 %v213_v61  ;;  %v814_v57 = vld [vmem:[#allocation2 + $0x370] sm:$0xff]  ;;  %v740_v59 = vld [vmem:[#allocation2 + $0x120] sm:$0xff] }
  0x8c   :  { %609 = vmatpush.msrb.mxu0 %v68_v62  ;;  %631 = vmatpush.msrb.mxu1 %v204_v63  ;;  %v2338_v60 = vld [vmem:[%s2512_s2] sm:$0xff]  ;;  %v706_v63 = vld [vmem:[#allocation2 + $0x10] sm:$0xff] }
  0x8d   :  { %655 = vmatpush.msrb.mxu2 %v69_v0  ;;  %677 = vmatpush.msrb.mxu3 %v205_v1  ;;  %v776_v61 = vld [vmem:[#allocation2 + $0x240] sm:$0xff]  ;;  %v738_v0 = vld [vmem:[#allocation2 + $0x110] sm:$0xff] }
  0x8e   :  { %610 = vmatpush.msrb.mxu0 %v60_v2  ;;  %632 = vmatpush.msrb.mxu1 %v196_v3  ;;  %v812_v62 = vld [vmem:[#allocation2 + $0x360] sm:$0xff]  ;;  %v774_v1 = vld [vmem:[#allocation2 + $0x230] sm:$0xff] }
  0x8f   :  { %656 = vmatpush.msrb.mxu2 %v61_v4  ;;  %678 = vmatpush.msrb.mxu3 %v197_v5  ;;  %v810_v2 = vld [vmem:[#allocation2 + $0x350] sm:$0xff]  ;;  %v704_v3 = vld [vmem:[#allocation2] sm:$0xff]  ;;  %v304_v5 = vperm.slane %v2338_v60, 0 }
  0x90   :  { %611 = vmatpush.msrb.mxu0 %v52_v6  ;;  %633 = vmatpush.msrb.mxu1 %v188_v7  ;;  %v736_v4 = vld [vmem:[#allocation2 + $0x100] sm:$0xff]  ;;  %v862_v6 = vld [vmem:[#allocation2 + $0x4f0] sm:$0xff] }
  0x91   :  { %657 = vmatpush.msrb.mxu2 %v53_v8  ;;  %679 = vmatpush.msrb.mxu3 %v189_v9  ;;  %v894_v7 = vld [vmem:[#allocation2 + $0x5f0] sm:$0xff]  ;;  %v772_v8 = vld [vmem:[#allocation2 + $0x220] sm:$0xff] }
  0x92   :  { %612 = vmatmul.f32.vlgmr.msrb.gmra.mxu0 %v1800_v30  ;;  %658 = vmatmul.f32.vlgmr.msrb.gmra.mxu2 %v1800_v30  ;;  %v728_v30 = vld [vmem:[#allocation2 + $0xc0] sm:$0xff] }
  0x93   :  { %634 = vmatpush.msrb.mxu1 %v180_v10  ;;  %680 = vmatpush.msrb.mxu3 %v181_v11  ;;  %v808_v9 = vld [vmem:[#allocation2 + $0x340] sm:$0xff] }
  0x94   :  { %635 = vmatmul.f32.vlgmr.msrb.gmra.mxu1 %v1819_v35  ;;  %681 = vmatmul.f32.vlgmr.msrb.gmra.mxu3 %v1819_v35  ;;  %v726_v35 = vld [vmem:[#allocation2 + $0xb0] sm:$0xff]  ;;  %v860_v10 = vld [vmem:[#allocation2 + $0x4e0] sm:$0xff] }
  0x95   :  { %960 = vmatpush.msra.mxu0 %v734_v12  ;;  %983 = vmatpush.msra.mxu1 %v766_v13  ;;  %v892_v12 = vld [vmem:[#allocation2 + $0x5e0] sm:$0xff] }
  0x96   :  { %1006 = vmatpush.msra.mxu2 %v798_v14  ;;  %1029 = vmatpush.msra.mxu3 %v830_v23  ;;  %v770_v14 = vld [vmem:[#allocation2 + $0x210] sm:$0xff] }
  0x97   :  { %961 = vmatpush.msra.mxu0 %v732_v15  ;;  %984 = vmatpush.msra.mxu1 %v764_v16  ;;  %v806_v15 = vld [vmem:[#allocation2 + $0x330] sm:$0xff] }
  0x98   :  { %1007 = vmatpush.msra.mxu2 %v796_v17  ;;  %1030 = vmatpush.msra.mxu3 %v828_v27  ;;  %v858_v16 = vld [vmem:[#allocation2 + $0x4d0] sm:$0xff] }
  0x99   :  { %962 = vmatpush.msra.mxu0 %v730_v18  ;;  %985 = vmatpush.msra.mxu1 %v762_v19  ;;  %v890_v17 = vld [vmem:[#allocation2 + $0x5d0] sm:$0xff]  ;;  %v305_v19 = vperm.slane %v2338_v60, 1 }
  0x9a   :  { %615 = vmatmul.f32.gmra.mxu0 %v1862_v48  ;;  %661 = vmatmul.f32.gmra.mxu2 %v1862_v48  ;;  %v790_v48 = vld [vmem:[#allocation2 + $0x2b0] sm:$0xff] }
  0x9b   :  { %963 = vmatpush.msra.mxu0 %v728_v30  ;;  %986 = vmatpush.msra.mxu1 %v760_v20  ;;  %v768_v30 = vld [vmem:[#allocation2 + $0x200] sm:$0xff]  ;;  %v926_v23 = vld [vmem:[#allocation2 + $0x6f0] sm:$0xff] }
  0x9c   :  { %638 = vmatmul.f32.gmra.mxu1 %v1881_v53  ;;  %684 = vmatmul.f32.gmra.mxu3 %v1881_v53  ;;  %v788_v53 = vld [vmem:[#allocation2 + $0x2a0] sm:$0xff]  ;;  %v886_v27 = vld [vmem:[#allocation2 + $0x5b0] sm:$0xff] }
  0x9d   :  { %964 = vmatpush.msra.mxu0 %v726_v35  ;;  %987 = vmatpush.msra.mxu1 %v758_v21  ;;  %v804_v20 = vld [vmem:[#allocation2 + $0x320] sm:$0xff] }
  0x9e   :  { %1008 = vmatpush.msra.mxu2 %v794_v22  ;;  %1031 = vmatpush.msra.mxu3 %v826_v31  ;;  %v856_v35 = vld [vmem:[#allocation2 + $0x4c0] sm:$0xff] }
  0x9f   :  { %965 = vmatpush.msra.mxu0 %v724_v24  ;;  %988 = vmatpush.msra.mxu1 %v756_v25  ;;  %v888_v22 = vld [vmem:[#allocation2 + $0x5c0] sm:$0xff]  ;;  %v854_v24 = vld [vmem:[#allocation2 + $0x4b0] sm:$0xff] }
  0xa0   :  { %1009 = vmatpush.msra.mxu2 %v792_v26  ;;  %1032 = vmatpush.msra.mxu3 %v824_v34  ;;  %v852_v31 = vld [vmem:[#allocation2 + $0x4a0] sm:$0xff]  ;;  %v922_v34 = vld [vmem:[#allocation2 + $0x6d0] sm:$0xff] }
  0xa1   :  { %966 = vmatpush.msra.mxu0 %v722_v28  ;;  %989 = vmatpush.msra.mxu1 %v754_v29  ;;  %v802_v29 = vld [vmem:[#allocation2 + $0x310] sm:$0xff] }
  0xa2   :  { %1010 = vmatpush.msra.mxu2 %v790_v48  ;;  %1033 = vmatpush.msra.mxu3 %v822_v39  ;;  %v924_v48 = vld [vmem:[#allocation2 + $0x6e0] sm:$0xff]  ;;  %v882_v39 = vld [vmem:[#allocation2 + $0x590] sm:$0xff] }
  0xa3   :  { %967 = vmatpush.msra.mxu0 %v720_v32  ;;  %990 = vmatpush.msra.mxu1 %v752_v33  ;;  %v884_v32 = vld [vmem:[#allocation2 + $0x5a0] sm:$0xff] }
  0xa4   :  { %1011 = vmatpush.msra.mxu2 %v788_v53  ;;  %1034 = vmatpush.msra.mxu3 %v820_v43  ;;  %v800_v53 = vld [vmem:[#allocation2 + $0x300] sm:$0xff] }
  0xa5   :  { %968 = vmatpush.msra.mxu0 %v718_v36  ;;  %991 = vmatpush.msra.mxu1 %v750_v37  ;;  %v850_v36 = vld [vmem:[#allocation2 + $0x490] sm:$0xff]  ;;  %v880_v43 = vld [vmem:[#allocation2 + $0x580] sm:$0xff] }
  0xa6   :  { %1012 = vmatpush.msra.mxu2 %v786_v38  ;;  %1035 = vmatpush.msra.mxu3 %v818_v47  ;;  %v846_v47 = vld [vmem:[#allocation2 + $0x470] sm:$0xff] }
  0xa7   :  { %969 = vmatpush.msra.mxu0 %v716_v40  ;;  %992 = vmatpush.msra.mxu1 %v748_v41  ;;  %v920_v40 = vld [vmem:[#allocation2 + $0x6c0] sm:$0xff] }
  0xa8   :  { %1013 = vmatpush.msra.mxu2 %v784_v42  ;;  %1036 = vmatpush.msra.mxu3 %v816_v52  ;;  %v848_v41 = vld [vmem:[#allocation2 + $0x480] sm:$0xff] }
  0xa9   :  { %970 = vmatpush.msra.mxu0 %v714_v44  ;;  %993 = vmatpush.msra.mxu1 %v746_v45  ;;  %v958_v45 = vld [vmem:[#allocation2 + $0x7f0] sm:$0xff]  ;;  %v844_v52 = vld [vmem:[#allocation2 + $0x460] sm:$0xff] }
  0xaa   :  { %1014 = vmatpush.msra.mxu2 %v782_v46  ;;  %1037 = vmatpush.msra.mxu3 %v814_v57  ;;  %v918_v46 = vld [vmem:[#allocation2 + $0x6b0] sm:$0xff] }
  0xab   :  { %971 = vmatpush.msra.mxu0 %v712_v49  ;;  %994 = vmatpush.msra.mxu1 %v744_v50  ;;  %v878_v49 = vld [vmem:[#allocation2 + $0x570] sm:$0xff]  ;;  %v956_v50 = vld [vmem:[#allocation2 + $0x7e0] sm:$0xff] }
  0xac   :  { %1015 = vmatpush.msra.mxu2 %v780_v51  ;;  %1038 = vmatpush.msra.mxu3 %v812_v62  ;;  %v916_v51 = vld [vmem:[#allocation2 + $0x6a0] sm:$0xff]  ;;  %v954_v57 = vld [vmem:[#allocation2 + $0x7d0] sm:$0xff] }
  0xad   :  { %972 = vmatpush.msra.mxu0 %v710_v54  ;;  %995 = vmatpush.msra.mxu1 %v742_v55  ;;  %v876_v55 = vld [vmem:[#allocation2 + $0x560] sm:$0xff] }
  0xae   :  { %1016 = vmatpush.msra.mxu2 %v778_v56  ;;  %1039 = vmatpush.msra.mxu3 %v810_v2  ;;  %v306_v56 = vperm.slane %v2338_v60, 2 }
  0xaf   :  { %973 = vmatpush.msra.mxu0 %v708_v58  ;;  %996 = vmatpush.msra.mxu1 %v740_v59  ;;  %v914_v58 = vld [vmem:[#allocation2 + $0x690] sm:$0xff] }
  0xb0   :  { %1017 = vmatpush.msra.mxu2 %v776_v61  ;;  %1040 = vmatpush.msra.mxu3 %v808_v9  ;;  %v842_v59 = vld [vmem:[#allocation2 + $0x450] sm:$0xff] }
  0xb1   :  { %974 = vmatpush.msra.mxu0 %v706_v63  ;;  %997 = vmatpush.msra.mxu1 %v738_v0  ;;  %v874_v61 = vld [vmem:[#allocation2 + $0x550] sm:$0xff]  ;;  %v952_v63 = vld [vmem:[#allocation2 + $0x7c0] sm:$0xff] }
  0xb2   :  { %1018 = vmatpush.msra.mxu2 %v774_v1  ;;  %1041 = vmatpush.msra.mxu3 %v806_v15  ;;  %v912_v0 = vld [vmem:[#allocation2 + $0x680] sm:$0xff]  ;;  %v838_v9 = vld [vmem:[#allocation2 + $0x430] sm:$0xff] }
  0xb3   :  { %975 = vmatpush.msra.mxu0 %v704_v3  ;;  %998 = vmatpush.msra.mxu1 %v736_v4  ;;  %v337_v11 = vpop.f32.mrf.mxu0  ;;  %v840_v1 = vld [vmem:[#allocation2 + $0x440] sm:$0xff] }
  0xb4   :  { %v338_v13 = vadd.f32 %v337_v11, %v304_v5  ;;  %1019 = vmatpush.msra.mxu2 %v772_v8  ;;  %1042 = vmatpush.msra.mxu3 %v804_v20  ;;  %v872_v3 = vld [vmem:[#allocation2 + $0x540] sm:$0xff]  ;;  %v910_v8 = vld [vmem:[#allocation2 + $0x670] sm:$0xff] }
  0xb5   :  { %1052 = vmatpush.msrb.mxu0 %v862_v6  ;;  %1075 = vmatpush.msrb.mxu1 %v894_v7  ;;  %v950_v7 = vld [vmem:[#allocation2 + $0x7b0] sm:$0xff] }
  0xb6   :  { %v360_v18 = vpop.f32.mrf.mxu1  ;;  %1020 = vmatpush.msra.mxu2 %v770_v14  ;;  %1043 = vmatpush.msra.mxu3 %v802_v29  ;;  %v908_v14 = vld [vmem:[#allocation2 + $0x660] sm:$0xff] }
  0xb7   :  { %1053 = vmatpush.msrb.mxu0 %v860_v10  ;;  %1076 = vmatpush.msrb.mxu1 %v892_v12  ;;  %v2344_v21 = vadd.f32 %v360_v18, %v338_v13  ;;  %v870_v10 = vld [vmem:[#allocation2 + $0x530] sm:$0xff]  ;;  %v307_v12 = vperm.slane %v2338_v60, 3  ;;  %v948_v13 = vld [vmem:[#allocation2 + $0x7a0] sm:$0xff] }
  0xb8   :  { %1021 = vmatpush.msra.mxu2 %v768_v30  ;;  %1044 = vmatpush.msra.mxu3 %v800_v53  ;;  %v946_v18 = vld [vmem:[#allocation2 + $0x790] sm:$0xff]  ;;  %v864_v29 = vld [vmem:[#allocation2 + $0x500] sm:$0xff] }
  0xb9   :  { %1054 = vmatpush.msrb.mxu0 %v858_v16  ;;  %1077 = vmatpush.msrb.mxu1 %v890_v17  ;;  %v688_v25 = vmax.f32 %v2344_v21, 0.0  ;;  %v383_v26 = vpop.f32.mrf.mxu2  ;;  %v868_v16 = vld [vmem:[#allocation2 + $0x520] sm:$0xff]  ;;  %v837_v21 = vld [vmem:[#allocation2 + $0x428] sm:$0xff] }
  0xba   :  { %v384_v28 = vadd.f32 %v383_v26, %v305_v19  ;;  %1098 = vmatpush.msrb.mxu2 %v926_v23  ;;  %1121 = vmatpush.msrb.mxu3 %v958_v45  ;;  %v866_v23 = vld [vmem:[#allocation2 + $0x510] sm:$0xff]  ;;  %v763_v45 = vld [vmem:[#allocation2 + $0x1d8] sm:$0xff] }
  0xbb   :  { %1055 = vmatpush.msrb.mxu0 %v856_v35  ;;  %1078 = vmatpush.msrb.mxu1 %v888_v22  ;;  %v834_v35 = vld [vmem:[#allocation2 + $0x410] sm:$0xff] }
  0xbc   :  { %976 = vmatmul.f32.vlgmr.msra.gmra.mxu0 %v688_v25  ;;  %v406_v33 = vpop.f32.mrf.mxu3  ;;  %1099 = vmatpush.msrb.mxu2 %v924_v48  ;;  %v906_v26 = vld [vmem:[#allocation2 + $0x650] sm:$0xff] }
  0xbd   :  { %1056 = vmatpush.msrb.mxu0 %v854_v24  ;;  %1079 = vmatpush.msrb.mxu1 %v886_v27  ;;  %v340_v37 = vpop.f32.mrf.mxu0  ;;  %v2351_v38 = vadd.f32 %v406_v33, %v384_v28  ;;  %v944_v27 = vld [vmem:[#allocation2 + $0x780] sm:$0xff] }
  0xbe   :  { %1100 = vmatpush.msrb.mxu2 %v922_v34  ;;  %1122 = vmatpush.msrb.mxu3 %v956_v50  ;;  %v341_v4 = vadd.f32 %v340_v37, %v304_v5  ;;  %v836_v5 = vld [vmem:[#allocation2 + $0x420] sm:$0xff] }
  0xbf   :  { %1057 = vmatpush.msrb.mxu0 %v852_v31  ;;  %1080 = vmatpush.msrb.mxu1 %v884_v32  ;;  %v689_v42 = vmax.f32 %v2351_v38, 0.0  ;;  %v832_v28 = vld [vmem:[#allocation2 + $0x400] sm:$0xff]  ;;  %v735_v31 = vld [vmem:[#allocation2 + $0xf8] sm:$0xff] }
  0xc0   :  { %v363_v44 = vpop.f32.mrf.mxu1  ;;  %1101 = vmatpush.msrb.mxu2 %v920_v40  ;;  %1123 = vmatpush.msrb.mxu3 %v954_v57  ;;  %v767_v32 = vld [vmem:[#allocation2 + $0x1f8] sm:$0xff]  ;;  %v904_v34 = vld [vmem:[#allocation2 + $0x640] sm:$0xff]  ;;  %v942_v40 = vld [vmem:[#allocation2 + $0x770] sm:$0xff] }
  0xc1   :  { %1058 = vmatpush.msrb.mxu0 %v850_v36  ;;  %1081 = vmatpush.msrb.mxu1 %v882_v39  ;;  %v2364_v17 = vadd.f32 %v363_v44, %v341_v4  ;;  %v733_v36 = vld [vmem:[#allocation2 + $0xe8] sm:$0xff]  ;;  %v900_v50 = vld [vmem:[#allocation2 + $0x620] sm:$0xff] }
  0xc2   :  { %999 = vmatmul.f32.vlgmr.msra.gmra.mxu1 %v689_v42  ;;  %1102 = vmatpush.msrb.mxu2 %v918_v46  ;;  %v765_v39 = vld [vmem:[#allocation2 + $0x1e8] sm:$0xff]  ;;  %v940_v46 = vld [vmem:[#allocation2 + $0x760] sm:$0xff] }
  0xc3   :  { %1059 = vmatpush.msrb.mxu0 %v848_v41  ;;  %1082 = vmatpush.msrb.mxu1 %v880_v43  ;;  %v386_v54 = vpop.f32.mrf.mxu2  ;;  %v731_v41 = vld [vmem:[#allocation2 + $0xd8] sm:$0xff]  ;;  %v902_v43 = vld [vmem:[#allocation2 + $0x630] sm:$0xff]  ;;  %v725_v57 = vld [vmem:[#allocation2 + $0xa8] sm:$0xff] }
  0xc4   :  { %1103 = vmatpush.msrb.mxu2 %v916_v51  ;;  %1124 = vmatpush.msrb.mxu3 %v952_v63  ;;  %v387_v30 = vadd.f32 %v386_v54, %v305_v19  ;;  %v696_v19 = vmax.f32 %v2364_v17, 0.0  ;;  %v727_v51 = vld [vmem:[#allocation2 + $0xb8] sm:$0xff]  ;;  %v934_v63 = vld [vmem:[#allocation2 + $0x730] sm:$0xff]  ;;  %v753_v4 = vld [vmem:[#allocation2 + $0x188] sm:$0xff] }
  0xc5   :  { %1060 = vmatpush.msrb.mxu0 %v846_v47  ;;  %1083 = vmatpush.msrb.mxu1 %v878_v49  ;;  %v729_v47 = vld [vmem:[#allocation2 + $0xc8] sm:$0xff]  ;;  %v759_v54 = vld [vmem:[#allocation2 + $0x1b8] sm:$0xff] }
  0xc6   :  { %v409_v62 = vpop.f32.mrf.mxu3  ;;  %1104 = vmatpush.msrb.mxu2 %v914_v58  ;;  %1125 = vmatpush.msrb.mxu3 %v950_v7  ;;  %v761_v49 = vld [vmem:[#allocation2 + $0x1c8] sm:$0xff]  ;;  %v936_v58 = vld [vmem:[#allocation2 + $0x740] sm:$0xff]  ;;  %v867_v17 = vld [vmem:[#allocation2 + $0x518] sm:$0xff] }
  0xc7   :  { %1061 = vmatpush.msrb.mxu0 %v844_v52  ;;  %1084 = vmatpush.msrb.mxu1 %v876_v55  ;;  %v429_v2 = vpop.f32.mrf.mxu0  ;;  %v2374_v33 = vadd.f32 %v409_v62, %v387_v30  ;;  %v938_v52 = vld [vmem:[#allocation2 + $0x750] sm:$0xff]  ;;  %v723_v62 = vld [vmem:[#allocation2 + $0x98] sm:$0xff]  ;;  %v928_v30 = vld [vmem:[#allocation2 + $0x700] sm:$0xff] }
  0xc8   :  { %v430_v6 = vadd.f32 %v429_v2, %v306_v56  ;;  %1105 = vmatpush.msrb.mxu2 %v912_v0  ;;  %1126 = vmatpush.msrb.mxu3 %v948_v13  ;;  %v898_v55 = vld [vmem:[#allocation2 + $0x610] sm:$0xff]  ;;  %v755_v0 = vld [vmem:[#allocation2 + $0x198] sm:$0xff]  ;;  %v721_v2 = vld [vmem:[#allocation2 + $0x88] sm:$0xff] }
  0xc9   :  { %1062 = vmatpush.msrb.mxu0 %v842_v59  ;;  %1085 = vmatpush.msrb.mxu1 %v874_v61  ;;  %v697_v44 = vmax.f32 %v2374_v33, 0.0  ;;  %v757_v59 = vld [vmem:[#allocation2 + $0x1a8] sm:$0xff]  ;;  %v896_v61 = vld [vmem:[#allocation2 + $0x600] sm:$0xff]  ;;  %v751_v13 = vld [vmem:[#allocation2 + $0x178] sm:$0xff] }
  0xca   :  { %v452_v11 = vpop.f32.mrf.mxu1  ;;  %1106 = vmatpush.msrb.mxu2 %v910_v8  ;;  %1127 = vmatpush.msrb.mxu3 %v946_v18  ;;  %v719_v8 = vld [vmem:[#allocation2 + $0x78] sm:$0xff]  ;;  %v717_v18 = vld [vmem:[#allocation2 + $0x68] sm:$0xff] }
  0xcb   :  { %1063 = vmatpush.msrb.mxu0 %v840_v1  ;;  %1086 = vmatpush.msrb.mxu1 %v872_v3  ;;  %v2362_v15 = vadd.f32 %v452_v11, %v430_v6  ;;  %v799_v1 = vld [vmem:[#allocation2 + $0x2f8] sm:$0xff]  ;;  %v932_v3 = vld [vmem:[#allocation2 + $0x720] sm:$0xff]  ;;  %v797_v6 = vld [vmem:[#allocation2 + $0x2e8] sm:$0xff] }
  0xcc   :  { %1107 = vmatpush.msrb.mxu2 %v908_v14  ;;  %1128 = vmatpush.msrb.mxu3 %v944_v27  ;;  %v795_v14 = vld [vmem:[#allocation2 + $0x2d8] sm:$0xff] }
  0xcd   :  { %1064 = vmatpush.msrb.mxu0 %v838_v9  ;;  %1087 = vmatpush.msrb.mxu1 %v870_v10  ;;  %v690_v20 = vmax.f32 %v2362_v15, 0.0  ;;  %v475_v22 = vpop.f32.mrf.mxu2  ;;  %v930_v9 = vld [vmem:[#allocation2 + $0x710] sm:$0xff]  ;;  %v901_v15 = vld [vmem:[#allocation2 + $0x628] sm:$0xff] }
  0xce   :  { %v476_v24 = vadd.f32 %v475_v22, %v307_v12  ;;  %1108 = vmatpush.msrb.mxu2 %v906_v26  ;;  %979 = vmatmul.f32.gmra.mxu0 %v696_v19  ;;  %v749_v22 = vld [vmem:[#allocation2 + $0x168] sm:$0xff] }
  0xcf   :  { %1065 = vmatpush.msrb.mxu0 %v836_v5  ;;  %1088 = vmatpush.msrb.mxu1 %v868_v16 }
  0xd0   :  { %1022 = vmatmul.f32.vlgmr.msra.gmra.mxu2 %v690_v20  ;;  %v498_v48 = vpop.f32.mrf.mxu3  ;;  %1129 = vmatpush.msrb.mxu3 %v942_v40  ;;  %v743_v40 = vld [vmem:[#allocation2 + $0x138] sm:$0xff] }
  0xd1   :  { %1066 = vmatpush.msrb.mxu0 %v834_v35  ;;  %1089 = vmatpush.msrb.mxu1 %v866_v23  ;;  %v2376_v53 = vadd.f32 %v498_v48, %v476_v24  ;;  %v793_v23 = vld [vmem:[#allocation2 + $0x2c8] sm:$0xff]  ;;  %v715_v24 = vld [vmem:[#allocation2 + $0x58] sm:$0xff] }
  0xd2   :  { %1109 = vmatpush.msrb.mxu2 %v904_v34  ;;  %1130 = vmatpush.msrb.mxu3 %v940_v46  ;;  %v308_v34 = vperm.slane %v2338_v60, 4 }
  0xd3   :  { %1067 = vmatpush.msrb.mxu0 %v832_v28  ;;  %1090 = vmatpush.msrb.mxu1 %v864_v29  ;;  %v691_v37 = vmax.f32 %v2376_v53, 0.0  ;;  %v831_v28 = vld [vmem:[#allocation2 + $0x3f8] sm:$0xff]  ;;  %v713_v29 = vld [vmem:[#allocation2 + $0x48] sm:$0xff] }
  0xd4   :  { %1110 = vmatpush.msrb.mxu2 %v902_v43  ;;  %1002 = vmatmul.f32.gmra.mxu1 %v697_v44  ;;  %v709_v43 = vld [vmem:[#allocation2 + $0x28] sm:$0xff] }
  0xd5   :  { %1144 = vmatpush.msra.mxu0 %v735_v31  ;;  %1167 = vmatpush.msra.mxu1 %v767_v32  ;;  %v745_v31 = vld [vmem:[#allocation2 + $0x148] sm:$0xff]  ;;  %v791_v32 = vld [vmem:[#allocation2 + $0x2b8] sm:$0xff] }
  0xd6   :  { %1045 = vmatmul.f32.vlgmr.msra.gmra.mxu3 %v691_v37  ;;  %1111 = vmatpush.msrb.mxu2 %v900_v50  ;;  %v933_v53 = vld [vmem:[#allocation2 + $0x728] sm:$0xff] }
  0xd7   :  { %1145 = vmatpush.msra.mxu0 %v733_v36  ;;  %1168 = vmatpush.msra.mxu1 %v765_v39  ;;  %v711_v36 = vld [vmem:[#allocation2 + $0x38] sm:$0xff]  ;;  %v829_v39 = vld [vmem:[#allocation2 + $0x3e8] sm:$0xff] }
  0xd8   :  { %1131 = vmatpush.msrb.mxu3 %v938_v52  ;;  %1112 = vmatpush.msrb.mxu2 %v898_v55  ;;  %v825_v52 = vld [vmem:[#allocation2 + $0x3c8] sm:$0xff] }
  0xd9   :  { %1146 = vmatpush.msra.mxu0 %v731_v41  ;;  %1169 = vmatpush.msra.mxu1 %v763_v45  ;;  %v789_v41 = vld [vmem:[#allocation2 + $0x2a8] sm:$0xff]  ;;  %v827_v45 = vld [vmem:[#allocation2 + $0x3d8] sm:$0xff] }
  0xda   :  { %1132 = vmatpush.msrb.mxu3 %v936_v58  ;;  %1113 = vmatpush.msrb.mxu2 %v896_v61  ;;  %v785_v55 = vld [vmem:[#allocation2 + $0x288] sm:$0xff]  ;;  %v309_v58 = vperm.slane %v2338_v60, 5  ;;  %v823_v61 = vld [vmem:[#allocation2 + $0x3b8] sm:$0xff] }
  0xdb   :  { %1147 = vmatpush.msra.mxu0 %v729_v47  ;;  %1170 = vmatpush.msra.mxu1 %v761_v49  ;;  %v741_v47 = vld [vmem:[#allocation2 + $0x128] sm:$0xff]  ;;  %v787_v49 = vld [vmem:[#allocation2 + $0x298] sm:$0xff] }
  0xdc   :  { %1133 = vmatpush.msrb.mxu3 %v934_v63  ;;  %1190 = vmatpush.msra.mxu2 %v799_v1  ;;  %v737_v63 = vld [vmem:[#allocation2 + $0x108] sm:$0xff] }
  0xdd   :  { %1148 = vmatpush.msra.mxu0 %v727_v51  ;;  %1171 = vmatpush.msra.mxu1 %v759_v54  ;;  %v707_v51 = vld [vmem:[#allocation2 + $0x18] sm:$0xff]  ;;  %v821_v1 = vld [vmem:[#allocation2 + $0x3a8] sm:$0xff] }
  0xde   :  { %1134 = vmatpush.msrb.mxu3 %v932_v3  ;;  %1191 = vmatpush.msra.mxu2 %v797_v6  ;;  %v739_v54 = vld [vmem:[#allocation2 + $0x118] sm:$0xff]  ;;  %v781_v6 = vld [vmem:[#allocation2 + $0x268] sm:$0xff] }
  0xdf   :  { %1149 = vmatpush.msra.mxu0 %v725_v57  ;;  %1172 = vmatpush.msra.mxu1 %v757_v59  ;;  %v705_v59 = vld [vmem:[#allocation2 + $0x8] sm:$0xff] }
  0xe0   :  { %v432_v7 = vpop.f32.mrf.mxu0  ;;  %1135 = vmatpush.msrb.mxu3 %v930_v9  ;;  %1192 = vmatpush.msra.mxu2 %v795_v14  ;;  %v861_v9 = vld [vmem:[#allocation2 + $0x4e8] sm:$0xff] }
  0xe1   :  { %1150 = vmatpush.msra.mxu0 %v723_v62  ;;  %1173 = vmatpush.msra.mxu1 %v755_v0  ;;  %v433_v10 = vadd.f32 %v432_v7, %v306_v56  ;;  %v478_v11 = vpop.f32.mrf.mxu2  ;;  %v783_v0 = vld [vmem:[#allocation2 + $0x278] sm:$0xff] }
  0xe2   :  { %v455_v5 = vpop.f32.mrf.mxu1  ;;  %v479_v16 = vadd.f32 %v478_v11, %v307_v12  ;;  %v747_v12 = vld [vmem:[#allocation2 + $0x158] sm:$0xff]  ;;  %1136 = vmatpush.msrb.mxu3 %v928_v30  ;;  %1193 = vmatpush.msra.mxu2 %v793_v23 }
  0xe3   :  { %1151 = vmatpush.msra.mxu0 %v721_v2  ;;  %1174 = vmatpush.msra.mxu1 %v753_v4  ;;  %v2390_v35 = vadd.f32 %v455_v5, %v433_v10  ;;  %v863_v4 = vld [vmem:[#allocation2 + $0x4f8] sm:$0xff] }
  0xe4   :  { %v501_v56 = vpop.f32.mrf.mxu3  ;;  %1213 = vmatpush.msra.mxu3 %v831_v28  ;;  %1194 = vmatpush.msra.mxu2 %v791_v32  ;;  %v779_v10 = vld [vmem:[#allocation2 + $0x258] sm:$0xff] }
  0xe5   :  { %1152 = vmatpush.msra.mxu0 %v719_v8  ;;  %1175 = vmatpush.msra.mxu1 %v751_v13  ;;  %v698_v26 = vmax.f32 %v2390_v35, 0.0  ;;  %v2393_v27 = vadd.f32 %v501_v56, %v479_v16  ;;  %v819_v8 = vld [vmem:[#allocation2 + $0x398] sm:$0xff]  ;;  %v817_v13 = vld [vmem:[#allocation2 + $0x388] sm:$0xff] }
  0xe6   :  { %1214 = vmatpush.msra.mxu3 %v829_v39  ;;  %1195 = vmatpush.msra.mxu2 %v789_v41  ;;  %v859_v16 = vld [vmem:[#allocation2 + $0x4d8] sm:$0xff]  ;;  %v857_v56 = vld [vmem:[#allocation2 + $0x4c8] sm:$0xff] }
  0xe7   :  { %1153 = vmatpush.msra.mxu0 %v717_v18  ;;  %1176 = vmatpush.msra.mxu1 %v749_v22  ;;  %v699_v48 = vmax.f32 %v2393_v27, 0.0  ;;  %v777_v18 = vld [vmem:[#allocation2 + $0x248] sm:$0xff]  ;;  %v815_v22 = vld [vmem:[#allocation2 + $0x378] sm:$0xff] }
  0xe8   :  { %1025 = vmatmul.f32.gmra.mxu2 %v698_v26  ;;  %1215 = vmatpush.msra.mxu3 %v827_v45  ;;  %v775_v28 = vld [vmem:[#allocation2 + $0x238] sm:$0xff]  ;;  %v853_v41 = vld [vmem:[#allocation2 + $0x4a8] sm:$0xff] }
  0xe9   :  { %1154 = vmatpush.msra.mxu0 %v715_v24  ;;  %1177 = vmatpush.msra.mxu1 %v747_v12  ;;  %v895_v24 = vld [vmem:[#allocation2 + $0x5f8] sm:$0xff]  ;;  %v929_v35 = vld [vmem:[#allocation2 + $0x708] sm:$0xff] }
  0xea   :  { %1048 = vmatmul.f32.gmra.mxu3 %v699_v48  ;;  %1196 = vmatpush.msra.mxu2 %v787_v49  ;;  %v855_v32 = vld [vmem:[#allocation2 + $0x4b8] sm:$0xff] }
  0xeb   :  { %1155 = vmatpush.msra.mxu0 %v713_v29  ;;  %1178 = vmatpush.msra.mxu1 %v745_v31  ;;  %v521_v46 = vpop.f32.mrf.mxu0  ;;  %v813_v29 = vld [vmem:[#allocation2 + $0x368] sm:$0xff]  ;;  %v851_v49 = vld [vmem:[#allocation2 + $0x498] sm:$0xff] }
  0xec   :  { %v522_v50 = vadd.f32 %v521_v46, %v308_v34  ;;  %1216 = vmatpush.msra.mxu3 %v825_v52  ;;  %1197 = vmatpush.msra.mxu2 %v785_v55  ;;  %v811_v46 = vld [vmem:[#allocation2 + $0x358] sm:$0xff]  ;;  %v809_v52 = vld [vmem:[#allocation2 + $0x348] sm:$0xff] }
  0xed   :  { %1156 = vmatpush.msra.mxu0 %v711_v36  ;;  %1179 = vmatpush.msra.mxu1 %v743_v40  ;;  %v773_v36 = vld [vmem:[#allocation2 + $0x228] sm:$0xff] }
  0xee   :  { %v544_v57 = vpop.f32.mrf.mxu1  ;;  %1217 = vmatpush.msra.mxu3 %v823_v61  ;;  %1198 = vmatpush.msra.mxu2 %v783_v0  ;;  %v885_v0 = vld [vmem:[#allocation2 + $0x5a8] sm:$0xff] }
  0xef   :  { %1157 = vmatpush.msra.mxu0 %v709_v43  ;;  %1180 = vmatpush.msra.mxu1 %v741_v47  ;;  %v2404_v62 = vadd.f32 %v544_v57, %v522_v50  ;;  %v891_v43 = vld [vmem:[#allocation2 + $0x5d8] sm:$0xff]  ;;  %v889_v50 = vld [vmem:[#allocation2 + $0x5c8] sm:$0xff] }
  0xf0   :  { %1218 = vmatpush.msra.mxu3 %v821_v1  ;;  %1199 = vmatpush.msra.mxu2 %v781_v6  ;;  %v771_v47 = vld [vmem:[#allocation2 + $0x218] sm:$0xff]  ;;  %v849_v57 = vld [vmem:[#allocation2 + $0x488] sm:$0xff] }
  0xf1   :  { %1158 = vmatpush.msra.mxu0 %v707_v51  ;;  %1181 = vmatpush.msra.mxu1 %v739_v54  ;;  %v692_v2 = vmax.f32 %v2404_v62, 0.0  ;;  %v567_v3 = vpop.f32.mrf.mxu2  ;;  %v769_v54 = vld [vmem:[#allocation2 + $0x208] sm:$0xff]  ;;  %v803_v6 = vld [vmem:[#allocation2 + $0x318] sm:$0xff] }
  0xf2   :  { %v568_v7 = vadd.f32 %v567_v3, %v309_v58  ;;  %1219 = vmatpush.msra.mxu3 %v819_v8  ;;  %1200 = vmatpush.msra.mxu2 %v779_v10  ;;  %v805_v1 = vld [vmem:[#allocation2 + $0x328] sm:$0xff] }
  0xf3   :  { %1159 = vmatpush.msra.mxu0 %v705_v59  ;;  %1182 = vmatpush.msra.mxu1 %v737_v63  ;;  %v887_v59 = vld [vmem:[#allocation2 + $0x5b8] sm:$0xff]  ;;  %v845_v3 = vld [vmem:[#allocation2 + $0x468] sm:$0xff] }
  0xf4   :  { %1068 = vmatmul.f32.vlgmr.msrb.gmra.mxu0 %v692_v2  ;;  %v590_v11 = vpop.f32.mrf.mxu3  ;;  %1220 = vmatpush.msra.mxu3 %v817_v13  ;;  %v847_v63 = vld [vmem:[#allocation2 + $0x478] sm:$0xff]  ;;  %v881_v8 = vld [vmem:[#allocation2 + $0x588] sm:$0xff] }
  0xf5   :  { %1236 = vmatpush.msrb.mxu0 %v863_v4  ;;  %v524_v14 = vpop.f32.mrf.mxu0  ;;  %v2411_v5 = vadd.f32 %v590_v11, %v568_v7  ;;  %1201 = vmatpush.msra.mxu2 %v777_v18  ;;  %v883_v4 = vld [vmem:[#allocation2 + $0x598] sm:$0xff]  ;;  %v841_v10 = vld [vmem:[#allocation2 + $0x448] sm:$0xff] }
  0xf6   :  { %v525_v30 = vadd.f32 %v524_v14, %v308_v34  ;;  %v893_v34 = vld [vmem:[#allocation2 + $0x5e8] sm:$0xff]  ;;  %1221 = vmatpush.msra.mxu3 %v815_v22  ;;  %v843_v7 = vld [vmem:[#allocation2 + $0x458] sm:$0xff] }
  0xf7   :  { %1237 = vmatpush.msrb.mxu0 %v861_v9  ;;  %v693_v23 = vmax.f32 %v2411_v5, 0.0  ;;  %1202 = vmatpush.msra.mxu2 %v775_v28  ;;  %v801_v9 = vld [vmem:[#allocation2 + $0x308] sm:$0xff]  ;;  %v879_v11 = vld [vmem:[#allocation2 + $0x578] sm:$0xff] }
  0xf8   :  { %v547_v12 = vpop.f32.mrf.mxu1  ;;  %1222 = vmatpush.msra.mxu3 %v813_v29  ;;  %v839_v13 = vld [vmem:[#allocation2 + $0x438] sm:$0xff]  ;;  %v877_v14 = vld [vmem:[#allocation2 + $0x568] sm:$0xff]  ;;  %v311_v29 = vperm.slane %v2338_v60, 7 }
  0xf9   :  { %1238 = vmatpush.msrb.mxu0 %v859_v16  ;;  %v2416_v31 = vadd.f32 %v547_v12, %v525_v30  ;;  %1091 = vmatmul.f32.vlgmr.msrb.gmra.mxu1 %v693_v23  ;;  %v310_v16 = vperm.slane %v2338_v60, 6  ;;  %v835_v18 = vld [vmem:[#allocation2 + $0x418] sm:$0xff]  ;;  %v873_v30 = vld [vmem:[#allocation2 + $0x548] sm:$0xff] }
  0xfa   :  { %1259 = vmatpush.msrb.mxu1 %v895_v24  ;;  %1203 = vmatpush.msra.mxu2 %v773_v36  ;;  %v871_v24 = vld [vmem:[#allocation2 + $0x538] sm:$0xff]  ;;  %v865_v36 = vld [vmem:[#allocation2 + $0x508] sm:$0xff] }
  0xfb   :  { %1239 = vmatpush.msrb.mxu0 %v857_v56  ;;  %v700_v39 = vmax.f32 %v2416_v31, 0.0  ;;  %v570_v40 = vpop.f32.mrf.mxu2  ;;  %1223 = vmatpush.msra.mxu3 %v811_v46  ;;  %v833_v56 = vld [vmem:[#allocation2 + $0x408] sm:$0xff]  ;;  %v955_v5 = vld [vmem:[#allocation2 + $0x7d8] sm:$0xff] }
  0xfc   :  { %v571_v45 = vadd.f32 %v570_v40, %v309_v58  ;;  %1260 = vmatpush.msrb.mxu1 %v893_v34  ;;  %1204 = vmatpush.msra.mxu2 %v771_v47  ;;  %v807_v58 = vld [vmem:[#allocation2 + $0x338] sm:$0xff]  ;;  %v925_v60 = vld [vmem:[#allocation2 + $0x6e8] sm:$0xff] }
  0xfd   :  { %1240 = vmatpush.msrb.mxu0 %v855_v32  ;;  %1224 = vmatpush.msra.mxu3 %v809_v52  ;;  %v927_v32 = vld [vmem:[#allocation2 + $0x6f8] sm:$0xff]  ;;  %v921_v47 = vld [vmem:[#allocation2 + $0x6c8] sm:$0xff] }
  0xfe   :  { %1071 = vmatmul.f32.gmra.mxu0 %v700_v39  ;;  %v593_v51 = vpop.f32.mrf.mxu3  ;;  %1261 = vmatpush.msrb.mxu1 %v891_v43  ;;  %v957_v52 = vld [vmem:[#allocation2 + $0x7e8] sm:$0xff]  ;;  %v911_v31 = vld [vmem:[#allocation2 + $0x678] sm:$0xff] }
  0xff   :  { %1241 = vmatpush.msrb.mxu0 %v853_v41  ;;  %v2425_v55 = vadd.f32 %v593_v51, %v571_v45  ;;  %1205 = vmatpush.msra.mxu2 %v769_v54  ;;  %v923_v45 = vld [vmem:[#allocation2 + $0x6d8] sm:$0xff] }
 0x100   :  { %1262 = vmatpush.msrb.mxu1 %v889_v50  ;;  %1225 = vmatpush.msra.mxu3 %v807_v58  ;;  %v919_v51 = vld [vmem:[#allocation2 + $0x6b8] sm:$0xff] }
 0x101   :  { %1242 = vmatpush.msrb.mxu0 %v851_v49  ;;  %v701_v61 = vmax.f32 %v2425_v55, 0.0  ;;  %v959_v49 = vld [vmem:[#allocation2 + $0x7f8] sm:$0xff] }
 0x102   :  { %1263 = vmatpush.msrb.mxu1 %v887_v59  ;;  %1226 = vmatpush.msra.mxu3 %v805_v1  ;;  %v917_v59 = vld [vmem:[#allocation2 + $0x6a8] sm:$0xff]  ;;  %v903_v55 = vld [vmem:[#allocation2 + $0x638] sm:$0xff] }
 0x103   :  { %1243 = vmatpush.msrb.mxu0 %v849_v57  ;;  %1094 = vmatmul.f32.gmra.mxu1 %v701_v61 }
 0x104   :  { %1264 = vmatpush.msrb.mxu1 %v885_v0  ;;  %1227 = vmatpush.msra.mxu3 %v803_v6  ;;  %v953_v0 = vld [vmem:[#allocation2 + $0x7c8] sm:$0xff] }
 0x105   :  { %1244 = vmatpush.msrb.mxu0 %v847_v63  ;;  %v915_v63 = vld [vmem:[#allocation2 + $0x698] sm:$0xff]  ;;  %v909_v6 = vld [vmem:[#allocation2 + $0x668] sm:$0xff] }
 0x106   :  { %1160 = vmatmul.f32.vlgmr.msra.gmra.mxu0 %v688_v25  ;;  %1265 = vmatpush.msrb.mxu1 %v883_v4  ;;  %v875_v25 = vld [vmem:[#allocation2 + $0x558] sm:$0xff] }
 0x107   :  { %1245 = vmatpush.msrb.mxu0 %v845_v3  ;;  %1228 = vmatpush.msra.mxu3 %v801_v9  ;;  %v913_v3 = vld [vmem:[#allocation2 + $0x688] sm:$0xff]  ;;  %v951_v4 = vld [vmem:[#allocation2 + $0x7b8] sm:$0xff] }
 0x108   :  { %1266 = vmatpush.msrb.mxu1 %v881_v8  ;;  %v907_v8 = vld [vmem:[#allocation2 + $0x658] sm:$0xff]  ;;  %v945_v9 = vld [vmem:[#allocation2 + $0x788] sm:$0xff] }
 0x109   :  { %1246 = vmatpush.msrb.mxu0 %v843_v7  ;;  %v947_v7 = vld [vmem:[#allocation2 + $0x798] sm:$0xff] }
 0x10a   :  { %1267 = vmatpush.msrb.mxu1 %v879_v11  ;;  %v943_v11 = vld [vmem:[#allocation2 + $0x778] sm:$0xff] }
 0x10b   :  { %1247 = vmatpush.msrb.mxu0 %v841_v10  ;;  %1183 = vmatmul.f32.vlgmr.msra.gmra.mxu1 %v689_v42  ;;  %v869_v42 = vld [vmem:[#allocation2 + $0x528] sm:$0xff] }
 0x10c   :  { %1268 = vmatpush.msrb.mxu1 %v877_v14  ;;  %v905_v10 = vld [vmem:[#allocation2 + $0x648] sm:$0xff] }
 0x10d   :  { %1248 = vmatpush.msrb.mxu0 %v839_v13  ;;  %v899_v13 = vld [vmem:[#allocation2 + $0x618] sm:$0xff]  ;;  %v937_v14 = vld [vmem:[#allocation2 + $0x748] sm:$0xff] }
 0x10e   :  { %1163 = vmatmul.f32.gmra.mxu0 %v696_v19  ;;  %1269 = vmatpush.msrb.mxu1 %v875_v25  ;;  %v935_v25 = vld [vmem:[#allocation2 + $0x738] sm:$0xff] }
 0x10f   :  { %1249 = vmatpush.msrb.mxu0 %v837_v21  ;;  %v613_v22 = vpop.f32.mrf.mxu0  ;;  %v897_v21 = vld [vmem:[#allocation2 + $0x608] sm:$0xff] }
 0x110   :  { %v614_v12 = vadd.f32 %v613_v22, %v310_v16  ;;  %1270 = vmatpush.msrb.mxu1 %v873_v30 }
 0x111   :  { %1250 = vmatpush.msrb.mxu0 %v835_v18  ;;  %v636_v38 = vpop.f32.mrf.mxu1 }
 0x112   :  { %v2437_v28 = vadd.f32 %v636_v38, %v614_v12  ;;  %1271 = vmatpush.msrb.mxu1 %v871_v24 }
 0x113   :  { %1251 = vmatpush.msrb.mxu0 %v833_v56  ;;  %1186 = vmatmul.f32.gmra.mxu1 %v697_v44 }
 0x114   :  { %v694_v19 = vmax.f32 %v2437_v28, 0.0  ;;  %1272 = vmatpush.msrb.mxu1 %v869_v42 }
 0x115   :  { %v659_v34 = vpop.f32.mrf.mxu2 }
 0x116   :  { %1252 = vmatmul.f32.vlgmr.msrb.gmra.mxu0 %v692_v2  ;;  %v660_v40 = vadd.f32 %v659_v34, %v311_v29  ;;  %1114 = vmatmul.f32.vlgmr.msrb.gmra.mxu2 %v694_v19 }
 0x117   :  { %1273 = vmatpush.msrb.mxu1 %v867_v17  ;;  %v616_v41 = vpop.f32.mrf.mxu0  ;;  %v682_v43 = vpop.f32.mrf.mxu3  ;;  %1282 = vmatpush.msrb.mxu2 %v927_v32 }
 0x118   :  { %v617_v33 = vadd.f32 %v616_v41, %v310_v16  ;;  %v2447_v44 = vadd.f32 %v682_v43, %v660_v40 }
 0x119   :  { %1274 = vmatpush.msrb.mxu1 %v865_v36  ;;  %v639_v46 = vpop.f32.mrf.mxu1  ;;  %1283 = vmatpush.msrb.mxu2 %v925_v60 }
 0x11a   :  { %v695_v62 = vmax.f32 %v2447_v44, 0.0  ;;  %v2450_v2 = vadd.f32 %v639_v46, %v617_v33 }
 0x11b   :  { %1284 = vmatpush.msrb.mxu2 %v923_v45  ;;  %1275 = vmatmul.f32.vlgmr.msrb.gmra.mxu1 %v693_v23 }
 0x11c   :  { %v702_v50 = vmax.f32 %v2450_v2, 0.0  ;;  %1137 = vmatmul.f32.vlgmr.msrb.gmra.mxu3 %v695_v62 }
 0x11d   :  { %v662_v54 = vpop.f32.mrf.mxu2  ;;  %1285 = vmatpush.msrb.mxu2 %v921_v47  ;;  %1305 = vmatpush.msrb.mxu3 %v959_v49 }
 0x11e   :  { %v663_v57 = vadd.f32 %v662_v54, %v311_v29  ;;  %1117 = vmatmul.f32.gmra.mxu2 %v702_v50  ;;  %1255 = vmatmul.f32.gmra.mxu0 %v700_v39  ;;  %v949_v39 = vld [vmem:[#allocation2 + $0x7a8] sm:$0xff] }
 0x11f   :  { %v685_v23 = vpop.f32.mrf.mxu3  ;;  %1286 = vmatpush.msrb.mxu2 %v919_v51  ;;  %1306 = vmatpush.msrb.mxu3 %v957_v52 }
 0x120   :  { %v686_v58 = vadd.f32 %v685_v23, %v663_v57 }
 0x121   :  { %1287 = vmatpush.msrb.mxu2 %v917_v59  ;;  %1307 = vmatpush.msrb.mxu3 %v955_v5 }
 0x122   :  { %v703_v1 = vmax.f32 %v686_v58, 0.0 }
 0x123   :  { %1288 = vmatpush.msrb.mxu2 %v915_v63  ;;  %1308 = vmatpush.msrb.mxu3 %v953_v0 }
 0x124   :  { %1140 = vmatmul.f32.gmra.mxu3 %v703_v1  ;;  %1278 = vmatmul.f32.gmra.mxu1 %v701_v61  ;;  %v941_v61 = vld [vmem:[#allocation2 + $0x768] sm:$0xff] }
 0x125   :  { %1289 = vmatpush.msrb.mxu2 %v913_v3  ;;  %1309 = vmatpush.msrb.mxu3 %v951_v4 }
 0x126   :  { %1206 = vmatmul.f32.vlgmr.msra.gmra.mxu2 %v690_v20  ;;  %v939_v20 = vld [vmem:[#allocation2 + $0x758] sm:$0xff] }
 0x127   :  { %1290 = vmatpush.msrb.mxu2 %v911_v31  ;;  %1310 = vmatpush.msrb.mxu3 %v949_v39  ;;  %v1332_v31 = vld [vmem:[%s2514_s4] sm:$0x3] }
 0x129   :  { %1291 = vmatpush.msrb.mxu2 %v909_v6  ;;  %1311 = vmatpush.msrb.mxu3 %v947_v7 }
 0x12b   :  { %1292 = vmatpush.msrb.mxu2 %v907_v8  ;;  %1312 = vmatpush.msrb.mxu3 %v945_v9 }
 0x12c   :  { %1229 = vmatmul.f32.vlgmr.msra.gmra.mxu3 %v691_v37  ;;  %v931_v37 = vld [vmem:[#allocation2 + $0x718] sm:$0xff] }
 0x12d   :  { %1293 = vmatpush.msrb.mxu2 %v905_v10  ;;  %1313 = vmatpush.msrb.mxu3 %v943_v11  ;;  %v1334_v10 = vperm.slane %v1332_v31, 0  ;;  %v1438_v11 = vld [vmem:[%s2510_s0] sm:$0xff] }
 0x12e   :  { %1209 = vmatmul.f32.gmra.mxu2 %v698_v26 }
 0x12f   :  { %1294 = vmatpush.msrb.mxu2 %v903_v55  ;;  %1314 = vmatpush.msrb.mxu3 %v941_v61 }
 0x131   :  { %1295 = vmatpush.msrb.mxu2 %v901_v15  ;;  %1315 = vmatpush.msrb.mxu3 %v939_v20  ;;  %v1335_v20 = vperm.slane %v1332_v31, 1 }
 0x133   :  { %1296 = vmatpush.msrb.mxu2 %v899_v13  ;;  %1316 = vmatpush.msrb.mxu3 %v937_v14  ;;  %v1439_v14 = vld [vmem:[%s2510_s0 + $0x8] sm:$0xff] }
 0x134   :  { %1232 = vmatmul.f32.gmra.mxu3 %v699_v48 }
 0x135   :  { %1297 = vmatpush.msrb.mxu2 %v897_v21  ;;  %1317 = vmatpush.msrb.mxu3 %v935_v25 }
 0x136   :  { %1298 = vmatmul.f32.vlgmr.msrb.gmra.mxu2 %v694_v19 }
 0x137   :  { %1318 = vmatpush.msrb.mxu3 %v933_v53 }
 0x139   :  { %1319 = vmatpush.msrb.mxu3 %v931_v37  ;;  %v977_v26 = vpop.f32.mrf.mxu0 }
 0x13b   :  { %1320 = vmatpush.msrb.mxu3 %v929_v35 }
 0x13c   :  { %1321 = vmatmul.f32.vlgmr.msrb.gmra.mxu3 %v695_v62 }
 0x13e   :  { %1301 = vmatmul.f32.gmra.mxu2 %v702_v50 }
 0x13f   :  { %v1000_v27 = vpop.f32.mrf.mxu1 }
 0x140   :  { %v1001_v60 = vadd.f32 %v1000_v27, %v977_v26 }
 0x144   :  { %1324 = vmatmul.f32.gmra.mxu3 %v703_v1 }
 0x14b   :  { %v980_v48 = vpop.f32.mrf.mxu0 }
 0x151   :  { %v1003_v18 = vpop.f32.mrf.mxu1 }
 0x152   :  { %v1004_v62 = vadd.f32 %v1003_v18, %v980_v48 }
 0x153   :  { %v1023_v16 = vpop.f32.mrf.mxu2 }
 0x154   :  { %v1024_v45 = vadd.f32 %v1023_v16, %v1001_v60 }
 0x159   :  { %v1046_v22 = vpop.f32.mrf.mxu3 }
 0x15a   :  { %v1047_v2 = vadd.f32 %v1046_v22, %v1024_v45 }
 0x16b   :  { %v1026_v56 = vpop.f32.mrf.mxu2 }
 0x16c   :  { %v1027_v51 = vadd.f32 %v1026_v56, %v1004_v62 }
 0x16d   :  { %v1049_v12 = vpop.f32.mrf.mxu3 }
 0x16e   :  { %v1050_v0 = vadd.f32 %v1049_v12, %v1027_v51 }
 0x171   :  { %v1069_v30 = vpop.f32.mrf.mxu0 }
 0x172   :  { %v1070_v50 = vadd.f32 %v1069_v30, %v1047_v2  ;;  %v1440_v30 = vld [vmem:[%s2510_s0 + $0x10] sm:$0xff] }
 0x176   :  { %v1092_v24 = vpop.f32.mrf.mxu1 }
 0x177   :  { %v1093_v54 = vadd.f32 %v1092_v24, %v1070_v50  ;;  %v1441_v24 = vld [vmem:[%s2510_s0 + $0x18] sm:$0xff] }
 0x17b   :  { %v1072_v38 = vpop.f32.mrf.mxu0 }
 0x17c   :  { %v1073_v39 = vadd.f32 %v1072_v38, %v1050_v0 }
 0x180   :  { %v1095_v28 = vpop.f32.mrf.mxu1 }
 0x181   :  { %v1096_v7 = vadd.f32 %v1095_v28, %v1073_v39 }
 0x183   :  { %v1161_v17 = vpop.f32.mrf.mxu0 }
 0x188   :  { %v1184_v32 = vpop.f32.mrf.mxu1 }
 0x189   :  { %v1185_v33 = vadd.f32 %v1184_v32, %v1161_v17 }
 0x18b   :  { %v1164_v40 = vpop.f32.mrf.mxu0 }
 0x190   :  { %v1187_v41 = vpop.f32.mrf.mxu1 }
 0x191   :  { %v1188_v57 = vadd.f32 %v1187_v41, %v1164_v40 }
 0x193   :  { %v1253_v49 = vpop.f32.mrf.mxu0 }
 0x198   :  { %v1276_v5 = vpop.f32.mrf.mxu1 }
 0x199   :  { %v1115_v42 = vpop.f32.mrf.mxu2 }
 0x19a   :  { %v1116_v58 = vadd.f32 %v1115_v42, %v1093_v54 }
 0x19b   :  { %v1256_v8 = vpop.f32.mrf.mxu0 }
 0x19f   :  { %v1138_v29 = vpop.f32.mrf.mxu3 }
 0x1a0   :  { %v1139_v1 = vadd.f32 %v1138_v29, %v1116_v58  ;;  %v1471_v29 = vmov 256.0  }
 0x1a1   :  { %v1118_v19 = vpop.f32.mrf.mxu2  ;;  %v1279_v25 = vpop.f32.mrf.mxu1  ;;  %1432 = vrcp.f32 %v1471_v29 }
 0x1a2   :  { %v1328_v55 = vadd.f32 %v1438_v11, %v1139_v1  ;;  %v1119_v13 = vadd.f32 %v1118_v19, %v1096_v7 }
 0x1a4   :  { %v1338_v26 = vadd.f32 %v1334_v10, %v1328_v55 }
 0x1a7   :  { %v1141_v34 = vpop.f32.mrf.mxu3  ;;  %v1433_v17 = vpop.eup %1432 }
 0x1a8   :  { %v1142_v37 = vadd.f32 %v1141_v34, %v1119_v13  ;;  %v1349_v19 = vmul.f32 256.0, %v1433_v17  ;;  %vm1353_vm0 = vweird.f32 %v1433_v17 }
 0x1a9   :  { %v1207_v36 = vpop.f32.mrf.mxu2 }
 0x1aa   :  { %v1208_v46 = vadd.f32 %v1207_v36, %v1185_v33  ;;  %v1330_v22 = vadd.f32 %v1440_v30, %v1142_v37  ;;  %v1350_v32 = vsub.f32 1.0, %v1349_v19 }
 0x1ac   :  { %v1340_v38 = vadd.f32 %v1334_v10, %v1330_v22  ;;  %v1351_v34 = vmul.f32 %v1433_v17, %v1350_v32 }
 0x1ae   :  { %v1352_v36 = vadd.f32 %v1433_v17, %v1351_v34 }
 0x1af   :  { %v1230_v43 = vpop.f32.mrf.mxu3 }
 0x1b0   :  { %v1231_v47 = vadd.f32 %v1230_v43, %v1208_v46  ;;  %v1354_v40 = vsel %vm1353_vm0, %v1433_v17, %v1352_v36 }
 0x1b1   :  { %v1210_v44 = vpop.f32.mrf.mxu2 }
 0x1b2   :  { %v1254_v59 = vadd.f32 %v1253_v49, %v1231_v47  ;;  %v1211_v63 = vadd.f32 %v1210_v44, %v1188_v57 }
 0x1b4   :  { %v1277_v4 = vadd.f32 %v1276_v5, %v1254_v59 }
 0x1b7   :  { %v1233_v52 = vpop.f32.mrf.mxu3 }
 0x1b8   :  { %v1234_v3 = vadd.f32 %v1233_v52, %v1211_v63 }
 0x1b9   :  { %v1299_v23 = vpop.f32.mrf.mxu2 }
 0x1ba   :  { %v1300_v6 = vadd.f32 %v1299_v23, %v1277_v4  ;;  %v1257_v61 = vadd.f32 %v1256_v8, %v1234_v3  ;;  %v1399_v4 = vld [vmem:[%s2515_s5] sm:$0x3] }
 0x1bb   :  { %v1402_v10 = vperm.slane %v1399_v4, 1 }
 0x1bc   :  { %v1280_v35 = vadd.f32 %v1279_v25, %v1257_v61 }
 0x1bf   :  { %v1322_v9 = vpop.f32.mrf.mxu3 }
 0x1c0   :  { %v1323_v15 = vadd.f32 %v1322_v9, %v1300_v6  ;;  %v1409_v6 = vld [vmem:[%s2516_s6] sm:$0x3]  ;;  %v1401_v9 = vperm.slane %v1399_v4, 0 }
 0x1c1   :  { %v1302_v53 = vpop.f32.mrf.mxu2  ;;  %v1411_v61 = vperm.slane %v1409_v6, 0 }
 0x1c2   :  { %v1329_v21 = vadd.f32 %v1439_v14, %v1323_v15  ;;  %v1303_v48 = vadd.f32 %v1302_v53, %v1280_v35  ;;  %v1412_v15 = vperm.slane %v1409_v6, 1 }
 0x1c4   :  { %v1339_v27 = vadd.f32 %v1335_v20, %v1329_v21 }
 0x1c6   :  { %v1342_v16 = vadd.f32 %v1339_v27, %v1338_v26 }
 0x1c7   :  { %v1325_v18 = vpop.f32.mrf.mxu3 }
 0x1c8   :  { %v1326_v56 = vadd.f32 %v1325_v18, %v1303_v48  ;;  %1343 = vadd.xlane.f32.xlu0 %v1342_v16 }
 0x1ca   :  { %v1331_v12 = vadd.f32 %v1441_v24, %v1326_v56 }
 0x1cc   :  { %v1341_v42 = vadd.f32 %v1335_v20, %v1331_v12 }
 0x1ce   :  { %v1345_v28 = vadd.f32 %v1341_v42, %v1340_v38 }
 0x1d0   :  { %1346 = vadd.xlane.f32.xlu0 %v1345_v28 }
 0x23b   :  { %v1344_v60 = vpop.xlane.xlu0 %1343 }
 0x23c   :  { %v1355_v41 = vmul.f32 %v1354_v40, %v1344_v60 }
 0x23e   :  { %v1357_v43 = vsub.f32 %v1338_v26, %v1355_v41  ;;  %v1358_v33 = vsub.f32 %v1339_v27, %v1355_v41 }
 0x240   :  { %v1361_v44 = vmul.f32 %v1357_v43, %v1357_v43  ;;  %v1362_v45 = vmul.f32 %v1358_v33, %v1358_v33 }
 0x242   :  { %v1365_v46 = vadd.f32 %v1362_v45, %v1361_v44 }
 0x243   :  { %v1347_v62 = vpop.xlane.xlu0 %1346 }
 0x244   :  { %v1356_v2 = vmul.f32 %v1354_v40, %v1347_v62  ;;  %1366 = vadd.xlane.f32.xlu1 %v1365_v46 }
 0x246   :  { %v1359_v47 = vsub.f32 %v1340_v38, %v1356_v2  ;;  %v1360_v49 = vsub.f32 %v1341_v42, %v1356_v2 }
 0x248   :  { %v1363_v50 = vmul.f32 %v1359_v47, %v1359_v47  ;;  %v1364_v51 = vmul.f32 %v1360_v49, %v1360_v49 }
 0x24a   :  { %v1368_v52 = vadd.f32 %v1364_v51, %v1363_v50 }
 0x24c   :  { %1369 = vadd.xlane.f32.xlu1 %v1368_v52 }
 0x2b7   :  { %v1367_v54 = vpop.xlane.xlu1 %1366 }
 0x2b8   :  { %v1371_v57 = vmul.f32 %v1367_v54, %v1354_v40 }
 0x2ba   :  { %v1373_v59 = vadd.f32 1e-05, %v1371_v57 }
 0x2bc   :  { %1434 = vrsqrt.f32 %v1373_v59  ;;  %vm1381_vm2 = vweird.f32 %v1373_v59 }
 0x2bf   :  { %v1370_v5 = vpop.xlane.xlu1 %1369 }
 0x2c0   :  { %v1372_v23 = vmul.f32 %v1370_v5, %v1354_v40 }
 0x2c2   :  { %v1435_v58 = vpop.eup %1434  ;;  %v1374_v63 = vadd.f32 1e-05, %v1372_v23 }
 0x2c3   :  { %v1376_v0 = vmul.f32 %v1435_v58, %v1373_v59  ;;  %vm1382_vm1 = vweird.f32 %v1435_v58 }
 0x2c4   :  { %1436 = vrsqrt.f32 %v1374_v63  ;;  %vm1383_vm3 = vmor %vm1381_vm2, %vm1382_vm1  ;;  %vm1391_vm5 = vweird.f32 %v1374_v63 }
 0x2c5   :  { %v1377_v1 = vmul.f32 %v1435_v58, %v1376_v0 }
 0x2c7   :  { %v1378_v3 = vmul.f32 0.5, %v1377_v1 }
 0x2c9   :  { %v1379_v31 = vsub.f32 1.5, %v1378_v3 }
 0x2ca   :  { %v1437_v39 = vpop.eup %1436 }
 0x2cb   :  { %v1380_v7 = vmul.f32 %v1435_v58, %v1379_v31  ;;  %v1386_v8 = vmul.f32 %v1437_v39, %v1374_v63  ;;  %vm1392_vm4 = vweird.f32 %v1437_v39 }
 0x2cc   :  { %vm1393_vm6 = vmor %vm1391_vm5, %vm1392_vm4 }
 0x2cd   :  { %v1384_v11 = vsel %vm1383_vm3, %v1435_v58, %v1380_v7  ;;  %v1387_v55 = vmul.f32 %v1437_v39, %v1386_v8 }
 0x2ce   :  { %v1395_v20 = vmul.f32 %v1384_v11, %v1357_v43  ;;  %v1396_v13 = vmul.f32 %v1384_v11, %v1358_v33 }
 0x2cf   :  { %v1388_v14 = vmul.f32 0.5, %v1387_v55 }
 0x2d0   :  { %v1405_v21 = vmul.f32 %v1401_v9, %v1395_v20  ;;  %v1406_v25 = vmul.f32 %v1402_v10, %v1396_v13 }
 0x2d1   :  { %v1389_v53 = vsub.f32 1.5, %v1388_v14 }
 0x2d2   :  { %v1415_v37 = vadd.f32 %v1411_v61, %v1405_v21  ;;  %v1416_v35 = vadd.f32 %v1412_v15, %v1406_v25 }
 0x2d3   :  { %v1390_v26 = vmul.f32 %v1437_v39, %v1389_v53 }
 0x2d4   :  { %1419 = vst [vmem:[%s2517_s7] sm:$0xff] %v1415_v37 }
 0x2d5   :  { %1420 = vst [vmem:[%s2517_s7 + $0x8] sm:$0xff] %v1416_v35  ;;  %v1394_v27 = vsel %vm1393_vm6, %v1437_v39, %v1390_v26 }
 0x2d6   :  { %v1397_v48 = vmul.f32 %v1394_v27, %v1359_v47  ;;  %v1398_v16 = vmul.f32 %v1394_v27, %v1360_v49 }
 0x2d8   :  { %v1407_v18 = vmul.f32 %v1401_v9, %v1397_v48  ;;  %v1408_v30 = vmul.f32 %v1402_v10, %v1398_v16 }
 0x2da   :  { %v1417_v22 = vadd.f32 %v1411_v61, %v1407_v18  ;;  %v1418_v56 = vadd.f32 %v1412_v15, %v1408_v30 }
 0x2dc   :  { %1421 = vst [vmem:[%s2517_s7 + $0x10] sm:$0xff] %v1417_v22 }
 0x2dd   :  { %1422 = vst [vmem:[%s2517_s7 + $0x18] sm:$0xff] %v1418_v56 }
 0x2de   :  { %1427 = vsyncpa [#allocation3], 1 }

// kernel: emodel_forward.29
= control target key start
LH: loop header
LB: loop body
LE: loop exit
PB: predicated region body
PF: predicated region fallthrough
CT: control target
= control target key end

     0   :  { %v529_v6 = vmov 256.0   ;;  %vm311_vm7 = vcmask 7168   ;;  %vm428_vm8 = vcmask 1041409   ;;  %vm479_vm9 = vcmask 1041408   ;;  %s968_s0 = inlined_call_operand.vmem [shape: f32[16,256], index: 0, kind: input, shape index: {}]   ;;  %s969_s3 = inlined_call_operand.vmem [shape: f32[256,256], index: 3, kind: input, shape index: {}]   ;;  %s970_s1 = inlined_call_operand.vmem [shape: f32[1,256], index: 1, kind: input, shape index: {}]   ;;  %s971_s2 = inlined_call_operand.vmem [shape: f32[1,256], index: 2, kind: input, shape index: {}]   ;;  %s972_s4 = inlined_call_operand.vmem [shape: f32[1,256], index: 4, kind: input, shape index: {}]   ;;  %s973_s6 = inlined_call_operand.<no memory space> [shape: f32[1,1], index: 6, kind: input, shape index: {}]   ;;  %s974_s5 = inlined_call_operand.vmem [shape: f32[1,256], index: 5, kind: input, shape index: {}]   ;;  %s975_s7 = inlined_call_operand.vmem [shape: f32[256,128], index: 7, kind: input, shape index: {}]   ;;  %s976_s8 = inlined_call_operand.vmem [shape: f32[1,128], index: 8, kind: input, shape index: {}]   ;;  %s977_s9 = inlined_call_operand.vmem [shape: f32[1,128], index: 9, kind: input, shape index: {}]   ;;  %s978_s10 = inlined_call_operand.<no memory space> [shape: f32[1,1], index: 10, kind: input, shape index: {}]   ;;  %s979_s11 = inlined_call_operand.vmem [shape: f32[2,128], index: 11, kind: output, shape index: {}]  }
   0x1   :  { %v42_v0 = vld [vmem:[%s968_s0] sm:$0xff]  ;;  %v43_v1 = vld [vmem:[%s968_s0 + $0x8] sm:$0xff]  ;;  %v44_v3 = vld [vmem:[%s968_s0 + $0x10] sm:$0xff]  ;;  %507 = vrcp.f32 %v529_v6 }
   0x2   :  { %v46_v2 = vadd.f32 %v43_v1, %v42_v0  ;;  %v45_v4 = vld [vmem:[%s968_s0 + $0x18] sm:$0xff]  ;;  %v153_v9 = vld [vmem:[%s969_s3 + $0xf0] sm:$0xff]  ;;  %v151_v14 = vld [vmem:[%s969_s3 + $0xe0] sm:$0xff] }
   0x3   :  { %v49_v5 = vadd.f32 %v45_v4, %v44_v3  ;;  %v185_v10 = vld [vmem:[%s969_s3 + $0x1f0] sm:$0xff]  ;;  %v154_v11 = vld [vmem:[%s969_s3 + $0xf8] sm:$0xff]  ;;  %193 = vmatpush.msra.mxu0 %v153_v9  ;;  %v183_v15 = vld [vmem:[%s969_s3 + $0x1e0] sm:$0xff] }
   0x4   :  { %47 = vadd.xlane.f32.xlu0 %v46_v2  ;;  %216 = vmatpush.msra.mxu1 %v185_v10  ;;  %v186_v13 = vld [vmem:[%s969_s3 + $0x1f8] sm:$0xff]  ;;  %v152_v16 = vld [vmem:[%s969_s3 + $0xe8] sm:$0xff]  ;;  %v149_v35 = vld [vmem:[%s969_s3 + $0xd0] sm:$0xff] }
   0x5   :  { %239 = vmatpush.msra.mxu2 %v154_v11  ;;  %262 = vmatpush.msra.mxu3 %v186_v13  ;;  %v184_v17 = vld [vmem:[%s969_s3 + $0x1e8] sm:$0xff]  ;;  %v181_v36 = vld [vmem:[%s969_s3 + $0x1d0] sm:$0xff]  ;;  %v150_v37 = vld [vmem:[%s969_s3 + $0xd8] sm:$0xff] }
   0x6   :  { %194 = vmatpush.msra.mxu0 %v151_v14  ;;  %217 = vmatpush.msra.mxu1 %v183_v15  ;;  %v182_v38 = vld [vmem:[%s969_s3 + $0x1d8] sm:$0xff]  ;;  %v147_v39 = vld [vmem:[%s969_s3 + $0xc0] sm:$0xff]  ;;  %v148_v41 = vld [vmem:[%s969_s3 + $0xc8] sm:$0xff] }
   0x7   :  { %v508_v7 = vpop.eup %507  ;;  %240 = vmatpush.msra.mxu2 %v152_v16  ;;  %263 = vmatpush.msra.mxu3 %v184_v17  ;;  %v179_v40 = vld [vmem:[%s969_s3 + $0x1c0] sm:$0xff]  ;;  %v180_v42 = vld [vmem:[%s969_s3 + $0x1c8] sm:$0xff]  ;;  %v145_v43 = vld [vmem:[%s969_s3 + $0xb0] sm:$0xff] }
   0x8   :  { %v53_v8 = vmul.f32 256.0, %v508_v7  ;;  %vm57_vm0 = vweird.f32 %v508_v7  ;;  %195 = vmatpush.msra.mxu0 %v149_v35  ;;  %218 = vmatpush.msra.mxu1 %v181_v36  ;;  %v177_v44 = vld [vmem:[%s969_s3 + $0x1b0] sm:$0xff]  ;;  %v146_v45 = vld [vmem:[%s969_s3 + $0xb8] sm:$0xff]  ;;  %v143_v47 = vld [vmem:[%s969_s3 + $0xa0] sm:$0xff] }
   0x9   :  { %241 = vmatpush.msra.mxu2 %v150_v37  ;;  %264 = vmatpush.msra.mxu3 %v182_v38  ;;  %v178_v46 = vld [vmem:[%s969_s3 + $0x1b8] sm:$0xff]  ;;  %v175_v48 = vld [vmem:[%s969_s3 + $0x1a0] sm:$0xff]  ;;  %v144_v49 = vld [vmem:[%s969_s3 + $0xa8] sm:$0xff] }
   0xa   :  { %v54_v12 = vsub.f32 1.0, %v53_v8  ;;  %196 = vmatpush.msra.mxu0 %v147_v39  ;;  %219 = vmatpush.msra.mxu1 %v179_v40  ;;  %v176_v50 = vld [vmem:[%s969_s3 + $0x1a8] sm:$0xff]  ;;  %v141_v51 = vld [vmem:[%s969_s3 + $0x90] sm:$0xff]  ;;  %v142_v53 = vld [vmem:[%s969_s3 + $0x98] sm:$0xff] }
   0xb   :  { %242 = vmatpush.msra.mxu2 %v148_v41  ;;  %265 = vmatpush.msra.mxu3 %v180_v42  ;;  %v173_v52 = vld [vmem:[%s969_s3 + $0x190] sm:$0xff]  ;;  %v174_v54 = vld [vmem:[%s969_s3 + $0x198] sm:$0xff]  ;;  %v139_v55 = vld [vmem:[%s969_s3 + $0x80] sm:$0xff] }
   0xc   :  { %50 = vadd.xlane.f32.xlu0 %v49_v5  ;;  %v55_v18 = vmul.f32 %v508_v7, %v54_v12  ;;  %197 = vmatpush.msra.mxu0 %v145_v43  ;;  %v171_v56 = vld [vmem:[%s969_s3 + $0x180] sm:$0xff]  ;;  %v140_v57 = vld [vmem:[%s969_s3 + $0x88] sm:$0xff]  ;;  %v137_v59 = vld [vmem:[%s969_s3 + $0x70] sm:$0xff] }
   0xd   :  { %220 = vmatpush.msra.mxu1 %v177_v44  ;;  %243 = vmatpush.msra.mxu2 %v146_v45  ;;  %v172_v58 = vld [vmem:[%s969_s3 + $0x188] sm:$0xff]  ;;  %v169_v60 = vld [vmem:[%s969_s3 + $0x170] sm:$0xff]  ;;  %v138_v61 = vld [vmem:[%s969_s3 + $0x78] sm:$0xff] }
   0xe   :  { %v56_v19 = vadd.f32 %v508_v7, %v55_v18  ;;  %266 = vmatpush.msra.mxu3 %v178_v46  ;;  %198 = vmatpush.msra.mxu0 %v143_v47  ;;  %v170_v62 = vld [vmem:[%s969_s3 + $0x178] sm:$0xff]  ;;  %v135_v63 = vld [vmem:[%s969_s3 + $0x60] sm:$0xff]  ;;  %v168_v2 = vld [vmem:[%s969_s3 + $0x168] sm:$0xff] }
   0xf   :  { %221 = vmatpush.msra.mxu1 %v175_v48  ;;  %244 = vmatpush.msra.mxu2 %v144_v49  ;;  %v134_v5 = vld [vmem:[%s969_s3 + $0x58] sm:$0xff]  ;;  %v163_v8 = vld [vmem:[%s969_s3 + $0x140] sm:$0xff]  ;;  %v132_v9 = vld [vmem:[%s969_s3 + $0x48] sm:$0xff] }
  0x10   :  { %v627_v20 = vsel %vm57_vm0, %v508_v7, %v56_v19  ;;  %267 = vmatpush.msra.mxu3 %v176_v50  ;;  %199 = vmatpush.msra.mxu0 %v141_v51  ;;  %v166_v6 = vld [vmem:[%s969_s3 + $0x158] sm:$0xff]  ;;  %v131_v7 = vld [vmem:[%s969_s3 + $0x40] sm:$0xff]  ;;  %v164_v10 = vld [vmem:[%s969_s3 + $0x148] sm:$0xff] }
  0x11   :  { %222 = vmatpush.msra.mxu1 %v173_v52  ;;  %245 = vmatpush.msra.mxu2 %v142_v53  ;;  %v129_v11 = vld [vmem:[%s969_s3 + $0x30] sm:$0xff]  ;;  %v130_v13 = vld [vmem:[%s969_s3 + $0x38] sm:$0xff]  ;;  %v127_v15 = vld [vmem:[%s969_s3 + $0x20] sm:$0xff] }
  0x12   :  { %268 = vmatpush.msra.mxu3 %v174_v54  ;;  %200 = vmatpush.msra.mxu0 %v139_v55  ;;  %v161_v12 = vld [vmem:[%s969_s3 + $0x130] sm:$0xff]  ;;  %v162_v14 = vld [vmem:[%s969_s3 + $0x138] sm:$0xff]  ;;  %v159_v16 = vld [vmem:[%s969_s3 + $0x120] sm:$0xff] }
  0x13   :  { %223 = vmatpush.msra.mxu1 %v171_v56  ;;  %246 = vmatpush.msra.mxu2 %v140_v57  ;;  %v128_v17 = vld [vmem:[%s969_s3 + $0x28] sm:$0xff]  ;;  %v125_v19 = vld [vmem:[%s969_s3 + $0x10] sm:$0xff]  ;;  %v103_v43 = vld [vmem:[%s970_s1] sm:$0x3] }
  0x14   :  { %269 = vmatpush.msra.mxu3 %v172_v58  ;;  %201 = vmatpush.msra.mxu0 %v137_v59  ;;  %v160_v18 = vld [vmem:[%s969_s3 + $0x128] sm:$0xff]  ;;  %v105_v47 = vperm.slane %v103_v43, 0  ;;  %v106_v48 = vperm.slane %v103_v43, 1 }
  0x15   :  { %224 = vmatpush.msra.mxu1 %v169_v60  ;;  %247 = vmatpush.msra.mxu2 %v138_v61 }
  0x16   :  { %270 = vmatpush.msra.mxu3 %v170_v62  ;;  %202 = vmatpush.msra.mxu0 %v135_v63 }
  0x18   :  { %271 = vmatpush.msra.mxu3 %v168_v2 }
  0x1a   :  { %272 = vmatpush.msra.mxu3 %v166_v6 }
  0x1c   :  { %273 = vmatpush.msra.mxu3 %v164_v10 }
  0x1e   :  { %274 = vmatpush.msra.mxu3 %v162_v14 }
  0x20   :  { %275 = vmatpush.msra.mxu3 %v160_v18 }
  0x77   :  { %v48_v21 = vpop.xlane.xlu0 %47 }
  0x78   :  { %v59_v22 = vmul.f32 %v627_v20, %v48_v21  ;;  %v157_v21 = vld [vmem:[%s969_s3 + $0x110] sm:$0xff] }
  0x7a   :  { %v630_v23 = vsub.f32 %v42_v0, %v59_v22  ;;  %v632_v24 = vsub.f32 %v43_v1, %v59_v22  ;;  %v167_v0 = vld [vmem:[%s969_s3 + $0x160] sm:$0xff]  ;;  %v136_v1 = vld [vmem:[%s969_s3 + $0x68] sm:$0xff]  ;;  %v126_v22 = vld [vmem:[%s969_s3 + $0x18] sm:$0xff] }
  0x7b   :  { %225 = vmatpush.msra.mxu1 %v167_v0  ;;  %248 = vmatpush.msra.mxu2 %v136_v1 }
  0x7c   :  { %v65_v25 = vmul.f32 %v630_v23, %v630_v23  ;;  %v66_v26 = vmul.f32 %v632_v24, %v632_v24 }
  0x7d   :  { %249 = vmatpush.msra.mxu2 %v134_v5 }
  0x7e   :  { %v69_v27 = vadd.f32 %v66_v26, %v65_v25  ;;  %v158_v25 = vld [vmem:[%s969_s3 + $0x118] sm:$0xff]  ;;  %v123_v26 = vld [vmem:[%s969_s3] sm:$0xff] }
  0x7f   :  { %v51_v28 = vpop.xlane.xlu0 %50  ;;  %250 = vmatpush.msra.mxu2 %v132_v9  ;;  %276 = vmatpush.msra.mxu3 %v158_v25 }
  0x80   :  { %v60_v29 = vmul.f32 %v627_v20, %v51_v28  ;;  %70 = vadd.xlane.f32.xlu1 %v69_v27  ;;  %v155_v27 = vld [vmem:[%s969_s3 + $0x100] sm:$0xff]  ;;  %v124_v28 = vld [vmem:[%s969_s3 + $0x8] sm:$0xff] }
  0x81   :  { %251 = vmatpush.msra.mxu2 %v130_v13 }
  0x82   :  { %v639_v30 = vsub.f32 %v44_v3, %v60_v29  ;;  %v641_v31 = vsub.f32 %v45_v4, %v60_v29  ;;  %v133_v3 = vld [vmem:[%s969_s3 + $0x50] sm:$0xff]  ;;  %v156_v29 = vld [vmem:[%s969_s3 + $0x108] sm:$0xff] }
  0x83   :  { %v165_v4 = vld [vmem:[%s969_s3 + $0x150] sm:$0xff]  ;;  %203 = vmatpush.msra.mxu0 %v133_v3  ;;  %252 = vmatpush.msra.mxu2 %v128_v17 }
  0x84   :  { %v67_v32 = vmul.f32 %v639_v30, %v639_v30  ;;  %v68_v33 = vmul.f32 %v641_v31, %v641_v31  ;;  %226 = vmatpush.msra.mxu1 %v165_v4  ;;  %277 = vmatpush.msra.mxu3 %v156_v29 }
  0x85   :  { %204 = vmatpush.msra.mxu0 %v131_v7  ;;  %253 = vmatpush.msra.mxu2 %v126_v22 }
  0x86   :  { %v72_v34 = vadd.f32 %v68_v33, %v67_v32  ;;  %227 = vmatpush.msra.mxu1 %v163_v8 }
  0x87   :  { %205 = vmatpush.msra.mxu0 %v129_v11  ;;  %254 = vmatpush.msra.mxu2 %v124_v28 }
  0x88   :  { %73 = vadd.xlane.f32.xlu1 %v72_v34  ;;  %228 = vmatpush.msra.mxu1 %v161_v12 }
  0x89   :  { %206 = vmatpush.msra.mxu0 %v127_v15  ;;  %v289_v15 = vld [vmem:[%s974_s5] sm:$0x3] }
  0x8a   :  { %229 = vmatpush.msra.mxu1 %v159_v16 }
  0x8b   :  { %207 = vmatpush.msra.mxu0 %v125_v19  ;;  %v291_v19 = vperm.slane %v289_v15, 0 }
  0x8c   :  { %230 = vmatpush.msra.mxu1 %v157_v21  ;;  %v292_v21 = vperm.slane %v289_v15, 1 }
  0x8d   :  { %208 = vmatpush.msra.mxu0 %v123_v26 }
  0x8e   :  { %231 = vmatpush.msra.mxu1 %v155_v27 }
  0xf3   :  { %v71_v32 = vpop.xlane.xlu1 %70 }
  0xf4   :  { %v75_v33 = vmul.f32 %v71_v32, %v627_v20 }
  0xf6   :  { %v77_v34 = vadd.f32 1e-05, %v75_v33 }
  0xf8   :  { %509 = vrsqrt.f32 %v77_v34  ;;  %vm85_vm2 = vweird.f32 %v77_v34 }
  0xfb   :  { %v74_v35 = vpop.xlane.xlu1 %73 }
  0xfc   :  { %v76_v36 = vmul.f32 %v74_v35, %v627_v20  ;;  %v113_v20 = vld [vmem:[%s971_s2] sm:$0x3] }
  0xfd   :  { %v115_v52 = vperm.slane %v113_v20, 0  ;;  %v116_v54 = vperm.slane %v113_v20, 1 }
  0xfe   :  { %v510_v37 = vpop.eup %509  ;;  %v78_v38 = vadd.f32 1e-05, %v76_v36 }
  0xff   :  { %v80_v39 = vmul.f32 %v510_v37, %v77_v34  ;;  %vm86_vm1 = vweird.f32 %v510_v37 }
 0x100   :  { %511 = vrsqrt.f32 %v78_v38  ;;  %vm87_vm3 = vmor %vm85_vm2, %vm86_vm1  ;;  %vm95_vm5 = vweird.f32 %v78_v38 }
 0x101   :  { %v81_v40 = vmul.f32 %v510_v37, %v80_v39 }
 0x103   :  { %v82_v41 = vmul.f32 0.5, %v81_v40 }
 0x105   :  { %v83_v42 = vsub.f32 1.5, %v82_v41 }
 0x106   :  { %v512_v44 = vpop.eup %511 }
 0x107   :  { %v84_v45 = vmul.f32 %v510_v37, %v83_v42  ;;  %v90_v46 = vmul.f32 %v512_v44, %v78_v38  ;;  %vm96_vm4 = vweird.f32 %v512_v44 }
 0x108   :  { %vm97_vm6 = vmor %vm95_vm5, %vm96_vm4 }
 0x109   :  { %v88_v49 = vsel %vm87_vm3, %v510_v37, %v84_v45  ;;  %v91_v50 = vmul.f32 %v512_v44, %v90_v46 }
 0x10a   :  { %v99_v51 = vmul.f32 %v88_v49, %v630_v23  ;;  %v100_v53 = vmul.f32 %v88_v49, %v632_v24 }
 0x10b   :  { %v92_v55 = vmul.f32 0.5, %v91_v50 }
 0x10c   :  { %v109_v56 = vmul.f32 %v105_v47, %v99_v51  ;;  %v110_v57 = vmul.f32 %v106_v48, %v100_v53 }
 0x10d   :  { %v93_v58 = vsub.f32 1.5, %v92_v55 }
 0x10e   :  { %v825_v59 = vadd.f32 %v115_v52, %v109_v56  ;;  %v827_v60 = vadd.f32 %v116_v54, %v110_v57 }
 0x10f   :  { %v94_v61 = vmul.f32 %v512_v44, %v93_v58 }
 0x110   :  { %209 = vmatmul.f32.vlgmr.msra.gmra.mxu0 %v825_v59  ;;  %232 = vmatmul.f32.vlgmr.msra.gmra.mxu1 %v827_v60 }
 0x111   :  { %v98_v23 = vsel %vm97_vm6, %v512_v44, %v94_v61  ;;  %255 = vmatmul.f32.vlgmr.msra.gmra.mxu2 %v825_v59  ;;  %278 = vmatmul.f32.vlgmr.msra.gmra.mxu3 %v827_v60 }
 0x112   :  { %v101_v24 = vmul.f32 %v98_v23, %v639_v30  ;;  %v102_v62 = vmul.f32 %v98_v23, %v641_v31  ;;  %v187_v30 = vld [vmem:[%s972_s4] sm:$0x3]  ;;  %v16_v31 = vstv %s973_s6 }
 0x113   :  { %v189_v3 = vperm.slane %v187_v30, 0  ;;  %17 = vst [vmem:[#allocation2] sm:$0x1] %v16_v31  ;;  %v190_v7 = vperm.slane %v187_v30, 1 }
 0x114   :  { %v111_v63 = vmul.f32 %v105_v47, %v101_v24  ;;  %v112_v0 = vmul.f32 %v106_v48, %v102_v62  ;;  %v530_v47 = vmov 0   ;;  %v403_v24 = vld [vmem:[%s975_s7 + $0x78] sm:$0xff] }
 0x115   :  { %500 = vset.pattern.permute.xlu0 %v530_v47  ;;  %501 = vset.pattern.permute.xlu1 %v530_v47  ;;  %v419_v62 = vld [vmem:[%s975_s7 + $0xf8] sm:$0xff] }
 0x116   :  { %v835_v1 = vadd.f32 %v115_v52, %v111_v63  ;;  %v837_v2 = vadd.f32 %v116_v54, %v112_v0  ;;  %502 = vset.pattern.permute.xlu2 %v530_v47  ;;  %v402_v63 = vld [vmem:[%s975_s7 + $0x70] sm:$0xff]  ;;  %433 = vmatpush.msrb.mxu0 %v403_v24  ;;  %v407_v47 = vld [vmem:[%s975_s7 + $0x98] sm:$0xff] }
 0x117   :  { %453 = vmatpush.msrb.mxu1 %v419_v62 }
 0x118   :  { %212 = vmatmul.f32.gmra.mxu0 %v835_v1  ;;  %235 = vmatmul.f32.gmra.mxu1 %v837_v2 }
 0x119   :  { %258 = vmatmul.f32.gmra.mxu2 %v835_v1  ;;  %281 = vmatmul.f32.gmra.mxu3 %v837_v2 }
 0x11a   :  { %v503_v39 = vld [vmem:[#allocation2] ss:$0 sm:$0xff]  ;;  %434 = vmatpush.msrb.mxu0 %v402_v63 }
 0x18d   :  { %v210_v4 = vpop.f32.mrf.mxu0  ;;  %v233_v6 = vpop.f32.mrf.mxu1 }
 0x18e   :  { %v211_v5 = vadd.f32 %v210_v4, %v189_v3  ;;  %v401_v4 = vld [vmem:[%s975_s7 + $0x68] sm:$0xff] }
 0x18f   :  { %435 = vmatpush.msrb.mxu0 %v401_v4 }
 0x190   :  { %v234_v8 = vadd.f32 %v233_v6, %v211_v5  ;;  %v417_v5 = vld [vmem:[%s975_s7 + $0xe8] sm:$0xff] }
 0x192   :  { %513 = vtanh.f32 %v234_v8  ;;  %v416_v8 = vld [vmem:[%s975_s7 + $0xe0] sm:$0xff] }
 0x194   :  { %v256_v9 = vpop.f32.mrf.mxu2  ;;  %v279_v10 = vpop.f32.mrf.mxu3 }
 0x195   :  { %v257_v11 = vadd.f32 %v256_v9, %v190_v7  ;;  %v213_v12 = vpop.f32.mrf.mxu0  ;;  %v236_v16 = vpop.f32.mrf.mxu1 }
 0x196   :  { %v214_v14 = vadd.f32 %v213_v12, %v189_v3  ;;  %v418_v3 = vld [vmem:[%s975_s7 + $0xf0] sm:$0xff] }
 0x197   :  { %v280_v13 = vadd.f32 %v279_v10, %v257_v11  ;;  %454 = vmatpush.msrb.mxu1 %v418_v3 }
 0x198   :  { %v237_v17 = vadd.f32 %v236_v16, %v214_v14  ;;  %v514_v22 = vpop.eup %513 }
 0x199   :  { %515 = vtanh.f32 %v280_v13  ;;  %v295_v29 = vmul.f32 %v514_v22, %v291_v19  ;;  %455 = vmatpush.msrb.mxu1 %v417_v5 }
 0x19a   :  { %517 = vtanh.f32 %v237_v17 }
 0x19b   :  { %456 = vmatpush.msrb.mxu1 %v416_v8 }
 0x19c   :  { %v259_v18 = vpop.f32.mrf.mxu2  ;;  %v282_v26 = vpop.f32.mrf.mxu3 }
 0x19d   :  { %v260_v25 = vadd.f32 %v259_v18, %v190_v7  ;;  %v400_v7 = vld [vmem:[%s975_s7 + $0x60] sm:$0xff] }
 0x19e   :  { %436 = vmatpush.msrb.mxu0 %v400_v7 }
 0x19f   :  { %v516_v27 = vpop.eup %515  ;;  %v283_v28 = vadd.f32 %v282_v26, %v260_v25 }
 0x1a0   :  { %v296_v32 = vmul.f32 %v516_v27, %v292_v21  ;;  %v518_v34 = vpop.eup %517 }
 0x1a1   :  { %519 = vtanh.f32 %v283_v28  ;;  %v297_v36 = vmul.f32 %v518_v34, %v291_v19  ;;  %v414_v34 = vld [vmem:[%s975_s7 + $0xd0] sm:$0xff] }
 0x1a2   :  { %v299_v33 = vadd.f32 %v296_v32, %v295_v29  ;;  %v399_v29 = vld [vmem:[%s975_s7 + $0x58] sm:$0xff] }
 0x1a3   :  { %v415_v32 = vld [vmem:[%s975_s7 + $0xd8] sm:$0xff]  ;;  %437 = vmatpush.msrb.mxu0 %v399_v29 }
 0x1a4   :  { %300 = vadd.xlane.f32.xlu2 %v299_v33  ;;  %457 = vmatpush.msrb.mxu1 %v415_v32  ;;  %v398_v33 = vld [vmem:[%s975_s7 + $0x50] sm:$0xff] }
 0x1a5   :  { %438 = vmatpush.msrb.mxu0 %v398_v33 }
 0x1a6   :  { %458 = vmatpush.msrb.mxu1 %v414_v34 }
 0x1a7   :  { %v520_v35 = vpop.eup %519 }
 0x1a8   :  { %v298_v37 = vmul.f32 %v520_v35, %v292_v21  ;;  %v397_v35 = vld [vmem:[%s975_s7 + $0x48] sm:$0xff] }
 0x1a9   :  { %439 = vmatpush.msrb.mxu0 %v397_v35 }
 0x1aa   :  { %v302_v38 = vadd.f32 %v298_v37, %v297_v36  ;;  %v413_v36 = vld [vmem:[%s975_s7 + $0xc8] sm:$0xff]  ;;  %v396_v37 = vld [vmem:[%s975_s7 + $0x40] sm:$0xff] }
 0x1ab   :  { %459 = vmatpush.msrb.mxu1 %v413_v36  ;;  %440 = vmatpush.msrb.mxu0 %v396_v37 }
 0x1ac   :  { %303 = vadd.xlane.f32.xlu2 %v302_v38  ;;  %v412_v38 = vld [vmem:[%s975_s7 + $0xc0] sm:$0xff] }
 0x1ad   :  { %460 = vmatpush.msrb.mxu1 %v412_v38 }
 0x217   :  { %v301_v40 = vpop.xlane.xlu2 %300 }
 0x218   :  { %v309_v41 = vadd.f32 %v503_v39, %v301_v40  ;;  %v411_v40 = vld [vmem:[%s975_s7 + $0xb8] sm:$0xff] }
 0x219   :  { %461 = vmatpush.msrb.mxu1 %v411_v40 }
 0x21a   :  { %v312_v42 = vsel %vm311_vm7, %v309_v41, -inf }
 0x21b   :  { %v313_v43 = vrot.slane %v312_v42, 4 }
 0x21d   :  { %v314_v44 = vmax.f32 %v312_v42, %v313_v43  ;;  %v410_v42 = vld [vmem:[%s975_s7 + $0xb0] sm:$0xff]  ;;  %v393_v43 = vld [vmem:[%s975_s7 + $0x28] sm:$0xff] }
 0x21e   :  { %462 = vmatpush.msrb.mxu1 %v410_v42 }
 0x21f   :  { %v315_v45 = vrot.slane %v314_v44, 2  ;;  %v304_v46 = vpop.xlane.xlu2 %303 }
 0x220   :  { %v310_v20 = vadd.f32 %v503_v39, %v304_v46  ;;  %v395_v39 = vld [vmem:[%s975_s7 + $0x38] sm:$0xff]  ;;  %v408_v46 = vld [vmem:[%s975_s7 + $0xa0] sm:$0xff] }
 0x221   :  { %v316_v48 = vmax.f32 %v314_v44, %v315_v45  ;;  %441 = vmatpush.msrb.mxu0 %v395_v39  ;;  %v409_v44 = vld [vmem:[%s975_s7 + $0xa8] sm:$0xff]  ;;  %v392_v45 = vld [vmem:[%s975_s7 + $0x20] sm:$0xff] }
 0x222   :  { %v319_v49 = vsel %vm311_vm7, %v310_v20, -inf  ;;  %463 = vmatpush.msrb.mxu1 %v409_v44 }
 0x223   :  { %v317_v50 = vrot.slane %v316_v48, 1  ;;  %v320_v51 = vrot.slane %v319_v49, 4 }
 0x224   :  { %464 = vmatpush.msrb.mxu1 %v408_v46 }
 0x225   :  { %v318_v52 = vmax.f32 %v316_v48, %v317_v50  ;;  %v321_v53 = vmax.f32 %v319_v49, %v320_v51  ;;  %v390_v48 = vld [vmem:[%s975_s7 + $0x10] sm:$0xff]  ;;  %v389_v50 = vld [vmem:[%s975_s7 + $0x8] sm:$0xff] }
 0x226   :  { %465 = vmatpush.msrb.mxu1 %v407_v47  ;;  %v406_v49 = vld [vmem:[%s975_s7 + $0x90] sm:$0xff]  ;;  %v405_v51 = vld [vmem:[%s975_s7 + $0x88] sm:$0xff] }
 0x227   :  { %v326_v54 = vsub.f32 %v309_v41, %v318_v52  ;;  %v322_v55 = vrot.slane %v321_v53, 2  ;;  %v394_v41 = vld [vmem:[%s975_s7 + $0x30] sm:$0xff]  ;;  %v388_v52 = vld [vmem:[%s975_s7] sm:$0xff] }
 0x228   :  { %442 = vmatpush.msrb.mxu0 %v394_v41  ;;  %466 = vmatpush.msrb.mxu1 %v406_v49 }
 0x229   :  { %v328_v56 = vmul.f32 1.442695, %v326_v54  ;;  %v323_v57 = vmax.f32 %v321_v53, %v322_v55  ;;  %v404_v53 = vld [vmem:[%s975_s7 + $0x80] sm:$0xff] }
 0x22a   :  { %443 = vmatpush.msrb.mxu0 %v393_v43  ;;  %467 = vmatpush.msrb.mxu1 %v405_v51 }
 0x22b   :  { %521 = vpow2.f32 %v328_v56  ;;  %v324_v58 = vrot.slane %v323_v57, 1 }
 0x22c   :  { %444 = vmatpush.msrb.mxu0 %v392_v45  ;;  %468 = vmatpush.msrb.mxu1 %v404_v53 }
 0x22d   :  { %v325_v61 = vmax.f32 %v323_v57, %v324_v58 }
 0x22f   :  { %v327_v23 = vsub.f32 %v310_v20, %v325_v61  ;;  %v391_v20 = vld [vmem:[%s975_s7 + $0x18] sm:$0xff] }
 0x230   :  { %445 = vmatpush.msrb.mxu0 %v391_v20 }
 0x231   :  { %v522_v0 = vpop.eup %521  ;;  %v330_v30 = vmul.f32 1.442695, %v327_v23 }
 0x232   :  { %v332_v31 = vsel %vm311_vm7, %v522_v0, 0.0  ;;  %446 = vmatpush.msrb.mxu0 %v390_v48 }
 0x233   :  { %v333_v6 = vrot.slane %v332_v31, 4  ;;  %523 = vpow2.f32 %v330_v30 }
 0x234   :  { %447 = vmatpush.msrb.mxu0 %v389_v50 }
 0x235   :  { %v334_v9 = vadd.f32 %v333_v6, %v332_v31 }
 0x236   :  { %448 = vmatpush.msrb.mxu0 %v388_v52 }
 0x237   :  { %v335_v10 = vrot.slane %v334_v9, 2 }
 0x239   :  { %v524_v11 = vpop.eup %523  ;;  %v336_v12 = vadd.f32 %v335_v10, %v334_v9 }
 0x23a   :  { %v339_v13 = vsel %vm311_vm7, %v524_v11, 0.0 }
 0x23b   :  { %v340_v14 = vrot.slane %v339_v13, 4  ;;  %v337_v15 = vrot.slane %v336_v12, 1 }
 0x23d   :  { %v341_v16 = vadd.f32 %v340_v14, %v339_v13  ;;  %v338_v17 = vadd.f32 %v337_v15, %v336_v12 }
 0x23f   :  { %v342_v18 = vrot.slane %v341_v16, 2  ;;  %525 = vrcp.f32 %v338_v17 }
 0x241   :  { %v343_v19 = vadd.f32 %v342_v18, %v341_v16  ;;  %v18_v18 = vstv %s978_s10 }
 0x242   :  { %19 = vst [vmem:[#allocation3] sm:$0x1] %v18_v18 }
 0x243   :  { %v344_v21 = vrot.slane %v343_v19, 1 }
 0x245   :  { %v526_v22 = vpop.eup %525  ;;  %v345_v25 = vadd.f32 %v344_v21, %v343_v19  ;;  %v504_v19 = vld [vmem:[%s976_s8] ss:$0 sm:$0xff] }
 0x246   :  { %v348_v26 = vmul.f32 %v526_v22, %v522_v0 }
 0x247   :  { %527 = vrcp.f32 %v345_v25 }
 0x248   :  { %352 = vperm.xlu0 %500, %v348_v26  }
 0x249   :  { %v506_v33 = vld [vmem:[#allocation3] ss:$0 sm:$0xff] }
 0x24d   :  { %v528_v27 = vpop.eup %527 }
 0x24e   :  { %v349_v28 = vmul.f32 %v528_v27, %v524_v11  ;;  %v505_v27 = vld [vmem:[%s977_s9] ss:$0 sm:$0xff] }
 0x250   :  { %357 = vperm.xlu1 %501, %v349_v28  }
 0x2ba   :  { %v353_v54 = vpop.permute.xlu0 %352 }
 0x2bb   :  { %v360_v55 = vmul.f32 %v353_v54, %v825_v59  ;;  %v361_v56 = vmul.f32 %v353_v54, %v827_v60 }
 0x2bd   :  { %v364_v57 = vrot.slane %v360_v55, 4  ;;  %v370_v58 = vrot.slane %v361_v56, 4 }
 0x2bf   :  { %v365_v61 = vadd.f32 %v364_v57, %v360_v55  ;;  %v371_v23 = vadd.f32 %v370_v58, %v361_v56 }
 0x2c1   :  { %v366_v62 = vrot.slane %v365_v61, 2  ;;  %v372_v63 = vrot.slane %v371_v23, 2 }
 0x2c2   :  { %v358_v24 = vpop.permute.xlu1 %357 }
 0x2c3   :  { %v362_v0 = vmul.f32 %v358_v24, %v835_v1  ;;  %v363_v30 = vmul.f32 %v358_v24, %v837_v2  ;;  %v367_v4 = vadd.f32 %v366_v62, %v365_v61  ;;  %v373_v5 = vadd.f32 %v372_v63, %v371_v23 }
 0x2c5   :  { %v376_v3 = vrot.slane %v362_v0, 4  ;;  %v382_v31 = vrot.slane %v363_v30, 4  ;;  %v368_v60 = vrot.slane %v367_v4, 1  ;;  %v374_v9 = vrot.slane %v373_v5, 1 }
 0x2c7   :  { %v377_v6 = vadd.f32 %v376_v3, %v362_v0  ;;  %v383_v7 = vadd.f32 %v382_v31, %v363_v30  ;;  %v369_v14 = vadd.f32 %v368_v60, %v367_v4  ;;  %v375_v1 = vadd.f32 %v374_v9, %v373_v5 }
 0x2c9   :  { %v378_v59 = vrot.slane %v377_v6, 2  ;;  %v384_v8 = vrot.slane %v383_v7, 2 }
 0x2cb   :  { %v379_v10 = vadd.f32 %v378_v59, %v377_v6  ;;  %v385_v11 = vadd.f32 %v384_v8, %v383_v7 }
 0x2cd   :  { %v380_v12 = vrot.slane %v379_v10, 1  ;;  %v386_v13 = vrot.slane %v385_v11, 1 }
 0x2cf   :  { %v381_v15 = vadd.f32 %v380_v12, %v379_v10  ;;  %v387_v16 = vadd.f32 %v386_v13, %v385_v11 }
 0x2d1   :  { %v429_v2 = vsel %vm428_vm8, %v381_v15, %v369_v14  ;;  %v430_v17 = vsel %vm428_vm8, %v387_v16, %v375_v1 }
 0x2d2   :  { %449 = vmatmul.f32.vlgmr.msrb.gmra.mxu0 %v429_v2  ;;  %469 = vmatmul.f32.vlgmr.msrb.gmra.mxu1 %v430_v17 }
 0x34f   :  { %v450_v21 = vpop.f32.mrf.mxu0  ;;  %v470_v25 = vpop.f32.mrf.mxu1 }
 0x350   :  { %v451_v22 = vadd.f32 %v504_v19, %v450_v21 }
 0x352   :  { %v471_v26 = vadd.f32 %v470_v25, %v451_v22 }
 0x354   :  { %v473_v28 = vmax.f32 %v471_v26, 0.0 }
 0x356   :  { %v478_v29 = vmul.f32 %v505_v27, %v473_v28 }
 0x358   :  { %v480_v32 = vsel %vm479_vm9, %v478_v29, 0.0 }
 0x359   :  { %481 = vadd.xlane.f32.xlu2 %v480_v32 }
 0x3cc   :  { %v482_v34 = vpop.xlane.xlu2 %481 }
 0x3cd   :  { %v487_v35 = vadd.f32 %v506_v33, %v482_v34 }
 0x3cf   :  { %490 = vperm.xlu2 %502, %v487_v35  }
 0x429   :  { %v491_v36 = vpop.permute.xlu2 %490 }
 0x42a   :  { %493 = vst [vmem:[%s979_s11] sm:$0x3] %v491_v36 }

// kernel: emodel_forward.25
= control target key start
LH: loop header
LB: loop body
LE: loop exit
PB: predicated region body
PF: predicated region fallthrough
CT: control target
= control target key end

     0   :  { %s3226_s1 = inlined_call_operand.vmem [shape: f32[256,1024], index: 1, kind: input, shape index: {}]   ;;  %s3227_s0 = inlined_call_operand.vmem [shape: f32[16,256], index: 0, kind: input, shape index: {}]   ;;  %s3228_s3 = inlined_call_operand.vmem [shape: f32[1024,256], index: 3, kind: input, shape index: {}]   ;;  %s3229_s2 = inlined_call_operand.vmem [shape: f32[1,1024], index: 2, kind: input, shape index: {}]   ;;  %s3230_s4 = inlined_call_operand.vmem [shape: f32[1,256], index: 4, kind: input, shape index: {}]   ;;  %s3231_s5 = inlined_call_operand.vmem [shape: f32[1,256], index: 5, kind: input, shape index: {}]   ;;  %s3232_s6 = inlined_call_operand.vmem [shape: f32[1,256], index: 6, kind: input, shape index: {}]   ;;  %s3233_s7 = inlined_call_operand.vmem [shape: f32[16,256], index: 7, kind: output, shape index: {}]  }
   0x1   :  { %v150_v0 = vld [vmem:[%s3226_s1 + $0x3c0] sm:$0xff]  ;;  %v151_v1 = vld [vmem:[%s3226_s1 + $0x3c8] sm:$0xff]  ;;  %v152_v62 = vld [vmem:[%s3226_s1 + $0x3d0] sm:$0xff] }
   0x2   :  { %v142_v2 = vld [vmem:[%s3226_s1 + $0x380] sm:$0xff]  ;;  %304 = vmatpush.msra.mxu0 %v150_v0  ;;  %350 = vmatpush.msra.mxu2 %v151_v1  ;;  %v143_v4 = vld [vmem:[%s3226_s1 + $0x388] sm:$0xff]  ;;  %v153_v63 = vld [vmem:[%s3226_s1 + $0x3d8] sm:$0xff] }
   0x3   :  { %v278_v3 = vld [vmem:[%s3226_s1 + $0x7c0] sm:$0xff]  ;;  %v279_v5 = vld [vmem:[%s3226_s1 + $0x7c8] sm:$0xff] }
   0x4   :  { %327 = vmatpush.msra.mxu1 %v278_v3  ;;  %373 = vmatpush.msra.mxu3 %v279_v5  ;;  %v134_v6 = vld [vmem:[%s3226_s1 + $0x340] sm:$0xff]  ;;  %v135_v8 = vld [vmem:[%s3226_s1 + $0x348] sm:$0xff]  ;;  %v280_v3 = vld [vmem:[%s3226_s1 + $0x7d0] sm:$0xff] }
   0x5   :  { %v270_v7 = vld [vmem:[%s3226_s1 + $0x780] sm:$0xff]  ;;  %305 = vmatpush.msra.mxu0 %v142_v2  ;;  %351 = vmatpush.msra.mxu2 %v143_v4  ;;  %v271_v9 = vld [vmem:[%s3226_s1 + $0x788] sm:$0xff]  ;;  %v144_v2 = vld [vmem:[%s3226_s1 + $0x390] sm:$0xff] }
   0x6   :  { %v262_v10 = vld [vmem:[%s3226_s1 + $0x740] sm:$0xff]  ;;  %328 = vmatpush.msra.mxu1 %v270_v7  ;;  %374 = vmatpush.msra.mxu3 %v271_v9  ;;  %v127_v12 = vld [vmem:[%s3226_s1 + $0x308] sm:$0xff]  ;;  %v145_v4 = vld [vmem:[%s3226_s1 + $0x398] sm:$0xff] }
   0x7   :  { %v126_v11 = vld [vmem:[%s3226_s1 + $0x300] sm:$0xff]  ;;  %v263_v13 = vld [vmem:[%s3226_s1 + $0x748] sm:$0xff]  ;;  %306 = vmatpush.msra.mxu0 %v134_v6  ;;  %352 = vmatpush.msra.mxu2 %v135_v8  ;;  %v281_v5 = vld [vmem:[%s3226_s1 + $0x7d8] sm:$0xff] }
   0x8   :  { %v254_v14 = vld [vmem:[%s3226_s1 + $0x700] sm:$0xff]  ;;  %v255_v15 = vld [vmem:[%s3226_s1 + $0x708] sm:$0xff]  ;;  %329 = vmatpush.msra.mxu1 %v262_v10  ;;  %375 = vmatpush.msra.mxu3 %v263_v13  ;;  %v136_v6 = vld [vmem:[%s3226_s1 + $0x350] sm:$0xff] }
   0x9   :  { %v118_v16 = vld [vmem:[%s3226_s1 + $0x2c0] sm:$0xff]  ;;  %v119_v17 = vld [vmem:[%s3226_s1 + $0x2c8] sm:$0xff]  ;;  %307 = vmatpush.msra.mxu0 %v126_v11  ;;  %353 = vmatpush.msra.mxu2 %v127_v12  ;;  %v272_v7 = vld [vmem:[%s3226_s1 + $0x790] sm:$0xff] }
   0xa   :  { %v246_v18 = vld [vmem:[%s3226_s1 + $0x6c0] sm:$0xff]  ;;  %v247_v19 = vld [vmem:[%s3226_s1 + $0x6c8] sm:$0xff]  ;;  %330 = vmatpush.msra.mxu1 %v254_v14  ;;  %376 = vmatpush.msra.mxu3 %v255_v15  ;;  %v137_v8 = vld [vmem:[%s3226_s1 + $0x358] sm:$0xff] }
   0xb   :  { %v110_v20 = vld [vmem:[%s3226_s1 + $0x280] sm:$0xff]  ;;  %v111_v21 = vld [vmem:[%s3226_s1 + $0x288] sm:$0xff]  ;;  %308 = vmatpush.msra.mxu0 %v118_v16  ;;  %354 = vmatpush.msra.mxu2 %v119_v17  ;;  %v273_v9 = vld [vmem:[%s3226_s1 + $0x798] sm:$0xff] }
   0xc   :  { %v238_v22 = vld [vmem:[%s3226_s1 + $0x680] sm:$0xff]  ;;  %v239_v23 = vld [vmem:[%s3226_s1 + $0x688] sm:$0xff]  ;;  %331 = vmatpush.msra.mxu1 %v246_v18  ;;  %377 = vmatpush.msra.mxu3 %v247_v19  ;;  %v128_v10 = vld [vmem:[%s3226_s1 + $0x310] sm:$0xff] }
   0xd   :  { %v102_v24 = vld [vmem:[%s3226_s1 + $0x240] sm:$0xff]  ;;  %v103_v25 = vld [vmem:[%s3226_s1 + $0x248] sm:$0xff]  ;;  %309 = vmatpush.msra.mxu0 %v110_v20  ;;  %355 = vmatpush.msra.mxu2 %v111_v21  ;;  %v264_v11 = vld [vmem:[%s3226_s1 + $0x750] sm:$0xff] }
   0xe   :  { %v230_v26 = vld [vmem:[%s3226_s1 + $0x640] sm:$0xff]  ;;  %v231_v27 = vld [vmem:[%s3226_s1 + $0x648] sm:$0xff]  ;;  %332 = vmatpush.msra.mxu1 %v238_v22  ;;  %378 = vmatpush.msra.mxu3 %v239_v23  ;;  %v129_v12 = vld [vmem:[%s3226_s1 + $0x318] sm:$0xff] }
   0xf   :  { %v94_v28 = vld [vmem:[%s3226_s1 + $0x200] sm:$0xff]  ;;  %v95_v29 = vld [vmem:[%s3226_s1 + $0x208] sm:$0xff]  ;;  %310 = vmatpush.msra.mxu0 %v102_v24  ;;  %356 = vmatpush.msra.mxu2 %v103_v25  ;;  %v265_v13 = vld [vmem:[%s3226_s1 + $0x758] sm:$0xff] }
  0x10   :  { %v222_v30 = vld [vmem:[%s3226_s1 + $0x600] sm:$0xff]  ;;  %v223_v31 = vld [vmem:[%s3226_s1 + $0x608] sm:$0xff]  ;;  %333 = vmatpush.msra.mxu1 %v230_v26  ;;  %379 = vmatpush.msra.mxu3 %v231_v27  ;;  %v120_v14 = vld [vmem:[%s3226_s1 + $0x2d0] sm:$0xff] }
  0x11   :  { %v86_v32 = vld [vmem:[%s3226_s1 + $0x1c0] sm:$0xff]  ;;  %v87_v33 = vld [vmem:[%s3226_s1 + $0x1c8] sm:$0xff]  ;;  %311 = vmatpush.msra.mxu0 %v94_v28  ;;  %357 = vmatpush.msra.mxu2 %v95_v29  ;;  %v256_v15 = vld [vmem:[%s3226_s1 + $0x710] sm:$0xff] }
  0x12   :  { %v214_v34 = vld [vmem:[%s3226_s1 + $0x5c0] sm:$0xff]  ;;  %v215_v35 = vld [vmem:[%s3226_s1 + $0x5c8] sm:$0xff]  ;;  %334 = vmatpush.msra.mxu1 %v222_v30  ;;  %380 = vmatpush.msra.mxu3 %v223_v31  ;;  %v121_v16 = vld [vmem:[%s3226_s1 + $0x2d8] sm:$0xff] }
  0x13   :  { %v78_v36 = vld [vmem:[%s3226_s1 + $0x180] sm:$0xff]  ;;  %v79_v37 = vld [vmem:[%s3226_s1 + $0x188] sm:$0xff]  ;;  %312 = vmatpush.msra.mxu0 %v86_v32  ;;  %358 = vmatpush.msra.mxu2 %v87_v33  ;;  %v257_v17 = vld [vmem:[%s3226_s1 + $0x718] sm:$0xff] }
  0x14   :  { %v206_v38 = vld [vmem:[%s3226_s1 + $0x580] sm:$0xff]  ;;  %v207_v39 = vld [vmem:[%s3226_s1 + $0x588] sm:$0xff]  ;;  %335 = vmatpush.msra.mxu1 %v214_v34  ;;  %381 = vmatpush.msra.mxu3 %v215_v35  ;;  %v112_v18 = vld [vmem:[%s3226_s1 + $0x290] sm:$0xff] }
  0x15   :  { %v70_v40 = vld [vmem:[%s3226_s1 + $0x140] sm:$0xff]  ;;  %v71_v41 = vld [vmem:[%s3226_s1 + $0x148] sm:$0xff]  ;;  %313 = vmatpush.msra.mxu0 %v78_v36  ;;  %359 = vmatpush.msra.mxu2 %v79_v37  ;;  %v248_v19 = vld [vmem:[%s3226_s1 + $0x6d0] sm:$0xff] }
  0x16   :  { %v198_v42 = vld [vmem:[%s3226_s1 + $0x540] sm:$0xff]  ;;  %v199_v43 = vld [vmem:[%s3226_s1 + $0x548] sm:$0xff]  ;;  %336 = vmatpush.msra.mxu1 %v206_v38  ;;  %382 = vmatpush.msra.mxu3 %v207_v39  ;;  %v113_v20 = vld [vmem:[%s3226_s1 + $0x298] sm:$0xff] }
  0x17   :  { %v62_v44 = vld [vmem:[%s3226_s1 + $0x100] sm:$0xff]  ;;  %v63_v45 = vld [vmem:[%s3226_s1 + $0x108] sm:$0xff]  ;;  %314 = vmatpush.msra.mxu0 %v70_v40  ;;  %360 = vmatpush.msra.mxu2 %v71_v41  ;;  %v249_v21 = vld [vmem:[%s3226_s1 + $0x6d8] sm:$0xff] }
  0x18   :  { %v190_v46 = vld [vmem:[%s3226_s1 + $0x500] sm:$0xff]  ;;  %v191_v47 = vld [vmem:[%s3226_s1 + $0x508] sm:$0xff]  ;;  %337 = vmatpush.msra.mxu1 %v198_v42  ;;  %383 = vmatpush.msra.mxu3 %v199_v43  ;;  %v104_v22 = vld [vmem:[%s3226_s1 + $0x250] sm:$0xff] }
  0x19   :  { %v54_v48 = vld [vmem:[%s3226_s1 + $0xc0] sm:$0xff]  ;;  %v55_v49 = vld [vmem:[%s3226_s1 + $0xc8] sm:$0xff]  ;;  %315 = vmatpush.msra.mxu0 %v62_v44  ;;  %361 = vmatpush.msra.mxu2 %v63_v45  ;;  %v240_v23 = vld [vmem:[%s3226_s1 + $0x690] sm:$0xff] }
  0x1a   :  { %v182_v50 = vld [vmem:[%s3226_s1 + $0x4c0] sm:$0xff]  ;;  %v183_v51 = vld [vmem:[%s3226_s1 + $0x4c8] sm:$0xff]  ;;  %338 = vmatpush.msra.mxu1 %v190_v46  ;;  %384 = vmatpush.msra.mxu3 %v191_v47  ;;  %v105_v24 = vld [vmem:[%s3226_s1 + $0x258] sm:$0xff] }
  0x1b   :  { %v46_v52 = vld [vmem:[%s3226_s1 + $0x80] sm:$0xff]  ;;  %v47_v53 = vld [vmem:[%s3226_s1 + $0x88] sm:$0xff]  ;;  %316 = vmatpush.msra.mxu0 %v54_v48  ;;  %362 = vmatpush.msra.mxu2 %v55_v49  ;;  %v241_v25 = vld [vmem:[%s3226_s1 + $0x698] sm:$0xff] }
  0x1c   :  { %v174_v54 = vld [vmem:[%s3226_s1 + $0x480] sm:$0xff]  ;;  %v175_v55 = vld [vmem:[%s3226_s1 + $0x488] sm:$0xff]  ;;  %339 = vmatpush.msra.mxu1 %v182_v50  ;;  %385 = vmatpush.msra.mxu3 %v183_v51  ;;  %v96_v26 = vld [vmem:[%s3226_s1 + $0x210] sm:$0xff] }
  0x1d   :  { %v38_v56 = vld [vmem:[%s3226_s1 + $0x40] sm:$0xff]  ;;  %v39_v57 = vld [vmem:[%s3226_s1 + $0x48] sm:$0xff]  ;;  %317 = vmatpush.msra.mxu0 %v46_v52  ;;  %363 = vmatpush.msra.mxu2 %v47_v53  ;;  %v232_v27 = vld [vmem:[%s3226_s1 + $0x650] sm:$0xff] }
  0x1e   :  { %v166_v58 = vld [vmem:[%s3226_s1 + $0x440] sm:$0xff]  ;;  %v167_v59 = vld [vmem:[%s3226_s1 + $0x448] sm:$0xff]  ;;  %340 = vmatpush.msra.mxu1 %v174_v54  ;;  %386 = vmatpush.msra.mxu3 %v175_v55  ;;  %v97_v28 = vld [vmem:[%s3226_s1 + $0x218] sm:$0xff] }
  0x1f   :  { %v30_v60 = vld [vmem:[%s3226_s1] sm:$0xff]  ;;  %v31_v61 = vld [vmem:[%s3226_s1 + $0x8] sm:$0xff]  ;;  %318 = vmatpush.msra.mxu0 %v38_v56  ;;  %364 = vmatpush.msra.mxu2 %v39_v57  ;;  %v233_v29 = vld [vmem:[%s3226_s1 + $0x658] sm:$0xff] }
  0x20   :  { %341 = vmatpush.msra.mxu1 %v166_v58  ;;  %387 = vmatpush.msra.mxu3 %v167_v59  ;;  %v158_v0 = vld [vmem:[%s3226_s1 + $0x400] sm:$0xff]  ;;  %v159_v1 = vld [vmem:[%s3226_s1 + $0x408] sm:$0xff]  ;;  %v88_v31 = vld [vmem:[%s3226_s1 + $0x1d0] sm:$0xff] }
  0x21   :  { %319 = vmatpush.msra.mxu0 %v30_v60  ;;  %365 = vmatpush.msra.mxu2 %v31_v61  ;;  %v1748_v30 = vld [vmem:[%s3227_s0] sm:$0xff]  ;;  %v224_v32 = vld [vmem:[%s3226_s1 + $0x610] sm:$0xff]  ;;  %v89_v33 = vld [vmem:[%s3226_s1 + $0x1d8] sm:$0xff] }
  0x22   :  { %342 = vmatpush.msra.mxu1 %v158_v0  ;;  %388 = vmatpush.msra.mxu3 %v159_v1  ;;  %v225_v34 = vld [vmem:[%s3226_s1 + $0x618] sm:$0xff]  ;;  %v1767_v35 = vld [vmem:[%s3227_s0 + $0x8] sm:$0xff]  ;;  %v80_v36 = vld [vmem:[%s3226_s1 + $0x190] sm:$0xff] }
  0x23   :  { %396 = vmatpush.msrb.mxu0 %v152_v62  ;;  %442 = vmatpush.msrb.mxu2 %v153_v63  ;;  %v216_v37 = vld [vmem:[%s3226_s1 + $0x5d0] sm:$0xff]  ;;  %v81_v38 = vld [vmem:[%s3226_s1 + $0x198] sm:$0xff] }
  0x24   :  { %419 = vmatpush.msrb.mxu1 %v280_v3  ;;  %465 = vmatpush.msrb.mxu3 %v281_v5  ;;  %v217_v39 = vld [vmem:[%s3226_s1 + $0x5d8] sm:$0xff]  ;;  %v72_v40 = vld [vmem:[%s3226_s1 + $0x150] sm:$0xff]  ;;  %v155_v3 = vld [vmem:[%s3226_s1 + $0x3e8] sm:$0xff] }
  0x25   :  { %397 = vmatpush.msrb.mxu0 %v144_v2  ;;  %443 = vmatpush.msrb.mxu2 %v145_v4  ;;  %v208_v41 = vld [vmem:[%s3226_s1 + $0x590] sm:$0xff]  ;;  %v73_v42 = vld [vmem:[%s3226_s1 + $0x158] sm:$0xff]  ;;  %v154_v2 = vld [vmem:[%s3226_s1 + $0x3e0] sm:$0xff] }
  0x26   :  { %420 = vmatpush.msrb.mxu1 %v272_v7  ;;  %466 = vmatpush.msrb.mxu3 %v273_v9  ;;  %v209_v43 = vld [vmem:[%s3226_s1 + $0x598] sm:$0xff]  ;;  %v64_v44 = vld [vmem:[%s3226_s1 + $0x110] sm:$0xff]  ;;  %v282_v7 = vld [vmem:[%s3226_s1 + $0x7e0] sm:$0xff] }
  0x27   :  { %398 = vmatpush.msrb.mxu0 %v136_v6  ;;  %444 = vmatpush.msrb.mxu2 %v137_v8  ;;  %v200_v45 = vld [vmem:[%s3226_s1 + $0x550] sm:$0xff]  ;;  %v65_v46 = vld [vmem:[%s3226_s1 + $0x118] sm:$0xff]  ;;  %v146_v6 = vld [vmem:[%s3226_s1 + $0x3a0] sm:$0xff] }
  0x28   :  { %421 = vmatpush.msrb.mxu1 %v264_v11  ;;  %467 = vmatpush.msrb.mxu3 %v265_v13  ;;  %v201_v47 = vld [vmem:[%s3226_s1 + $0x558] sm:$0xff]  ;;  %v1810_v48 = vld [vmem:[%s3227_s0 + $0x10] sm:$0xff]  ;;  %v147_v8 = vld [vmem:[%s3226_s1 + $0x3a8] sm:$0xff] }
  0x29   :  { %399 = vmatpush.msrb.mxu0 %v128_v10  ;;  %445 = vmatpush.msrb.mxu2 %v129_v12  ;;  %v56_v49 = vld [vmem:[%s3226_s1 + $0xd0] sm:$0xff]  ;;  %v57_v51 = vld [vmem:[%s3226_s1 + $0xd8] sm:$0xff]  ;;  %v283_v9 = vld [vmem:[%s3226_s1 + $0x7e8] sm:$0xff] }
  0x2a   :  { %422 = vmatpush.msrb.mxu1 %v256_v15  ;;  %468 = vmatpush.msrb.mxu3 %v257_v17  ;;  %v192_v50 = vld [vmem:[%s3226_s1 + $0x510] sm:$0xff]  ;;  %v193_v52 = vld [vmem:[%s3226_s1 + $0x518] sm:$0xff]  ;;  %v138_v10 = vld [vmem:[%s3226_s1 + $0x360] sm:$0xff] }
  0x2b   :  { %400 = vmatpush.msrb.mxu0 %v120_v14  ;;  %446 = vmatpush.msrb.mxu2 %v121_v16  ;;  %v1829_v53 = vld [vmem:[%s3227_s0 + $0x18] sm:$0xff]  ;;  %v48_v54 = vld [vmem:[%s3226_s1 + $0x90] sm:$0xff]  ;;  %v274_v11 = vld [vmem:[%s3226_s1 + $0x7a0] sm:$0xff] }
  0x2c   :  { %423 = vmatpush.msrb.mxu1 %v248_v19  ;;  %469 = vmatpush.msrb.mxu3 %v249_v21  ;;  %v184_v55 = vld [vmem:[%s3226_s1 + $0x4d0] sm:$0xff]  ;;  %v49_v56 = vld [vmem:[%s3226_s1 + $0x98] sm:$0xff]  ;;  %v139_v12 = vld [vmem:[%s3226_s1 + $0x368] sm:$0xff] }
  0x2d   :  { %401 = vmatpush.msrb.mxu0 %v112_v18  ;;  %447 = vmatpush.msrb.mxu2 %v113_v20  ;;  %v185_v57 = vld [vmem:[%s3226_s1 + $0x4d8] sm:$0xff]  ;;  %v40_v58 = vld [vmem:[%s3226_s1 + $0x50] sm:$0xff]  ;;  %v275_v13 = vld [vmem:[%s3226_s1 + $0x7a8] sm:$0xff] }
  0x2e   :  { %424 = vmatpush.msrb.mxu1 %v240_v23  ;;  %470 = vmatpush.msrb.mxu3 %v241_v25  ;;  %v176_v59 = vld [vmem:[%s3226_s1 + $0x490] sm:$0xff]  ;;  %v41_v60 = vld [vmem:[%s3226_s1 + $0x58] sm:$0xff]  ;;  %v130_v14 = vld [vmem:[%s3226_s1 + $0x320] sm:$0xff] }
  0x2f   :  { %402 = vmatpush.msrb.mxu0 %v104_v22  ;;  %448 = vmatpush.msrb.mxu2 %v105_v24  ;;  %v177_v61 = vld [vmem:[%s3226_s1 + $0x498] sm:$0xff]  ;;  %v32_v62 = vld [vmem:[%s3226_s1 + $0x10] sm:$0xff]  ;;  %v266_v15 = vld [vmem:[%s3226_s1 + $0x760] sm:$0xff] }
  0x30   :  { %425 = vmatpush.msrb.mxu1 %v232_v27  ;;  %471 = vmatpush.msrb.mxu3 %v233_v29  ;;  %v168_v63 = vld [vmem:[%s3226_s1 + $0x450] sm:$0xff]  ;;  %v33_v0 = vld [vmem:[%s3226_s1 + $0x18] sm:$0xff]  ;;  %v131_v16 = vld [vmem:[%s3226_s1 + $0x328] sm:$0xff] }
  0x31   :  { %403 = vmatpush.msrb.mxu0 %v96_v26  ;;  %449 = vmatpush.msrb.mxu2 %v97_v28  ;;  %v169_v1 = vld [vmem:[%s3226_s1 + $0x458] sm:$0xff]  ;;  %v160_v4 = vld [vmem:[%s3226_s1 + $0x410] sm:$0xff]  ;;  %v267_v17 = vld [vmem:[%s3226_s1 + $0x768] sm:$0xff] }
  0x32   :  { %320 = vmatmul.f32.vlgmr.msra.gmra.mxu0 %v1748_v30  ;;  %366 = vmatmul.f32.vlgmr.msra.gmra.mxu2 %v1748_v30  ;;  %v161_v5 = vld [vmem:[%s3226_s1 + $0x418] sm:$0xff]  ;;  %v122_v18 = vld [vmem:[%s3226_s1 + $0x2e0] sm:$0xff]  ;;  %v123_v20 = vld [vmem:[%s3226_s1 + $0x2e8] sm:$0xff] }
  0x33   :  { %404 = vmatpush.msrb.mxu0 %v88_v31  ;;  %426 = vmatpush.msrb.mxu1 %v224_v32  ;;  %v258_v19 = vld [vmem:[%s3226_s1 + $0x720] sm:$0xff]  ;;  %v259_v21 = vld [vmem:[%s3226_s1 + $0x728] sm:$0xff] }
  0x34   :  { %450 = vmatpush.msrb.mxu2 %v89_v33  ;;  %472 = vmatpush.msrb.mxu3 %v225_v34  ;;  %v114_v22 = vld [vmem:[%s3226_s1 + $0x2a0] sm:$0xff]  ;;  %v115_v24 = vld [vmem:[%s3226_s1 + $0x2a8] sm:$0xff] }
  0x35   :  { %343 = vmatmul.f32.vlgmr.msra.gmra.mxu1 %v1767_v35  ;;  %389 = vmatmul.f32.vlgmr.msra.gmra.mxu3 %v1767_v35  ;;  %v250_v23 = vld [vmem:[%s3226_s1 + $0x6e0] sm:$0xff]  ;;  %v251_v25 = vld [vmem:[%s3226_s1 + $0x6e8] sm:$0xff] }
  0x36   :  { %405 = vmatpush.msrb.mxu0 %v80_v36  ;;  %427 = vmatpush.msrb.mxu1 %v216_v37  ;;  %v106_v26 = vld [vmem:[%s3226_s1 + $0x260] sm:$0xff]  ;;  %v107_v28 = vld [vmem:[%s3226_s1 + $0x268] sm:$0xff] }
  0x37   :  { %451 = vmatpush.msrb.mxu2 %v81_v38  ;;  %473 = vmatpush.msrb.mxu3 %v217_v39  ;;  %v242_v27 = vld [vmem:[%s3226_s1 + $0x6a0] sm:$0xff]  ;;  %v243_v29 = vld [vmem:[%s3226_s1 + $0x6a8] sm:$0xff] }
  0x38   :  { %406 = vmatpush.msrb.mxu0 %v72_v40  ;;  %428 = vmatpush.msrb.mxu1 %v208_v41  ;;  %v98_v31 = vld [vmem:[%s3226_s1 + $0x220] sm:$0xff]  ;;  %v99_v33 = vld [vmem:[%s3226_s1 + $0x228] sm:$0xff] }
  0x39   :  { %452 = vmatpush.msrb.mxu2 %v73_v42  ;;  %474 = vmatpush.msrb.mxu3 %v209_v43  ;;  %v234_v32 = vld [vmem:[%s3226_s1 + $0x660] sm:$0xff]  ;;  %v235_v34 = vld [vmem:[%s3226_s1 + $0x668] sm:$0xff] }
  0x3a   :  { %407 = vmatpush.msrb.mxu0 %v64_v44  ;;  %429 = vmatpush.msrb.mxu1 %v200_v45  ;;  %v90_v36 = vld [vmem:[%s3226_s1 + $0x1e0] sm:$0xff]  ;;  %v91_v38 = vld [vmem:[%s3226_s1 + $0x1e8] sm:$0xff] }
  0x3b   :  { %453 = vmatpush.msrb.mxu2 %v65_v46  ;;  %475 = vmatpush.msrb.mxu3 %v201_v47  ;;  %v226_v37 = vld [vmem:[%s3226_s1 + $0x620] sm:$0xff]  ;;  %v227_v39 = vld [vmem:[%s3226_s1 + $0x628] sm:$0xff] }
  0x3c   :  { %323 = vmatmul.f32.gmra.mxu0 %v1810_v48  ;;  %369 = vmatmul.f32.gmra.mxu2 %v1810_v48  ;;  %v82_v40 = vld [vmem:[%s3226_s1 + $0x1a0] sm:$0xff]  ;;  %v83_v42 = vld [vmem:[%s3226_s1 + $0x1a8] sm:$0xff] }
  0x3d   :  { %408 = vmatpush.msrb.mxu0 %v56_v49  ;;  %430 = vmatpush.msrb.mxu1 %v192_v50  ;;  %v218_v41 = vld [vmem:[%s3226_s1 + $0x5e0] sm:$0xff]  ;;  %v219_v43 = vld [vmem:[%s3226_s1 + $0x5e8] sm:$0xff] }
  0x3e   :  { %454 = vmatpush.msrb.mxu2 %v57_v51  ;;  %476 = vmatpush.msrb.mxu3 %v193_v52  ;;  %v74_v44 = vld [vmem:[%s3226_s1 + $0x160] sm:$0xff]  ;;  %v75_v46 = vld [vmem:[%s3226_s1 + $0x168] sm:$0xff] }
  0x3f   :  { %346 = vmatmul.f32.gmra.mxu1 %v1829_v53  ;;  %392 = vmatmul.f32.gmra.mxu3 %v1829_v53  ;;  %v210_v45 = vld [vmem:[%s3226_s1 + $0x5a0] sm:$0xff]  ;;  %v211_v47 = vld [vmem:[%s3226_s1 + $0x5a8] sm:$0xff] }
  0x40   :  { %409 = vmatpush.msrb.mxu0 %v48_v54  ;;  %431 = vmatpush.msrb.mxu1 %v184_v55  ;;  %v202_v49 = vld [vmem:[%s3226_s1 + $0x560] sm:$0xff]  ;;  %v67_v51 = vld [vmem:[%s3226_s1 + $0x128] sm:$0xff] }
  0x41   :  { %455 = vmatpush.msrb.mxu2 %v49_v56  ;;  %477 = vmatpush.msrb.mxu3 %v185_v57  ;;  %v66_v50 = vld [vmem:[%s3226_s1 + $0x120] sm:$0xff]  ;;  %v203_v52 = vld [vmem:[%s3226_s1 + $0x568] sm:$0xff] }
  0x42   :  { %410 = vmatpush.msrb.mxu0 %v40_v58  ;;  %432 = vmatpush.msrb.mxu1 %v176_v59  ;;  %v58_v54 = vld [vmem:[%s3226_s1 + $0xe0] sm:$0xff]  ;;  %v59_v56 = vld [vmem:[%s3226_s1 + $0xe8] sm:$0xff] }
  0x43   :  { %456 = vmatpush.msrb.mxu2 %v41_v60  ;;  %478 = vmatpush.msrb.mxu3 %v177_v61  ;;  %v194_v55 = vld [vmem:[%s3226_s1 + $0x520] sm:$0xff]  ;;  %v195_v57 = vld [vmem:[%s3226_s1 + $0x528] sm:$0xff] }
  0x44   :  { %411 = vmatpush.msrb.mxu0 %v32_v62  ;;  %433 = vmatpush.msrb.mxu1 %v168_v63  ;;  %v50_v58 = vld [vmem:[%s3226_s1 + $0xa0] sm:$0xff]  ;;  %v51_v60 = vld [vmem:[%s3226_s1 + $0xa8] sm:$0xff] }
  0x45   :  { %457 = vmatpush.msrb.mxu2 %v33_v0  ;;  %479 = vmatpush.msrb.mxu3 %v169_v1  ;;  %v186_v59 = vld [vmem:[%s3226_s1 + $0x4e0] sm:$0xff]  ;;  %v187_v61 = vld [vmem:[%s3226_s1 + $0x4e8] sm:$0xff] }
  0x46   :  { %412 = vmatmul.f32.vlgmr.msrb.gmra.mxu0 %v1748_v30  ;;  %458 = vmatmul.f32.vlgmr.msrb.gmra.mxu2 %v1748_v30  ;;  %v42_v62 = vld [vmem:[%s3226_s1 + $0x60] sm:$0xff]  ;;  %v43_v0 = vld [vmem:[%s3226_s1 + $0x68] sm:$0xff] }
  0x47   :  { %488 = vmatpush.msra.mxu0 %v154_v2  ;;  %534 = vmatpush.msra.mxu2 %v155_v3  ;;  %v178_v63 = vld [vmem:[%s3226_s1 + $0x4a0] sm:$0xff]  ;;  %v179_v1 = vld [vmem:[%s3226_s1 + $0x4a8] sm:$0xff] }
  0x48   :  { %434 = vmatpush.msrb.mxu1 %v160_v4  ;;  %480 = vmatpush.msrb.mxu3 %v161_v5  ;;  %v34_v2 = vld [vmem:[%s3226_s1 + $0x20] sm:$0xff]  ;;  %v35_v4 = vld [vmem:[%s3226_s1 + $0x28] sm:$0xff] }
  0x49   :  { %435 = vmatmul.f32.vlgmr.msrb.gmra.mxu1 %v1767_v35  ;;  %481 = vmatmul.f32.vlgmr.msrb.gmra.mxu3 %v1767_v35  ;;  %v170_v3 = vld [vmem:[%s3226_s1 + $0x460] sm:$0xff]  ;;  %v171_v5 = vld [vmem:[%s3226_s1 + $0x468] sm:$0xff] }
  0x4a   :  { %489 = vmatpush.msra.mxu0 %v146_v6  ;;  %511 = vmatpush.msra.mxu1 %v282_v7  ;;  %v156_v6 = vld [vmem:[%s3226_s1 + $0x3f0] sm:$0xff]  ;;  %v157_v7 = vld [vmem:[%s3226_s1 + $0x3f8] sm:$0xff] }
  0x4b   :  { %535 = vmatpush.msra.mxu2 %v147_v8  ;;  %557 = vmatpush.msra.mxu3 %v283_v9  ;;  %v162_v8 = vld [vmem:[%s3226_s1 + $0x420] sm:$0xff]  ;;  %v163_v9 = vld [vmem:[%s3226_s1 + $0x428] sm:$0xff] }
  0x4c   :  { %490 = vmatpush.msra.mxu0 %v138_v10  ;;  %512 = vmatpush.msra.mxu1 %v274_v11  ;;  %v148_v10 = vld [vmem:[%s3226_s1 + $0x3b0] sm:$0xff] }
  0x4d   :  { %536 = vmatpush.msra.mxu2 %v139_v12  ;;  %558 = vmatpush.msra.mxu3 %v275_v13  ;;  %v284_v11 = vld [vmem:[%s3226_s1 + $0x7f0] sm:$0xff]  ;;  %v149_v12 = vld [vmem:[%s3226_s1 + $0x3b8] sm:$0xff] }
  0x4e   :  { %491 = vmatpush.msra.mxu0 %v130_v14  ;;  %513 = vmatpush.msra.mxu1 %v266_v15  ;;  %v285_v13 = vld [vmem:[%s3226_s1 + $0x7f8] sm:$0xff]  ;;  %v140_v14 = vld [vmem:[%s3226_s1 + $0x370] sm:$0xff] }
  0x4f   :  { %537 = vmatpush.msra.mxu2 %v131_v16  ;;  %559 = vmatpush.msra.mxu3 %v267_v17  ;;  %v276_v15 = vld [vmem:[%s3226_s1 + $0x7b0] sm:$0xff]  ;;  %v141_v16 = vld [vmem:[%s3226_s1 + $0x378] sm:$0xff] }
  0x50   :  { %492 = vmatpush.msra.mxu0 %v122_v18  ;;  %514 = vmatpush.msra.mxu1 %v258_v19  ;;  %v277_v17 = vld [vmem:[%s3226_s1 + $0x7b8] sm:$0xff]  ;;  %v132_v18 = vld [vmem:[%s3226_s1 + $0x330] sm:$0xff] }
  0x51   :  { %538 = vmatpush.msra.mxu2 %v123_v20  ;;  %560 = vmatpush.msra.mxu3 %v259_v21  ;;  %v268_v19 = vld [vmem:[%s3226_s1 + $0x770] sm:$0xff]  ;;  %v133_v20 = vld [vmem:[%s3226_s1 + $0x338] sm:$0xff] }
  0x52   :  { %493 = vmatpush.msra.mxu0 %v114_v22  ;;  %515 = vmatpush.msra.mxu1 %v250_v23  ;;  %v269_v21 = vld [vmem:[%s3226_s1 + $0x778] sm:$0xff]  ;;  %v124_v22 = vld [vmem:[%s3226_s1 + $0x2f0] sm:$0xff] }
  0x53   :  { %539 = vmatpush.msra.mxu2 %v115_v24  ;;  %561 = vmatpush.msra.mxu3 %v251_v25  ;;  %v260_v23 = vld [vmem:[%s3226_s1 + $0x730] sm:$0xff]  ;;  %v125_v24 = vld [vmem:[%s3226_s1 + $0x2f8] sm:$0xff] }
  0x54   :  { %494 = vmatpush.msra.mxu0 %v106_v26  ;;  %516 = vmatpush.msra.mxu1 %v242_v27  ;;  %v261_v25 = vld [vmem:[%s3226_s1 + $0x738] sm:$0xff]  ;;  %v116_v26 = vld [vmem:[%s3226_s1 + $0x2b0] sm:$0xff] }
  0x55   :  { %540 = vmatpush.msra.mxu2 %v107_v28  ;;  %562 = vmatpush.msra.mxu3 %v243_v29  ;;  %v252_v27 = vld [vmem:[%s3226_s1 + $0x6f0] sm:$0xff]  ;;  %v117_v28 = vld [vmem:[%s3226_s1 + $0x2b8] sm:$0xff] }
  0x56   :  { %495 = vmatpush.msra.mxu0 %v98_v31  ;;  %517 = vmatpush.msra.mxu1 %v234_v32  ;;  %v253_v29 = vld [vmem:[%s3226_s1 + $0x6f8] sm:$0xff]  ;;  %v108_v31 = vld [vmem:[%s3226_s1 + $0x270] sm:$0xff] }
  0x57   :  { %541 = vmatpush.msra.mxu2 %v99_v33  ;;  %563 = vmatpush.msra.mxu3 %v235_v34  ;;  %v244_v32 = vld [vmem:[%s3226_s1 + $0x6b0] sm:$0xff]  ;;  %v109_v33 = vld [vmem:[%s3226_s1 + $0x278] sm:$0xff] }
  0x58   :  { %496 = vmatpush.msra.mxu0 %v90_v36  ;;  %518 = vmatpush.msra.mxu1 %v226_v37  ;;  %v245_v34 = vld [vmem:[%s3226_s1 + $0x6b8] sm:$0xff]  ;;  %v100_v36 = vld [vmem:[%s3226_s1 + $0x230] sm:$0xff] }
  0x59   :  { %542 = vmatpush.msra.mxu2 %v91_v38  ;;  %564 = vmatpush.msra.mxu3 %v227_v39  ;;  %v236_v37 = vld [vmem:[%s3226_s1 + $0x670] sm:$0xff]  ;;  %v101_v38 = vld [vmem:[%s3226_s1 + $0x238] sm:$0xff] }
  0x5a   :  { %461 = vmatmul.f32.gmra.mxu2 %v1810_v48  ;;  %497 = vmatpush.msra.mxu0 %v82_v40  ;;  %v237_v39 = vld [vmem:[%s3226_s1 + $0x678] sm:$0xff]  ;;  %v92_v40 = vld [vmem:[%s3226_s1 + $0x1f0] sm:$0xff] }
  0x5b   :  { %519 = vmatpush.msra.mxu1 %v218_v41  ;;  %543 = vmatpush.msra.mxu2 %v83_v42  ;;  %v228_v41 = vld [vmem:[%s3226_s1 + $0x630] sm:$0xff]  ;;  %v93_v42 = vld [vmem:[%s3226_s1 + $0x1f8] sm:$0xff] }
  0x5c   :  { %565 = vmatpush.msra.mxu3 %v219_v43  ;;  %498 = vmatpush.msra.mxu0 %v74_v44  ;;  %v229_v43 = vld [vmem:[%s3226_s1 + $0x638] sm:$0xff]  ;;  %v84_v44 = vld [vmem:[%s3226_s1 + $0x1b0] sm:$0xff] }
  0x5d   :  { %484 = vmatmul.f32.gmra.mxu3 %v1829_v53  ;;  %520 = vmatpush.msra.mxu1 %v210_v45  ;;  %v220_v45 = vld [vmem:[%s3226_s1 + $0x5f0] sm:$0xff] }
  0x5e   :  { %544 = vmatpush.msra.mxu2 %v75_v46  ;;  %566 = vmatpush.msra.mxu3 %v211_v47  ;;  %v85_v46 = vld [vmem:[%s3226_s1 + $0x1b8] sm:$0xff] }
  0x5f   :  { %415 = vmatmul.f32.gmra.mxu0 %v1810_v48  ;;  %521 = vmatpush.msra.mxu1 %v202_v49  ;;  %v221_v47 = vld [vmem:[%s3226_s1 + $0x5f8] sm:$0xff]  ;;  %v76_v49 = vld [vmem:[%s3226_s1 + $0x170] sm:$0xff] }
  0x60   :  { %499 = vmatpush.msra.mxu0 %v66_v50  ;;  %545 = vmatpush.msra.mxu2 %v67_v51  ;;  %v212_v50 = vld [vmem:[%s3226_s1 + $0x5b0] sm:$0xff]  ;;  %v77_v51 = vld [vmem:[%s3226_s1 + $0x178] sm:$0xff] }
  0x61   :  { %567 = vmatpush.msra.mxu3 %v203_v52  ;;  %438 = vmatmul.f32.gmra.mxu1 %v1829_v53  ;;  %v213_v52 = vld [vmem:[%s3226_s1 + $0x5b8] sm:$0xff] }
  0x62   :  { %500 = vmatpush.msra.mxu0 %v58_v54  ;;  %522 = vmatpush.msra.mxu1 %v194_v55  ;;  %v68_v54 = vld [vmem:[%s3226_s1 + $0x130] sm:$0xff] }
  0x63   :  { %546 = vmatpush.msra.mxu2 %v59_v56  ;;  %568 = vmatpush.msra.mxu3 %v195_v57  ;;  %v204_v55 = vld [vmem:[%s3226_s1 + $0x570] sm:$0xff]  ;;  %v69_v56 = vld [vmem:[%s3226_s1 + $0x138] sm:$0xff] }
  0x64   :  { %501 = vmatpush.msra.mxu0 %v50_v58  ;;  %523 = vmatpush.msra.mxu1 %v186_v59  ;;  %v205_v57 = vld [vmem:[%s3226_s1 + $0x578] sm:$0xff]  ;;  %v60_v58 = vld [vmem:[%s3226_s1 + $0xf0] sm:$0xff] }
  0x65   :  { %547 = vmatpush.msra.mxu2 %v51_v60  ;;  %569 = vmatpush.msra.mxu3 %v187_v61  ;;  %v196_v59 = vld [vmem:[%s3226_s1 + $0x530] sm:$0xff]  ;;  %v61_v60 = vld [vmem:[%s3226_s1 + $0xf8] sm:$0xff] }
  0x66   :  { %502 = vmatpush.msra.mxu0 %v42_v62  ;;  %524 = vmatpush.msra.mxu1 %v178_v63  ;;  %v197_v61 = vld [vmem:[%s3226_s1 + $0x538] sm:$0xff]  ;;  %v52_v62 = vld [vmem:[%s3226_s1 + $0xb0] sm:$0xff] }
  0x67   :  { %548 = vmatpush.msra.mxu2 %v43_v0  ;;  %570 = vmatpush.msra.mxu3 %v179_v1  ;;  %v188_v63 = vld [vmem:[%s3226_s1 + $0x4f0] sm:$0xff]  ;;  %v53_v0 = vld [vmem:[%s3226_s1 + $0xb8] sm:$0xff] }
  0x68   :  { %503 = vmatpush.msra.mxu0 %v34_v2  ;;  %525 = vmatpush.msra.mxu1 %v170_v3  ;;  %v189_v1 = vld [vmem:[%s3226_s1 + $0x4f8] sm:$0xff]  ;;  %v44_v2 = vld [vmem:[%s3226_s1 + $0x70] sm:$0xff] }
  0x69   :  { %549 = vmatpush.msra.mxu2 %v35_v4  ;;  %571 = vmatpush.msra.mxu3 %v171_v5  ;;  %v180_v3 = vld [vmem:[%s3226_s1 + $0x4b0] sm:$0xff]  ;;  %v45_v4 = vld [vmem:[%s3226_s1 + $0x78] sm:$0xff] }
  0x6a   :  { %504 = vmatmul.f32.vlgmr.msra.gmra.mxu0 %v1748_v30  ;;  %550 = vmatmul.f32.vlgmr.msra.gmra.mxu2 %v1748_v30  ;;  %v181_v5 = vld [vmem:[%s3226_s1 + $0x4b8] sm:$0xff] }
  0x6b   :  { %580 = vmatpush.msrb.mxu0 %v156_v6  ;;  %626 = vmatpush.msrb.mxu2 %v157_v7  ;;  %v36_v6 = vld [vmem:[%s3226_s1 + $0x30] sm:$0xff] }
  0x6c   :  { %526 = vmatpush.msra.mxu1 %v162_v8  ;;  %572 = vmatpush.msra.mxu3 %v163_v9  ;;  %v172_v7 = vld [vmem:[%s3226_s1 + $0x470] sm:$0xff]  ;;  %v37_v8 = vld [vmem:[%s3226_s1 + $0x38] sm:$0xff] }
  0x6d   :  { %527 = vmatmul.f32.vlgmr.msra.gmra.mxu1 %v1767_v35  ;;  %573 = vmatmul.f32.vlgmr.msra.gmra.mxu3 %v1767_v35  ;;  %v173_v9 = vld [vmem:[%s3226_s1 + $0x478] sm:$0xff] }
  0x6e   :  { %581 = vmatpush.msrb.mxu0 %v148_v10  ;;  %603 = vmatpush.msrb.mxu1 %v284_v11  ;;  %v164_v10 = vld [vmem:[%s3226_s1 + $0x430] sm:$0xff]  ;;  %v165_v11 = vld [vmem:[%s3226_s1 + $0x438] sm:$0xff] }
  0x6f   :  { %627 = vmatpush.msrb.mxu2 %v149_v12  ;;  %649 = vmatpush.msrb.mxu3 %v285_v13  ;;  %v718_v12 = vld [vmem:[%s3228_s3 + $0xf0] sm:$0xff] }
  0x70   :  { %582 = vmatpush.msrb.mxu0 %v140_v14  ;;  %604 = vmatpush.msrb.mxu1 %v276_v15  ;;  %v750_v13 = vld [vmem:[%s3228_s3 + $0x1f0] sm:$0xff]  ;;  %v748_v15 = vld [vmem:[%s3228_s3 + $0x1e0] sm:$0xff] }
  0x71   :  { %628 = vmatpush.msrb.mxu2 %v141_v16  ;;  %650 = vmatpush.msrb.mxu3 %v277_v17  ;;  %v782_v14 = vld [vmem:[%s3228_s3 + $0x2f0] sm:$0xff]  ;;  %v780_v16 = vld [vmem:[%s3228_s3 + $0x2e0] sm:$0xff] }
  0x72   :  { %583 = vmatpush.msrb.mxu0 %v132_v18  ;;  %605 = vmatpush.msrb.mxu1 %v268_v19  ;;  %v714_v17 = vld [vmem:[%s3228_s3 + $0xd0] sm:$0xff]  ;;  %v712_v18 = vld [vmem:[%s3228_s3 + $0xc0] sm:$0xff] }
  0x73   :  { %629 = vmatpush.msrb.mxu2 %v133_v20  ;;  %651 = vmatpush.msrb.mxu3 %v269_v21  ;;  %v744_v19 = vld [vmem:[%s3228_s3 + $0x1c0] sm:$0xff]  ;;  %v710_v20 = vld [vmem:[%s3228_s3 + $0xb0] sm:$0xff] }
  0x74   :  { %507 = vmatmul.f32.gmra.mxu0 %v1810_v48  ;;  %553 = vmatmul.f32.gmra.mxu2 %v1810_v48  ;;  %v742_v21 = vld [vmem:[%s3228_s3 + $0x1b0] sm:$0xff] }
  0x75   :  { %584 = vmatpush.msrb.mxu0 %v124_v22  ;;  %606 = vmatpush.msrb.mxu1 %v260_v23  ;;  %v778_v22 = vld [vmem:[%s3228_s3 + $0x2d0] sm:$0xff] }
  0x76   :  { %630 = vmatpush.msrb.mxu2 %v125_v24  ;;  %652 = vmatpush.msrb.mxu3 %v261_v25  ;;  %v814_v23 = vld [vmem:[%s3228_s3 + $0x3f0] sm:$0xff]  ;;  %v740_v24 = vld [vmem:[%s3228_s3 + $0x1a0] sm:$0xff] }
  0x77   :  { %530 = vmatmul.f32.gmra.mxu1 %v1829_v53  ;;  %576 = vmatmul.f32.gmra.mxu3 %v1829_v53  ;;  %v776_v25 = vld [vmem:[%s3228_s3 + $0x2c0] sm:$0xff] }
  0x78   :  { %585 = vmatpush.msrb.mxu0 %v116_v26  ;;  %607 = vmatpush.msrb.mxu1 %v252_v27  ;;  %v812_v26 = vld [vmem:[%s3228_s3 + $0x3e0] sm:$0xff]  ;;  %v738_v27 = vld [vmem:[%s3228_s3 + $0x190] sm:$0xff] }
  0x79   :  { %631 = vmatpush.msrb.mxu2 %v117_v28  ;;  %653 = vmatpush.msrb.mxu3 %v253_v29  ;;  %v774_v28 = vld [vmem:[%s3228_s3 + $0x2b0] sm:$0xff] }
  0x7a   :  { %586 = vmatpush.msrb.mxu0 %v108_v31  ;;  %608 = vmatpush.msrb.mxu1 %v244_v32  ;;  %v810_v29 = vld [vmem:[%s3228_s3 + $0x3d0] sm:$0xff]  ;;  %v704_v31 = vld [vmem:[%s3228_s3 + $0x80] sm:$0xff] }
  0x7b   :  { %632 = vmatpush.msrb.mxu2 %v109_v33  ;;  %654 = vmatpush.msrb.mxu3 %v245_v34  ;;  %v736_v32 = vld [vmem:[%s3228_s3 + $0x180] sm:$0xff] }
  0x7c   :  { %587 = vmatpush.msrb.mxu0 %v100_v36  ;;  %609 = vmatpush.msrb.mxu1 %v236_v37  ;;  %v772_v33 = vld [vmem:[%s3228_s3 + $0x2a0] sm:$0xff]  ;;  %v702_v36 = vld [vmem:[%s3228_s3 + $0x70] sm:$0xff] }
  0x7d   :  { %633 = vmatpush.msrb.mxu2 %v101_v38  ;;  %655 = vmatpush.msrb.mxu3 %v237_v39  ;;  %v808_v34 = vld [vmem:[%s3228_s3 + $0x3c0] sm:$0xff]  ;;  %v734_v37 = vld [vmem:[%s3228_s3 + $0x170] sm:$0xff] }
  0x7e   :  { %588 = vmatpush.msrb.mxu0 %v92_v40  ;;  %610 = vmatpush.msrb.mxu1 %v228_v41  ;;  %v770_v38 = vld [vmem:[%s3228_s3 + $0x290] sm:$0xff]  ;;  %v700_v40 = vld [vmem:[%s3228_s3 + $0x60] sm:$0xff] }
  0x7f   :  { %634 = vmatpush.msrb.mxu2 %v93_v42  ;;  %656 = vmatpush.msrb.mxu3 %v229_v43  ;;  %v806_v39 = vld [vmem:[%s3228_s3 + $0x3b0] sm:$0xff]  ;;  %v732_v41 = vld [vmem:[%s3228_s3 + $0x160] sm:$0xff] }
  0x80   :  { %589 = vmatpush.msrb.mxu0 %v84_v44  ;;  %611 = vmatpush.msrb.mxu1 %v220_v45  ;;  %v768_v42 = vld [vmem:[%s3228_s3 + $0x280] sm:$0xff]  ;;  %v698_v44 = vld [vmem:[%s3228_s3 + $0x50] sm:$0xff] }
  0x81   :  { %635 = vmatpush.msrb.mxu2 %v85_v46  ;;  %657 = vmatpush.msrb.mxu3 %v221_v47  ;;  %v804_v43 = vld [vmem:[%s3228_s3 + $0x3a0] sm:$0xff]  ;;  %v730_v45 = vld [vmem:[%s3228_s3 + $0x150] sm:$0xff] }
  0x82   :  { %590 = vmatpush.msrb.mxu0 %v76_v49  ;;  %612 = vmatpush.msrb.mxu1 %v212_v50  ;;  %v766_v46 = vld [vmem:[%s3228_s3 + $0x270] sm:$0xff]  ;;  %v696_v49 = vld [vmem:[%s3228_s3 + $0x40] sm:$0xff] }
  0x83   :  { %636 = vmatpush.msrb.mxu2 %v77_v51  ;;  %658 = vmatpush.msrb.mxu3 %v213_v52  ;;  %v802_v47 = vld [vmem:[%s3228_s3 + $0x390] sm:$0xff]  ;;  %v728_v50 = vld [vmem:[%s3228_s3 + $0x140] sm:$0xff] }
  0x84   :  { %591 = vmatpush.msrb.mxu0 %v68_v54  ;;  %613 = vmatpush.msrb.mxu1 %v204_v55  ;;  %v764_v51 = vld [vmem:[%s3228_s3 + $0x260] sm:$0xff]  ;;  %v694_v54 = vld [vmem:[%s3228_s3 + $0x30] sm:$0xff] }
  0x85   :  { %637 = vmatpush.msrb.mxu2 %v69_v56  ;;  %659 = vmatpush.msrb.mxu3 %v205_v57  ;;  %v800_v52 = vld [vmem:[%s3228_s3 + $0x380] sm:$0xff]  ;;  %v726_v55 = vld [vmem:[%s3228_s3 + $0x130] sm:$0xff] }
  0x86   :  { %592 = vmatpush.msrb.mxu0 %v60_v58  ;;  %614 = vmatpush.msrb.mxu1 %v196_v59  ;;  %v762_v56 = vld [vmem:[%s3228_s3 + $0x250] sm:$0xff]  ;;  %v692_v58 = vld [vmem:[%s3228_s3 + $0x20] sm:$0xff] }
  0x87   :  { %638 = vmatpush.msrb.mxu2 %v61_v60  ;;  %660 = vmatpush.msrb.mxu3 %v197_v61  ;;  %v798_v57 = vld [vmem:[%s3228_s3 + $0x370] sm:$0xff]  ;;  %v724_v59 = vld [vmem:[%s3228_s3 + $0x120] sm:$0xff] }
  0x88   :  { %593 = vmatpush.msrb.mxu0 %v52_v62  ;;  %615 = vmatpush.msrb.mxu1 %v188_v63  ;;  %v2430_v60 = vld [vmem:[%s3229_s2] sm:$0xff]  ;;  %v690_v63 = vld [vmem:[%s3228_s3 + $0x10] sm:$0xff] }
  0x89   :  { %639 = vmatpush.msrb.mxu2 %v53_v0  ;;  %661 = vmatpush.msrb.mxu3 %v189_v1  ;;  %v760_v61 = vld [vmem:[%s3228_s3 + $0x240] sm:$0xff]  ;;  %v722_v0 = vld [vmem:[%s3228_s3 + $0x110] sm:$0xff] }
  0x8a   :  { %594 = vmatpush.msrb.mxu0 %v44_v2  ;;  %616 = vmatpush.msrb.mxu1 %v180_v3  ;;  %v796_v62 = vld [vmem:[%s3228_s3 + $0x360] sm:$0xff]  ;;  %v758_v1 = vld [vmem:[%s3228_s3 + $0x230] sm:$0xff] }
  0x8b   :  { %640 = vmatpush.msrb.mxu2 %v45_v4  ;;  %662 = vmatpush.msrb.mxu3 %v181_v5  ;;  %v794_v2 = vld [vmem:[%s3228_s3 + $0x350] sm:$0xff]  ;;  %v688_v3 = vld [vmem:[%s3228_s3] sm:$0xff]  ;;  %v288_v5 = vperm.slane %v2430_v60, 0 }
  0x8c   :  { %595 = vmatpush.msrb.mxu0 %v36_v6  ;;  %617 = vmatpush.msrb.mxu1 %v172_v7  ;;  %v720_v4 = vld [vmem:[%s3228_s3 + $0x100] sm:$0xff]  ;;  %v846_v6 = vld [vmem:[%s3228_s3 + $0x4f0] sm:$0xff] }
  0x8d   :  { %641 = vmatpush.msrb.mxu2 %v37_v8  ;;  %663 = vmatpush.msrb.mxu3 %v173_v9  ;;  %v878_v7 = vld [vmem:[%s3228_s3 + $0x5f0] sm:$0xff]  ;;  %v756_v8 = vld [vmem:[%s3228_s3 + $0x220] sm:$0xff] }
  0x8e   :  { %596 = vmatmul.f32.vlgmr.msrb.gmra.mxu0 %v1748_v30  ;;  %642 = vmatmul.f32.vlgmr.msrb.gmra.mxu2 %v1748_v30  ;;  %v716_v30 = vld [vmem:[%s3228_s3 + $0xe0] sm:$0xff] }
  0x8f   :  { %618 = vmatpush.msrb.mxu1 %v164_v10  ;;  %664 = vmatpush.msrb.mxu3 %v165_v11  ;;  %v792_v9 = vld [vmem:[%s3228_s3 + $0x340] sm:$0xff] }
  0x90   :  { %619 = vmatmul.f32.vlgmr.msrb.gmra.mxu1 %v1767_v35  ;;  %665 = vmatmul.f32.vlgmr.msrb.gmra.mxu3 %v1767_v35  ;;  %v746_v35 = vld [vmem:[%s3228_s3 + $0x1d0] sm:$0xff]  ;;  %v844_v10 = vld [vmem:[%s3228_s3 + $0x4e0] sm:$0xff] }
  0x91   :  { %944 = vmatpush.msra.mxu0 %v718_v12  ;;  %967 = vmatpush.msra.mxu1 %v750_v13  ;;  %v876_v12 = vld [vmem:[%s3228_s3 + $0x5e0] sm:$0xff] }
  0x92   :  { %990 = vmatpush.msra.mxu2 %v782_v14  ;;  %1013 = vmatpush.msra.mxu3 %v814_v23  ;;  %v754_v14 = vld [vmem:[%s3228_s3 + $0x210] sm:$0xff] }
  0x93   :  { %945 = vmatpush.msra.mxu0 %v716_v30  ;;  %968 = vmatpush.msra.mxu1 %v748_v15  ;;  %v790_v30 = vld [vmem:[%s3228_s3 + $0x330] sm:$0xff] }
  0x94   :  { %991 = vmatpush.msra.mxu2 %v780_v16  ;;  %1014 = vmatpush.msra.mxu3 %v812_v26  ;;  %v842_v15 = vld [vmem:[%s3228_s3 + $0x4d0] sm:$0xff] }
  0x95   :  { %946 = vmatpush.msra.mxu0 %v714_v17  ;;  %969 = vmatpush.msra.mxu1 %v746_v35  ;;  %v874_v16 = vld [vmem:[%s3228_s3 + $0x5d0] sm:$0xff]  ;;  %v289_v35 = vperm.slane %v2430_v60, 1 }
  0x96   :  { %599 = vmatmul.f32.gmra.mxu0 %v1810_v48  ;;  %645 = vmatmul.f32.gmra.mxu2 %v1810_v48  ;;  %v708_v48 = vld [vmem:[%s3228_s3 + $0xa0] sm:$0xff]  ;;  %v910_v23 = vld [vmem:[%s3228_s3 + $0x6f0] sm:$0xff] }
  0x97   :  { %947 = vmatpush.msra.mxu0 %v712_v18  ;;  %970 = vmatpush.msra.mxu1 %v744_v19  ;;  %v752_v18 = vld [vmem:[%s3228_s3 + $0x200] sm:$0xff]  ;;  %v870_v26 = vld [vmem:[%s3228_s3 + $0x5b0] sm:$0xff] }
  0x98   :  { %622 = vmatmul.f32.gmra.mxu1 %v1829_v53  ;;  %668 = vmatmul.f32.gmra.mxu3 %v1829_v53  ;;  %v706_v53 = vld [vmem:[%s3228_s3 + $0x90] sm:$0xff]  ;;  %v788_v19 = vld [vmem:[%s3228_s3 + $0x320] sm:$0xff] }
  0x99   :  { %948 = vmatpush.msra.mxu0 %v710_v20  ;;  %971 = vmatpush.msra.mxu1 %v742_v21  ;;  %v840_v20 = vld [vmem:[%s3228_s3 + $0x4c0] sm:$0xff] }
  0x9a   :  { %992 = vmatpush.msra.mxu2 %v778_v22  ;;  %1015 = vmatpush.msra.mxu3 %v810_v29  ;;  %v872_v22 = vld [vmem:[%s3228_s3 + $0x5c0] sm:$0xff] }
  0x9b   :  { %949 = vmatpush.msra.mxu0 %v708_v48  ;;  %972 = vmatpush.msra.mxu1 %v740_v24  ;;  %v838_v48 = vld [vmem:[%s3228_s3 + $0x4b0] sm:$0xff]  ;;  %v836_v29 = vld [vmem:[%s3228_s3 + $0x4a0] sm:$0xff] }
  0x9c   :  { %993 = vmatpush.msra.mxu2 %v776_v25  ;;  %1016 = vmatpush.msra.mxu3 %v808_v34  ;;  %v906_v34 = vld [vmem:[%s3228_s3 + $0x6d0] sm:$0xff] }
  0x9d   :  { %950 = vmatpush.msra.mxu0 %v706_v53  ;;  %973 = vmatpush.msra.mxu1 %v738_v27  ;;  %v786_v27 = vld [vmem:[%s3228_s3 + $0x310] sm:$0xff] }
  0x9e   :  { %994 = vmatpush.msra.mxu2 %v774_v28  ;;  %1017 = vmatpush.msra.mxu3 %v806_v39  ;;  %v908_v28 = vld [vmem:[%s3228_s3 + $0x6e0] sm:$0xff]  ;;  %v866_v39 = vld [vmem:[%s3228_s3 + $0x590] sm:$0xff] }
  0x9f   :  { %951 = vmatpush.msra.mxu0 %v704_v31  ;;  %974 = vmatpush.msra.mxu1 %v736_v32  ;;  %v868_v31 = vld [vmem:[%s3228_s3 + $0x5a0] sm:$0xff] }
  0xa0   :  { %995 = vmatpush.msra.mxu2 %v772_v33  ;;  %1018 = vmatpush.msra.mxu3 %v804_v43  ;;  %v784_v33 = vld [vmem:[%s3228_s3 + $0x300] sm:$0xff] }
  0xa1   :  { %952 = vmatpush.msra.mxu0 %v702_v36  ;;  %975 = vmatpush.msra.mxu1 %v734_v37  ;;  %v834_v36 = vld [vmem:[%s3228_s3 + $0x490] sm:$0xff]  ;;  %v864_v43 = vld [vmem:[%s3228_s3 + $0x580] sm:$0xff] }
  0xa2   :  { %996 = vmatpush.msra.mxu2 %v770_v38  ;;  %1019 = vmatpush.msra.mxu3 %v802_v47  ;;  %v830_v47 = vld [vmem:[%s3228_s3 + $0x470] sm:$0xff] }
  0xa3   :  { %953 = vmatpush.msra.mxu0 %v700_v40  ;;  %976 = vmatpush.msra.mxu1 %v732_v41  ;;  %v904_v40 = vld [vmem:[%s3228_s3 + $0x6c0] sm:$0xff] }
  0xa4   :  { %997 = vmatpush.msra.mxu2 %v768_v42  ;;  %1020 = vmatpush.msra.mxu3 %v800_v52  ;;  %v832_v41 = vld [vmem:[%s3228_s3 + $0x480] sm:$0xff] }
  0xa5   :  { %954 = vmatpush.msra.mxu0 %v698_v44  ;;  %977 = vmatpush.msra.mxu1 %v730_v45  ;;  %v942_v45 = vld [vmem:[%s3228_s3 + $0x7f0] sm:$0xff]  ;;  %v828_v52 = vld [vmem:[%s3228_s3 + $0x460] sm:$0xff] }
  0xa6   :  { %998 = vmatpush.msra.mxu2 %v766_v46  ;;  %1021 = vmatpush.msra.mxu3 %v798_v57  ;;  %v902_v46 = vld [vmem:[%s3228_s3 + $0x6b0] sm:$0xff] }
  0xa7   :  { %955 = vmatpush.msra.mxu0 %v696_v49  ;;  %978 = vmatpush.msra.mxu1 %v728_v50  ;;  %v862_v49 = vld [vmem:[%s3228_s3 + $0x570] sm:$0xff]  ;;  %v940_v50 = vld [vmem:[%s3228_s3 + $0x7e0] sm:$0xff] }
  0xa8   :  { %999 = vmatpush.msra.mxu2 %v764_v51  ;;  %1022 = vmatpush.msra.mxu3 %v796_v62  ;;  %v900_v51 = vld [vmem:[%s3228_s3 + $0x6a0] sm:$0xff]  ;;  %v938_v57 = vld [vmem:[%s3228_s3 + $0x7d0] sm:$0xff] }
  0xa9   :  { %956 = vmatpush.msra.mxu0 %v694_v54  ;;  %979 = vmatpush.msra.mxu1 %v726_v55  ;;  %v860_v55 = vld [vmem:[%s3228_s3 + $0x560] sm:$0xff] }
  0xaa   :  { %1000 = vmatpush.msra.mxu2 %v762_v56  ;;  %1023 = vmatpush.msra.mxu3 %v794_v2  ;;  %v290_v56 = vperm.slane %v2430_v60, 2 }
  0xab   :  { %957 = vmatpush.msra.mxu0 %v692_v58  ;;  %980 = vmatpush.msra.mxu1 %v724_v59  ;;  %v898_v58 = vld [vmem:[%s3228_s3 + $0x690] sm:$0xff] }
  0xac   :  { %1001 = vmatpush.msra.mxu2 %v760_v61  ;;  %1024 = vmatpush.msra.mxu3 %v792_v9  ;;  %v826_v59 = vld [vmem:[%s3228_s3 + $0x450] sm:$0xff] }
  0xad   :  { %958 = vmatpush.msra.mxu0 %v690_v63  ;;  %981 = vmatpush.msra.mxu1 %v722_v0  ;;  %v858_v61 = vld [vmem:[%s3228_s3 + $0x550] sm:$0xff]  ;;  %v936_v63 = vld [vmem:[%s3228_s3 + $0x7c0] sm:$0xff] }
  0xae   :  { %1002 = vmatpush.msra.mxu2 %v758_v1  ;;  %1025 = vmatpush.msra.mxu3 %v790_v30  ;;  %v896_v0 = vld [vmem:[%s3228_s3 + $0x680] sm:$0xff]  ;;  %v822_v9 = vld [vmem:[%s3228_s3 + $0x430] sm:$0xff] }
  0xaf   :  { %959 = vmatpush.msra.mxu0 %v688_v3  ;;  %982 = vmatpush.msra.mxu1 %v720_v4  ;;  %v321_v11 = vpop.f32.mrf.mxu0  ;;  %v824_v1 = vld [vmem:[%s3228_s3 + $0x440] sm:$0xff] }
  0xb0   :  { %v322_v13 = vadd.f32 %v321_v11, %v288_v5  ;;  %1003 = vmatpush.msra.mxu2 %v756_v8  ;;  %1026 = vmatpush.msra.mxu3 %v788_v19  ;;  %v856_v3 = vld [vmem:[%s3228_s3 + $0x540] sm:$0xff]  ;;  %v894_v8 = vld [vmem:[%s3228_s3 + $0x670] sm:$0xff]  ;;  %v291_v11 = vperm.slane %v2430_v60, 3 }
  0xb1   :  { %1036 = vmatpush.msrb.mxu0 %v846_v6  ;;  %1059 = vmatpush.msrb.mxu1 %v878_v7  ;;  %v934_v7 = vld [vmem:[%s3228_s3 + $0x7b0] sm:$0xff]  ;;  %v820_v30 = vld [vmem:[%s3228_s3 + $0x420] sm:$0xff] }
  0xb2   :  { %v344_v17 = vpop.f32.mrf.mxu1  ;;  %1004 = vmatpush.msra.mxu2 %v754_v14  ;;  %1027 = vmatpush.msra.mxu3 %v786_v27 }
  0xb3   :  { %1037 = vmatpush.msrb.mxu0 %v844_v10  ;;  %1060 = vmatpush.msrb.mxu1 %v876_v12  ;;  %v2499_v21 = vadd.f32 %v344_v17, %v322_v13  ;;  %v932_v12 = vld [vmem:[%s3228_s3 + $0x7a0] sm:$0xff]  ;;  %v930_v17 = vld [vmem:[%s3228_s3 + $0x790] sm:$0xff] }
  0xb4   :  { %1005 = vmatpush.msra.mxu2 %v752_v18  ;;  %1028 = vmatpush.msra.mxu3 %v784_v33  ;;  %v892_v13 = vld [vmem:[%s3228_s3 + $0x660] sm:$0xff] }
  0xb5   :  { %1038 = vmatpush.msrb.mxu0 %v842_v15  ;;  %1061 = vmatpush.msrb.mxu1 %v874_v16  ;;  %v672_v24 = vmax.f32 %v2499_v21, 0.0  ;;  %v367_v25 = vpop.f32.mrf.mxu2  ;;  %v852_v15 = vld [vmem:[%s3228_s3 + $0x520] sm:$0xff]  ;;  %v825_v21 = vld [vmem:[%s3228_s3 + $0x448] sm:$0xff] }
  0xb6   :  { %v368_v53 = vadd.f32 %v367_v25, %v289_v35  ;;  %1082 = vmatpush.msrb.mxu2 %v910_v23  ;;  %1105 = vmatpush.msrb.mxu3 %v942_v45  ;;  %v850_v23 = vld [vmem:[%s3228_s3 + $0x510] sm:$0xff]  ;;  %v928_v25 = vld [vmem:[%s3228_s3 + $0x780] sm:$0xff]  ;;  %v747_v45 = vld [vmem:[%s3228_s3 + $0x1d8] sm:$0xff] }
  0xb7   :  { %1039 = vmatpush.msrb.mxu0 %v840_v20  ;;  %1062 = vmatpush.msrb.mxu1 %v872_v22  ;;  %v818_v20 = vld [vmem:[%s3228_s3 + $0x410] sm:$0xff] }
  0xb8   :  { %960 = vmatmul.f32.vlgmr.msra.gmra.mxu0 %v672_v24  ;;  %v390_v32 = vpop.f32.mrf.mxu3  ;;  %1083 = vmatpush.msrb.mxu2 %v908_v28 }
  0xb9   :  { %1040 = vmatpush.msrb.mxu0 %v838_v48  ;;  %1063 = vmatpush.msrb.mxu1 %v870_v26  ;;  %v324_v37 = vpop.f32.mrf.mxu0  ;;  %v2539_v38 = vadd.f32 %v390_v32, %v368_v53  ;;  %v816_v26 = vld [vmem:[%s3228_s3 + $0x400] sm:$0xff] }
  0xba   :  { %1084 = vmatpush.msrb.mxu2 %v906_v34  ;;  %1106 = vmatpush.msrb.mxu3 %v940_v50  ;;  %v325_v4 = vadd.f32 %v324_v37, %v288_v5  ;;  %v854_v5 = vld [vmem:[%s3228_s3 + $0x530] sm:$0xff]  ;;  %v848_v53 = vld [vmem:[%s3228_s3 + $0x500] sm:$0xff] }
  0xbb   :  { %1041 = vmatpush.msrb.mxu0 %v836_v29  ;;  %1064 = vmatpush.msrb.mxu1 %v868_v31  ;;  %v673_v42 = vmax.f32 %v2539_v38, 0.0  ;;  %v719_v29 = vld [vmem:[%s3228_s3 + $0xf8] sm:$0xff]  ;;  %v888_v34 = vld [vmem:[%s3228_s3 + $0x640] sm:$0xff] }
  0xbc   :  { %v347_v44 = vpop.f32.mrf.mxu1  ;;  %1085 = vmatpush.msrb.mxu2 %v904_v40  ;;  %1107 = vmatpush.msrb.mxu3 %v938_v57  ;;  %v751_v31 = vld [vmem:[%s3228_s3 + $0x1f8] sm:$0xff]  ;;  %v926_v40 = vld [vmem:[%s3228_s3 + $0x770] sm:$0xff]  ;;  %v884_v50 = vld [vmem:[%s3228_s3 + $0x620] sm:$0xff] }
  0xbd   :  { %1042 = vmatpush.msrb.mxu0 %v834_v36  ;;  %1065 = vmatpush.msrb.mxu1 %v866_v39  ;;  %v2636_v16 = vadd.f32 %v347_v44, %v325_v4  ;;  %v717_v36 = vld [vmem:[%s3228_s3 + $0xe8] sm:$0xff]  ;;  %v819_v38 = vld [vmem:[%s3228_s3 + $0x418] sm:$0xff] }
  0xbe   :  { %983 = vmatmul.f32.vlgmr.msra.gmra.mxu1 %v673_v42  ;;  %1086 = vmatpush.msrb.mxu2 %v902_v46  ;;  %v749_v39 = vld [vmem:[%s3228_s3 + $0x1e8] sm:$0xff]  ;;  %v924_v46 = vld [vmem:[%s3228_s3 + $0x760] sm:$0xff] }
  0xbf   :  { %1043 = vmatpush.msrb.mxu0 %v832_v41  ;;  %1066 = vmatpush.msrb.mxu1 %v864_v43  ;;  %v370_v54 = vpop.f32.mrf.mxu2  ;;  %v680_v27 = vmax.f32 %v2636_v16, 0.0  ;;  %v715_v41 = vld [vmem:[%s3228_s3 + $0xd8] sm:$0xff]  ;;  %v886_v43 = vld [vmem:[%s3228_s3 + $0x630] sm:$0xff]  ;;  %v709_v57 = vld [vmem:[%s3228_s3 + $0xa8] sm:$0xff] }
  0xc0   :  { %1087 = vmatpush.msrb.mxu2 %v900_v51  ;;  %1108 = vmatpush.msrb.mxu3 %v936_v63  ;;  %v371_v18 = vadd.f32 %v370_v54, %v289_v35  ;;  %v890_v35 = vld [vmem:[%s3228_s3 + $0x650] sm:$0xff]  ;;  %v711_v51 = vld [vmem:[%s3228_s3 + $0xb8] sm:$0xff]  ;;  %v737_v4 = vld [vmem:[%s3228_s3 + $0x188] sm:$0xff] }
  0xc1   :  { %1044 = vmatpush.msrb.mxu0 %v830_v47  ;;  %1067 = vmatpush.msrb.mxu1 %v862_v49  ;;  %v713_v47 = vld [vmem:[%s3228_s3 + $0xc8] sm:$0xff]  ;;  %v743_v54 = vld [vmem:[%s3228_s3 + $0x1b8] sm:$0xff]  ;;  %v918_v63 = vld [vmem:[%s3228_s3 + $0x730] sm:$0xff] }
  0xc2   :  { %v393_v62 = vpop.f32.mrf.mxu3  ;;  %1088 = vmatpush.msrb.mxu2 %v898_v58  ;;  %1109 = vmatpush.msrb.mxu3 %v934_v7  ;;  %v745_v49 = vld [vmem:[%s3228_s3 + $0x1c8] sm:$0xff]  ;;  %v920_v58 = vld [vmem:[%s3228_s3 + $0x740] sm:$0xff]  ;;  %v855_v16 = vld [vmem:[%s3228_s3 + $0x538] sm:$0xff] }
  0xc3   :  { %1045 = vmatpush.msrb.mxu0 %v828_v52  ;;  %1068 = vmatpush.msrb.mxu1 %v860_v55  ;;  %v413_v2 = vpop.f32.mrf.mxu0  ;;  %v2673_v32 = vadd.f32 %v393_v62, %v371_v18  ;;  %v922_v52 = vld [vmem:[%s3228_s3 + $0x750] sm:$0xff]  ;;  %v707_v62 = vld [vmem:[%s3228_s3 + $0x98] sm:$0xff] }
  0xc4   :  { %v414_v6 = vadd.f32 %v413_v2, %v290_v56  ;;  %1089 = vmatpush.msrb.mxu2 %v896_v0  ;;  %1110 = vmatpush.msrb.mxu3 %v932_v12  ;;  %v882_v55 = vld [vmem:[%s3228_s3 + $0x610] sm:$0xff]  ;;  %v739_v0 = vld [vmem:[%s3228_s3 + $0x198] sm:$0xff]  ;;  %v705_v2 = vld [vmem:[%s3228_s3 + $0x88] sm:$0xff] }
  0xc5   :  { %1046 = vmatpush.msrb.mxu0 %v826_v59  ;;  %1069 = vmatpush.msrb.mxu1 %v858_v61  ;;  %v681_v44 = vmax.f32 %v2673_v32, 0.0  ;;  %v741_v59 = vld [vmem:[%s3228_s3 + $0x1a8] sm:$0xff]  ;;  %v880_v61 = vld [vmem:[%s3228_s3 + $0x600] sm:$0xff]  ;;  %v735_v12 = vld [vmem:[%s3228_s3 + $0x178] sm:$0xff] }
  0xc6   :  { %v436_v10 = vpop.f32.mrf.mxu1  ;;  %1090 = vmatpush.msrb.mxu2 %v894_v8  ;;  %1111 = vmatpush.msrb.mxu3 %v930_v17  ;;  %v703_v8 = vld [vmem:[%s3228_s3 + $0x78] sm:$0xff]  ;;  %v701_v17 = vld [vmem:[%s3228_s3 + $0x68] sm:$0xff] }
  0xc7   :  { %1047 = vmatpush.msrb.mxu0 %v824_v1  ;;  %1070 = vmatpush.msrb.mxu1 %v856_v3  ;;  %v2628_v14 = vadd.f32 %v436_v10, %v414_v6  ;;  %v783_v1 = vld [vmem:[%s3228_s3 + $0x2f8] sm:$0xff]  ;;  %v916_v3 = vld [vmem:[%s3228_s3 + $0x720] sm:$0xff]  ;;  %v781_v6 = vld [vmem:[%s3228_s3 + $0x2e8] sm:$0xff] }
  0xc8   :  { %1091 = vmatpush.msrb.mxu2 %v892_v13  ;;  %1112 = vmatpush.msrb.mxu3 %v928_v25  ;;  %v779_v13 = vld [vmem:[%s3228_s3 + $0x2d8] sm:$0xff] }
  0xc9   :  { %1048 = vmatpush.msrb.mxu0 %v822_v9  ;;  %1071 = vmatpush.msrb.mxu1 %v854_v5  ;;  %v674_v19 = vmax.f32 %v2628_v14, 0.0  ;;  %v459_v22 = vpop.f32.mrf.mxu2  ;;  %v914_v9 = vld [vmem:[%s3228_s3 + $0x710] sm:$0xff]  ;;  %v731_v25 = vld [vmem:[%s3228_s3 + $0x158] sm:$0xff]  ;;  %v889_v14 = vld [vmem:[%s3228_s3 + $0x648] sm:$0xff] }
  0xca   :  { %v460_v48 = vadd.f32 %v459_v22, %v291_v11  ;;  %1092 = vmatpush.msrb.mxu2 %v890_v35  ;;  %963 = vmatmul.f32.gmra.mxu0 %v680_v27 }
  0xcb   :  { %1049 = vmatpush.msrb.mxu0 %v820_v30  ;;  %1072 = vmatpush.msrb.mxu1 %v852_v15 }
  0xcc   :  { %1006 = vmatmul.f32.vlgmr.msra.gmra.mxu2 %v674_v19  ;;  %v482_v28 = vpop.f32.mrf.mxu3  ;;  %1113 = vmatpush.msrb.mxu3 %v926_v40  ;;  %v727_v40 = vld [vmem:[%s3228_s3 + $0x138] sm:$0xff] }
  0xcd   :  { %1050 = vmatpush.msrb.mxu0 %v818_v20  ;;  %1073 = vmatpush.msrb.mxu1 %v850_v23  ;;  %v2675_v33 = vadd.f32 %v482_v28, %v460_v48  ;;  %v733_v20 = vld [vmem:[%s3228_s3 + $0x168] sm:$0xff]  ;;  %v699_v23 = vld [vmem:[%s3228_s3 + $0x58] sm:$0xff] }
  0xce   :  { %1093 = vmatpush.msrb.mxu2 %v888_v34  ;;  %1114 = vmatpush.msrb.mxu3 %v924_v46  ;;  %v292_v34 = vperm.slane %v2430_v60, 4 }
  0xcf   :  { %1051 = vmatpush.msrb.mxu0 %v816_v26  ;;  %1074 = vmatpush.msrb.mxu1 %v848_v53  ;;  %v675_v37 = vmax.f32 %v2675_v33, 0.0  ;;  %v815_v26 = vld [vmem:[%s3228_s3 + $0x3f8] sm:$0xff]  ;;  %v697_v53 = vld [vmem:[%s3228_s3 + $0x48] sm:$0xff] }
  0xd0   :  { %1094 = vmatpush.msrb.mxu2 %v886_v43  ;;  %986 = vmatmul.f32.gmra.mxu1 %v681_v44  ;;  %v693_v43 = vld [vmem:[%s3228_s3 + $0x28] sm:$0xff]  ;;  %v923_v33 = vld [vmem:[%s3228_s3 + $0x758] sm:$0xff] }
  0xd1   :  { %1128 = vmatpush.msra.mxu0 %v719_v29  ;;  %1151 = vmatpush.msra.mxu1 %v751_v31  ;;  %v729_v29 = vld [vmem:[%s3228_s3 + $0x148] sm:$0xff]  ;;  %v775_v31 = vld [vmem:[%s3228_s3 + $0x2b8] sm:$0xff] }
  0xd2   :  { %1029 = vmatmul.f32.vlgmr.msra.gmra.mxu3 %v675_v37  ;;  %1095 = vmatpush.msrb.mxu2 %v884_v50 }
  0xd3   :  { %1129 = vmatpush.msra.mxu0 %v717_v36  ;;  %1152 = vmatpush.msra.mxu1 %v749_v39  ;;  %v695_v36 = vld [vmem:[%s3228_s3 + $0x38] sm:$0xff]  ;;  %v813_v39 = vld [vmem:[%s3228_s3 + $0x3e8] sm:$0xff] }
  0xd4   :  { %1115 = vmatpush.msrb.mxu3 %v922_v52  ;;  %1096 = vmatpush.msrb.mxu2 %v882_v55  ;;  %v809_v52 = vld [vmem:[%s3228_s3 + $0x3c8] sm:$0xff] }
  0xd5   :  { %1130 = vmatpush.msra.mxu0 %v715_v41  ;;  %1153 = vmatpush.msra.mxu1 %v747_v45  ;;  %v773_v41 = vld [vmem:[%s3228_s3 + $0x2a8] sm:$0xff]  ;;  %v811_v45 = vld [vmem:[%s3228_s3 + $0x3d8] sm:$0xff] }
  0xd6   :  { %1116 = vmatpush.msrb.mxu3 %v920_v58  ;;  %1097 = vmatpush.msrb.mxu2 %v880_v61  ;;  %v769_v55 = vld [vmem:[%s3228_s3 + $0x288] sm:$0xff]  ;;  %v293_v58 = vperm.slane %v2430_v60, 5  ;;  %v807_v61 = vld [vmem:[%s3228_s3 + $0x3b8] sm:$0xff] }
  0xd7   :  { %1131 = vmatpush.msra.mxu0 %v713_v47  ;;  %1154 = vmatpush.msra.mxu1 %v745_v49  ;;  %v725_v47 = vld [vmem:[%s3228_s3 + $0x128] sm:$0xff]  ;;  %v771_v49 = vld [vmem:[%s3228_s3 + $0x298] sm:$0xff] }
  0xd8   :  { %1117 = vmatpush.msrb.mxu3 %v918_v63  ;;  %1174 = vmatpush.msra.mxu2 %v783_v1  ;;  %v721_v63 = vld [vmem:[%s3228_s3 + $0x108] sm:$0xff] }
  0xd9   :  { %1132 = vmatpush.msra.mxu0 %v711_v51  ;;  %1155 = vmatpush.msra.mxu1 %v743_v54  ;;  %v691_v51 = vld [vmem:[%s3228_s3 + $0x18] sm:$0xff]  ;;  %v805_v1 = vld [vmem:[%s3228_s3 + $0x3a8] sm:$0xff] }
  0xda   :  { %1118 = vmatpush.msrb.mxu3 %v916_v3  ;;  %1175 = vmatpush.msra.mxu2 %v781_v6  ;;  %v723_v54 = vld [vmem:[%s3228_s3 + $0x118] sm:$0xff]  ;;  %v765_v6 = vld [vmem:[%s3228_s3 + $0x268] sm:$0xff] }
  0xdb   :  { %1133 = vmatpush.msra.mxu0 %v709_v57  ;;  %1156 = vmatpush.msra.mxu1 %v741_v59  ;;  %v689_v59 = vld [vmem:[%s3228_s3 + $0x8] sm:$0xff] }
  0xdc   :  { %v416_v7 = vpop.f32.mrf.mxu0  ;;  %1119 = vmatpush.msrb.mxu3 %v914_v9  ;;  %1176 = vmatpush.msra.mxu2 %v779_v13  ;;  %v845_v9 = vld [vmem:[%s3228_s3 + $0x4e8] sm:$0xff] }
  0xdd   :  { %1134 = vmatpush.msra.mxu0 %v707_v62  ;;  %1157 = vmatpush.msra.mxu1 %v739_v0  ;;  %v417_v5 = vadd.f32 %v416_v7, %v290_v56  ;;  %v462_v10 = vpop.f32.mrf.mxu2  ;;  %v912_v56 = vld [vmem:[%s3228_s3 + $0x700] sm:$0xff]  ;;  %v767_v0 = vld [vmem:[%s3228_s3 + $0x278] sm:$0xff] }
  0xde   :  { %v439_v30 = vpop.f32.mrf.mxu1  ;;  %v463_v15 = vadd.f32 %v462_v10, %v291_v11  ;;  %v777_v11 = vld [vmem:[%s3228_s3 + $0x2c8] sm:$0xff]  ;;  %1120 = vmatpush.msrb.mxu3 %v912_v56 }
  0xdf   :  { %1135 = vmatpush.msra.mxu0 %v705_v2  ;;  %1158 = vmatpush.msra.mxu1 %v737_v4  ;;  %v2788_v18 = vadd.f32 %v439_v30, %v417_v5  ;;  %v847_v4 = vld [vmem:[%s3228_s3 + $0x4f8] sm:$0xff] }
  0xe0   :  { %v485_v22 = vpop.f32.mrf.mxu3  ;;  %1177 = vmatpush.msra.mxu2 %v777_v11  ;;  %1197 = vmatpush.msra.mxu3 %v815_v26  ;;  %v763_v5 = vld [vmem:[%s3228_s3 + $0x258] sm:$0xff] }
  0xe1   :  { %1136 = vmatpush.msra.mxu0 %v703_v8  ;;  %1159 = vmatpush.msra.mxu1 %v735_v12  ;;  %v682_v48 = vmax.f32 %v2788_v18, 0.0  ;;  %v2800_v35 = vadd.f32 %v485_v22, %v463_v15  ;;  %v803_v8 = vld [vmem:[%s3228_s3 + $0x398] sm:$0xff]  ;;  %v801_v12 = vld [vmem:[%s3228_s3 + $0x388] sm:$0xff] }
  0xe2   :  { %1178 = vmatpush.msra.mxu2 %v775_v31  ;;  %1198 = vmatpush.msra.mxu3 %v813_v39  ;;  %v843_v15 = vld [vmem:[%s3228_s3 + $0x4d8] sm:$0xff]  ;;  %v841_v22 = vld [vmem:[%s3228_s3 + $0x4c8] sm:$0xff] }
  0xe3   :  { %1137 = vmatpush.msra.mxu0 %v701_v17  ;;  %1160 = vmatpush.msra.mxu1 %v733_v20  ;;  %v683_v28 = vmax.f32 %v2800_v35, 0.0  ;;  %v761_v17 = vld [vmem:[%s3228_s3 + $0x248] sm:$0xff]  ;;  %v799_v20 = vld [vmem:[%s3228_s3 + $0x378] sm:$0xff] }
  0xe4   :  { %1009 = vmatmul.f32.gmra.mxu2 %v682_v48  ;;  %1199 = vmatpush.msra.mxu3 %v811_v45  ;;  %v759_v26 = vld [vmem:[%s3228_s3 + $0x238] sm:$0xff]  ;;  %v881_v18 = vld [vmem:[%s3228_s3 + $0x608] sm:$0xff] }
  0xe5   :  { %1138 = vmatpush.msra.mxu0 %v699_v23  ;;  %1161 = vmatpush.msra.mxu1 %v731_v25  ;;  %v879_v23 = vld [vmem:[%s3228_s3 + $0x5f8] sm:$0xff] }
  0xe6   :  { %1032 = vmatmul.f32.gmra.mxu3 %v683_v28  ;;  %1179 = vmatpush.msra.mxu2 %v773_v41  ;;  %v839_v31 = vld [vmem:[%s3228_s3 + $0x4b8] sm:$0xff]  ;;  %v837_v41 = vld [vmem:[%s3228_s3 + $0x4a8] sm:$0xff] }
  0xe7   :  { %1139 = vmatpush.msra.mxu0 %v697_v53  ;;  %1162 = vmatpush.msra.mxu1 %v729_v29  ;;  %v505_v46 = vpop.f32.mrf.mxu0  ;;  %v797_v53 = vld [vmem:[%s3228_s3 + $0x368] sm:$0xff] }
  0xe8   :  { %v506_v50 = vadd.f32 %v505_v46, %v292_v34  ;;  %1180 = vmatpush.msra.mxu2 %v771_v49  ;;  %1200 = vmatpush.msra.mxu3 %v809_v52  ;;  %v795_v46 = vld [vmem:[%s3228_s3 + $0x358] sm:$0xff]  ;;  %v793_v52 = vld [vmem:[%s3228_s3 + $0x348] sm:$0xff] }
  0xe9   :  { %1140 = vmatpush.msra.mxu0 %v695_v36  ;;  %1163 = vmatpush.msra.mxu1 %v727_v40  ;;  %v757_v36 = vld [vmem:[%s3228_s3 + $0x228] sm:$0xff]  ;;  %v835_v49 = vld [vmem:[%s3228_s3 + $0x498] sm:$0xff] }
  0xea   :  { %v528_v57 = vpop.f32.mrf.mxu1  ;;  %1181 = vmatpush.msra.mxu2 %v769_v55  ;;  %1201 = vmatpush.msra.mxu3 %v807_v61 }
  0xeb   :  { %1141 = vmatpush.msra.mxu0 %v693_v43  ;;  %1164 = vmatpush.msra.mxu1 %v725_v47  ;;  %v2868_v62 = vadd.f32 %v528_v57, %v506_v50  ;;  %v875_v43 = vld [vmem:[%s3228_s3 + $0x5d8] sm:$0xff]  ;;  %v873_v50 = vld [vmem:[%s3228_s3 + $0x5c8] sm:$0xff] }
  0xec   :  { %1182 = vmatpush.msra.mxu2 %v767_v0  ;;  %1202 = vmatpush.msra.mxu3 %v805_v1  ;;  %v755_v47 = vld [vmem:[%s3228_s3 + $0x218] sm:$0xff]  ;;  %v833_v57 = vld [vmem:[%s3228_s3 + $0x488] sm:$0xff] }
  0xed   :  { %1142 = vmatpush.msra.mxu0 %v691_v51  ;;  %1165 = vmatpush.msra.mxu1 %v723_v54  ;;  %v676_v2 = vmax.f32 %v2868_v62, 0.0  ;;  %v551_v3 = vpop.f32.mrf.mxu2  ;;  %v753_v54 = vld [vmem:[%s3228_s3 + $0x208] sm:$0xff]  ;;  %v907_v62 = vld [vmem:[%s3228_s3 + $0x6d8] sm:$0xff] }
  0xee   :  { %v552_v7 = vadd.f32 %v551_v3, %v293_v58  ;;  %1183 = vmatpush.msra.mxu2 %v765_v6  ;;  %1203 = vmatpush.msra.mxu3 %v803_v8  ;;  %v869_v0 = vld [vmem:[%s3228_s3 + $0x5a8] sm:$0xff]  ;;  %v787_v6 = vld [vmem:[%s3228_s3 + $0x318] sm:$0xff] }
  0xef   :  { %1143 = vmatpush.msra.mxu0 %v689_v59  ;;  %1166 = vmatpush.msra.mxu1 %v721_v63  ;;  %v791_v59 = vld [vmem:[%s3228_s3 + $0x338] sm:$0xff]  ;;  %v789_v1 = vld [vmem:[%s3228_s3 + $0x328] sm:$0xff] }
  0xf0   :  { %1052 = vmatmul.f32.vlgmr.msrb.gmra.mxu0 %v676_v2  ;;  %v574_v10 = vpop.f32.mrf.mxu3  ;;  %1184 = vmatpush.msra.mxu2 %v763_v5  ;;  %v831_v63 = vld [vmem:[%s3228_s3 + $0x478] sm:$0xff]  ;;  %v829_v3 = vld [vmem:[%s3228_s3 + $0x468] sm:$0xff] }
  0xf1   :  { %1220 = vmatpush.msrb.mxu0 %v847_v4  ;;  %v508_v13 = vpop.f32.mrf.mxu0  ;;  %v2902_v30 = vadd.f32 %v574_v10, %v552_v7  ;;  %1204 = vmatpush.msra.mxu3 %v801_v12  ;;  %v867_v4 = vld [vmem:[%s3228_s3 + $0x598] sm:$0xff]  ;;  %v865_v8 = vld [vmem:[%s3228_s3 + $0x588] sm:$0xff] }
  0xf2   :  { %v509_v56 = vadd.f32 %v508_v13, %v292_v34  ;;  %1185 = vmatpush.msra.mxu2 %v761_v17  ;;  %v877_v34 = vld [vmem:[%s3228_s3 + $0x5e8] sm:$0xff]  ;;  %v827_v7 = vld [vmem:[%s3228_s3 + $0x458] sm:$0xff] }
  0xf3   :  { %1221 = vmatpush.msrb.mxu0 %v845_v9  ;;  %v677_v11 = vmax.f32 %v2902_v30, 0.0  ;;  %1205 = vmatpush.msra.mxu3 %v799_v20  ;;  %v785_v9 = vld [vmem:[%s3228_s3 + $0x308] sm:$0xff]  ;;  %v823_v5 = vld [vmem:[%s3228_s3 + $0x438] sm:$0xff] }
  0xf4   :  { %v531_v25 = vpop.f32.mrf.mxu1  ;;  %1186 = vmatpush.msra.mxu2 %v759_v26  ;;  %v861_v10 = vld [vmem:[%s3228_s3 + $0x568] sm:$0xff]  ;;  %v859_v13 = vld [vmem:[%s3228_s3 + $0x558] sm:$0xff] }
  0xf5   :  { %1222 = vmatpush.msrb.mxu0 %v843_v15  ;;  %v2928_v29 = vadd.f32 %v531_v25, %v509_v56  ;;  %1075 = vmatmul.f32.vlgmr.msrb.gmra.mxu1 %v677_v11  ;;  %v821_v12 = vld [vmem:[%s3228_s3 + $0x428] sm:$0xff]  ;;  %v294_v15 = vperm.slane %v2430_v60, 6  ;;  %v295_v25 = vperm.slane %v2430_v60, 7  ;;  %v851_v26 = vld [vmem:[%s3228_s3 + $0x518] sm:$0xff] }
  0xf6   :  { %1243 = vmatpush.msrb.mxu1 %v879_v23  ;;  %1206 = vmatpush.msra.mxu3 %v797_v53  ;;  %v817_v56 = vld [vmem:[%s3228_s3 + $0x408] sm:$0xff] }
  0xf7   :  { %1223 = vmatpush.msrb.mxu0 %v841_v22  ;;  %v684_v39 = vmax.f32 %v2928_v29, 0.0  ;;  %v554_v40 = vpop.f32.mrf.mxu2  ;;  %1187 = vmatpush.msra.mxu2 %v757_v36  ;;  %v853_v22 = vld [vmem:[%s3228_s3 + $0x528] sm:$0xff] }
  0xf8   :  { %v555_v45 = vadd.f32 %v554_v40, %v293_v58  ;;  %1244 = vmatpush.msrb.mxu1 %v877_v34  ;;  %v871_v58 = vld [vmem:[%s3228_s3 + $0x5b8] sm:$0xff]  ;;  %1207 = vmatpush.msra.mxu3 %v795_v46  ;;  %v849_v60 = vld [vmem:[%s3228_s3 + $0x508] sm:$0xff] }
  0xf9   :  { %1224 = vmatpush.msrb.mxu0 %v839_v31  ;;  %1188 = vmatpush.msra.mxu2 %v755_v47  ;;  %v911_v31 = vld [vmem:[%s3228_s3 + $0x6f8] sm:$0xff]  ;;  %v905_v47 = vld [vmem:[%s3228_s3 + $0x6c8] sm:$0xff] }
  0xfa   :  { %1055 = vmatmul.f32.gmra.mxu0 %v684_v39  ;;  %v577_v51 = vpop.f32.mrf.mxu3  ;;  %1245 = vmatpush.msrb.mxu1 %v875_v43  ;;  %v901_v30 = vld [vmem:[%s3228_s3 + $0x6a8] sm:$0xff] }
  0xfb   :  { %1225 = vmatpush.msrb.mxu0 %v837_v41  ;;  %v2970_v55 = vadd.f32 %v577_v51, %v555_v45  ;;  %1208 = vmatpush.msra.mxu3 %v793_v52  ;;  %v903_v51 = vld [vmem:[%s3228_s3 + $0x6b8] sm:$0xff]  ;;  %v941_v52 = vld [vmem:[%s3228_s3 + $0x7e8] sm:$0xff] }
  0xfc   :  { %1246 = vmatpush.msrb.mxu1 %v873_v50  ;;  %1189 = vmatpush.msra.mxu2 %v753_v54  ;;  %v937_v29 = vld [vmem:[%s3228_s3 + $0x7c8] sm:$0xff] }
  0xfd   :  { %1226 = vmatpush.msrb.mxu0 %v835_v49  ;;  %v685_v61 = vmax.f32 %v2970_v55, 0.0  ;;  %1209 = vmatpush.msra.mxu3 %v791_v59  ;;  %v943_v49 = vld [vmem:[%s3228_s3 + $0x7f8] sm:$0xff] }
  0xfe   :  { %1247 = vmatpush.msrb.mxu1 %v871_v58  ;;  %v931_v55 = vld [vmem:[%s3228_s3 + $0x798] sm:$0xff] }
  0xff   :  { %1227 = vmatpush.msrb.mxu0 %v833_v57  ;;  %1078 = vmatmul.f32.gmra.mxu1 %v685_v61 }
 0x100   :  { %1248 = vmatpush.msrb.mxu1 %v869_v0  ;;  %1210 = vmatpush.msra.mxu3 %v789_v1  ;;  %v897_v0 = vld [vmem:[%s3228_s3 + $0x688] sm:$0xff]  ;;  %v935_v1 = vld [vmem:[%s3228_s3 + $0x7b8] sm:$0xff] }
 0x101   :  { %1228 = vmatpush.msrb.mxu0 %v831_v63  ;;  %v899_v63 = vld [vmem:[%s3228_s3 + $0x698] sm:$0xff] }
 0x102   :  { %1144 = vmatmul.f32.vlgmr.msra.gmra.mxu0 %v672_v24  ;;  %1249 = vmatpush.msrb.mxu1 %v867_v4  ;;  %v863_v24 = vld [vmem:[%s3228_s3 + $0x578] sm:$0xff]  ;;  %v933_v4 = vld [vmem:[%s3228_s3 + $0x7a8] sm:$0xff] }
 0x103   :  { %1229 = vmatpush.msrb.mxu0 %v829_v3  ;;  %1211 = vmatpush.msra.mxu3 %v787_v6  ;;  %v895_v3 = vld [vmem:[%s3228_s3 + $0x678] sm:$0xff]  ;;  %v893_v6 = vld [vmem:[%s3228_s3 + $0x668] sm:$0xff] }
 0x104   :  { %1250 = vmatpush.msrb.mxu1 %v865_v8  ;;  %v887_v8 = vld [vmem:[%s3228_s3 + $0x638] sm:$0xff] }
 0x105   :  { %1230 = vmatpush.msrb.mxu0 %v827_v7  ;;  %1212 = vmatpush.msra.mxu3 %v785_v9  ;;  %v929_v7 = vld [vmem:[%s3228_s3 + $0x788] sm:$0xff] }
 0x106   :  { %1251 = vmatpush.msrb.mxu1 %v863_v24  ;;  %v925_v9 = vld [vmem:[%s3228_s3 + $0x768] sm:$0xff] }
 0x107   :  { %1231 = vmatpush.msrb.mxu0 %v825_v21  ;;  %1167 = vmatmul.f32.vlgmr.msra.gmra.mxu1 %v673_v42  ;;  %v857_v42 = vld [vmem:[%s3228_s3 + $0x548] sm:$0xff] }
 0x108   :  { %1252 = vmatpush.msrb.mxu1 %v861_v10  ;;  %v885_v21 = vld [vmem:[%s3228_s3 + $0x628] sm:$0xff]  ;;  %v915_v10 = vld [vmem:[%s3228_s3 + $0x718] sm:$0xff] }
 0x109   :  { %1232 = vmatpush.msrb.mxu0 %v823_v5  ;;  %v921_v24 = vld [vmem:[%s3228_s3 + $0x748] sm:$0xff] }
 0x10a   :  { %1147 = vmatmul.f32.gmra.mxu0 %v680_v27  ;;  %1253 = vmatpush.msrb.mxu1 %v859_v13  ;;  %v917_v5 = vld [vmem:[%s3228_s3 + $0x728] sm:$0xff] }
 0x10b   :  { %1233 = vmatpush.msrb.mxu0 %v821_v12  ;;  %v597_v17 = vpop.f32.mrf.mxu0  ;;  %v913_v12 = vld [vmem:[%s3228_s3 + $0x708] sm:$0xff] }
 0x10c   :  { %v598_v27 = vadd.f32 %v597_v17, %v294_v15  ;;  %1254 = vmatpush.msrb.mxu1 %v857_v42 }
 0x10d   :  { %1234 = vmatpush.msrb.mxu0 %v819_v38  ;;  %v620_v20 = vpop.f32.mrf.mxu1 }
 0x10e   :  { %v3051_v23 = vadd.f32 %v620_v20, %v598_v27  ;;  %1255 = vmatpush.msrb.mxu1 %v855_v16 }
 0x10f   :  { %1235 = vmatpush.msrb.mxu0 %v817_v56  ;;  %1170 = vmatmul.f32.gmra.mxu1 %v681_v44  ;;  %v909_v44 = vld [vmem:[%s3228_s3 + $0x6e8] sm:$0xff] }
 0x110   :  { %v678_v53 = vmax.f32 %v3051_v23, 0.0  ;;  %1256 = vmatpush.msrb.mxu1 %v853_v22 }
 0x111   :  { %v643_v34 = vpop.f32.mrf.mxu2 }
 0x112   :  { %1236 = vmatmul.f32.vlgmr.msrb.gmra.mxu0 %v676_v2  ;;  %v644_v32 = vadd.f32 %v643_v34, %v295_v25  ;;  %1098 = vmatmul.f32.vlgmr.msrb.gmra.mxu2 %v678_v53 }
 0x113   :  { %1257 = vmatpush.msrb.mxu1 %v851_v26  ;;  %v600_v36 = vpop.f32.mrf.mxu0  ;;  %v666_v40 = vpop.f32.mrf.mxu3  ;;  %1266 = vmatpush.msrb.mxu2 %v911_v31 }
 0x114   :  { %v601_v41 = vadd.f32 %v600_v36, %v294_v15  ;;  %v3073_v43 = vadd.f32 %v666_v40, %v644_v32 }
 0x115   :  { %1258 = vmatpush.msrb.mxu1 %v849_v60  ;;  %v623_v2 = vpop.f32.mrf.mxu1  ;;  %1267 = vmatpush.msrb.mxu2 %v909_v44 }
 0x116   :  { %v679_v45 = vmax.f32 %v3073_v43, 0.0  ;;  %v3079_v46 = vadd.f32 %v623_v2, %v601_v41 }
 0x117   :  { %1268 = vmatpush.msrb.mxu2 %v907_v62  ;;  %1259 = vmatmul.f32.vlgmr.msrb.gmra.mxu1 %v677_v11  ;;  %v939_v11 = vld [vmem:[%s3228_s3 + $0x7d8] sm:$0xff] }
 0x118   :  { %v686_v50 = vmax.f32 %v3079_v46, 0.0  ;;  %1121 = vmatmul.f32.vlgmr.msrb.gmra.mxu3 %v679_v45 }
 0x119   :  { %v646_v54 = vpop.f32.mrf.mxu2  ;;  %1269 = vmatpush.msrb.mxu2 %v905_v47  ;;  %1289 = vmatpush.msrb.mxu3 %v943_v49 }
 0x11a   :  { %v647_v57 = vadd.f32 %v646_v54, %v295_v25  ;;  %1101 = vmatmul.f32.gmra.mxu2 %v686_v50  ;;  %1239 = vmatmul.f32.gmra.mxu0 %v684_v39 }
 0x11b   :  { %v669_v58 = vpop.f32.mrf.mxu3  ;;  %1270 = vmatpush.msrb.mxu2 %v903_v51  ;;  %1290 = vmatpush.msrb.mxu3 %v941_v52 }
 0x11c   :  { %v670_v59 = vadd.f32 %v669_v58, %v647_v57 }
 0x11d   :  { %1271 = vmatpush.msrb.mxu2 %v901_v30  ;;  %1291 = vmatpush.msrb.mxu3 %v939_v11 }
 0x11e   :  { %v687_v39 = vmax.f32 %v670_v59, 0.0 }
 0x11f   :  { %1272 = vmatpush.msrb.mxu2 %v899_v63  ;;  %1292 = vmatpush.msrb.mxu3 %v937_v29 }
 0x120   :  { %1124 = vmatmul.f32.gmra.mxu3 %v687_v39  ;;  %1262 = vmatmul.f32.gmra.mxu1 %v685_v61  ;;  %v891_v61 = vld [vmem:[%s3228_s3 + $0x658] sm:$0xff] }
 0x121   :  { %1273 = vmatpush.msrb.mxu2 %v897_v0  ;;  %1293 = vmatpush.msrb.mxu3 %v935_v1 }
 0x122   :  { %1190 = vmatmul.f32.vlgmr.msra.gmra.mxu2 %v674_v19  ;;  %v927_v19 = vld [vmem:[%s3228_s3 + $0x778] sm:$0xff] }
 0x123   :  { %1274 = vmatpush.msrb.mxu2 %v895_v3  ;;  %1294 = vmatpush.msrb.mxu3 %v933_v4  ;;  %v1316_v3 = vld [vmem:[%s3230_s4] sm:$0x3] }
 0x125   :  { %1275 = vmatpush.msrb.mxu2 %v893_v6  ;;  %1295 = vmatpush.msrb.mxu3 %v931_v55 }
 0x127   :  { %1276 = vmatpush.msrb.mxu2 %v891_v61  ;;  %1296 = vmatpush.msrb.mxu3 %v929_v7 }
 0x128   :  { %1213 = vmatmul.f32.vlgmr.msra.gmra.mxu3 %v675_v37  ;;  %v883_v37 = vld [vmem:[%s3228_s3 + $0x618] sm:$0xff] }
 0x129   :  { %1277 = vmatpush.msrb.mxu2 %v889_v14  ;;  %1297 = vmatpush.msrb.mxu3 %v927_v19  ;;  %v1318_v14 = vperm.slane %v1316_v3, 0  ;;  %v1418_v19 = vld [vmem:[%s3227_s0] sm:$0xff] }
 0x12a   :  { %1193 = vmatmul.f32.gmra.mxu2 %v682_v48  ;;  %v919_v48 = vld [vmem:[%s3228_s3 + $0x738] sm:$0xff] }
 0x12b   :  { %1278 = vmatpush.msrb.mxu2 %v887_v8  ;;  %1298 = vmatpush.msrb.mxu3 %v925_v9 }
 0x12d   :  { %1279 = vmatpush.msrb.mxu2 %v885_v21  ;;  %1299 = vmatpush.msrb.mxu3 %v923_v33  ;;  %v1319_v33 = vperm.slane %v1316_v3, 1 }
 0x12f   :  { %1280 = vmatpush.msrb.mxu2 %v883_v37  ;;  %1300 = vmatpush.msrb.mxu3 %v921_v24  ;;  %v1419_v24 = vld [vmem:[%s3227_s0 + $0x8] sm:$0xff] }
 0x130   :  { %1216 = vmatmul.f32.gmra.mxu3 %v683_v28 }
 0x131   :  { %1281 = vmatpush.msrb.mxu2 %v881_v18  ;;  %1301 = vmatpush.msrb.mxu3 %v919_v48 }
 0x132   :  { %1282 = vmatmul.f32.vlgmr.msrb.gmra.mxu2 %v678_v53 }
 0x133   :  { %1302 = vmatpush.msrb.mxu3 %v917_v5 }
 0x135   :  { %1303 = vmatpush.msrb.mxu3 %v915_v10  ;;  %v961_v35 = vpop.f32.mrf.mxu0 }
 0x137   :  { %1304 = vmatpush.msrb.mxu3 %v913_v12 }
 0x138   :  { %1305 = vmatmul.f32.vlgmr.msrb.gmra.mxu3 %v679_v45 }
 0x13a   :  { %1285 = vmatmul.f32.gmra.mxu2 %v686_v50 }
 0x13b   :  { %v984_v28 = vpop.f32.mrf.mxu1 }
 0x13c   :  { %v985_v44 = vadd.f32 %v984_v28, %v961_v35 }
 0x140   :  { %1308 = vmatmul.f32.gmra.mxu3 %v687_v39 }
 0x147   :  { %v964_v13 = vpop.f32.mrf.mxu0 }
 0x14d   :  { %v987_v38 = vpop.f32.mrf.mxu1 }
 0x14e   :  { %v988_v45 = vadd.f32 %v987_v38, %v964_v13 }
 0x14f   :  { %v1007_v15 = vpop.f32.mrf.mxu2 }
 0x150   :  { %v1008_v62 = vadd.f32 %v1007_v15, %v985_v44 }
 0x155   :  { %v1030_v17 = vpop.f32.mrf.mxu3 }
 0x156   :  { %v1031_v46 = vadd.f32 %v1030_v17, %v1008_v62 }
 0x167   :  { %v1010_v56 = vpop.f32.mrf.mxu2 }
 0x168   :  { %v1011_v51 = vadd.f32 %v1010_v56, %v988_v45 }
 0x169   :  { %v1033_v27 = vpop.f32.mrf.mxu3 }
 0x16a   :  { %v1034_v29 = vadd.f32 %v1033_v27, %v1011_v51 }
 0x16d   :  { %v1053_v42 = vpop.f32.mrf.mxu0 }
 0x16e   :  { %v1054_v50 = vadd.f32 %v1053_v42, %v1031_v46  ;;  %v1420_v42 = vld [vmem:[%s3227_s0 + $0x10] sm:$0xff] }
 0x172   :  { %v1076_v16 = vpop.f32.mrf.mxu1 }
 0x173   :  { %v1077_v54 = vadd.f32 %v1076_v16, %v1054_v50  ;;  %v1421_v16 = vld [vmem:[%s3227_s0 + $0x18] sm:$0xff] }
 0x177   :  { %v1056_v20 = vpop.f32.mrf.mxu0 }
 0x178   :  { %v1057_v4 = vadd.f32 %v1056_v20, %v1034_v29 }
 0x17c   :  { %v1079_v23 = vpop.f32.mrf.mxu1 }
 0x17d   :  { %v1080_v55 = vadd.f32 %v1079_v23, %v1057_v4 }
 0x17f   :  { %v1145_v26 = vpop.f32.mrf.mxu0 }
 0x184   :  { %v1168_v31 = vpop.f32.mrf.mxu1 }
 0x185   :  { %v1169_v41 = vadd.f32 %v1168_v31, %v1145_v26 }
 0x187   :  { %v1148_v32 = vpop.f32.mrf.mxu0 }
 0x18c   :  { %v1171_v36 = vpop.f32.mrf.mxu1 }
 0x18d   :  { %v1172_v57 = vadd.f32 %v1171_v36, %v1148_v32 }
 0x18f   :  { %v1237_v49 = vpop.f32.mrf.mxu0 }
 0x194   :  { %v1260_v11 = vpop.f32.mrf.mxu1 }
 0x195   :  { %v1099_v22 = vpop.f32.mrf.mxu2 }
 0x196   :  { %v1100_v59 = vadd.f32 %v1099_v22, %v1077_v54 }
 0x197   :  { %v1240_v61 = vpop.f32.mrf.mxu0 }
 0x19b   :  { %v1122_v25 = vpop.f32.mrf.mxu3 }
 0x19c   :  { %v1123_v39 = vadd.f32 %v1122_v25, %v1100_v59  ;;  %v1422_v25 = vmov 256.0  }
 0x19d   :  { %v1102_v53 = vpop.f32.mrf.mxu2  ;;  %v1263_v48 = vpop.f32.mrf.mxu1  ;;  %1412 = vrcp.f32 %v1422_v25 }
 0x19e   :  { %v1312_v8 = vadd.f32 %v1418_v19, %v1123_v39  ;;  %v1103_v37 = vadd.f32 %v1102_v53, %v1080_v55 }
 0x1a0   :  { %v1322_v35 = vadd.f32 %v1318_v14, %v1312_v8 }
 0x1a3   :  { %v1125_v34 = vpop.f32.mrf.mxu3  ;;  %v1413_v26 = vpop.eup %1412 }
 0x1a4   :  { %v1126_v10 = vadd.f32 %v1125_v34, %v1103_v37  ;;  %v1333_v53 = vmul.f32 256.0, %v1413_v26  ;;  %vm1337_vm0 = vweird.f32 %v1413_v26 }
 0x1a5   :  { %v1191_v60 = vpop.f32.mrf.mxu2 }
 0x1a6   :  { %v1192_v2 = vadd.f32 %v1191_v60, %v1169_v41  ;;  %v1314_v17 = vadd.f32 %v1420_v42, %v1126_v10  ;;  %v1334_v31 = vsub.f32 1.0, %v1333_v53 }
 0x1a8   :  { %v1324_v20 = vadd.f32 %v1318_v14, %v1314_v17  ;;  %v1335_v34 = vmul.f32 %v1413_v26, %v1334_v31 }
 0x1aa   :  { %v1336_v60 = vadd.f32 %v1413_v26, %v1335_v34 }
 0x1ab   :  { %v1214_v40 = vpop.f32.mrf.mxu3 }
 0x1ac   :  { %v1215_v47 = vadd.f32 %v1214_v40, %v1192_v2  ;;  %v1338_v32 = vsel %vm1337_vm0, %v1413_v26, %v1336_v60 }
 0x1ad   :  { %v1194_v43 = vpop.f32.mrf.mxu2 }
 0x1ae   :  { %v1238_v30 = vadd.f32 %v1237_v49, %v1215_v47  ;;  %v1195_v63 = vadd.f32 %v1194_v43, %v1172_v57 }
 0x1b0   :  { %v1261_v1 = vadd.f32 %v1260_v11, %v1238_v30 }
 0x1b3   :  { %v1217_v52 = vpop.f32.mrf.mxu3 }
 0x1b4   :  { %v1218_v0 = vadd.f32 %v1217_v52, %v1195_v63 }
 0x1b5   :  { %v1283_v58 = vpop.f32.mrf.mxu2 }
 0x1b6   :  { %v1284_v6 = vadd.f32 %v1283_v58, %v1261_v1  ;;  %v1241_v9 = vadd.f32 %v1240_v61, %v1218_v0  ;;  %v1383_v1 = vld [vmem:[%s3231_s5] sm:$0x3] }
 0x1b7   :  { %v1386_v14 = vperm.slane %v1383_v1, 1 }
 0x1b8   :  { %v1264_v12 = vadd.f32 %v1263_v48, %v1241_v9 }
 0x1bb   :  { %v1306_v7 = vpop.f32.mrf.mxu3 }
 0x1bc   :  { %v1307_v21 = vadd.f32 %v1306_v7, %v1284_v6  ;;  %v1393_v6 = vld [vmem:[%s3232_s6] sm:$0x3]  ;;  %v1385_v7 = vperm.slane %v1383_v1, 0 }
 0x1bd   :  { %v1286_v5 = vpop.f32.mrf.mxu2  ;;  %v1395_v9 = vperm.slane %v1393_v6, 0 }
 0x1be   :  { %v1313_v18 = vadd.f32 %v1419_v24, %v1307_v21  ;;  %v1287_v13 = vadd.f32 %v1286_v5, %v1264_v12  ;;  %v1396_v21 = vperm.slane %v1393_v6, 1 }
 0x1c0   :  { %v1323_v28 = vadd.f32 %v1319_v33, %v1313_v18 }
 0x1c2   :  { %v1326_v15 = vadd.f32 %v1323_v28, %v1322_v35 }
 0x1c3   :  { %v1309_v38 = vpop.f32.mrf.mxu3 }
 0x1c4   :  { %v1310_v56 = vadd.f32 %v1309_v38, %v1287_v13  ;;  %1327 = vadd.xlane.f32.xlu0 %v1326_v15 }
 0x1c6   :  { %v1315_v27 = vadd.f32 %v1421_v16, %v1310_v56 }
 0x1c8   :  { %v1325_v22 = vadd.f32 %v1319_v33, %v1315_v27 }
 0x1ca   :  { %v1329_v23 = vadd.f32 %v1325_v22, %v1324_v20 }
 0x1cc   :  { %1330 = vadd.xlane.f32.xlu0 %v1329_v23 }
 0x237   :  { %v1328_v44 = vpop.xlane.xlu0 %1327 }
 0x238   :  { %v1339_v36 = vmul.f32 %v1338_v32, %v1328_v44 }
 0x23a   :  { %v1341_v40 = vsub.f32 %v1322_v35, %v1339_v36  ;;  %v1342_v41 = vsub.f32 %v1323_v28, %v1339_v36 }
 0x23c   :  { %v1345_v43 = vmul.f32 %v1341_v40, %v1341_v40  ;;  %v1346_v62 = vmul.f32 %v1342_v41, %v1342_v41 }
 0x23e   :  { %v1349_v2 = vadd.f32 %v1346_v62, %v1345_v43 }
 0x23f   :  { %v1331_v45 = vpop.xlane.xlu0 %1330 }
 0x240   :  { %v1340_v46 = vmul.f32 %v1338_v32, %v1331_v45  ;;  %1350 = vadd.xlane.f32.xlu1 %v1349_v2 }
 0x242   :  { %v1343_v47 = vsub.f32 %v1324_v20, %v1340_v46  ;;  %v1344_v49 = vsub.f32 %v1325_v22, %v1340_v46 }
 0x244   :  { %v1347_v50 = vmul.f32 %v1343_v47, %v1343_v47  ;;  %v1348_v51 = vmul.f32 %v1344_v49, %v1344_v49 }
 0x246   :  { %v1352_v52 = vadd.f32 %v1348_v51, %v1347_v50 }
 0x248   :  { %1353 = vadd.xlane.f32.xlu1 %v1352_v52 }
 0x2b3   :  { %v1351_v54 = vpop.xlane.xlu1 %1350 }
 0x2b4   :  { %v1355_v57 = vmul.f32 %v1351_v54, %v1338_v32 }
 0x2b6   :  { %v1357_v30 = vadd.f32 1e-05, %v1355_v57 }
 0x2b8   :  { %1414 = vrsqrt.f32 %v1357_v30  ;;  %vm1365_vm2 = vweird.f32 %v1357_v30 }
 0x2bb   :  { %v1354_v11 = vpop.xlane.xlu1 %1353 }
 0x2bc   :  { %v1356_v58 = vmul.f32 %v1354_v11, %v1338_v32 }
 0x2be   :  { %v1415_v59 = vpop.eup %1414  ;;  %v1358_v63 = vadd.f32 1e-05, %v1356_v58 }
 0x2bf   :  { %v1360_v29 = vmul.f32 %v1415_v59, %v1357_v30  ;;  %vm1366_vm1 = vweird.f32 %v1415_v59 }
 0x2c0   :  { %1416 = vrsqrt.f32 %v1358_v63  ;;  %vm1367_vm3 = vmor %vm1365_vm2, %vm1366_vm1  ;;  %vm1375_vm5 = vweird.f32 %v1358_v63 }
 0x2c1   :  { %v1361_v39 = vmul.f32 %v1415_v59, %v1360_v29 }
 0x2c3   :  { %v1362_v0 = vmul.f32 0.5, %v1361_v39 }
 0x2c5   :  { %v1363_v3 = vsub.f32 1.5, %v1362_v0 }
 0x2c6   :  { %v1417_v4 = vpop.eup %1416 }
 0x2c7   :  { %v1364_v55 = vmul.f32 %v1415_v59, %v1363_v3  ;;  %v1370_v61 = vmul.f32 %v1417_v4, %v1358_v63  ;;  %vm1376_vm4 = vweird.f32 %v1417_v4 }
 0x2c8   :  { %vm1377_vm6 = vmor %vm1375_vm5, %vm1376_vm4 }
 0x2c9   :  { %v1368_v19 = vsel %vm1367_vm3, %v1415_v59, %v1364_v55  ;;  %v1371_v8 = vmul.f32 %v1417_v4, %v1370_v61 }
 0x2ca   :  { %v1379_v33 = vmul.f32 %v1368_v19, %v1341_v40  ;;  %v1380_v37 = vmul.f32 %v1368_v19, %v1342_v41 }
 0x2cb   :  { %v1372_v24 = vmul.f32 0.5, %v1371_v8 }
 0x2cc   :  { %v1389_v18 = vmul.f32 %v1385_v7, %v1379_v33  ;;  %v1390_v48 = vmul.f32 %v1386_v14, %v1380_v37 }
 0x2cd   :  { %v1373_v5 = vsub.f32 1.5, %v1372_v24 }
 0x2ce   :  { %v1399_v10 = vadd.f32 %v1395_v9, %v1389_v18  ;;  %v1400_v12 = vadd.f32 %v1396_v21, %v1390_v48 }
 0x2cf   :  { %v1374_v35 = vmul.f32 %v1417_v4, %v1373_v5 }
 0x2d0   :  { %1403 = vst [vmem:[%s3233_s7] sm:$0xff] %v1399_v10 }
 0x2d1   :  { %1404 = vst [vmem:[%s3233_s7 + $0x8] sm:$0xff] %v1400_v12  ;;  %v1378_v28 = vsel %vm1377_vm6, %v1417_v4, %v1374_v35 }
 0x2d2   :  { %v1381_v13 = vmul.f32 %v1378_v28, %v1343_v47  ;;  %v1382_v15 = vmul.f32 %v1378_v28, %v1344_v49 }
 0x2d4   :  { %v1391_v38 = vmul.f32 %v1385_v7, %v1381_v13  ;;  %v1392_v42 = vmul.f32 %v1386_v14, %v1382_v15 }
 0x2d6   :  { %v1401_v17 = vadd.f32 %v1395_v9, %v1391_v38  ;;  %v1402_v56 = vadd.f32 %v1396_v21, %v1392_v42 }
 0x2d8   :  { %1405 = vst [vmem:[%s3233_s7 + $0x10] sm:$0xff] %v1401_v17 }
 0x2d9   :  { %1406 = vst [vmem:[%s3233_s7 + $0x18] sm:$0xff] %v1402_v56 }

</bundles_post_ra>
